<compile_context>
chip_gen: v7x
topology: tpu7x:2x2x1
jax: 0.10.0
libtpu: 0.0.40
codegen_flags: <defaults>
</compile_context>

<pallas_src>
import numpy as np
import jax
import jax.numpy as jnp
from jax import lax
from jax.experimental import pallas as pl
from jax.experimental.pallas import tpu as pltpu

H0 = W0 = 16          # input spatial size
N = 2                 # batch used in the test below (kernel works for any N)
KS = 3                # conv kernel size

# channel counts through the net (input, conv1..conv3, fconv1, fconv2)
C0, C1, C2, C3, C4, C5 = 1, 10, 40, 80, 160, 25

# row-flattened grids
GRID1 = H0 * W0       # 256 rows / sample, row = h*16 + w   (input .. pool2)
W8 = 8                # compacted grid width after pool2 (valid region is 8x8)
GRID2 = W8 * W8       # 64 rows / sample,  row = h*8 + w    (conv3 .. end)

# valid spatial sizes through the net (stride-1 'valid' convs / pools):
#   conv1 14, pool1 12, conv2 10, pool2 8, conv3 6, pool3 4


# ----------------------------- in-kernel helpers -----------------------------
def _shift_rows(a, s):
    """b[r] = a[r + s] (zero-filled tail).  `s` is a static Python int.

    On the row-flattened grid this implements a (dh, dw) spatial shift with
    s = dh*row_stride + dw.  The zero tail only ever lands in garbage rows of
    the last sample (proven by the valid-region bounds below)."""
    if s == 0:
        return a
    pad = jnp.zeros((s, a.shape[1]), a.dtype)
    return jnp.concatenate([a[s:, :], pad], axis=0)


def _maxpool3(a, row_stride):
    """3x3 / stride-1 / valid max-pool on the row-flattened grid (separable):
    3 shifts along w (by 1 row) then 3 shifts along h (by row_stride rows)."""
    m = jnp.maximum(jnp.maximum(a, _shift_rows(a, 1)), _shift_rows(a, 2))
    return jnp.maximum(jnp.maximum(m, _shift_rows(m, row_stride)),
                       _shift_rows(m, 2 * row_stride))


def _conv3x3(a, w_ref, b_ref, row_stride):
    """3x3 / stride-1 / valid conv + bias + tanh via an in-kernel im2col slab.

    a: (rows, Cin) f32 activations, row-flattened grid with the given stride.
    w_ref: (9*Cin, Cout) bf16 compact weights, row index = (dh*3+dw)*Cin + cin.
    One fused MXU matmul (bf16 inputs, f32 accumulation); bias/tanh in f32."""
    shifts = [dh * row_stride + dw for dh in range(KS) for dw in range(KS)]
    slab = jnp.concatenate([_shift_rows(a, s) for s in shifts], axis=1)
    y = jnp.dot(slab.astype(jnp.bfloat16), w_ref[...],
                preferred_element_type=jnp.float32)
    return jnp.tanh(y + b_ref[...])


# ----------------------------- Pallas kernel ---------------------------------
def fcnet_kernel(x_ref, m1_ref, b1_ref, m2_ref, b2_ref, m3_ref, b3_ref,
                 mf1_ref, bf1_ref, mf2_ref, bf2_ref, o_ref):
    n = x_ref.shape[0] // GRID1                      # static batch size

    # ---- stride-16 grid: row = s*256 + h*16 + w ----------------------------
    a = jnp.dot(x_ref[...].astype(jnp.bfloat16), m1_ref[...],
                preferred_element_type=jnp.float32)
    a = jnp.tanh(a + b1_ref[...])                    # conv1+tanh (N*256, 10), valid 14x14
    a = _maxpool3(a, W0)                             # pool1              , valid 12x12
    a = _conv3x3(a, m2_ref, b2_ref, W0)              # conv2+tanh (N*256, 40), valid 10x10
    a = _maxpool3(a, W0)                             # pool2              , valid 8x8

    # ---- compact valid 8x8 region onto a stride-8 grid (aligned 8-row copies)
    a = jnp.concatenate(
        [a[s * GRID1 + h * W0: s * GRID1 + h * W0 + W8, :]
         for s in range(n) for h in range(W8)], axis=0)      # (N*64, 40)

    a = _conv3x3(a, m3_ref, b3_ref, W8)              # conv3+tanh (N*64, 80), valid 6x6
    a = _maxpool3(a, W8)                             # pool3             , valid 4x4

    # ---- 1x1 convs = dense matmuls in the row-flattened layout -------------
    y = jnp.dot(a.astype(jnp.bfloat16), mf1_ref[...],
                preferred_element_type=jnp.float32)
    y = jnp.tanh(y + bf1_ref[...])                   # fconv1+tanh (N*64, 160)
    y = jnp.dot(y.astype(jnp.bfloat16), mf2_ref[...],
                preferred_element_type=jnp.float32)
    y = jnp.maximum(y + bf2_ref[...], 0.0)           # fconv2+relu (N*64, 25)

    # ---- spatial sum over the valid 4x4 region per sample (sublane reduce) --
    outs = []
    for s in range(n):
        sub = jnp.concatenate(
            [y[s * GRID2 + h * W8: s * GRID2 + h * W8 + 4, :] for h in range(4)],
            axis=0)                                  # (16, 25)
        outs.append(jnp.sum(sub, axis=0, keepdims=True))
    o_ref[...] = jnp.concatenate(outs, axis=0)       # (N, 25)


# ----------------------------- wrapper ---------------------------------------
def fcnet_forward(x_nchw, params):
    (w1, b1, w2, b2, w3, b3, fw1, fb1, fw2, fb2) = params
    n = x_nchw.shape[0]

    # compact im2col weights: (9*Cin, Cout), row = (dh*3+dw)*Cin + cin
    def conv_mat(w):
        w = jnp.asarray(w, jnp.float32)
        cout, cin = w.shape[0], w.shape[1]
        return jnp.transpose(w, (2, 3, 1, 0)).reshape(KS * KS * cin,
                                                      cout).astype(jnp.bfloat16)

    # dense 1x1-conv weights: (Cin, Cout)
    def pw_mat(w):
        return jnp.asarray(w, jnp.float32)[:, :, 0, 0].T.astype(jnp.bfloat16)

    def brow(b):
        return jnp.asarray(b, jnp.float32)[None, :]

    m1, m2, m3 = conv_mat(w1), conv_mat(w2), conv_mat(w3)       # (9,10)(90,40)(360,80)
    mf1, mf2 = pw_mat(fw1), pw_mat(fw2)                         # (80,160)(160,25)
    b1r, b2r, b3r = brow(b1), brow(b2), brow(b3)
    bf1r, bf2r = brow(fb1), brow(fb2)

    # conv1 im2col patch slab (pure layout plumbing of the raw input):
    # row = s*256 + h*16 + w, column = dh*3 + dw  ->  x[s, 0, h+dh, w+dw]
    x2 = jnp.asarray(x_nchw, jnp.float32)[:, 0, :, :]           # (N, 16, 16)
    xp = jnp.pad(x2, ((0, 0), (0, KS - 1), (0, KS - 1)))        # (N, 18, 18)
    cols = [xp[:, dh:dh + H0, dw:dw + W0]
            for dh in range(KS) for dw in range(KS)]
    x_slab = jnp.stack(cols, axis=-1).reshape(n * GRID1, KS * KS)   # (N*256, 9)

    vmem = lambda: pl.BlockSpec(memory_space=pltpu.MemorySpace.VMEM)
    out = pl.pallas_call(
        fcnet_kernel,
        out_shape=jax.ShapeDtypeStruct((n, C5), jnp.float32),
        in_specs=[vmem() for _ in range(11)],
        out_specs=vmem(),
        compiler_params=pltpu.CompilerParams(vmem_limit_bytes=8 << 20),
    )(x_slab, m1, b1r, m2, b2r, m3, b3r, mf1, bf1r, mf2, bf2r)
    return out                                                   # (N, 25)


# ----------------------------- pure-JAX reference ----------------------------
def _conv(x, w, b):
    y = lax.conv_general_dilated(x, w, (1, 1), 'VALID',
                                 dimension_numbers=('NCHW', 'OIHW', 'NCHW'))
    return y + b[None, :, None, None]


def _pool(x):
    return lax.reduce_window(x, -jnp.inf, lax.max,
                             (1, 1, 3, 3), (1, 1, 1, 1), 'VALID')


def fcnet_reference(x, params):
    (w1, b1, w2, b2, w3, b3, fw1, fb1, fw2, fb2) = params
    y = jnp.tanh(_conv(x, w1, b1)); y = _pool(y)
    y = jnp.tanh(_conv(y, w2, b2)); y = _pool(y)
    y = jnp.tanh(_conv(y, w3, b3)); y = _pool(y)
    y = jnp.tanh(_conv(y, fw1, fb1))
    y = jax.nn.relu(_conv(y, fw2, fb2))
    return jnp.sum(y, axis=(2, 3))


# ----------------------------- main -------------------------------------------
if __name__ == "__main__":
    key = jax.random.PRNGKey(0)
    ks = jax.random.split(key, 11)
    s = 0.05
    w1 = s * jax.random.normal(ks[0], (C1, C0, 3, 3), jnp.float32)
    b1 = s * jax.random.normal(ks[1], (C1,), jnp.float32)
    w2 = s * jax.random.normal(ks[2], (C2, C1, 3, 3), jnp.float32)
    b2 = s * jax.random.normal(ks[3], (C2,), jnp.float32)
    w3 = s * jax.random.normal(ks[4], (C3, C2, 3, 3), jnp.float32)
    b3 = s * jax.random.normal(ks[5], (C3,), jnp.float32)
    fw1 = s * jax.random.normal(ks[6], (C4, C3, 1, 1), jnp.float32)
    fb1 = s * jax.random.normal(ks[7], (C4,), jnp.float32)
    fw2 = s * jax.random.normal(ks[8], (C5, C4, 1, 1), jnp.float32)
    fb2 = s * jax.random.normal(ks[9], (C5,), jnp.float32)
    params = (w1, b1, w2, b2, w3, b3, fw1, fb1, fw2, fb2)

    x = jax.random.normal(ks[10], (N, C0, H0, W0), jnp.float32)

    out = jax.block_until_ready(fcnet_forward(x, params))
    assert out.shape == (N, C5), out.shape

    ref = jax.block_until_ready(fcnet_reference(x, params))
    np.testing.assert_allclose(np.asarray(out), np.asarray(ref),
                               rtol=3e-2, atol=3e-2)
    print("KERNEL_OK")
</pallas_src>

<mosaic_0001>
module attributes {stable_mosaic.version = 11 : i64} {
  func.func @fcnet_kernel(%arg0: memref<512x9xf32, #tpu.memory_space<vmem>>, %arg1: memref<9x10xbf16, #tpu.memory_space<vmem>>, %arg2: memref<1x10xf32, #tpu.memory_space<vmem>>, %arg3: memref<90x40xbf16, #tpu.memory_space<vmem>>, %arg4: memref<1x40xf32, #tpu.memory_space<vmem>>, %arg5: memref<360x80xbf16, #tpu.memory_space<vmem>>, %arg6: memref<1x80xf32, #tpu.memory_space<vmem>>, %arg7: memref<80x160xbf16, #tpu.memory_space<vmem>>, %arg8: memref<1x160xf32, #tpu.memory_space<vmem>>, %arg9: memref<160x25xbf16, #tpu.memory_space<vmem>>, %arg10: memref<1x25xf32, #tpu.memory_space<vmem>>, %arg11: memref<2x25xf32, #tpu.memory_space<vmem>>) attributes {dimension_semantics = [], scalar_prefetch = 0 : i64, scratch_operands = 0 : i64, tpu.core_type = #tpu.core_type<tc>} {
    %c0 = arith.constant 0 : index
    %c0_0 = arith.constant 0 : index
    %0 = vector.load %arg0[%c0, %c0_0] : memref<512x9xf32, #tpu.memory_space<vmem>>, vector<512x9xf32>
    %1 = arith.truncf %0 : vector<512x9xf32> to vector<512x9xbf16>
    %c0_1 = arith.constant 0 : index
    %c0_2 = arith.constant 0 : index
    %2 = vector.load %arg1[%c0_1, %c0_2] : memref<9x10xbf16, #tpu.memory_space<vmem>>, vector<9x10xbf16>
    %cst = arith.constant dense<0.000000e+00> : vector<512x10xf32>
    %3 = tpu.matmul %1, %2, %cst {dimension_numbers = #tpu.dot_dimension_numbers<[1], [0], [0], [1], [0, 0, 1, 1], [], []>} : vector<512x9xbf16>, vector<9x10xbf16>, vector<512x10xf32> -> vector<512x10xf32>
    %c0_3 = arith.constant 0 : index
    %c0_4 = arith.constant 0 : index
    %4 = vector.load %arg2[%c0_3, %c0_4] : memref<1x10xf32, #tpu.memory_space<vmem>>, vector<1x10xf32>
    %5 = vector.broadcast %4 : vector<1x10xf32> to vector<512x10xf32>
    %6 = arith.addf %3, %5 : vector<512x10xf32>
    %7 = math.tanh %6 : vector<512x10xf32>
    %cst_5 = arith.constant 0.000000e+00 : f32
    %8 = vector.broadcast %cst_5 : f32 to vector<1x10xf32>
    %9 = vector.extract_strided_slice %7 {offsets = [1, 0], sizes = [511, 10], strides = [1, 1]} : vector<512x10xf32> to vector<511x10xf32>
    %10 = tpu.concatenate %9, %8 in 0 : vector<511x10xf32>, vector<1x10xf32> -> vector<512x10xf32>
    %11 = arith.maximumf %7, %10 : vector<512x10xf32>
    %cst_6 = arith.constant 0.000000e+00 : f32
    %12 = vector.broadcast %cst_6 : f32 to vector<2x10xf32>
    %13 = vector.extract_strided_slice %7 {offsets = [2, 0], sizes = [510, 10], strides = [1, 1]} : vector<512x10xf32> to vector<510x10xf32>
    %14 = tpu.concatenate %13, %12 in 0 : vector<510x10xf32>, vector<2x10xf32> -> vector<512x10xf32>
    %15 = arith.maximumf %11, %14 : vector<512x10xf32>
    %cst_7 = arith.constant 0.000000e+00 : f32
    %16 = vector.broadcast %cst_7 : f32 to vector<16x10xf32>
    %17 = vector.extract_strided_slice %15 {offsets = [16, 0], sizes = [496, 10], strides = [1, 1]} : vector<512x10xf32> to vector<496x10xf32>
    %18 = tpu.concatenate %17, %16 in 0 : vector<496x10xf32>, vector<16x10xf32> -> vector<512x10xf32>
    %19 = arith.maximumf %15, %18 : vector<512x10xf32>
    %cst_8 = arith.constant 0.000000e+00 : f32
    %20 = vector.broadcast %cst_8 : f32 to vector<32x10xf32>
    %21 = vector.extract_strided_slice %15 {offsets = [32, 0], sizes = [480, 10], strides = [1, 1]} : vector<512x10xf32> to vector<480x10xf32>
    %22 = tpu.concatenate %21, %20 in 0 : vector<480x10xf32>, vector<32x10xf32> -> vector<512x10xf32>
    %23 = arith.maximumf %19, %22 : vector<512x10xf32>
    %cst_9 = arith.constant 0.000000e+00 : f32
    %24 = vector.broadcast %cst_9 : f32 to vector<1x10xf32>
    %25 = vector.extract_strided_slice %23 {offsets = [1, 0], sizes = [511, 10], strides = [1, 1]} : vector<512x10xf32> to vector<511x10xf32>
    %26 = tpu.concatenate %25, %24 in 0 : vector<511x10xf32>, vector<1x10xf32> -> vector<512x10xf32>
    %cst_10 = arith.constant 0.000000e+00 : f32
    %27 = vector.broadcast %cst_10 : f32 to vector<2x10xf32>
    %28 = vector.extract_strided_slice %23 {offsets = [2, 0], sizes = [510, 10], strides = [1, 1]} : vector<512x10xf32> to vector<510x10xf32>
    %29 = tpu.concatenate %28, %27 in 0 : vector<510x10xf32>, vector<2x10xf32> -> vector<512x10xf32>
    %cst_11 = arith.constant 0.000000e+00 : f32
    %30 = vector.broadcast %cst_11 : f32 to vector<16x10xf32>
    %31 = vector.extract_strided_slice %23 {offsets = [16, 0], sizes = [496, 10], strides = [1, 1]} : vector<512x10xf32> to vector<496x10xf32>
    %32 = tpu.concatenate %31, %30 in 0 : vector<496x10xf32>, vector<16x10xf32> -> vector<512x10xf32>
    %cst_12 = arith.constant 0.000000e+00 : f32
    %33 = vector.broadcast %cst_12 : f32 to vector<17x10xf32>
    %34 = vector.extract_strided_slice %23 {offsets = [17, 0], sizes = [495, 10], strides = [1, 1]} : vector<512x10xf32> to vector<495x10xf32>
    %35 = tpu.concatenate %34, %33 in 0 : vector<495x10xf32>, vector<17x10xf32> -> vector<512x10xf32>
    %cst_13 = arith.constant 0.000000e+00 : f32
    %36 = vector.broadcast %cst_13 : f32 to vector<18x10xf32>
    %37 = vector.extract_strided_slice %23 {offsets = [18, 0], sizes = [494, 10], strides = [1, 1]} : vector<512x10xf32> to vector<494x10xf32>
    %38 = tpu.concatenate %37, %36 in 0 : vector<494x10xf32>, vector<18x10xf32> -> vector<512x10xf32>
    %cst_14 = arith.constant 0.000000e+00 : f32
    %39 = vector.broadcast %cst_14 : f32 to vector<32x10xf32>
    %40 = vector.extract_strided_slice %23 {offsets = [32, 0], sizes = [480, 10], strides = [1, 1]} : vector<512x10xf32> to vector<480x10xf32>
    %41 = tpu.concatenate %40, %39 in 0 : vector<480x10xf32>, vector<32x10xf32> -> vector<512x10xf32>
    %cst_15 = arith.constant 0.000000e+00 : f32
    %42 = vector.broadcast %cst_15 : f32 to vector<33x10xf32>
    %43 = vector.extract_strided_slice %23 {offsets = [33, 0], sizes = [479, 10], strides = [1, 1]} : vector<512x10xf32> to vector<479x10xf32>
    %44 = tpu.concatenate %43, %42 in 0 : vector<479x10xf32>, vector<33x10xf32> -> vector<512x10xf32>
    %cst_16 = arith.constant 0.000000e+00 : f32
    %45 = vector.broadcast %cst_16 : f32 to vector<34x10xf32>
    %46 = vector.extract_strided_slice %23 {offsets = [34, 0], sizes = [478, 10], strides = [1, 1]} : vector<512x10xf32> to vector<478x10xf32>
    %47 = tpu.concatenate %46, %45 in 0 : vector<478x10xf32>, vector<34x10xf32> -> vector<512x10xf32>
    %48 = tpu.concatenate %23, %26, %29, %32, %35, %38, %41, %44, %47 in 1 : vector<512x10xf32>, vector<512x10xf32>, vector<512x10xf32>, vector<512x10xf32>, vector<512x10xf32>, vector<512x10xf32>, vector<512x10xf32>, vector<512x10xf32>, vector<512x10xf32> -> vector<512x90xf32>
    %49 = arith.truncf %48 : vector<512x90xf32> to vector<512x90xbf16>
    %c0_17 = arith.constant 0 : index
    %c0_18 = arith.constant 0 : index
    %50 = vector.load %arg3[%c0_17, %c0_18] : memref<90x40xbf16, #tpu.memory_space<vmem>>, vector<90x40xbf16>
    %cst_19 = arith.constant dense<0.000000e+00> : vector<512x40xf32>
    %51 = tpu.matmul %49, %50, %cst_19 {dimension_numbers = #tpu.dot_dimension_numbers<[1], [0], [0], [1], [0, 0, 1, 1], [], []>} : vector<512x90xbf16>, vector<90x40xbf16>, vector<512x40xf32> -> vector<512x40xf32>
    %c0_20 = arith.constant 0 : index
    %c0_21 = arith.constant 0 : index
    %52 = vector.load %arg4[%c0_20, %c0_21] : memref<1x40xf32, #tpu.memory_space<vmem>>, vector<1x40xf32>
    %53 = vector.broadcast %52 : vector<1x40xf32> to vector<512x40xf32>
    %54 = arith.addf %51, %53 : vector<512x40xf32>
    %55 = math.tanh %54 : vector<512x40xf32>
    %cst_22 = arith.constant 0.000000e+00 : f32
    %56 = vector.broadcast %cst_22 : f32 to vector<1x40xf32>
    %57 = vector.extract_strided_slice %55 {offsets = [1, 0], sizes = [511, 40], strides = [1, 1]} : vector<512x40xf32> to vector<511x40xf32>
    %58 = tpu.concatenate %57, %56 in 0 : vector<511x40xf32>, vector<1x40xf32> -> vector<512x40xf32>
    %59 = arith.maximumf %55, %58 : vector<512x40xf32>
    %cst_23 = arith.constant 0.000000e+00 : f32
    %60 = vector.broadcast %cst_23 : f32 to vector<2x40xf32>
    %61 = vector.extract_strided_slice %55 {offsets = [2, 0], sizes = [510, 40], strides = [1, 1]} : vector<512x40xf32> to vector<510x40xf32>
    %62 = tpu.concatenate %61, %60 in 0 : vector<510x40xf32>, vector<2x40xf32> -> vector<512x40xf32>
    %63 = arith.maximumf %59, %62 : vector<512x40xf32>
    %cst_24 = arith.constant 0.000000e+00 : f32
    %64 = vector.broadcast %cst_24 : f32 to vector<16x40xf32>
    %65 = vector.extract_strided_slice %63 {offsets = [16, 0], sizes = [496, 40], strides = [1, 1]} : vector<512x40xf32> to vector<496x40xf32>
    %66 = tpu.concatenate %65, %64 in 0 : vector<496x40xf32>, vector<16x40xf32> -> vector<512x40xf32>
    %67 = arith.maximumf %63, %66 : vector<512x40xf32>
    %cst_25 = arith.constant 0.000000e+00 : f32
    %68 = vector.broadcast %cst_25 : f32 to vector<32x40xf32>
    %69 = vector.extract_strided_slice %63 {offsets = [32, 0], sizes = [480, 40], strides = [1, 1]} : vector<512x40xf32> to vector<480x40xf32>
    %70 = tpu.concatenate %69, %68 in 0 : vector<480x40xf32>, vector<32x40xf32> -> vector<512x40xf32>
    %71 = arith.maximumf %67, %70 : vector<512x40xf32>
    %72 = vector.extract_strided_slice %71 {offsets = [0, 0], sizes = [8, 40], strides = [1, 1]} : vector<512x40xf32> to vector<8x40xf32>
    %73 = vector.extract_strided_slice %71 {offsets = [16, 0], sizes = [8, 40], strides = [1, 1]} : vector<512x40xf32> to vector<8x40xf32>
    %74 = vector.extract_strided_slice %71 {offsets = [32, 0], sizes = [8, 40], strides = [1, 1]} : vector<512x40xf32> to vector<8x40xf32>
    %75 = vector.extract_strided_slice %71 {offsets = [48, 0], sizes = [8, 40], strides = [1, 1]} : vector<512x40xf32> to vector<8x40xf32>
    %76 = vector.extract_strided_slice %71 {offsets = [64, 0], sizes = [8, 40], strides = [1, 1]} : vector<512x40xf32> to vector<8x40xf32>
    %77 = vector.extract_strided_slice %71 {offsets = [80, 0], sizes = [8, 40], strides = [1, 1]} : vector<512x40xf32> to vector<8x40xf32>
    %78 = vector.extract_strided_slice %71 {offsets = [96, 0], sizes = [8, 40], strides = [1, 1]} : vector<512x40xf32> to vector<8x40xf32>
    %79 = vector.extract_strided_slice %71 {offsets = [112, 0], sizes = [8, 40], strides = [1, 1]} : vector<512x40xf32> to vector<8x40xf32>
    %80 = vector.extract_strided_slice %71 {offsets = [256, 0], sizes = [8, 40], strides = [1, 1]} : vector<512x40xf32> to vector<8x40xf32>
    %81 = vector.extract_strided_slice %71 {offsets = [272, 0], sizes = [8, 40], strides = [1, 1]} : vector<512x40xf32> to vector<8x40xf32>
    %82 = vector.extract_strided_slice %71 {offsets = [288, 0], sizes = [8, 40], strides = [1, 1]} : vector<512x40xf32> to vector<8x40xf32>
    %83 = vector.extract_strided_slice %71 {offsets = [304, 0], sizes = [8, 40], strides = [1, 1]} : vector<512x40xf32> to vector<8x40xf32>
    %84 = vector.extract_strided_slice %71 {offsets = [320, 0], sizes = [8, 40], strides = [1, 1]} : vector<512x40xf32> to vector<8x40xf32>
    %85 = vector.extract_strided_slice %71 {offsets = [336, 0], sizes = [8, 40], strides = [1, 1]} : vector<512x40xf32> to vector<8x40xf32>
    %86 = vector.extract_strided_slice %71 {offsets = [352, 0], sizes = [8, 40], strides = [1, 1]} : vector<512x40xf32> to vector<8x40xf32>
    %87 = vector.extract_strided_slice %71 {offsets = [368, 0], sizes = [8, 40], strides = [1, 1]} : vector<512x40xf32> to vector<8x40xf32>
    %88 = tpu.concatenate %72, %73, %74, %75, %76, %77, %78, %79, %80, %81, %82, %83, %84, %85, %86, %87 in 0 : vector<8x40xf32>, vector<8x40xf32>, vector<8x40xf32>, vector<8x40xf32>, vector<8x40xf32>, vector<8x40xf32>, vector<8x40xf32>, vector<8x40xf32>, vector<8x40xf32>, vector<8x40xf32>, vector<8x40xf32>, vector<8x40xf32>, vector<8x40xf32>, vector<8x40xf32>, vector<8x40xf32>, vector<8x40xf32> -> vector<128x40xf32>
    %cst_26 = arith.constant 0.000000e+00 : f32
    %89 = vector.broadcast %cst_26 : f32 to vector<1x40xf32>
    %90 = vector.extract_strided_slice %88 {offsets = [1, 0], sizes = [127, 40], strides = [1, 1]} : vector<128x40xf32> to vector<127x40xf32>
    %91 = tpu.concatenate %90, %89 in 0 : vector<127x40xf32>, vector<1x40xf32> -> vector<128x40xf32>
    %cst_27 = arith.constant 0.000000e+00 : f32
    %92 = vector.broadcast %cst_27 : f32 to vector<2x40xf32>
    %93 = vector.extract_strided_slice %88 {offsets = [2, 0], sizes = [126, 40], strides = [1, 1]} : vector<128x40xf32> to vector<126x40xf32>
    %94 = tpu.concatenate %93, %92 in 0 : vector<126x40xf32>, vector<2x40xf32> -> vector<128x40xf32>
    %cst_28 = arith.constant 0.000000e+00 : f32
    %95 = vector.broadcast %cst_28 : f32 to vector<8x40xf32>
    %96 = vector.extract_strided_slice %88 {offsets = [8, 0], sizes = [120, 40], strides = [1, 1]} : vector<128x40xf32> to vector<120x40xf32>
    %97 = tpu.concatenate %96, %95 in 0 : vector<120x40xf32>, vector<8x40xf32> -> vector<128x40xf32>
    %cst_29 = arith.constant 0.000000e+00 : f32
    %98 = vector.broadcast %cst_29 : f32 to vector<9x40xf32>
    %99 = vector.extract_strided_slice %88 {offsets = [9, 0], sizes = [119, 40], strides = [1, 1]} : vector<128x40xf32> to vector<119x40xf32>
    %100 = tpu.concatenate %99, %98 in 0 : vector<119x40xf32>, vector<9x40xf32> -> vector<128x40xf32>
    %cst_30 = arith.constant 0.000000e+00 : f32
    %101 = vector.broadcast %cst_30 : f32 to vector<10x40xf32>
    %102 = vector.extract_strided_slice %88 {offsets = [10, 0], sizes = [118, 40], strides = [1, 1]} : vector<128x40xf32> to vector<118x40xf32>
    %103 = tpu.concatenate %102, %101 in 0 : vector<118x40xf32>, vector<10x40xf32> -> vector<128x40xf32>
    %cst_31 = arith.constant 0.000000e+00 : f32
    %104 = vector.broadcast %cst_31 : f32 to vector<16x40xf32>
    %105 = vector.extract_strided_slice %88 {offsets = [16, 0], sizes = [112, 40], strides = [1, 1]} : vector<128x40xf32> to vector<112x40xf32>
    %106 = tpu.concatenate %105, %104 in 0 : vector<112x40xf32>, vector<16x40xf32> -> vector<128x40xf32>
    %cst_32 = arith.constant 0.000000e+00 : f32
    %107 = vector.broadcast %cst_32 : f32 to vector<17x40xf32>
    %108 = vector.extract_strided_slice %88 {offsets = [17, 0], sizes = [111, 40], strides = [1, 1]} : vector<128x40xf32> to vector<111x40xf32>
    %109 = tpu.concatenate %108, %107 in 0 : vector<111x40xf32>, vector<17x40xf32> -> vector<128x40xf32>
    %cst_33 = arith.constant 0.000000e+00 : f32
    %110 = vector.broadcast %cst_33 : f32 to vector<18x40xf32>
    %111 = vector.extract_strided_slice %88 {offsets = [18, 0], sizes = [110, 40], strides = [1, 1]} : vector<128x40xf32> to vector<110x40xf32>
    %112 = tpu.concatenate %111, %110 in 0 : vector<110x40xf32>, vector<18x40xf32> -> vector<128x40xf32>
    %113 = tpu.concatenate %88, %91, %94, %97, %100, %103, %106, %109, %112 in 1 : vector<128x40xf32>, vector<128x40xf32>, vector<128x40xf32>, vector<128x40xf32>, vector<128x40xf32>, vector<128x40xf32>, vector<128x40xf32>, vector<128x40xf32>, vector<128x40xf32> -> vector<128x360xf32>
    %114 = arith.truncf %113 : vector<128x360xf32> to vector<128x360xbf16>
    %c0_34 = arith.constant 0 : index
    %c0_35 = arith.constant 0 : index
    %115 = vector.load %arg5[%c0_34, %c0_35] : memref<360x80xbf16, #tpu.memory_space<vmem>>, vector<360x80xbf16>
    %cst_36 = arith.constant dense<0.000000e+00> : vector<128x80xf32>
    %116 = tpu.matmul %114, %115, %cst_36 {dimension_numbers = #tpu.dot_dimension_numbers<[1], [0], [0], [1], [0, 0, 1, 1], [], []>} : vector<128x360xbf16>, vector<360x80xbf16>, vector<128x80xf32> -> vector<128x80xf32>
    %c0_37 = arith.constant 0 : index
    %c0_38 = arith.constant 0 : index
    %117 = vector.load %arg6[%c0_37, %c0_38] : memref<1x80xf32, #tpu.memory_space<vmem>>, vector<1x80xf32>
    %118 = vector.broadcast %117 : vector<1x80xf32> to vector<128x80xf32>
    %119 = arith.addf %116, %118 : vector<128x80xf32>
    %120 = math.tanh %119 : vector<128x80xf32>
    %cst_39 = arith.constant 0.000000e+00 : f32
    %121 = vector.broadcast %cst_39 : f32 to vector<1x80xf32>
    %122 = vector.extract_strided_slice %120 {offsets = [1, 0], sizes = [127, 80], strides = [1, 1]} : vector<128x80xf32> to vector<127x80xf32>
    %123 = tpu.concatenate %122, %121 in 0 : vector<127x80xf32>, vector<1x80xf32> -> vector<128x80xf32>
    %124 = arith.maximumf %120, %123 : vector<128x80xf32>
    %cst_40 = arith.constant 0.000000e+00 : f32
    %125 = vector.broadcast %cst_40 : f32 to vector<2x80xf32>
    %126 = vector.extract_strided_slice %120 {offsets = [2, 0], sizes = [126, 80], strides = [1, 1]} : vector<128x80xf32> to vector<126x80xf32>
    %127 = tpu.concatenate %126, %125 in 0 : vector<126x80xf32>, vector<2x80xf32> -> vector<128x80xf32>
    %128 = arith.maximumf %124, %127 : vector<128x80xf32>
    %cst_41 = arith.constant 0.000000e+00 : f32
    %129 = vector.broadcast %cst_41 : f32 to vector<8x80xf32>
    %130 = vector.extract_strided_slice %128 {offsets = [8, 0], sizes = [120, 80], strides = [1, 1]} : vector<128x80xf32> to vector<120x80xf32>
    %131 = tpu.concatenate %130, %129 in 0 : vector<120x80xf32>, vector<8x80xf32> -> vector<128x80xf32>
    %132 = arith.maximumf %128, %131 : vector<128x80xf32>
    %cst_42 = arith.constant 0.000000e+00 : f32
    %133 = vector.broadcast %cst_42 : f32 to vector<16x80xf32>
    %134 = vector.extract_strided_slice %128 {offsets = [16, 0], sizes = [112, 80], strides = [1, 1]} : vector<128x80xf32> to vector<112x80xf32>
    %135 = tpu.concatenate %134, %133 in 0 : vector<112x80xf32>, vector<16x80xf32> -> vector<128x80xf32>
    %136 = arith.maximumf %132, %135 : vector<128x80xf32>
    %137 = arith.truncf %136 : vector<128x80xf32> to vector<128x80xbf16>
    %c0_43 = arith.constant 0 : index
    %c0_44 = arith.constant 0 : index
    %138 = vector.load %arg7[%c0_43, %c0_44] : memref<80x160xbf16, #tpu.memory_space<vmem>>, vector<80x160xbf16>
    %cst_45 = arith.constant dense<0.000000e+00> : vector<128x160xf32>
    %139 = tpu.matmul %137, %138, %cst_45 {dimension_numbers = #tpu.dot_dimension_numbers<[1], [0], [0], [1], [0, 0, 1, 1], [], []>} : vector<128x80xbf16>, vector<80x160xbf16>, vector<128x160xf32> -> vector<128x160xf32>
    %c0_46 = arith.constant 0 : index
    %c0_47 = arith.constant 0 : index
    %140 = vector.load %arg8[%c0_46, %c0_47] : memref<1x160xf32, #tpu.memory_space<vmem>>, vector<1x160xf32>
    %141 = vector.broadcast %140 : vector<1x160xf32> to vector<128x160xf32>
    %142 = arith.addf %139, %141 : vector<128x160xf32>
    %143 = math.tanh %142 : vector<128x160xf32>
    %144 = arith.truncf %143 : vector<128x160xf32> to vector<128x160xbf16>
    %c0_48 = arith.constant 0 : index
    %c0_49 = arith.constant 0 : index
    %145 = vector.load %arg9[%c0_48, %c0_49] : memref<160x25xbf16, #tpu.memory_space<vmem>>, vector<160x25xbf16>
    %cst_50 = arith.constant dense<0.000000e+00> : vector<128x25xf32>
    %146 = tpu.matmul %144, %145, %cst_50 {dimension_numbers = #tpu.dot_dimension_numbers<[1], [0], [0], [1], [0, 0, 1, 1], [], []>} : vector<128x160xbf16>, vector<160x25xbf16>, vector<128x25xf32> -> vector<128x25xf32>
    %c0_51 = arith.constant 0 : index
    %c0_52 = arith.constant 0 : index
    %147 = vector.load %arg10[%c0_51, %c0_52] : memref<1x25xf32, #tpu.memory_space<vmem>>, vector<1x25xf32>
    %148 = vector.broadcast %147 : vector<1x25xf32> to vector<128x25xf32>
    %149 = arith.addf %146, %148 : vector<128x25xf32>
    %cst_53 = arith.constant 0.000000e+00 : f32
    %150 = vector.broadcast %cst_53 : f32 to vector<128x25xf32>
    %151 = arith.maximumf %149, %150 : vector<128x25xf32>
    %152 = vector.extract_strided_slice %151 {offsets = [0, 0], sizes = [4, 25], strides = [1, 1]} : vector<128x25xf32> to vector<4x25xf32>
    %153 = vector.extract_strided_slice %151 {offsets = [8, 0], sizes = [4, 25], strides = [1, 1]} : vector<128x25xf32> to vector<4x25xf32>
    %154 = vector.extract_strided_slice %151 {offsets = [16, 0], sizes = [4, 25], strides = [1, 1]} : vector<128x25xf32> to vector<4x25xf32>
    %155 = vector.extract_strided_slice %151 {offsets = [24, 0], sizes = [4, 25], strides = [1, 1]} : vector<128x25xf32> to vector<4x25xf32>
    %156 = tpu.concatenate %152, %153, %154, %155 in 0 : vector<4x25xf32>, vector<4x25xf32>, vector<4x25xf32>, vector<4x25xf32> -> vector<16x25xf32>
    %cst_54 = arith.constant dense<0.000000e+00> : vector<25xf32>
    %157 = vector.multi_reduction <add>, %156, %cst_54 [0] : vector<16x25xf32> to vector<25xf32>
    %158 = vector.shape_cast %157 : vector<25xf32> to vector<1x25xf32>
    %159 = vector.extract_strided_slice %151 {offsets = [64, 0], sizes = [4, 25], strides = [1, 1]} : vector<128x25xf32> to vector<4x25xf32>
    %160 = vector.extract_strided_slice %151 {offsets = [72, 0], sizes = [4, 25], strides = [1, 1]} : vector<128x25xf32> to vector<4x25xf32>
    %161 = vector.extract_strided_slice %151 {offsets = [80, 0], sizes = [4, 25], strides = [1, 1]} : vector<128x25xf32> to vector<4x25xf32>
    %162 = vector.extract_strided_slice %151 {offsets = [88, 0], sizes = [4, 25], strides = [1, 1]} : vector<128x25xf32> to vector<4x25xf32>
    %163 = tpu.concatenate %159, %160, %161, %162 in 0 : vector<4x25xf32>, vector<4x25xf32>, vector<4x25xf32>, vector<4x25xf32> -> vector<16x25xf32>
    %cst_55 = arith.constant dense<0.000000e+00> : vector<25xf32>
    %164 = vector.multi_reduction <add>, %163, %cst_55 [0] : vector<16x25xf32> to vector<25xf32>
    %165 = vector.shape_cast %164 : vector<25xf32> to vector<1x25xf32>
    %166 = tpu.concatenate %158, %165 in 0 : vector<1x25xf32>, vector<1x25xf32> -> vector<2x25xf32>
    %c0_56 = arith.constant 0 : index
    %c0_57 = arith.constant 0 : index
    %167 = vector.load %arg11[%c0_56, %c0_57] : memref<2x25xf32, #tpu.memory_space<vmem>>, vector<2x25xf32>
    tpu.vector_store %arg11[%c0_56, %c0_57], %166 {strides = array<i32>} : memref<2x25xf32, #tpu.memory_space<vmem>>, vector<2x25xf32>,
    return
  }
}

</mosaic_0001>

<bundles_post_ra>
// kernel: tpu_custom_call.1
= control target key start
LH: loop header
LB: loop body
LE: loop exit
PB: predicated region body
PF: predicated region fallthrough
CT: control target
= control target key end

     0   :  { %vm14041_vm0 = vcmask 1043456   ;;  %vm248_vm1 = vcmask 1044480   ;;  %vm150_vm2 = vcmask 72704   ;;  %v8575_v3 = vmov 65535   ;;  %s13885_s0 = inlined_call_operand.vmem [shape: f32[512,9], index: 0, kind: input, shape index: {}]   ;;  %s13886_s1 = inlined_call_operand.vmem [shape: bf16[9,10], index: 1, kind: input, shape index: {}]   ;;  %s13887_s2 = inlined_call_operand.vmem [shape: f32[1,10], index: 2, kind: input, shape index: {}]   ;;  %s13888_s3 = inlined_call_operand.vmem [shape: bf16[90,40], index: 3, kind: input, shape index: {}]   ;;  %s13889_s4 = inlined_call_operand.vmem [shape: f32[1,40], index: 4, kind: input, shape index: {}]   ;;  %s13890_s5 = inlined_call_operand.vmem [shape: bf16[360,80], index: 5, kind: input, shape index: {}]   ;;  %s13891_s6 = inlined_call_operand.vmem [shape: f32[1,80], index: 6, kind: input, shape index: {}]   ;;  %s13892_s7 = inlined_call_operand.vmem [shape: bf16[80,160], index: 7, kind: input, shape index: {}]   ;;  %s13893_s8 = inlined_call_operand.vmem [shape: f32[1,160], index: 8, kind: input, shape index: {}]   ;;  %s13894_s9 = inlined_call_operand.vmem [shape: bf16[160,25], index: 9, kind: input, shape index: {}]   ;;  %s13895_s10 = inlined_call_operand.vmem [shape: f32[1,25], index: 10, kind: input, shape index: {}]   ;;  %s13896_s11 = inlined_call_operand.hbm [shape: f32[2,25], index: 11, kind: output, shape index: {}]  }
   0x1   :  { %v8187_v0 = vld [vmem:[%s13886_s1] sm:$0x1f]   ;;  %v41_v2 = vld [vmem:[%s13885_s0 + $0x8] sm:$0xff]  ;;  %v249_v4 = vsel %vm14041_vm0, 4294967295, %v8575_v3  ;;  %v42_v7 = vld [vmem:[%s13885_s0 + $0x10] sm:$0xff] }
   0x2   :  { %v40_v1 = vld [vmem:[%s13885_s0] sm:$0xff]  ;;  %v250_v6 = vsel %vm248_vm1, %v249_v4, 0  ;;  %v43_v8 = vld [vmem:[%s13885_s0 + $0x18] sm:$0xff]  ;;  %v45_v11 = vld [vmem:[%s13885_s0 + $0x28] sm:$0xff] }
   0x3   :  { %v104_v5 = vpack.c.bf16 %v41_v2, %v40_v1  ;;  %v252_v9 = vand.u32 %v8187_v0, %v250_v6  ;;  %v44_v10 = vld [vmem:[%s13885_s0 + $0x20] sm:$0xff]  ;;  %v105_v12 = vpack.c.bf16 %v43_v8, %v42_v7  ;;  %v46_v14 = vld [vmem:[%s13885_s0 + $0x30] sm:$0xff]  ;;  %v47_v15 = vld [vmem:[%s13885_s0 + $0x38] sm:$0xff] }
   0x4   :  { %v106_v13 = vpack.c.bf16 %v45_v11, %v44_v10  ;;  %v48_v16 = vld [vmem:[%s13885_s0 + $0x40] sm:$0xff]  ;;  %v49_v17 = vld [vmem:[%s13885_s0 + $0x48] sm:$0xff]  ;;  %v107_v18 = vpack.c.bf16 %v47_v15, %v46_v14  ;;  %v50_v20 = vld [vmem:[%s13885_s0 + $0x50] sm:$0xff] }
   0x5   :  { %6457 = vmatprep.mubr.msk.bf16.mxu0 %vm150_vm2, %v104_v5  ;;  %6455 = vmatprep.subr.bf16.mxu0 %v252_v9  ;;  %v108_v19 = vpack.c.bf16 %v49_v17, %v48_v16  ;;  %v51_v21 = vld [vmem:[%s13885_s0 + $0x58] sm:$0xff]  ;;  %v52_v22 = vld [vmem:[%s13885_s0 + $0x60] sm:$0xff]  ;;  %v53_v23 = vld [vmem:[%s13885_s0 + $0x68] sm:$0xff] }
   0x6   :  { %6456 = vmatpush3.bf16.msra.mxu0 %v252_v9  ;;  %v109_v24 = vpack.c.bf16 %v51_v21, %v50_v20  ;;  %v110_v25 = vpack.c.bf16 %v53_v23, %v52_v22  ;;  %v54_v26 = vld [vmem:[%s13885_s0 + $0x70] sm:$0xff]  ;;  %v55_v27 = vld [vmem:[%s13885_s0 + $0x78] sm:$0xff]  ;;  %v56_v28 = vld [vmem:[%s13885_s0 + $0x80] sm:$0xff] }
   0x7   :  { %v57_v29 = vld [vmem:[%s13885_s0 + $0x88] sm:$0xff]  ;;  %v111_v30 = vpack.c.bf16 %v55_v27, %v54_v26  ;;  %v58_v32 = vld [vmem:[%s13885_s0 + $0x90] sm:$0xff]  ;;  %v59_v33 = vld [vmem:[%s13885_s0 + $0x98] sm:$0xff] }
   0x8   :  { %v112_v31 = vpack.c.bf16 %v57_v29, %v56_v28  ;;  %v60_v34 = vld [vmem:[%s13885_s0 + $0xa0] sm:$0xff]  ;;  %v61_v35 = vld [vmem:[%s13885_s0 + $0xa8] sm:$0xff]  ;;  %v113_v36 = vpack.c.bf16 %v59_v33, %v58_v32  ;;  %v62_v38 = vld [vmem:[%s13885_s0 + $0xb0] sm:$0xff] }
   0x9   :  { %6458 = vmatmul.mubr.msk.bf16.vlgmr.msra.gmra.mrb[0].mxu0 %vm150_vm2, %v105_v12  ;;  %v114_v37 = vpack.c.bf16 %v61_v35, %v60_v34  ;;  %v63_v39 = vld [vmem:[%s13885_s0 + $0xb8] sm:$0xff]  ;;  %v64_v40 = vld [vmem:[%s13885_s0 + $0xc0] sm:$0xff]  ;;  %v65_v41 = vld [vmem:[%s13885_s0 + $0xc8] sm:$0xff] }
   0xa   :  { %6461 = vmatprep.mubr.msk.bf16.mxu0 %vm150_vm2, %v106_v13 }
  0x11   :  { %6462 = vmatmul.mubr.msk.bf16.gmra.mrb[4].mxu0 %vm150_vm2, %v107_v18 }
  0x12   :  { %6465 = vmatprep.mubr.msk.bf16.mxu0 %vm150_vm2, %v108_v19 }
  0x19   :  { %6466 = vmatmul.mubr.msk.bf16.gmra.mrb[8].mxu0 %vm150_vm2, %v109_v24 }
  0x1a   :  { %6469 = vmatprep.mubr.msk.bf16.mxu0 %vm150_vm2, %v110_v25 }
  0x21   :  { %6470 = vmatmul.mubr.msk.bf16.gmra.mrb[12].mxu0 %vm150_vm2, %v111_v30 }
  0x22   :  { %6473 = vmatprep.mubr.msk.bf16.mxu0 %vm150_vm2, %v112_v31 }
  0x29   :  { %6474 = vmatmul.mubr.msk.bf16.gmra.mrb[16].mxu0 %vm150_vm2, %v113_v36 }
  0x2a   :  { %6477 = vmatprep.mubr.msk.bf16.mxu0 %vm150_vm2, %v114_v37 }
  0x2b   :  { %16 = vsyncpa [#allocation3], 0  ;;  %v115_v42 = vpack.c.bf16 %v63_v39, %v62_v38  ;;  %v116_v43 = vpack.c.bf16 %v65_v41, %v64_v40  ;;  %v66_v44 = vld [vmem:[%s13885_s0 + $0xd0] sm:$0xff]  ;;  %v67_v45 = vld [vmem:[%s13885_s0 + $0xd8] sm:$0xff]  ;;  %vm671_vm3 = vcmask 1046528   ;;  %vm14042_vm4 = vcmask 1045504  }
  0x2c   :  { %v68_v46 = vld [vmem:[%s13885_s0 + $0xe0] sm:$0xff]  ;;  %v69_v47 = vld [vmem:[%s13885_s0 + $0xe8] sm:$0xff]  ;;  %v117_v48 = vpack.c.bf16 %v67_v45, %v66_v44  ;;  %v70_v50 = vld [vmem:[%s13885_s0 + $0xf0] sm:$0xff]  ;;  %s8576_s21 = smov 10   ;;  %s8577_s22 = smov 30   ;;  %vm3138_vm5 = vcmask 80896  }
  0x2d   :  { %v118_v49 = vpack.c.bf16 %v69_v47, %v68_v46  ;;  %v71_v51 = vld [vmem:[%s13885_s0 + $0xf8] sm:$0xff]  ;;  %v72_v52 = vld [vmem:[%s13885_s0 + $0x100] sm:$0xff]  ;;  %v73_v53 = vld [vmem:[%s13885_s0 + $0x108] sm:$0xff]  ;;  %s8578_s23 = smov 20   ;;  %s8579_s25 = smov 60   ;;  %vm3203_vm6 = vcmask 162816  }
  0x2e   :  { %v119_v54 = vpack.c.bf16 %v71_v51, %v70_v50  ;;  %v120_v55 = vpack.c.bf16 %v73_v53, %v72_v52  ;;  %v74_v56 = vld [vmem:[%s13885_s0 + $0x110] sm:$0xff]  ;;  %v75_v57 = vld [vmem:[%s13885_s0 + $0x118] sm:$0xff]  ;;  %v76_v58 = vld [vmem:[%s13885_s0 + $0x120] sm:$0xff]  ;;  %s8580_s28 = smov 40   ;;  %s8581_s12 = smov 50   ;;  %vm3268_vm7 = vcmask 244736  }
  0x2f   :  { %v77_v59 = vld [vmem:[%s13885_s0 + $0x128] sm:$0xff]  ;;  %v121_v60 = vpack.c.bf16 %v75_v57, %v74_v56  ;;  %v78_v62 = vld [vmem:[%s13885_s0 + $0x130] sm:$0xff]  ;;  %v79_v63 = vld [vmem:[%s13885_s0 + $0x138] sm:$0xff]  ;;  %s8582_s17 = smov 70   ;;  %vm3333_vm8 = vcmask 326656   ;;  %vm3398_vm9 = vcmask 408576  }
  0x30   :  { %v122_v61 = vpack.c.bf16 %v77_v59, %v76_v58  ;;  %v80_v0 = vld [vmem:[%s13885_s0 + $0x140] sm:$0xff]  ;;  %v81_v1 = vld [vmem:[%s13885_s0 + $0x148] sm:$0xff]  ;;  %v123_v2 = vpack.c.bf16 %v79_v63, %v78_v62  ;;  %v82_v4 = vld [vmem:[%s13885_s0 + $0x150] sm:$0xff]  ;;  %vm3528_vm10 = vcmask 572416   ;;  %vm3463_vm11 = vcmask 490496   ;;  %s8585_s30 = smov 24  }
  0x31   :  { %6478 = vmatmul.mubr.msk.bf16.gmra.mrb[20].mxu0 %vm150_vm2, %v115_v42  ;;  %v124_v3 = vpack.c.bf16 %v81_v1, %v80_v0  ;;  %v83_v5 = vld [vmem:[%s13885_s0 + $0x158] sm:$0xff]  ;;  %v84_v7 = vld [vmem:[%s13885_s0 + $0x160] sm:$0xff]  ;;  %v85_v8 = vld [vmem:[%s13885_s0 + $0x168] sm:$0xff]  ;;  %vm3593_vm12 = vcmask 654336   ;;  %vm3744_vm13 = vcmask 736256   ;;  %s8587_s13 = smov 64  }
  0x32   :  { %6481 = vmatprep.mubr.msk.bf16.mxu0 %vm150_vm2, %v116_v43  ;;  %v125_v6 = vpack.c.bf16 %v83_v5, %v82_v4  ;;  %v126_v9 = vpack.c.bf16 %v85_v8, %v84_v7  ;;  %v86_v10 = vld [vmem:[%s13885_s0 + $0x170] sm:$0xff]  ;;  %v87_v11 = vld [vmem:[%s13885_s0 + $0x178] sm:$0xff]  ;;  %v88_v13 = vld [vmem:[%s13885_s0 + $0x180] sm:$0xff]  ;;  %s8589_s16 = smov 32   ;;  %vm4980_vm14 = vcmask 195584   ;;  %vm4996_vm15 = vcmask 523264  }
  0x33   :  { %v127_v12 = vpack.c.bf16 %v87_v11, %v86_v10  ;;  %v89_v14 = vld [vmem:[%s13885_s0 + $0x188] sm:$0xff]  ;;  %v90_v15 = vld [vmem:[%s13885_s0 + $0x190] sm:$0xff]  ;;  %v91_v17 = vld [vmem:[%s13885_s0 + $0x198] sm:$0xff] }
  0x34   :  { %v128_v16 = vpack.c.bf16 %v89_v14, %v88_v13  ;;  %v129_v18 = vpack.c.bf16 %v91_v17, %v90_v15  ;;  %v92_v19 = vld [vmem:[%s13885_s0 + $0x1a0] sm:$0xff]  ;;  %v93_v20 = vld [vmem:[%s13885_s0 + $0x1a8] sm:$0xff]  ;;  %v94_v21 = vld [vmem:[%s13885_s0 + $0x1b0] sm:$0xff] }
  0x35   :  { %v130_v22 = vpack.c.bf16 %v93_v20, %v92_v19  ;;  %v95_v23 = vld [vmem:[%s13885_s0 + $0x1b8] sm:$0xff]  ;;  %v96_v25 = vld [vmem:[%s13885_s0 + $0x1c0] sm:$0xff]  ;;  %v97_v26 = vld [vmem:[%s13885_s0 + $0x1c8] sm:$0xff] }
  0x36   :  { %v131_v24 = vpack.c.bf16 %v95_v23, %v94_v21  ;;  %v98_v27 = vld [vmem:[%s13885_s0 + $0x1d0] sm:$0xff]  ;;  %v132_v28 = vpack.c.bf16 %v97_v26, %v96_v25  ;;  %v99_v29 = vld [vmem:[%s13885_s0 + $0x1d8] sm:$0xff]  ;;  %v8869_v31 = vld [vmem:[%s13887_s2] ss:$0 sm:$0xff] }
  0x37   :  { %v133_v30 = vpack.c.bf16 %v99_v29, %v98_v27 }
  0x39   :  { %6482 = vmatmul.mubr.msk.bf16.gmra.mrb[24].mxu0 %vm150_vm2, %v117_v48 }
  0x3a   :  { %6485 = vmatprep.mubr.msk.bf16.mxu0 %vm150_vm2, %v118_v49 }
  0x41   :  { %6486 = vmatmul.mubr.msk.bf16.gmra.mrb[28].mxu0 %vm150_vm2, %v119_v54 }
  0x42   :  { %6489 = vmatprep.mubr.msk.bf16.mxu0 %vm150_vm2, %v120_v55 }
  0x49   :  { %6490 = vmatmul.mubr.msk.bf16.gmra.mrb[32].mxu0 %vm150_vm2, %v121_v60 }
  0x4a   :  { %6493 = vmatprep.mubr.msk.bf16.mxu0 %vm150_vm2, %v122_v61 }
  0x51   :  { %6494 = vmatmul.mubr.msk.bf16.gmra.mrb[36].mxu0 %vm150_vm2, %v123_v2 }
  0x52   :  { %6497 = vmatprep.mubr.msk.bf16.mxu0 %vm150_vm2, %v124_v3 }
  0x59   :  { %6498 = vmatmul.mubr.msk.bf16.gmra.mrb[40].mxu0 %vm150_vm2, %v125_v6 }
  0x5a   :  { %6501 = vmatprep.mubr.msk.bf16.mxu0 %vm150_vm2, %v126_v9 }
  0x61   :  { %6502 = vmatmul.mubr.msk.bf16.gmra.mrb[44].mxu0 %vm150_vm2, %v127_v12 }
  0x62   :  { %6505 = vmatprep.mubr.msk.bf16.mxu0 %vm150_vm2, %v128_v16 }
  0x69   :  { %6506 = vmatmul.mubr.msk.bf16.gmra.mrb[48].mxu0 %vm150_vm2, %v129_v18 }
  0x6a   :  { %6509 = vmatprep.mubr.msk.bf16.mxu0 %vm150_vm2, %v130_v22 }
  0x71   :  { %6510 = vmatmul.mubr.msk.bf16.gmra.mrb[52].mxu0 %vm150_vm2, %v131_v24 }
  0x72   :  { %6513 = vmatprep.mubr.msk.bf16.mxu0 %vm150_vm2, %v132_v28 }
  0x79   :  { %6514 = vmatmul.mubr.msk.bf16.gmra.mrb[56].mxu0 %vm150_vm2, %v133_v30 }
  0xdc   :  { %v6459_v32 = vpop.f32.mrb[0].mxu0 }
  0xdd   :  { %v297_v33 = vadd.f32 %v6459_v32, %v8869_v31  ;;  %v288_v34 = vpop.f32.mrb[1].mxu0 }
  0xde   :  { %v289_v35 = vadd.f32 %v8869_v31, %v288_v34  ;;  %v6460_v36 = vpop.f32.mrb[2].mxu0 }
  0xdf   :  { %8242 = vtanh.f32 %v297_v33  ;;  %v300_v37 = vadd.f32 %v6460_v36, %v8869_v31  ;;  %v291_v38 = vpop.f32.mrb[3].mxu0 }
  0xe0   :  { %8244 = vtanh.f32 %v289_v35  ;;  %v292_v39 = vadd.f32 %v8869_v31, %v291_v38 }
  0xe1   :  { %8246 = vtanh.f32 %v300_v37 }
  0xe2   :  { %8248 = vtanh.f32 %v292_v39 }
  0xe4   :  { %v6463_v40 = vpop.f32.mrb[4].mxu0 }
  0xe5   :  { %v313_v41 = vadd.f32 %v6463_v40, %v8869_v31  ;;  %v304_v42 = vpop.f32.mrb[5].mxu0 }
  0xe6   :  { %v305_v43 = vadd.f32 %v8869_v31, %v304_v42  ;;  %v6464_v44 = vpop.f32.mrb[6].mxu0 }
  0xe7   :  { %8250 = vtanh.f32 %v313_v41  ;;  %v316_v45 = vadd.f32 %v6464_v44, %v8869_v31  ;;  %v307_v46 = vpop.f32.mrb[7].mxu0 }
  0xe8   :  { %8252 = vtanh.f32 %v305_v43  ;;  %v308_v47 = vadd.f32 %v8869_v31, %v307_v46 }
  0xe9   :  { %v8243_v48 = vpop.eup %8242  ;;  %8254 = vtanh.f32 %v316_v45 }
  0xea   :  { %v8245_v49 = vpop.eup %8244  ;;  %8256 = vtanh.f32 %v308_v47  ;;  %v675_v53 = vrot.slane %v8243_v48, 1  ;;  %v932_v55 = vrot.slane %v8243_v48, 2 }
  0xeb   :  { %v8881_v50 = vpop.eup %8246  ;;  %v672_v59 = vrot.slane %v8245_v49, 1  ;;  %v929_v1 = vrot.slane %v8245_v49, 2 }
  0xec   :  { %v8249_v51 = vpop.eup %8248  ;;  %v6467_v52 = vpop.f32.mrb[8].mxu0  ;;  %v677_v54 = vrot.slane %v8881_v50, 1  ;;  %v934_v56 = vrot.slane %v8881_v50, 2 }
  0xed   :  { %v329_v57 = vadd.f32 %v6467_v52, %v8869_v31  ;;  %v320_v58 = vpop.f32.mrb[9].mxu0  ;;  %v673_v60 = vrot.slane %v8249_v51, 1  ;;  %v930_v61 = vrot.slane %v8249_v51, 2 }
  0xee   :  { %v321_v62 = vadd.f32 %v8869_v31, %v320_v58  ;;  %v6468_v63 = vpop.f32.mrb[10].mxu0  ;;  %v678_v0 = vsel %vm671_vm3, %v675_v53, %v677_v54  ;;  %v935_v2 = vsel %vm14042_vm4, %v932_v55, %v934_v56 }
  0xef   :  { %8258 = vtanh.f32 %v329_v57  ;;  %v332_v3 = vadd.f32 %v6468_v63, %v8869_v31  ;;  %v323_v4 = vpop.f32.mrb[11].mxu0  ;;  %v674_v5 = vsel %vm671_vm3, %v672_v59, %v673_v60  ;;  %v676_v6 = vsel %vm671_vm3, %v673_v60, %v675_v53 }
  0xf0   :  { %8260 = vtanh.f32 %v321_v62  ;;  %v324_v7 = vadd.f32 %v8869_v31, %v323_v4  ;;  %v864_v8 = vmax.f32 %v8245_v49, %v674_v5  ;;  %v865_v9 = vmax.f32 %v8249_v51, %v676_v6 }
  0xf1   :  { %v8251_v10 = vpop.eup %8250  ;;  %8262 = vtanh.f32 %v332_v3  ;;  %v866_v11 = vmax.f32 %v8243_v48, %v678_v0  ;;  %v931_v12 = vsel %vm14042_vm4, %v929_v1, %v930_v61  ;;  %v933_v13 = vsel %vm14042_vm4, %v930_v61, %v932_v55 }
  0xf2   :  { %v8253_v14 = vpop.eup %8252  ;;  %8264 = vtanh.f32 %v324_v7  ;;  %v1121_v15 = vmax.f32 %v864_v8, %v931_v12  ;;  %v1122_v19 = vmax.f32 %v865_v9, %v933_v13  ;;  %v683_v24 = vrot.slane %v8251_v10, 1 }
  0xf3   :  { %v8895_v16 = vpop.eup %8254  ;;  %v679_v17 = vrot.slane %v8253_v14, 1  ;;  %v936_v18 = vrot.slane %v8253_v14, 2  ;;  %v1123_v20 = vmax.f32 %v866_v11, %v935_v2  ;;  %v940_v25 = vrot.slane %v8251_v10, 2 }
  0xf4   :  { %v8257_v21 = vpop.eup %8256  ;;  %v685_v22 = vrot.slane %v8895_v16, 1  ;;  %v6471_v23 = vpop.f32.mrb[12].mxu0  ;;  %v942_v36 = vrot.slane %v8895_v16, 2 }
  0xf5   :  { %v345_v26 = vadd.f32 %v6471_v23, %v8869_v31  ;;  %v336_v27 = vpop.f32.mrb[13].mxu0  ;;  %v680_v28 = vsel %vm671_vm3, %v677_v54, %v679_v17  ;;  %v681_v29 = vrot.slane %v8257_v21, 1  ;;  %v937_v30 = vsel %vm14042_vm4, %v934_v56, %v936_v18 }
  0xf6   :  { %v6472_v32 = vpop.f32.mrb[14].mxu0  ;;  %v686_v33 = vsel %vm671_vm3, %v683_v24, %v685_v22  ;;  %v867_v34 = vmax.f32 %v8881_v50, %v680_v28  ;;  %v938_v35 = vrot.slane %v8257_v21, 2  ;;  %v943_v48 = vsel %vm14042_vm4, %v940_v25, %v942_v36 }
  0xf7   :  { %8266 = vtanh.f32 %v345_v26  ;;  %v348_v37 = vadd.f32 %v6472_v32, %v8869_v31  ;;  %v339_v38 = vpop.f32.mrb[15].mxu0  ;;  %v682_v39 = vsel %vm671_vm3, %v679_v17, %v681_v29  ;;  %v684_v40 = vsel %vm671_vm3, %v681_v29, %v683_v24 }
  0xf8   :  { %v868_v41 = vmax.f32 %v8253_v14, %v682_v39  ;;  %v869_v42 = vmax.f32 %v8257_v21, %v684_v40  ;;  %v870_v44 = vmax.f32 %v8251_v10, %v686_v33  ;;  %v939_v45 = vsel %vm14042_vm4, %v936_v18, %v938_v35 }
  0xf9   :  { %v8907_v43 = vpop.eup %8258  ;;  %8268 = vtanh.f32 %v348_v37  ;;  %v941_v46 = vsel %vm14042_vm4, %v938_v35, %v940_v25  ;;  %v8916_v49 = vmax.f32 %v867_v34, %v937_v30  ;;  %v1185_v59 = vmax.f32 %v1121_v15, %v1123_v20 }
  0xfa   :  { %v8911_v47 = vpop.eup %8260  ;;  %v8921_v52 = vmax.f32 %v868_v41, %v939_v45  ;;  %v8923_v53 = vmax.f32 %v869_v42, %v941_v46  ;;  %v8925_v54 = vmax.f32 %v870_v44, %v943_v48  ;;  %v691_v56 = vrot.slane %v8907_v43, 1 }
  0xfb   :  { %v8918_v50 = vpop.eup %8262  ;;  %v687_v51 = vrot.slane %v8911_v47, 1  ;;  %v1186_v60 = vmax.f32 %v1122_v19, %v8916_v49  ;;  %v337_v17 = vadd.f32 %v8869_v31, %v336_v27  ;;  %v340_v19 = vadd.f32 %v8869_v31, %v339_v38 }
  0xfc   :  { %v8927_v55 = vpop.eup %8264  ;;  %v693_v57 = vrot.slane %v8918_v50, 1  ;;  %v6475_v58 = vpop.f32.mrb[16].mxu0  ;;  %v1187_v0 = vmax.f32 %v1123_v20, %v8921_v52  ;;  %v1188_v1 = vmax.f32 %v8916_v49, %v8923_v53  ;;  %v8945_v4 = vmax.f32 %v1185_v59, %v8921_v52 }
  0xfd   :  { %v689_v61 = vrot.slane %v8927_v55, 1  ;;  %v361_v62 = vadd.f32 %v6475_v58, %v8869_v31  ;;  %v8934_v63 = vpop.f32.mrb[17].mxu0  ;;  %v8948_v5 = vmax.f32 %v1186_v60, %v8923_v53  ;;  %v688_v9 = vsel %vm671_vm3, %v685_v22, %v687_v51 }
  0xfe   :  { %v8942_v2 = vsel %vm671_vm3, %v691_v56, %v693_v57  ;;  %v6476_v3 = vpop.f32.mrb[18].mxu0  ;;  %v8954_v8 = vmax.f32 %v1187_v0, %v8925_v54  ;;  %v1377_v10 = vrot.slane %v8945_v4, 1  ;;  %v871_v22 = vmax.f32 %v8895_v16, %v688_v9 }
  0xff   :  { %8270 = vtanh.f32 %v361_v62  ;;  %v364_v6 = vadd.f32 %v6476_v3, %v8869_v31  ;;  %v8951_v7 = vpop.f32.mrb[19].mxu0  ;;  %v1378_v11 = vrot.slane %v8948_v5, 1  ;;  %v690_v14 = vsel %vm671_vm3, %v687_v51, %v689_v61 }
 0x100   :  { %14043 = vst [vmem:[#allocation5_spill] sm:$0xff] %v8954_v8  ;;  %v1380_v13 = vrot.slane %v8954_v8, 1  ;;  %v692_v15 = vsel %vm671_vm3, %v689_v61, %v691_v56  ;;  %v872_v27 = vmax.f32 %v8911_v47, %v690_v14  ;;  %v950_v28 = vrot.slane %v8918_v50, 2 }
 0x101   :  { %v8959_v12 = vpop.eup %8266  ;;  %8272 = vtanh.f32 %v364_v6  ;;  %v1379_v20 = vsel %vm671_vm3, %v1377_v10, %v1378_v11  ;;  %v873_v32 = vmax.f32 %v8927_v55, %v692_v15  ;;  %v944_v35 = vrot.slane %v8911_v47, 2 }
 0x102   :  { %v1381_v21 = vsel %vm671_vm3, %v1378_v11, %v1380_v13  ;;  %v699_v23 = vrot.slane %v8959_v12, 1  ;;  %8274 = vtanh.f32 %v337_v17  ;;  %v946_v37 = vrot.slane %v8927_v55, 2 }
 0x103   :  { %v8965_v18 = vpop.eup %8268  ;;  %v6647_v26 = vpack.i.bf16 %v1381_v21, %v1379_v20  ;;  %v948_v40 = vrot.slane %v8907_v43, 2  ;;  %v1189_v41 = vmax.f32 %v8921_v52, %v8925_v54  ;;  %v945_v42 = vsel %vm14042_vm4, %v942_v36, %v944_v35 }
 0x104   :  { %v701_v24 = vrot.slane %v8965_v18, 1  ;;  %v6479_v25 = vpop.f32.mrb[20].mxu0  ;;  %v947_v44 = vsel %vm14042_vm4, %v944_v35, %v946_v37  ;;  %v9007_v48 = vmax.f32 %v871_v22, %v945_v42  ;;  %v1506_v62 = vrot.slane %v8945_v4, 2 }
 0x105   :  { %v377_v29 = vadd.f32 %v6479_v25, %v8869_v31  ;;  %v8978_v30 = vpop.f32.mrb[21].mxu0  ;;  %6648 = vrot.lane.b32.xlu0 %v6647_v26, %s8576_s21  ;;  %v949_v46 = vsel %vm14042_vm4, %v946_v37, %v948_v40  ;;  %v951_v47 = vsel %vm14042_vm4, %v948_v40, %v950_v28  ;;  %v9009_v51 = vmax.f32 %v872_v27, %v947_v44 }
 0x106   :  { %v8986_v33 = vsel %vm671_vm3, %v699_v23, %v701_v24  ;;  %v6480_v34 = vpop.f32.mrb[22].mxu0  ;;  %v9013_v16 = vmax.f32 %v873_v32, %v949_v46  ;;  %v1190_v36 = vmax.f32 %v8923_v53, %v9007_v48  ;;  %v1509_v6 = vrot.slane %v8954_v8, 2 }
 0x107   :  { %8276 = vtanh.f32 %v377_v29  ;;  %v380_v38 = vadd.f32 %v6480_v34, %v8869_v31  ;;  %v8992_v39 = vpop.f32.mrb[23].mxu0  ;;  %v1191_v58 = vmax.f32 %v8925_v54, %v9009_v51  ;;  %v9022_v59 = vmax.f32 %v1189_v41, %v9009_v51 }
 0x108   :  { %8278 = vtanh.f32 %v340_v19  ;;  %v9027_v61 = vmax.f32 %v1190_v36, %v9013_v16  ;;  %v1507_v54 = vrot.slane %v8948_v5, 2  ;;  %v9045_v9 = vmax.f32 %v1188_v1, %v9007_v48 }
 0x109   :  { %v9001_v45 = vpop.eup %8270  ;;  %8280 = vtanh.f32 %v380_v38  ;;  %14044 = vst [vmem:[#allocation6_spill] sm:$0xff] %v9022_v59  ;;  %v1513_v14 = vrot.slane %v9022_v59, 2  ;;  %v874_v15 = vmax.f32 %v8907_v43, %v8942_v2  ;;  %v353_v20 = vadd.f32 %v8869_v31, %v8934_v63 }
 0x10a   :  { %v13901_v55 = vrot.slane %v9001_v45, 1  ;;  %14045 = vst [vmem:[#allocation7_spill] sm:$0xff] %v9027_v61  ;;  %v6662_v11 = vpack.i.bf16 %v9027_v61, %v9022_v59  ;;  %v1508_v49 = vsel %vm14042_vm4, %v1506_v62, %v1507_v54  ;;  %v1510_v53 = vsel %vm14042_vm4, %v1507_v54, %v1509_v6 }
 0x10b   :  { %v9011_v52 = vpop.eup %8272  ;;  %v1511_v1 = vrot.slane %v9045_v9, 2  ;;  %v6652_v22 = vpack.i.bf16 %v1510_v53, %v1508_v49  ;;  %v9064_v43 = vmax.f32 %v874_v15, %v951_v47  ;;  %v356_v25 = vadd.f32 %v8869_v31, %v8951_v7 }
 0x10c   :  { %v13899_v56 = vrot.slane %v9011_v52, 1  ;;  %v9024_v60 = vpop.f32.mrb[24].mxu0  ;;  %v9054_v19 = vpop.eup %8274  ;;  %6663 = vrot.lane.b32.xlu1 %v6662_v11, %s8577_s22  ;;  %v1384_v7 = vrot.slane %v9022_v59, 1  ;;  %v1386_v35 = vrot.slane %v9027_v61, 1  ;;  %8282 = vtanh.f32 %v353_v20 }
 0x10d   :  { %v9030_v0 = vpop.f32.mrb[25].mxu0  ;;  %v1512_v26 = vsel %vm14042_vm4, %v1509_v6, %v1511_v1  ;;  %v1514_v27 = vsel %vm14042_vm4, %v1511_v1, %v1513_v14  ;;  %6653 = vrot.lane.b32.xlu0 %v6652_v22, %s8578_s23  ;;  %v9081_v34 = vmax.f32 %v1191_v58, %v9064_v43  ;;  %v695_v37 = vrot.slane %v9054_v19, 1 }
 0x10e   :  { %v9037_v3 = vsel %vm671_vm3, %v13901_v55, %v13899_v56  ;;  %v6484_v10 = vpop.f32.mrb[26].mxu0  ;;  %v9078_v32 = vpack.i.bf16 %v1514_v27, %v1512_v26  ;;  %v1382_v40 = vrot.slane %v9045_v9, 1  ;;  %v956_v42 = vrot.slane %v8959_v12, 2  ;;  %v8188_v27 = vld [vmem:[%s13888_s3] sm:$0xff]  }
 0x10f   :  { %v9052_v17 = vpop.f32.mrb[27].mxu0  ;;  %14046 = vst [vmem:[#allocation8_spill] sm:$0xff] %v9081_v34  ;;  %v952_v44 = vrot.slane %v9054_v19, 2  ;;  %v6657_v46 = vpack.i.bf16 %v9045_v9, %v8954_v8  ;;  %v13902_v47 = vrot.slane %v9081_v34, 1  ;;  %8284 = vtanh.f32 %v356_v25  ;;  %6521 = vmatprep.subr.bf16.mxu1 %v8188_v27 }
 0x110   :  { %6678 = vrot.lane.b32.xlu1 %v9078_v32, %s8578_s23  ;;  %v1387_v15 = vsel %vm671_vm3, %v1384_v7, %v1386_v35  ;;  %v1385_v49 = vsel %vm671_vm3, %v1382_v40, %v1384_v7  ;;  %v1383_v22 = vsel %vm671_vm3, %v1380_v13, %v1382_v40  ;;  %v1515_v25 = vrot.slane %v9027_v61, 2  ;;  %6522 = vmatpush3.bf16.msra.mxu1 %v8188_v27 }
 0x111   :  { %v9061_v21 = vpop.eup %8276  ;;  %6658 = vrot.lane.b32.xlu0 %v6657_v46, %s8577_s22  ;;  %v1389_v20 = vsel %vm671_vm3, %v1386_v35, %v13902_v47  ;;  %v696_v26 = vsel %vm671_vm3, %v693_v57, %v695_v37  ;;  %v13900_v7 = vrot.slane %v9081_v34, 2  ;;  %v953_v46 = vsel %vm14042_vm4, %v950_v28, %v952_v44 }
 0x112   :  { %v9066_v2 = vpop.eup %8278  ;;  %v13898_v63 = vrot.slane %v9061_v21, 1  ;;  %v9118_v1 = vpack.i.bf16 %v1389_v20, %v1387_v15  ;;  %v875_v35 = vmax.f32 %v8918_v50, %v696_v26  ;;  %v1192_v13 = vmax.f32 %v9007_v48, %v9013_v16 }
 0x113   :  { %v9075_v29 = vpop.eup %8280  ;;  %v697_v58 = vrot.slane %v9066_v2, 1  ;;  %v954_v62 = vrot.slane %v9066_v2, 2  ;;  %v6672_v40 = vpack.i.bf16 %v1385_v49, %v1383_v22  ;;  %v393_v57 = vadd.f32 %v9024_v60, %v8869_v31 }
 0x114   :  { %v13897_v38 = vrot.slane %v9075_v29, 1  ;;  %v9088_v41 = vpop.f32.mrb[28].mxu0  ;;  %6693 = vrot.lane.b32.xlu1 %v9118_v1, %s8576_s21  ;;  %v396_v15 = vadd.f32 %v6484_v10, %v8869_v31  ;;  %v9143_v20 = vmax.f32 %v875_v35, %v953_v46  ;;  %v1516_v27 = vsel %vm14042_vm4, %v1513_v14, %v1515_v25 }
 0x115   :  { %v9097_v36 = vpop.f32.mrb[29].mxu0  ;;  %6668 = vrot.lane.b32.xlu0 %v6662_v11, %s8579_s25  ;;  %v698_v50 = vsel %vm671_vm3, %v695_v37, %v697_v58  ;;  %v700_v28 = vsel %vm671_vm3, %v697_v58, %v699_v23  ;;  %v955_v48 = vsel %vm14042_vm4, %v952_v44, %v954_v62  ;;  %8286 = vtanh.f32 %v393_v57  ;;  %v8189_v37 = vld [vmem:[%s13888_s3 + $0x8] sm:$0xff]  }
 0x116   :  { %v9106_v54 = vsel %vm671_vm3, %v13898_v63, %v13897_v38  ;;  %v9108_v6 = vpop.f32.mrb[30].mxu0  ;;  %v876_v49 = vmax.f32 %v9054_v19, %v698_v50  ;;  %v877_v60 = vmax.f32 %v9066_v2, %v700_v28  ;;  %v957_v10 = vsel %vm14042_vm4, %v954_v62, %v956_v42  ;;  %v9172_v62 = vpop.eup %8282  ;;  %6523 = vmatprep.subr.bf16.mxu1 %v8189_v37 }
 0x117   :  { %v9116_v53 = vpop.f32.mrb[31].mxu0  ;;  %v1518_v23 = vsel %vm14042_vm4, %v1515_v25, %v13900_v7  ;;  %v9164_v44 = vmax.f32 %v1192_v13, %v9143_v20  ;;  %v1193_v19 = vmax.f32 %v9009_v51, %v9064_v43  ;;  %v1194_v2 = vmax.f32 %v9013_v16, %v9143_v20  ;;  %v8190_v51 = vld [vmem:[%s13888_s3 + $0x10] sm:$0xff]   ;;  %6524 = vmatpush3.bf16.msra.mxu1 %v8189_v37 }
 0x118   :  { %6698 = vrot.lane.b32.xlu1 %v9118_v1, %s8580_s28  ;;  %8288 = vtanh.f32 %v396_v15  ;;  %v9176_v22 = vmax.f32 %v876_v49, %v955_v48  ;;  %v9178_v26 = vmax.f32 %v877_v60, %v957_v10  ;;  %v958_v16 = vrot.slane %v8965_v18, 2  ;;  %6525 = vmatprep.subr.bf16.mxu1 %v8190_v51 }
 0x119   :  { %14047 = vst [vmem:[#allocation9_spill] sm:$0xff] %v9164_v44  ;;  %6673 = vrot.lane.b32.xlu0 %v6672_v40, %s8576_s21  ;;  %v9192_v13 = vpop.eup %8284  ;;  %v9194_v57 = vpack.i.bf16 %v1518_v23, %v1516_v27  ;;  %v878_v28 = vmax.f32 %v8959_v12, %v8986_v33  ;;  %v369_v48 = vadd.f32 %v8869_v31, %v8978_v30  ;;  %v703_v14 = vrot.slane %v9172_v62, 1  ;;  %v8191_v30 = vld [vmem:[%s13888_s3 + $0x18] sm:$0xff]  }
 0x11a   :  { %v9197_v15 = vmax.f32 %v1193_v19, %v9176_v22  ;;  %v9200_v50 = vmax.f32 %v1194_v2, %v9178_v26  ;;  %v959_v25 = vsel %vm14042_vm4, %v956_v42, %v958_v16  ;;  %v1195_v33 = vmax.f32 %v9064_v43, %v9176_v22 }
 0x11b   :  { %v9220_v49 = vpack.i.bf16 %v9164_v44, %v9081_v34  ;;  %v9222_v60 = vmax.f32 %v878_v28, %v959_v25  ;;  %6526 = vmatpush3.bf16.msra.mxu1 %v8190_v51  ;;  %8290 = vtanh.f32 %v369_v48  ;;  %v372_v19 = vadd.f32 %v8869_v31, %v8992_v39 }
 0x11c   :  { %v9155_v11 = vpop.f32.mrb[32].mxu0  ;;  %14048 = vst [vmem:[#allocation10_spill] sm:$0xff] %v9197_v15  ;;  %14049 = vst [vmem:[#allocation11_spill] sm:$0xff] %v9200_v50  ;;  %6703 = vrot.lane.b32.xlu1 %v9194_v57, %s8581_s12  ;;  %v13906_v12 = vrot.slane %v9197_v15, 1  ;;  %v1390_v51 = vrot.slane %v9164_v44, 1  ;;  %v704_v27 = vsel %vm671_vm3, %v701_v24, %v703_v14  ;;  %6527 = vmatprep.subr.bf16.mxu1 %v8191_v30  ;;  %v705_v25 = vrot.slane %v9192_v13, 1 }
 0x11d   :  { %v9170_v58 = vpop.f32.mrb[33].mxu0  ;;  %6683 = vrot.lane.b32.xlu0 %v6672_v40, %s8580_s28  ;;  %v960_v40 = vrot.slane %v9172_v62, 2  ;;  %v9235_v37 = vmax.f32 %v1195_v33, %v9222_v60  ;;  %v9255_v39 = vpack.i.bf16 %v9200_v50, %v9197_v15  ;;  %v879_v38 = vmax.f32 %v8965_v18, %v704_v27  ;;  %v9295_v27 = vld [vmem:[%s13888_s3 + $0x28] sm:$0x1f]  }
 0x11e   :  { %v9180_v35 = vpop.f32.mrb[34].mxu0  ;;  %v1393_v24 = vsel %vm671_vm3, %v1390_v51, %v13906_v12  ;;  %v962_v56 = vrot.slane %v9192_v13, 2  ;;  %v1196_v7 = vmax.f32 %v9143_v20, %v9178_v26  ;;  %v409_v55 = vadd.f32 %v9088_v41, %v8869_v31 }
 0x11f   :  { %v9190_v46 = vpop.f32.mrb[35].mxu0  ;;  %v9230_v43 = vpop.eup %8286  ;;  %14050 = vst [vmem:[#allocation12_spill] sm:$0xff] %v9235_v37  ;;  %v961_v63 = vsel %vm14042_vm4, %v958_v16, %v960_v40  ;;  %6528 = vmatpush3.bf16.msra.mxu1 %v8191_v30  ;;  %v964_v47 = vrot.slane %v9001_v45, 2  ;;  %8292 = vtanh.f32 %v372_v19  ;;  %v14051_v16 = vrot.slane %v9081_v34, 1 }
 0x120   :  { %6723 = vrot.lane.b32.xlu1 %v9220_v49, %s8579_s25  ;;  %v13904_v2 = vrot.slane %v9230_v43, 1  ;;  %v9288_v30 = vmax.f32 %v879_v38, %v961_v63  ;;  %8294 = vtanh.f32 %v409_v55 }
 0x121   :  { %6688 = vrot.lane.b32.xlu0 %v9078_v32, %s8581_s12  ;;  %v8192_v32 = vld [vmem:[%s13888_s3 + $0x20] sm:$0xff]   ;;  %v1391_v20 = vsel %vm671_vm3, %v14051_v16, %v1390_v51  ;;  %v706_v51 = vsel %vm671_vm3, %v703_v14, %v705_v25  ;;  %s8583_s3 = smov 80  }
 0x122   :  { %v9250_v48 = vpop.eup %8288  ;;  %6529 = vmatprep.subr.bf16.mxu1 %v8192_v32  ;;  %v9286_v41 = vpack.i.bf16 %v1393_v24, %v1391_v20  ;;  %v14052_v24 = vrot.slane %v9001_v45, 1  ;;  %v9309_v38 = vmax.f32 %v1196_v7, %v9288_v30  ;;  %v880_v16 = vmax.f32 %v9172_v62, %v706_v51 }
 0x123   :  { %v13903_v33 = vrot.slane %v9250_v48, 1  ;;  %6530 = vmatpush3.bf16.msra.mxu1 %v8192_v32  ;;  %v965_v32 = vsel %vm14042_vm4, %v962_v56, %v964_v47  ;;  %v1197_v7 = vmax.f32 %v9176_v22, %v9222_v60  ;;  %v1198_v62 = vmax.f32 %v9178_v26, %v9288_v30 }
 0x124   :  { %v9224_v10 = vpop.f32.mrb[36].mxu0  ;;  %6733 = vrot.lane.b32.xlu1 %v9255_v39, %s8577_s22  ;;  %v708_v63 = vsel %vm671_vm3, %v705_v25, %v14052_v24  ;;  %14053 = vst [vmem:[#allocation13_spill] sm:$0xff] %v9309_v38  ;;  %v1519_v25 = vrot.slane %v9164_v44, 2  ;;  %6627 = vmatprep.subr.msk.bf16.mxu1 %vm248_vm1, %v9295_v27 }
 0x125   :  { %v9228_v42 = vpop.f32.mrb[37].mxu0  ;;  %v9279_v18 = vsel %vm671_vm3, %v13904_v2, %v13903_v33  ;;  %6708 = vrot.lane.b32.xlu0 %v9118_v1, %s8582_s17  ;;  %v13905_v33 = vrot.slane %v9197_v15, 2  ;;  %v412_v1 = vadd.f32 %v9108_v6, %v8869_v31  ;;  %v881_v20 = vmax.f32 %v9192_v13, %v708_v63 }
 0x126   :  { %v9237_v23 = vpop.f32.mrb[38].mxu0  ;;  %v963_v6 = vsel %vm14042_vm4, %v960_v40, %v962_v56  ;;  %v9328_v40 = vpop.eup %8290  ;;  %v966_v56 = vrot.slane %v9011_v52, 2 }
 0x127   :  { %v9248_v28 = vpop.f32.mrb[39].mxu0  ;;  %8296 = vtanh.f32 %v412_v1  ;;  %v9330_v51 = vmax.f32 %v880_v16, %v963_v6  ;;  %v9332_v24 = vmax.f32 %v881_v20, %v965_v32  ;;  %v1522_v22 = vsel %vm14042_vm4, %v1519_v25, %v13905_v33 }
 0x128   :  { %6743 = vrot.lane.b32.xlu1 %v9286_v41, %s8576_s21  ;;  %v14056_v1 = vrot.slane %v9081_v34, 2  ;;  %v882_v20 = vmax.f32 %v9001_v45, %v9037_v3  ;;  %v711_v6 = vrot.slane %v9328_v40, 1  ;;  %v967_v33 = vsel %vm14042_vm4, %v964_v47, %v966_v56 }
 0x129   :  { %6713 = vrot.lane.b32.xlu0 %v9194_v57, %s8583_s3  ;;  %v9341_v26 = vmax.f32 %v1197_v7, %v9330_v51  ;;  %v9344_v63 = vmax.f32 %v1198_v62, %v9332_v24  ;;  %v8293_v2 = vpop.eup %8292  ;;  %v13908_v7 = vrot.slane %v9235_v37, 1  ;;  %v1199_v62 = vmax.f32 %v9222_v60, %v9330_v51 }
 0x12a   :  { %v1520_v16 = vsel %vm14042_vm4, %v14056_v1, %v1519_v25  ;;  %v9358_v12 = vpop.eup %8294  ;;  %v9363_v25 = vmax.f32 %v882_v20, %v967_v33  ;;  %v968_v45 = vrot.slane %v9328_v40, 2  ;;  %v1394_v3 = vrot.slane %v9200_v50, 1 }
 0x12b   :  { %14054 = vst [vmem:[#allocation14_spill] sm:$0xff] %v9341_v26  ;;  %14055 = vst [vmem:[#allocation15_spill] sm:$0xff] %v9344_v63  ;;  %v6752_v32 = vpack.i.bf16 %v1522_v22, %v1520_v16  ;;  %v14058_v1 = vrot.slane %v9011_v52, 1  ;;  %v713_v20 = vrot.slane %v8293_v2, 1  ;;  %v970_v34 = vrot.slane %v8293_v2, 2 }
 0x12c   :  { %v9290_v19 = vpop.f32.mrb[40].mxu0  ;;  %6748 = vrot.lane.b32.xlu1 %v9286_v41, %s8582_s17  ;;  %v9372_v22 = vmax.f32 %v1199_v62, %v9363_v25  ;;  %v1523_v62 = vrot.slane %v9200_v50, 2  ;;  %v969_v60 = vsel %vm14042_vm4, %v966_v56, %v968_v45  ;;  %v1200_v50 = vmax.f32 %v9288_v30, %v9332_v24 }
 0x12d   :  { %v9304_v55 = vpop.f32.mrb[41].mxu0  ;;  %6718 = vrot.lane.b32.xlu0 %v9194_v57, %s8578_s23  ;;  %v385_v57 = vadd.f32 %v8869_v31, %v9030_v0  ;;  %v1397_v0 = vsel %vm671_vm3, %v1394_v3, %v13908_v7  ;;  %v712_v16 = vsel %vm671_vm3, %v14058_v1, %v711_v6  ;;  %v14059_v7 = vrot.slane %v9197_v15, 1 }
 0x12e   :  { %v9314_v14 = vpop.f32.mrb[42].mxu0  ;;  %14057 = vst [vmem:[#allocation16_spill] sm:$0xff] %v9372_v22  ;;  %v883_v1 = vmax.f32 %v9011_v52, %v712_v16  ;;  %v14061_v52 = vrot.slane %v9358_v12, 1  ;;  %v14064_v16 = vrot.slane %v9061_v21, 1 }
 0x12f   :  { %v9326_v13 = vpop.f32.mrb[43].mxu0  ;;  %8298 = vtanh.f32 %v385_v57  ;;  %v1395_v47 = vsel %vm671_vm3, %v14059_v7, %v1394_v3  ;;  %v14060_v57 = vrot.slane %v9235_v37, 2  ;;  %v388_v7 = vadd.f32 %v8869_v31, %v9052_v17 }
 0x130   :  { %6753 = vrot.lane.b32.xlu1 %v6752_v32, %s8583_s3  ;;  %v6777_v44 = vpack.i.bf16 %v1397_v0, %v1395_v47  ;;  %v9409_v3 = vmax.f32 %v883_v1, %v969_v60  ;;  %v14062_v47 = vrot.slane %v9197_v15, 2  ;;  %v428_v0 = vadd.f32 %v9180_v35, %v8869_v31 }
 0x131   :  { %6728 = vrot.lane.b32.xlu0 %v9220_v49, %s8577_s22  ;;  %v9381_v49 = vpop.eup %8296  ;;  %v1526_v59 = vsel %vm14042_vm4, %v1523_v62, %v14060_v57  ;;  %v714_v60 = vsel %vm671_vm3, %v711_v6, %v713_v20  ;;  %v716_v1 = vsel %vm671_vm3, %v713_v20, %v14064_v16  ;;  %v971_v57 = vsel %vm14042_vm4, %v968_v45, %v970_v34  ;;  %v100_v6 = vld [vmem:[%s13885_s0 + $0x1e0] sm:$0xff] }
 0x132   :  { %v13912_v33 = vrot.slane %v9381_v49, 1  ;;  %v1524_v30 = vsel %vm14042_vm4, %v14062_v47, %v1523_v62  ;;  %v884_v62 = vmax.f32 %v9328_v40, %v714_v60  ;;  %v1202_v40 = vmax.f32 %v9332_v24, %v9409_v3  ;;  %v103_v24 = vld [vmem:[%s13885_s0 + $0x1f8] sm:$0xff] }
 0x133   :  { %v9417_v17 = vpack.i.bf16 %v1526_v59, %v1524_v30  ;;  %v974_v20 = vrot.slane %v9075_v29, 2  ;;  %v1398_v60 = vrot.slane %v9309_v38, 1  ;;  %v886_v16 = vmax.f32 %v9061_v21, %v9106_v54 }
 0x134   :  { %6758 = vrot.lane.b32.xlu1 %v6752_v32, %s8578_s23  ;;  %v9407_v56 = vsel %vm671_vm3, %v14061_v52, %v13912_v33  ;;  %v9437_v35 = vmax.f32 %v884_v62, %v971_v57  ;;  %v13913_v52 = vrot.slane %v9341_v26, 1  ;;  %v9481_v62 = vpack.i.bf16 %v9344_v63, %v9341_v26 }
 0x135   :  { %6738 = vrot.lane.b32.xlu0 %v9255_v39, %s8579_s25  ;;  %v425_v39 = vadd.f32 %v9155_v11, %v8869_v31  ;;  %v9420_v11 = vmax.f32 %v1200_v50, %v9409_v3  ;;  %v885_v50 = vmax.f32 %v8293_v2, %v716_v1  ;;  %v14071_v33 = vrot.slane %v9075_v29, 1 }
 0x136   :  { %v1401_v54 = vsel %vm671_vm3, %v1398_v60, %v13913_v52 }
 0x137   :  { %8300 = vtanh.f32 %v425_v39  ;;  %14063 = vst [vmem:[#allocation17_spill] sm:$0xff] %v9420_v11  ;;  %v1201_v39 = vmax.f32 %v9330_v51, %v9363_v25  ;;  %v102_v51 = vld [vmem:[%s13885_s0 + $0x1f0] sm:$0xff] }
 0x138   :  { %6778 = vrot.lane.b32.xlu1 %v6777_v44, %s8580_s28  ;;  %8302 = vtanh.f32 %v388_v7  ;;  %v9461_v7 = vpack.i.bf16 %v9309_v38, %v9235_v37 }
 0x139   :  { %6763 = vrot.lane.b32.xlu0 %v9286_v41, %s8580_s28  ;;  %v14065_v41 = vrot.slane %v9061_v21, 2  ;;  %8304 = vtanh.f32 %v428_v0  ;;  %v9456_v45 = vpop.eup %8298  ;;  %v135_v0 = vpack.c.bf16 %v103_v24, %v102_v51  ;;  %v13915_v51 = vrot.slane %v9341_v26, 2 }
 0x13b   :  { %v973_v59 = vsel %vm14042_vm4, %v970_v34, %v14065_v41  ;;  %v101_v34 = vld [vmem:[%s13885_s0 + $0x1e8] sm:$0xff]  ;;  %v14068_v57 = vmov %v14065_v41  ;;  %s8588_s0 = smov 120  }
 0x13c   :  { %6783 = vrot.lane.b32.xlu1 %v9417_v17, %s8581_s12  ;;  %v9448_v2 = vmax.f32 %v885_v50, %v973_v59  ;;  %v134_v30 = vpack.c.bf16 %v101_v34, %v100_v6  ;;  %v975_v41 = vsel %vm14042_vm4, %v14068_v57, %v974_v20  ;;  %v1203_v59 = vmax.f32 %v9363_v25, %v9437_v35 }
 0x13d   :  { %6768 = vrot.lane.b32.xlu0 %v6752_v32, %s8581_s12  ;;  %v9464_v32 = vmax.f32 %v1201_v39, %v9437_v35  ;;  %v719_v50 = vrot.slane %v9456_v45, 1  ;;  %v976_v39 = vrot.slane %v9456_v45, 2  ;;  %v9498_v21 = vmax.f32 %v886_v16, %v975_v41 }
 0x13e   :  { %v9468_v47 = vmax.f32 %v1202_v40, %v9448_v2  ;;  %6517 = vmatprep.mubr.msk.bf16.mxu0 %vm150_vm2, %v134_v30  ;;  %v401_v40 = vadd.f32 %v8869_v31, %v9097_v36  ;;  %v14069_v25 = vrot.slane %v9235_v37, 1  ;;  %v404_v36 = vadd.f32 %v8869_v31, %v9116_v53 }
 0x13f   :  { %14066 = vst [vmem:[#allocation18_spill] sm:$0xff] %v9464_v32  ;;  %6518 = vmatmul.mubr.msk.bf16.gmra.mrb[60].mxu0 %vm150_vm2, %v135_v0  ;;  %v9514_v57 = vmax.f32 %v1203_v59, %v9498_v21  ;;  %v720_v52 = vsel %vm671_vm3, %v14071_v33, %v719_v50  ;;  %v980_v30 = vrot.slane %v9230_v43, 2  ;;  %v1204_v8 = vmax.f32 %v9409_v3, %v9448_v2 }
 0x140   :  { %14067 = vst [vmem:[#allocation19_spill] sm:$0xff] %v9468_v47  ;;  %6803 = vrot.lane.b32.xlu1 %v9461_v7, %s8579_s25  ;;  %v1399_v34 = vsel %vm671_vm3, %v14069_v25, %v1398_v60  ;;  %v1527_v60 = vrot.slane %v9309_v38, 2  ;;  %v887_v59 = vmax.f32 %v9075_v29, %v720_v52  ;;  %8306 = vtanh.f32 %v401_v40 }
 0x141   :  { %6773 = vrot.lane.b32.xlu0 %v6777_v44, %s8576_s21  ;;  %v9477_v1 = vpop.eup %8300  ;;  %v9511_v16 = vpack.i.bf16 %v1401_v54, %v1399_v34  ;;  %14070 = vst [vmem:[#allocation20_spill] sm:$0xff] %v9514_v57  ;;  %v977_v54 = vsel %vm14042_vm4, %v974_v20, %v976_v39  ;;  %8308 = vtanh.f32 %v404_v36  ;;  %v444_v36 = vadd.f32 %v9237_v23, %v8869_v31 }
 0x142   :  { %v8303_v6 = vpop.eup %8302  ;;  %v13919_v24 = vrot.slane %v9477_v1, 1  ;;  %v1530_v25 = vsel %vm14042_vm4, %v1527_v60, %v13915_v51  ;;  %v14073_v29 = vrot.slane %v9477_v1, 2  ;;  %v9552_v15 = vmax.f32 %v887_v59, %v977_v54 }
 0x143   :  { %v9507_v0 = vpop.eup %8304  ;;  %v721_v53 = vrot.slane %v8303_v6, 1  ;;  %v978_v34 = vrot.slane %v8303_v6, 2  ;;  %v441_v59 = vadd.f32 %v9224_v10, %v8869_v31  ;;  %v1402_v23 = vrot.slane %v9344_v63, 1 }
 0x144   :  { %6813 = vrot.lane.b32.xlu1 %v9481_v62, %s8577_s22  ;;  %v13918_v41 = vrot.slane %v9507_v0, 1  ;;  %v14072_v38 = vrot.slane %v9507_v0, 2  ;;  %vm4946_vm2 = vcmask 588800  }
 0x145   :  { %6788 = vrot.lane.b32.xlu0 %v6777_v44, %s8582_s17  ;;  %v9516_v44 = vpop.f32.mrb[44].mxu0  ;;  %v722_v3 = vsel %vm671_vm3, %v719_v50, %v721_v53  ;;  %8310 = vtanh.f32 %v441_v59  ;;  %v981_v31 = vsel %vm14042_vm4, %v978_v34, %v980_v30  ;;  %v1206_v50 = vmax.f32 %v9448_v2, %v9552_v15 }
 0x146   :  { %v9539_v33 = vsel %vm671_vm3, %v13919_v24, %v13918_v41  ;;  %v9546_v20 = vsel %vm14042_vm4, %v14073_v29, %v14072_v38  ;;  %v9548_v52 = vpop.f32.mrb[45].mxu0  ;;  %v14074_v41 = vrot.slane %v9235_v37, 2  ;;  %v888_v10 = vmax.f32 %v9456_v45, %v722_v3 }
 0x147   :  { %v9554_v61 = vpop.f32.mrb[46].mxu0  ;;  %8312 = vtanh.f32 %v444_v36  ;;  %v14079_v29 = vrot.slane %v9341_v26, 1  ;;  %v1531_v36 = vrot.slane %v9344_v63, 2  ;;  %v13921_v3 = vrot.slane %v9372_v22, 2 }
 0x148   :  { %6823 = vrot.lane.b32.xlu1 %v9511_v16, %s8576_s21  ;;  %v1528_v24 = vsel %vm14042_vm4, %v14074_v41, %v1527_v60  ;;  %v9561_v38 = vpop.f32.mrb[47].mxu0  ;;  %v9574_v60 = vmax.f32 %v1204_v8, %v9552_v15  ;;  %v14076_v41 = vrot.slane %v9230_v43, 1  ;;  %v1205_v8 = vmax.f32 %v9437_v35, %v9498_v21 }
 0x149   :  { %6793 = vrot.lane.b32.xlu0 %v9417_v17, %s8583_s3  ;;  %v9565_v40 = vpack.i.bf16 %v1530_v25, %v1528_v24  ;;  %v979_v24 = vsel %vm14042_vm4, %v976_v39, %v978_v34  ;;  %v982_v35 = vrot.slane %v9250_v48, 2  ;;  %v1403_v59 = vsel %vm671_vm3, %v14079_v29, %v1402_v23 }
 0x14a   :  { %14075 = vst [vmem:[#allocation21_spill] sm:$0xff] %v9574_v60  ;;  %v724_v54 = vsel %vm671_vm3, %v721_v53, %v14076_v41  ;;  %v9591_v39 = vmax.f32 %v888_v10, %v979_v24 }
 0x14b   :  { %v889_v25 = vmax.f32 %v8303_v6, %v724_v54  ;;  %v9598_v6 = vld [vmem:[%s13887_s2] ss:$0 sm:$0xff]  ;;  %v890_v54 = vmax.f32 %v9230_v43, %v9279_v18  ;;  %v983_v24 = vsel %vm14042_vm4, %v980_v30, %v982_v35 }
 0x14c   :  { %6828 = vrot.lane.b32.xlu1 %v9511_v16, %s8582_s17  ;;  %v436_v53 = vadd.f32 %v9598_v6, %v9248_v28  ;;  %v9606_v2 = vmax.f32 %v1205_v8, %v9591_v39  ;;  %v14080_v8 = vrot.slane %v9341_v26, 2  ;;  %v417_v43 = vadd.f32 %v9598_v6, %v9170_v58 }
 0x14d   :  { %6798 = vrot.lane.b32.xlu0 %v9417_v17, %s8578_s23  ;;  %v13922_v17 = vrot.slane %v9372_v22, 1  ;;  %v9593_v45 = vmax.f32 %v889_v25, %v981_v31  ;;  %v1207_v25 = vmax.f32 %v9498_v21, %v9591_v39  ;;  %v9645_v18 = vmax.f32 %v890_v54, %v983_v24 }
 0x14e   :  { %14077 = vst [vmem:[#allocation22_spill] sm:$0xff] %v9606_v2  ;;  %8314 = vtanh.f32 %v436_v53  ;;  %v14083_v24 = vrot.slane %v9250_v48, 1  ;;  %v14087_v26 = vrot.slane %v9358_v12, 2 }
 0x14f   :  { %v9609_v34 = vmax.f32 %v1206_v50, %v9593_v45  ;;  %v1405_v28 = vsel %vm671_vm3, %v1402_v23, %v13922_v17  ;;  %v1532_v50 = vsel %vm14042_vm4, %v14080_v8, %v1531_v36  ;;  %v9658_v8 = vmax.f32 %v1207_v25, %v9645_v18 }
 0x150   :  { %6833 = vrot.lane.b32.xlu1 %v9565_v40, %s8583_s3  ;;  %v6857_v10 = vpack.i.bf16 %v1405_v28, %v1403_v59  ;;  %8316 = vtanh.f32 %v417_v43  ;;  %v420_v25 = vadd.f32 %v9598_v6, %v9190_v46 }
 0x151   :  { %6808 = vrot.lane.b32.xlu0 %v9461_v7, %s8577_s22  ;;  %14078 = vst [vmem:[#allocation23_spill] sm:$0xff] %v9609_v34  ;;  %v9619_v7 = vpop.eup %8306  ;;  %14082 = vst [vmem:[#allocation25_spill] sm:$0xff] %v9658_v8 }
 0x152   :  { %v9623_v41 = vpop.eup %8308  ;;  %v727_v31 = vrot.slane %v9619_v7, 1  ;;  %v984_v23 = vrot.slane %v9619_v7, 2  ;;  %8318 = vtanh.f32 %v420_v25  ;;  %v460_v25 = vadd.f32 %v9598_v6, %v9314_v14 }
 0x153   :  { %v9640_v53 = vpop.eup %8310  ;;  %v729_v28 = vrot.slane %v9623_v41, 1  ;;  %v986_v17 = vrot.slane %v9623_v41, 2 }
 0x154   :  { %6838 = vrot.lane.b32.xlu1 %v9565_v40, %s8578_s23  ;;  %v747_v30 = vrot.slane %v9640_v53, 1  ;;  %v13925_v29 = vrot.slane %v9640_v53, 2  ;;  %v9652_v59 = vpop.eup %8312  ;;  %v985_v51 = vsel %vm14042_vm4, %v982_v35, %v984_v23 }
 0x155   :  { %6818 = vrot.lane.b32.xlu0 %v9481_v62, %s8579_s25  ;;  %v1534_v62 = vsel %vm14042_vm4, %v1531_v36, %v13921_v3  ;;  %14081 = vst [vmem:[#allocation24_spill] sm:$0xff] %v9652_v59  ;;  %v13924_v58 = vrot.slane %v9652_v59, 1  ;;  %v13923_v54 = vrot.slane %v9652_v59, 2  ;;  %v987_v21 = vsel %vm14042_vm4, %v984_v23, %v986_v17 }
 0x156   :  { %v9655_v36 = vpack.i.bf16 %v1534_v62, %v1532_v50  ;;  %v1208_v62 = vmax.f32 %v9552_v15, %v9593_v45  ;;  %v9693_v15 = vpack.i.bf16 %v9420_v11, %v9372_v22  ;;  %v989_v14 = vsel %vm14042_vm4, %v986_v17, %v14087_v26 }
 0x157   :  { %v9681_v35 = vsel %vm671_vm3, %v747_v30, %v13924_v58  ;;  %v9688_v46 = vsel %vm14042_vm4, %v13925_v29, %v13923_v54  ;;  %v1406_v58 = vrot.slane %v9420_v11, 1  ;;  %v1537_v26 = vrot.slane %v9464_v32, 2 }
 0x158   :  { %6858 = vrot.lane.b32.xlu1 %v6857_v10, %s8580_s28  ;;  %v9666_v3 = vpop.eup %8314  ;;  %14084 = vst [vmem:[#allocation26_spill] sm:$0xff] %v9681_v35 }
 0x159   :  { %6843 = vrot.lane.b32.xlu0 %v9511_v16, %s8580_s28  ;;  %v728_v16 = vsel %vm671_vm3, %v14083_v24, %v727_v31 }
 0x15a   :  { %v891_v50 = vmax.f32 %v9250_v48, %v728_v16  ;;  %v13926_v48 = vrot.slane %v9666_v3, 1 }
 0x15c   :  { %6863 = vrot.lane.b32.xlu1 %v9655_v36, %s8581_s12  ;;  %v9698_v24 = vmax.f32 %v891_v50, %v985_v51  ;;  %v9704_v54 = vsel %vm671_vm3, %v13926_v48, %v747_v30  ;;  %v9717_v51 = vpack.i.bf16 %v9468_v47, %v9464_v32  ;;  %v457_v30 = vadd.f32 %v9598_v6, %v9290_v19 }
 0x15d   :  { %6848 = vrot.lane.b32.xlu0 %v9565_v40, %s8581_s12  ;;  %v13928_v40 = vrot.slane %v9464_v32, 1  ;;  %v730_v50 = vsel %vm671_vm3, %v727_v31, %v729_v28  ;;  %v1209_v31 = vmax.f32 %v9591_v39, %v9645_v18  ;;  %v3842_v39 = vsel %vm248_vm1, %v9295_v27, 0 }
 0x15e   :  { %v9712_v43 = vmax.f32 %v1208_v62, %v9698_v24  ;;  %v14086_v62 = vrot.slane %v9358_v12, 1  ;;  %v892_v16 = vmax.f32 %v9619_v7, %v730_v50  ;;  %8320 = vtanh.f32 %v457_v30  ;;  %6532 = vmatpush3.bf16.msra.mxu1 %v3842_v39 }
 0x15f   :  { %v1409_v29 = vsel %vm671_vm3, %v1406_v58, %v13928_v40  ;;  %v14088_v40 = vrot.slane %v9372_v22, 1  ;;  %v1210_v23 = vmax.f32 %v9593_v45, %v9698_v24  ;;  %8322 = vtanh.f32 %v460_v25 }
 0x160   :  { %6883 = vrot.lane.b32.xlu1 %v9693_v15, %s8579_s25  ;;  %14085 = vst [vmem:[#allocation27_spill] sm:$0xff] %v9712_v43  ;;  %v732_v48 = vsel %vm671_vm3, %v729_v28, %v14086_v62  ;;  %v9743_v7 = vmax.f32 %v892_v16, %v987_v21  ;;  %v894_v27 = vmax.f32 %v9358_v12, %v9407_v56  ;;  %v14091_v25 = vrot.slane %v9381_v49, 2 }
 0x161   :  { %6853 = vrot.lane.b32.xlu0 %v6857_v10, %s8576_s21  ;;  %v893_v19 = vmax.f32 %v9623_v41, %v732_v48  ;;  %v1407_v28 = vsel %vm671_vm3, %v14088_v40, %v1406_v58  ;;  %v452_v41 = vadd.f32 %v9598_v6, %v9326_v13  ;;  %v9755_v48 = vpop.eup %8316  ;;  %v1535_v13 = vrot.slane %v9420_v11, 2 }
 0x162   :  { %v9757_v21 = vpack.i.bf16 %v1409_v29, %v1407_v28  ;;  %v9760_v58 = vmax.f32 %v1209_v31, %v9743_v7  ;;  %v9771_v29 = vpop.f32.mrb[48].mxu0  ;;  %v735_v40 = vrot.slane %v9755_v48, 1  ;;  %v992_v16 = vrot.slane %v9755_v48, 2  ;;  %v9785_v56 = vpop.eup %8318 }
 0x163   :  { %v9751_v17 = vmax.f32 %v893_v19, %v989_v14  ;;  %8324 = vtanh.f32 %v452_v41  ;;  %v1538_v30 = vsel %vm14042_vm4, %v1535_v13, %v1537_v26  ;;  %v14092_v50 = vrot.slane %v9358_v12, 2  ;;  %v9783_v19 = vpop.f32.mrb[49].mxu0 }
 0x164   :  { %6893 = vrot.lane.b32.xlu1 %v9717_v51, %s8577_s22  ;;  %14089 = vst [vmem:[#allocation28_spill] sm:$0xff] %v9760_v58  ;;  %14093 = vst [vmem:[#allocation30_spill] sm:$0xff] %v9783_v19  ;;  %v1412_v14 = vrot.slane %v9514_v57, 1  ;;  %v1211_v28 = vmax.f32 %v9645_v18, %v9743_v7  ;;  %v14094_v41 = vrot.slane %v9372_v22, 2  ;;  %v1539_v12 = vrot.slane %v9468_v47, 2 }
 0x165   :  { %6868 = vrot.lane.b32.xlu0 %v6857_v10, %s8582_s17  ;;  %v9764_v45 = vmax.f32 %v1210_v23, %v9751_v17  ;;  %v1410_v10 = vrot.slane %v9468_v47, 1  ;;  %v991_v62 = vsel %vm14042_vm4, %v14092_v50, %v14091_v25  ;;  %v9792_v23 = vpop.f32.mrb[50].mxu0  ;;  %v1541_v25 = vrot.slane %v9514_v57, 2 }
 0x166   :  { %v9788_v31 = vmax.f32 %v894_v27, %v991_v62  ;;  %v1536_v39 = vsel %vm14042_vm4, %v14094_v41, %v1535_v13  ;;  %v9799_v50 = vpop.f32.mrb[51].mxu0  ;;  %v433_v13 = vadd.f32 %v9598_v6, %v9228_v42  ;;  %v14097_v41 = vrot.slane %v9381_v49, 1 }
 0x167   :  { %14090 = vst [vmem:[#allocation29_spill] sm:$0xff] %v9764_v45  ;;  %v9803_v27 = vpack.i.bf16 %v1538_v30, %v1536_v39  ;;  %v14098_v22 = vrot.slane %v9381_v49, 2  ;;  %v14099_v39 = vrot.slane %v9464_v32, 1  ;;  %v1542_v19 = vsel %vm14042_vm4, %v1539_v12, %v1541_v25 }
 0x168   :  { %6903 = vrot.lane.b32.xlu1 %v9757_v21, %s8576_s21  ;;  %v9806_v62 = vmax.f32 %v1211_v28, %v9788_v31  ;;  %v9808_v18 = vpop.eup %8320  ;;  %v736_v47 = vsel %vm671_vm3, %v14097_v41, %v735_v40  ;;  %v1212_v28 = vmax.f32 %v9698_v24, %v9751_v17  ;;  %v1540_v41 = vsel %vm14042_vm4, %v1537_v26, %v1539_v12 }
 0x169   :  { %6873 = vrot.lane.b32.xlu0 %v9655_v36, %s8583_s3  ;;  %14096 = vst [vmem:[#allocation32_spill] sm:$0xff] %v9808_v18  ;;  %v993_v30 = vsel %vm14042_vm4, %v14098_v22, %v992_v16  ;;  %v1411_v11 = vsel %vm671_vm3, %v14099_v39, %v1410_v10  ;;  %v755_v63 = vrot.slane %v9808_v18, 1  ;;  %v9828_v37 = vpop.eup %8322  ;;  %v737_v24 = vrot.slane %v9785_v56, 1 }
 0x16a   :  { %14095 = vst [vmem:[#allocation31_spill] sm:$0xff] %v9806_v62  ;;  %14100 = vst [vmem:[#allocation33_spill] sm:$0xff] %v9828_v37  ;;  %v13939_v39 = vrot.slane %v9828_v37, 1  ;;  %v895_v32 = vmax.f32 %v9381_v49, %v736_v47  ;;  %v994_v42 = vrot.slane %v9785_v56, 2  ;;  %8326 = vtanh.f32 %v433_v13 }
 0x16b   :  { %v9846_v59 = vpack.i.bf16 %v1542_v19, %v1540_v41  ;;  %v14102_v49 = vrot.slane %v9808_v18, 2  ;;  %v738_v41 = vsel %vm671_vm3, %v735_v40, %v737_v24  ;;  %v1416_v19 = vrot.slane %v9606_v2, 1 }
 0x16c   :  { %6908 = vrot.lane.b32.xlu1 %v9757_v21, %s8582_s17  ;;  %v9851_v35 = vsel %vm671_vm3, %v755_v63, %v13939_v39  ;;  %v896_v39 = vmax.f32 %v9755_v48, %v738_v41  ;;  %vm4929_vm1 = vcmask 261120  }
 0x16d   :  { %6878 = vrot.lane.b32.xlu0 %v9655_v36, %s8578_s23  ;;  %v1413_v36 = vsel %vm671_vm3, %v1410_v10, %v1412_v14  ;;  %v9832_v22 = vpop.eup %8324  ;;  %v13938_v10 = vrot.slane %v9828_v37, 2  ;;  %14101 = vst [vmem:[#allocation34_spill] sm:$0xff] %v9851_v35 }
 0x16e   :  { %v9843_v26 = vpack.i.bf16 %v1413_v36, %v1411_v11  ;;  %v13940_v12 = vrot.slane %v9832_v22, 1  ;;  %v9864_v11 = vpack.i.bf16 %v9574_v60, %v9514_v57  ;;  %v1414_v36 = vrot.slane %v9574_v60, 1 }
 0x16f   :  { %v9858_v47 = vsel %vm14042_vm4, %v14102_v49, %v13938_v10  ;;  %v1543_v49 = vrot.slane %v9574_v60, 2  ;;  %v1213_v60 = vmax.f32 %v9743_v7, %v9788_v31 }
 0x170   :  { %6913 = vrot.lane.b32.xlu1 %v9803_v27, %s8583_s3  ;;  %14103 = vst [vmem:[#allocation35_spill] sm:$0xff] %v9858_v47  ;;  %v9871_v13 = vsel %vm671_vm3, %v13940_v12, %v755_v63  ;;  %v14106_v63 = vrot.slane %v9477_v1, 1  ;;  %v14107_v12 = vrot.slane %v9477_v1, 2 }
 0x171   :  { %6888 = vrot.lane.b32.xlu0 %v9693_v15, %s8577_s22  ;;  %v9860_v15 = vmax.f32 %v895_v32, %v993_v30  ;;  %14104 = vst [vmem:[#allocation36_spill] sm:$0xff] %v9871_v13 }
 0x172   :  { %v740_v10 = vsel %vm671_vm3, %v737_v24, %v14106_v63  ;;  %v997_v40 = vsel %vm14042_vm4, %v994_v42, %v14107_v12  ;;  %v476_v24 = vadd.f32 %v9598_v6, %v9554_v61  ;;  %v1418_v61 = vrot.slane %v9609_v34, 1 }
 0x173   :  { %v9879_v30 = vmax.f32 %v1212_v28, %v9860_v15  ;;  %v897_v32 = vmax.f32 %v9785_v56, %v740_v10  ;;  %v995_v28 = vsel %vm14042_vm4, %v992_v16, %v994_v42  ;;  %v1214_v48 = vmax.f32 %v9751_v17, %v9860_v15 }
 0x174   :  { %6918 = vrot.lane.b32.xlu1 %v9803_v27, %s8578_s23  ;;  %v9896_v57 = vmax.f32 %v896_v39, %v995_v28  ;;  %v1415_v56 = vsel %vm671_vm3, %v1412_v14, %v1414_v36  ;;  %v473_v42 = vadd.f32 %v9598_v6, %v9516_v44  ;;  %v1544_v17 = vsel %vm14042_vm4, %v1541_v25, %v1543_v49 }
 0x175   :  { %14105 = vst [vmem:[#allocation37_spill] sm:$0xff] %v9879_v30  ;;  %6898 = vrot.lane.b32.xlu0 %v9717_v51, %s8579_s25  ;;  %v1545_v51 = vrot.slane %v9606_v2, 2  ;;  %v9905_v16 = vmax.f32 %v897_v32, %v997_v40  ;;  %v468_v10 = vadd.f32 %v9598_v6, %v9561_v38  ;;  %v1417_v44 = vsel %vm671_vm3, %v1414_v36, %v1416_v19 }
 0x176   :  { %v1215_v39 = vmax.f32 %v9788_v31, %v9896_v57  ;;  %v9919_v14 = vmax.f32 %v1213_v60, %v9896_v57  ;;  %8328 = vtanh.f32 %v473_v42  ;;  %v1420_v31 = vrot.slane %v9658_v8, 1 }
 0x177   :  { %v9913_v7 = vpop.permute.xlu0 %6648  ;;  %v9926_v12 = vmax.f32 %v1214_v48, %v9905_v16  ;;  %v1546_v25 = vsel %vm14042_vm4, %v1543_v49, %v1545_v51  ;;  %v1547_v60 = vrot.slane %v9609_v34, 2  ;;  %v1549_v32 = vrot.slane %v9658_v8, 2 }
 0x178   :  { %6938 = vrot.lane.b32.xlu1 %v9843_v26, %s8580_s28  ;;  %14108 = vst [vmem:[#allocation38_spill] sm:$0xff] %v9919_v14  ;;  %8330 = vtanh.f32 %v476_v24  ;;  %v9942_v36 = vpack.i.bf16 %v9609_v34, %v9606_v2  ;;  %v9944_v41 = vpack.i.bf16 %v1417_v44, %v1415_v56  ;;  %v9947_v63 = vpack.i.bf16 %v1546_v25, %v1544_v17  ;;  %v10030_v34 = vpop.f32.mrb[52].mxu0 }
 0x179   :  { %6923 = vrot.lane.b32.xlu0 %v9757_v21, %s8580_s28  ;;  %14109 = vst [vmem:[#allocation39_spill] sm:$0xff] %v9926_v12  ;;  %v9928_v21 = vpop.eup %8326  ;;  %8332 = vtanh.f32 %v468_v10  ;;  %v1419_v28 = vsel %vm671_vm3, %v1416_v19, %v1418_v61  ;;  %v1421_v48 = vsel %vm671_vm3, %v1418_v61, %v1420_v31  ;;  %v1550_v42 = vsel %vm14042_vm4, %v1547_v60, %v1549_v32 }
 0x17a   :  { %v13943_v49 = vrot.slane %v9928_v21, 1  ;;  %v14110_v56 = vmax.f32 %v9477_v1, %v9539_v33  ;;  %v13946_v17 = vrot.slane %v9928_v21, 2  ;;  %v449_v19 = vadd.f32 %v9598_v6, %v9304_v55 }
 0x17b   :  { %v1422_v10 = vrot.slane %v9712_v43, 1  ;;  %v1424_v44 = vrot.slane %v9760_v58, 1  ;;  %v9984_v55 = vpack.i.bf16 %v9712_v43, %v9658_v8 }
 0x17c   :  { %6943 = vrot.lane.b32.xlu1 %v9846_v59, %s8581_s12  ;;  %v9959_v24 = vmax.f32 %v14110_v56, %v9546_v20  ;;  %v9976_v20 = vpack.i.bf16 %v1421_v48, %v1419_v28  ;;  %v1553_v56 = vrot.slane %v9760_v58, 2  ;;  %8334 = vtanh.f32 %v449_v19 }
 0x17d   :  { %6928 = vrot.lane.b32.xlu0 %v9803_v27, %s8581_s12  ;;  %v1548_v27 = vsel %vm14042_vm4, %v1545_v51, %v1547_v60  ;;  %v1551_v60 = vrot.slane %v9712_v43, 2 }
 0x17e   :  { %v9938_v38 = vpop.permute.xlu1 %6663  ;;  %v9973_v1 = vmax.f32 %v1215_v39, %v9959_v24  ;;  %v9978_v61 = vpack.i.bf16 %v1550_v42, %v1548_v27  ;;  %v14112_v39 = vrot.slane %v9507_v0, 1  ;;  %v14114_v27 = vrot.slane %v9507_v0, 2 }
 0x17f   :  { %v9950_v40 = vpop.permute.xlu0 %6653 }
 0x180   :  { %6963 = vrot.lane.b32.xlu1 %v9864_v11, %s8579_s25  ;;  %14111 = vst [vmem:[#allocation40_spill] sm:$0xff] %v9973_v1  ;;  %v744_v33 = vsel %vm671_vm3, %v14112_v39, %v13943_v49  ;;  %v9993_v28 = vpop.eup %8328  ;;  %v1001_v42 = vsel %vm14042_vm4, %v14114_v27, %v13946_v17  ;;  %v1423_v39 = vsel %vm671_vm3, %v1420_v31, %v1422_v10 }
 0x181   :  { %6933 = vrot.lane.b32.xlu0 %v9843_v26, %s8576_s21  ;;  %14113 = vst [vmem:[#allocation41_spill] sm:$0xff] %v9993_v28  ;;  %v899_v48 = vmax.f32 %v9507_v0, %v744_v33  ;;  %v1425_v49 = vsel %vm671_vm3, %v1422_v10, %v1424_v44  ;;  %v763_v8 = vrot.slane %v9993_v28, 1  ;;  %v10015_v0 = vpack.i.bf16 %v9764_v45, %v9760_v58  ;;  %v10048_v58 = vpop.f32.mrb[53].mxu0 }
 0x182   :  { %v9968_v51 = vpop.permute.xlu1 %6678  ;;  %v10009_v43 = vpop.eup %8330  ;;  %v1552_v31 = vsel %vm14042_vm4, %v1549_v32, %v1551_v60  ;;  %v1554_v10 = vsel %vm14042_vm4, %v1551_v60, %v1553_v56  ;;  %v10027_v2 = vpack.i.bf16 %v1425_v49, %v1423_v39  ;;  %v1426_v32 = vrot.slane %v9764_v45, 1 }
 0x183   :  { %v9980_v25 = vpop.permute.xlu0 %6658  ;;  %14115 = vst [vmem:[#allocation42_spill] sm:$0xff] %v10009_v43  ;;  %v10017_v27 = vpop.eup %8332  ;;  %v13955_v17 = vrot.slane %v10009_v43, 1  ;;  %v1555_v60 = vrot.slane %v9764_v45, 2  ;;  %v14118_v37 = vrot.slane %v10009_v43, 2  ;;  %v14119_v49 = vrot.slane %v9993_v28, 2 }
 0x184   :  { %6973 = vrot.lane.b32.xlu1 %v9942_v36, %s8577_s22  ;;  %14116 = vst [vmem:[#allocation43_spill] sm:$0xff] %v10017_v27  ;;  %v10052_v47 = vpack.i.bf16 %v1554_v10, %v1552_v31  ;;  %v10062_v13 = vpop.f32.mrb[54].mxu0  ;;  %v6651_v10 = vunpack.i.h.bf16 %v9913_v7  ;;  %v6650_v45 = vunpack.i.l.bf16 %v9913_v7  ;;  %v489_v7 = vadd.f32 %v9598_v6, %v9771_v29 }
 0x185   :  { %6948 = vrot.lane.b32.xlu0 %v9843_v26, %s8582_s17  ;;  %v10039_v19 = vsel %vm671_vm3, %v763_v8, %v13955_v17  ;;  %v10046_v39 = vsel %vm14042_vm4, %v14119_v49, %v14118_v37  ;;  %v14121_v17 = vrot.slane %v10017_v27, 1  ;;  %14123 = vst [vmem:[#allocation47_spill] sm:$0xff] %v10062_v13  ;;  %v10067_v31 = vpop.f32.mrb[55].mxu0  ;;  %v10081_v1 = vsel %vm14042_vm4, %v1553_v56, %v1555_v60 }
 0x186   :  { %v10011_v33 = vpop.permute.xlu1 %6693  ;;  %14117 = vst [vmem:[#allocation44_spill] sm:$0xff] %v10039_v19  ;;  %14120 = vst [vmem:[#allocation45_spill] sm:$0xff] %v10046_v39  ;;  %v1216_v39 = vmax.f32 %v9860_v15, %v9905_v16  ;;  %v10087_v49 = vpop.eup %8334  ;;  %v14126_v56 = vrot.slane %v9666_v3, 1  ;;  %v14127_v15 = vrot.slane %v9928_v21, 1  ;;  %v6660_v29 = vunpack.i.l.bf16 %v9980_v25 }
 0x187   :  { %v10019_v26 = vpop.permute.xlu0 %6668  ;;  %v10060_v43 = vsel %vm671_vm3, %v14121_v17, %v763_v8  ;;  %14124 = vst [vmem:[#allocation48_spill] sm:$0xff] %v10067_v31  ;;  %v10073_v8 = vmax.f32 %v899_v48, %v1001_v42  ;;  %v10078_v17 = vsel %vm671_vm3, %v1424_v44, %v1426_v32  ;;  %v6656_v48 = vunpack.i.h.bf16 %v9950_v40 }
 0x188   :  { %6983 = vrot.lane.b32.xlu1 %v9944_v41, %s8576_s21  ;;  %14122 = vst [vmem:[#allocation46_spill] sm:$0xff] %v10060_v43  ;;  %v6655_v42 = vunpack.i.l.bf16 %v9950_v40  ;;  %v746_v43 = vsel %vm671_vm3, %v14127_v15, %v14126_v56  ;;  %v14128_v40 = vrot.slane %v9806_v62, 2  ;;  %v6666_v13 = vunpack.i.h.bf16 %v9938_v38 }
 0x189   :  { %6953 = vrot.lane.b32.xlu0 %v9846_v59, %s8583_s3  ;;  %v6665_v56 = vunpack.i.l.bf16 %v9938_v38  ;;  %v6661_v15 = vunpack.i.h.bf16 %v9980_v25  ;;  %8336 = vtanh.f32 %v489_v7  ;;  %v14130_v25 = vld [vmem:[#allocation5_spill] sm:$0xff] }
 0x18a   :  { %v10050_v35 = vpop.permute.xlu1 %6698  ;;  %v10107_v18 = vsel %vm14042_vm4, %v1555_v60, %v14128_v40  ;;  %v6681_v60 = vunpack.i.h.bf16 %v9968_v51 }
 0x18b   :  { %v6674_v37 = vpop.permute.xlu0 %6673 }
 0x18c   :  { %6988 = vrot.lane.b32.xlu1 %v9944_v41, %s8582_s17  ;;  %v6676_v28 = vunpack.i.h.bf16 %v6674_v37  ;;  %v6675_v27 = vunpack.i.l.bf16 %v6674_v37  ;;  %v492_v37 = vadd.f32 %v9598_v6, %v9792_v23 }
 0x18d   :  { %6958 = vrot.lane.b32.xlu0 %v9846_v59, %s8578_s23  ;;  %v14125_v59 = vrot.slane %v9806_v62, 1 }
 0x18e   :  { %v10091_v19 = vpop.permute.xlu1 %6703  ;;  %8338 = vtanh.f32 %v492_v37 }
 0x18f   :  { %v10096_v44 = vsel %vm671_vm3, %v1426_v32, %v14125_v59  ;;  %v6684_v31 = vpop.permute.xlu0 %6683  ;;  %v3140_v32 = vsel %vm3138_vm5, %v8948_v5, %v6651_v10  ;;  %v3139_v59 = vsel %vm3138_vm5, %v8945_v4, %v6650_v45  ;;  %v10123_v5 = vmax.f32 %v1216_v39, %v10073_v8 }
 0x190   :  { %6993 = vrot.lane.b32.xlu1 %v9947_v63, %s8583_s3  ;;  %v3204_v4 = vsel %vm3203_vm6, %v3139_v59, %v6655_v42  ;;  %v3205_v45 = vsel %vm3203_vm6, %v3140_v32, %v6656_v48  ;;  %v6680_v10 = vunpack.i.l.bf16 %v9968_v51  ;;  %v3141_v39 = vsel %vm3138_vm5, %v14130_v25, %v6675_v27 }
 0x191   :  { %6968 = vrot.lane.b32.xlu0 %v9864_v11, %s8577_s22  ;;  %14129 = vst [vmem:[#allocation49_spill] sm:$0xff] %v10123_v5  ;;  %v3269_v38 = vsel %vm3268_vm7, %v3204_v4, %v6660_v29  ;;  %v3142_v11 = vsel %vm3138_vm5, %v9045_v9, %v6676_v28  ;;  %v6685_v7 = vunpack.i.l.bf16 %v6684_v31  ;;  %v6686_v48 = vunpack.i.h.bf16 %v6684_v31 }
 0x192   :  { %v10129_v23 = vpop.permute.xlu1 %6723  ;;  %v900_v51 = vmax.f32 %v9928_v21, %v746_v43  ;;  %v3270_v29 = vsel %vm3268_vm7, %v3205_v45, %v6661_v15  ;;  %v14131_v9 = vrot.slane %v9666_v3, 2  ;;  %v14132_v28 = vrot.slane %v9928_v21, 2 }
 0x193   :  { %v6689_v42 = vpop.permute.xlu0 %6688  ;;  %v14133_v31 = vrot.slane %v9640_v53, 2  ;;  %v6671_v43 = vunpack.i.h.bf16 %v10019_v26  ;;  %v6670_v15 = vunpack.i.l.bf16 %v10019_v26  ;;  %v14135_v21 = vmax.f32 %v9666_v3, %v9704_v54 }
 0x194   :  { %v6690_v40 = vunpack.i.l.bf16 %v6689_v42  ;;  %6998 = vrot.lane.b32.xlu1 %v9947_v63, %s8578_s23  ;;  %v6691_v32 = vunpack.i.h.bf16 %v6689_v42  ;;  %v1003_v27 = vsel %vm14042_vm4, %v14132_v28, %v14131_v9  ;;  %v14134_v59 = vmov %v14131_v9 }
 0x195   :  { %6978 = vrot.lane.b32.xlu0 %v9942_v36, %s8579_s25  ;;  %v1005_v37 = vsel %vm14042_vm4, %v14134_v59, %v14133_v31  ;;  %v10156_v36 = vmax.f32 %v900_v51, %v1003_v27  ;;  %v6701_v25 = vunpack.i.h.bf16 %v10050_v35  ;;  %v3207_v42 = vsel %vm3203_vm6, %v3142_v11, %v6681_v60 }
 0x196   :  { %v10154_v4 = vpop.permute.xlu1 %6733  ;;  %v10161_v45 = vmax.f32 %v14135_v21, %v1005_v37  ;;  %v3206_v9 = vsel %vm3203_vm6, %v3141_v39, %v6680_v10  ;;  %v3334_v28 = vsel %vm3333_vm8, %v3269_v38, %v6685_v7  ;;  %v3335_v26 = vsel %vm3333_vm8, %v3270_v29, %v6686_v48 }
 0x197   :  { %v6709_v31 = vpop.permute.xlu0 %6708  ;;  %v3399_v59 = vsel %vm3398_vm9, %v3334_v28, %v6690_v40  ;;  %v1217_v3 = vmax.f32 %v9896_v57, %v9959_v24  ;;  %v1218_v54 = vmax.f32 %v9905_v16, %v10073_v8  ;;  %v3400_v60 = vsel %vm3398_vm9, %v3335_v26, %v6691_v32  ;;  %v10190_v40 = vpop.eup %8336 }
 0x198   :  { %7018 = vrot.lane.b32.xlu1 %v9976_v20, %s8580_s28  ;;  %v6711_v11 = vunpack.i.h.bf16 %v6709_v31  ;;  %v6710_v10 = vunpack.i.l.bf16 %v6709_v31  ;;  %v484_v38 = vadd.f32 %v9598_v6, %v9799_v50  ;;  %v6700_v39 = vunpack.i.l.bf16 %v10050_v35 }
 0x199   :  { %7003 = vrot.lane.b32.xlu0 %v9944_v41, %s8580_s28  ;;  %v3271_v7 = vsel %vm3268_vm7, %v3206_v9, %v6665_v56  ;;  %v10185_v57 = vmax.f32 %v1217_v3, %v10156_v36  ;;  %v10188_v16 = vmax.f32 %v1218_v54, %v10161_v45  ;;  %v6706_v51 = vunpack.i.h.bf16 %v10091_v19 }
 0x19a   :  { %v10182_v48 = vpop.permute.xlu1 %6743  ;;  %v6705_v41 = vunpack.i.l.bf16 %v10091_v19  ;;  %v3272_v50 = vsel %vm3268_vm7, %v3207_v42, %v6666_v13  ;;  %8340 = vtanh.f32 %v484_v38  ;;  %v3464_v32 = vsel %vm3463_vm11, %v3399_v59, %v6670_v15  ;;  %v10205_v42 = vpop.eup %8338 }
 0x19b   :  { %14136 = vst [vmem:[#allocation5_spill] sm:$0xff] %v10185_v57  ;;  %14137 = vst [vmem:[#allocation50_spill] sm:$0xff] %v10188_v16  ;;  %v6714_v29 = vpop.permute.xlu0 %6713  ;;  %v3465_v27 = vsel %vm3463_vm11, %v3400_v60, %v6671_v43  ;;  %v3336_v37 = vsel %vm3333_vm8, %v3271_v7, %v6700_v39  ;;  %v3529_v19 = vsel %vm3528_vm10, %v3464_v32, %v6710_v10  ;;  %v771_v21 = vrot.slane %v10190_v40, 1 }
 0x19c   :  { %v6716_v35 = vunpack.i.h.bf16 %v6714_v29  ;;  %v6715_v56 = vunpack.i.l.bf16 %v6714_v29  ;;  %7023 = vrot.lane.b32.xlu1 %v9978_v61, %s8581_s12  ;;  %v3530_v13 = vsel %vm3528_vm10, %v3465_v27, %v6711_v11  ;;  %14138 = vst [vmem:[#allocation51_spill] sm:$0xff] %v10205_v42  ;;  %v3337_v9 = vsel %vm3333_vm8, %v3272_v50, %v6701_v25 }
 0x19d   :  { %7008 = vrot.lane.b32.xlu0 %v9947_v63, %s8581_s12  ;;  %v13969_v31 = vrot.slane %v10190_v40, 2  ;;  %v6726_v26 = vunpack.i.h.bf16 %v10129_v23  ;;  %v6725_v63 = vunpack.i.l.bf16 %v10129_v23  ;;  %v13968_v54 = vrot.slane %v10205_v42, 1 }
 0x19e   :  { %v6749_v28 = vpop.permute.xlu1 %6748  ;;  %v3594_v15 = vsel %vm3593_vm12, %v3529_v19, %v6715_v56  ;;  %v3595_v43 = vsel %vm3593_vm12, %v3530_v13, %v6716_v35  ;;  %v13974_v25 = vrot.slane %v10087_v49, 1  ;;  %v13967_v10 = vrot.slane %v10205_v42, 2 }
 0x19f   :  { %v10213_v59 = vpop.permute.xlu0 %6718  ;;  %v3658_v3 = vpack.c.bf16 %v3595_v43, %v3594_v15  ;;  %v6751_v60 = vunpack.i.h.bf16 %v6749_v28  ;;  %v6750_v11 = vunpack.i.l.bf16 %v6749_v28  ;;  %v13978_v23 = vrot.slane %v10087_v49, 2  ;;  %v14139_v43 = vld [vmem:[#allocation26_spill] sm:$0xff] }
 0x1a0   :  { %7043 = vrot.lane.b32.xlu1 %v9984_v55, %s8579_s25  ;;  %v10226_v38 = vpack.i.bf16 %v10096_v44, %v10078_v17  ;;  %v10230_v39 = vpack.i.bf16 %v10107_v18, %v10081_v1  ;;  %v10235_v7 = vsel %vm671_vm3, %v771_v21, %v13968_v54  ;;  %v3401_v50 = vsel %vm3398_vm9, %v3336_v37, %v6705_v41 }
 0x1a1   :  { %7013 = vrot.lane.b32.xlu0 %v9976_v20, %s8576_s21  ;;  %6533 = vmatprep.mubr.msk.bf16.mxu1 %vm3744_vm13, %v3658_v3  ;;  %v3402_v29 = vsel %vm3398_vm9, %v3337_v9, %v6706_v51  ;;  %v10246_v18 = vsel %vm14042_vm4, %v13969_v31, %v13967_v10  ;;  %v3466_v1 = vsel %vm3463_vm11, %v3401_v50, %v6725_v63  ;;  %v1430_v37 = vrot.slane %v9879_v30, 1 }
 0x1a2   :  { %v6754_v35 = vpop.permute.xlu1 %6753  ;;  %v3467_v17 = vsel %vm3463_vm11, %v3402_v29, %v6726_v26  ;;  %v3531_v51 = vsel %vm3528_vm10, %v3466_v1, %v6750_v11  ;;  %v1432_v19 = vrot.slane %v9919_v14, 1  ;;  %v465_v15 = vadd.f32 %v9598_v6, %v9548_v52 }
 0x1a3   :  { %v6756_v44 = vunpack.i.h.bf16 %v6754_v35  ;;  %v6755_v32 = vunpack.i.l.bf16 %v6754_v35  ;;  %v10250_v41 = vpop.permute.xlu0 %6728  ;;  %v3532_v27 = vsel %vm3528_vm10, %v3467_v17, %v6751_v60  ;;  %v14140_v26 = vmax.f32 %v9640_v53, %v14139_v43  ;;  %v10296_v17 = vpop.f32.mrb[56].mxu0 }
 0x1a4   :  { %7053 = vrot.lane.b32.xlu1 %v10015_v0, %s8577_s22  ;;  %v10258_v13 = vpop.eup %8340  ;;  %v1559_v11 = vrot.slane %v9879_v30, 2  ;;  %v13971_v50 = vrot.slane %v9919_v14, 2  ;;  %v10281_v52 = vpack.i.bf16 %v9879_v30, %v9806_v62  ;;  %v14141_v53 = vrot.slane %v9806_v62, 1 }
 0x1a5   :  { %v3596_v9 = vsel %vm3593_vm12, %v3531_v51, %v6755_v32  ;;  %v3597_v28 = vsel %vm3593_vm12, %v3532_v27, %v6756_v44  ;;  %7028 = vrot.lane.b32.xlu0 %v9976_v20, %s8582_s17  ;;  %v10270_v63 = vmax.f32 %v14140_v26, %v9688_v46  ;;  %v13970_v29 = vrot.slane %v10258_v13, 1  ;;  %v10306_v51 = vpop.f32.mrb[57].mxu0 }
 0x1a6   :  { %v10272_v3 = vpop.permute.xlu1 %6758  ;;  %v3659_v60 = vpack.c.bf16 %v3597_v28, %v3596_v9  ;;  %v1431_v46 = vsel %vm671_vm3, %v14141_v53, %v1430_v37  ;;  %v1433_v20 = vsel %vm671_vm3, %v1430_v37, %v1432_v19  ;;  %v10302_v44 = vpack.i.bf16 %v9926_v12, %v9919_v14  ;;  %v10319_v43 = vpop.f32.mrb[58].mxu0 }
 0x1a7   :  { %v10277_v35 = vpop.permute.xlu0 %6738  ;;  %v10294_v1 = vsel %vm671_vm3, %v13970_v29, %v771_v21  ;;  %8342 = vtanh.f32 %v465_v15  ;;  %v14142_v21 = vrot.slane %v9806_v62, 2  ;;  %v1562_v9 = vsel %vm14042_vm4, %v1559_v11, %v13971_v50  ;;  %v10323_v53 = vpop.f32.mrb[59].mxu0  ;;  %v14147_v50 = vld [vmem:[#allocation7_spill] sm:$0xff]  ;;  %v14150_v62 = vld [vmem:[#allocation8_spill] sm:$0xff] }
 0x1a8   :  { %7063 = vrot.lane.b32.xlu1 %v10027_v2, %s8576_s21  ;;  %6534 = vmatmul.mubr.msk.bf16.vlgmr.msra.gmra.mrb[0].mxu1 %vm3744_vm13, %v3659_v60  ;;  %v13972_v28 = vrot.slane %v9926_v12, 1  ;;  %v1219_v15 = vmax.f32 %v9959_v24, %v10156_v36  ;;  %v10321_v60 = vpack.i.bf16 %v1433_v20, %v1431_v46  ;;  %v6696_v10 = vunpack.i.h.bf16 %v10011_v33 }
 0x1a9   :  { %7033 = vrot.lane.b32.xlu0 %v9978_v61, %s8583_s3  ;;  %v1560_v37 = vsel %vm14042_vm4, %v14142_v21, %v1559_v11  ;;  %v6695_v21 = vunpack.i.l.bf16 %v10011_v33  ;;  %v6746_v54 = vunpack.i.h.bf16 %v10182_v48  ;;  %v6745_v24 = vunpack.i.l.bf16 %v10182_v48 }
 0x1aa   :  { %v10308_v27 = vpop.permute.xlu1 %6778  ;;  %v10330_v11 = vmax.f32 %v1219_v15, %v10270_v63  ;;  %v10336_v46 = vpack.i.bf16 %v1562_v9, %v1560_v37  ;;  %v6721_v20 = vunpack.i.h.bf16 %v10213_v59  ;;  %v6720_v56 = vunpack.i.l.bf16 %v10213_v59  ;;  %v14144_v37 = vld [vmem:[#allocation24_spill] sm:$0xff] }
 0x1ab   :  { %v6764_v26 = vpop.permute.xlu0 %6763  ;;  %v10345_v15 = vsel %vm671_vm3, %v1432_v19, %v13972_v28  ;;  %v6731_v48 = vunpack.i.h.bf16 %v10250_v41  ;;  %v6730_v31 = vunpack.i.l.bf16 %v10250_v41  ;;  %v14145_v9 = vrot.slane %v14144_v37, 1  ;;  %v14148_v28 = vld [vmem:[#allocation6_spill] sm:$0xff] }
 0x1ac   :  { %7068 = vrot.lane.b32.xlu1 %v10027_v2, %s8582_s17  ;;  %14143 = vst [vmem:[#allocation26_spill] sm:$0xff] %v10330_v11  ;;  %v14146_v29 = vrot.slane %v14144_v37, 2  ;;  %v3144_v32 = vsel %vm3138_vm5, %v14147_v50, %v6696_v10  ;;  %v3143_v6 = vsel %vm3138_vm5, %v14148_v28, %v6695_v21  ;;  %v3145_v42 = vsel %vm3138_vm5, %v14150_v62, %v6745_v24 }
 0x1ad   :  { %7038 = vrot.lane.b32.xlu0 %v9978_v61, %s8578_s23  ;;  %v752_v59 = vsel %vm671_vm3, %v14145_v9, %v13974_v25  ;;  %v14149_v9 = vld [vmem:[#allocation9_spill] sm:$0xff]  ;;  %v6760_v10 = vunpack.i.l.bf16 %v10272_v3  ;;  %v3209_v50 = vsel %vm3203_vm6, %v3144_v32, %v6721_v20  ;;  %v3208_v28 = vsel %vm3203_vm6, %v3143_v6, %v6720_v56 }
 0x1ae   :  { %v10340_v33 = vpop.permute.xlu1 %6783  ;;  %v1009_v19 = vsel %vm14042_vm4, %v14146_v29, %v13978_v23  ;;  %v3146_v25 = vsel %vm3138_vm5, %v14149_v9, %v6746_v54  ;;  %v6761_v29 = vunpack.i.h.bf16 %v10272_v3  ;;  %v6766_v21 = vunpack.i.h.bf16 %v6764_v26 }
 0x1af   :  { %v6769_v61 = vpop.permute.xlu0 %6768  ;;  %v6765_v41 = vunpack.i.l.bf16 %v6764_v26  ;;  %v3273_v54 = vsel %vm3268_vm7, %v3208_v28, %v6730_v31  ;;  %v3274_v62 = vsel %vm3268_vm7, %v3209_v50, %v6731_v48  ;;  %v6741_v24 = vunpack.i.h.bf16 %v10277_v35 }
 0x1b0   :  { %7073 = vrot.lane.b32.xlu1 %v10052_v47, %s8583_s3  ;;  %v6770_v3 = vunpack.i.l.bf16 %v6769_v61  ;;  %v6771_v32 = vunpack.i.h.bf16 %v6769_v61  ;;  %v903_v56 = vmax.f32 %v14144_v37, %v752_v59  ;;  %v1220_v6 = vmax.f32 %v10073_v8, %v10161_v45 }
 0x1b1   :  { %7048 = vrot.lane.b32.xlu0 %v9984_v55, %s8577_s22  ;;  %v10380_v23 = vpop.eup %8342  ;;  %v6740_v55 = vunpack.i.l.bf16 %v10277_v35  ;;  %v3210_v31 = vsel %vm3203_vm6, %v3145_v42, %v6760_v10  ;;  %v3211_v26 = vsel %vm3203_vm6, %v3146_v25, %v6761_v29  ;;  %v6781_v20 = vunpack.i.h.bf16 %v10308_v27  ;;  %v10401_v35 = vld [vmem:[%s13887_s2] ss:$0 sm:$0xff]  ;;  %v14151_v10 = vld [vmem:[#allocation47_spill] sm:$0xff] }
 0x1b2   :  { %v10378_v30 = vpop.permute.xlu1 %6803  ;;  %v505_v48 = vadd.f32 %v10401_v35, %v10030_v34  ;;  %v6780_v61 = vunpack.i.l.bf16 %v10308_v27  ;;  %v3338_v8 = vsel %vm3333_vm8, %v3273_v54, %v6765_v41  ;;  %v3339_v42 = vsel %vm3333_vm8, %v3274_v62, %v6766_v21 }
 0x1b3   :  { %v10385_v9 = vpop.permute.xlu0 %6773  ;;  %v10410_v37 = vmax.f32 %v903_v56, %v1009_v19  ;;  %v497_v29 = vadd.f32 %v10401_v35, %v10048_v58  ;;  %v508_v34 = vadd.f32 %v10401_v35, %v14151_v10  ;;  %v3404_v27 = vsel %vm3398_vm9, %v3339_v42, %v6771_v32  ;;  %v14157_v32 = vld [vmem:[#allocation32_spill] sm:$0xff] }
 0x1b4   :  { %7078 = vrot.lane.b32.xlu1 %v10052_v47, %s8578_s23  ;;  %8344 = vtanh.f32 %v505_v48  ;;  %v14153_v28 = vrot.slane %v9832_v22, 1  ;;  %v14154_v58 = vrot.slane %v10087_v49, 1  ;;  %v14155_v54 = vrot.slane %v9832_v22, 2 }
 0x1b5   :  { %7058 = vrot.lane.b32.xlu0 %v10015_v0, %s8579_s25  ;;  %v3403_v0 = vsel %vm3398_vm9, %v3338_v8, %v6770_v3  ;;  %v10421_v19 = vmax.f32 %v1220_v6, %v10410_v37  ;;  %8346 = vtanh.f32 %v508_v34  ;;  %v14156_v62 = vrot.slane %v10087_v49, 2 }
 0x1b6   :  { %v10408_v25 = vpop.permute.xlu1 %6813  ;;  %v754_v21 = vsel %vm671_vm3, %v14154_v58, %v14153_v28  ;;  %v14158_v56 = vrot.slane %v14157_v32, 2  ;;  %v14159_v6 = vmov %v14155_v54  ;;  %v6785_v8 = vunpack.i.l.bf16 %v10340_v33  ;;  %v14160_v58 = vld [vmem:[#allocation36_spill] sm:$0xff] }
 0x1b7   :  { %v6789_v59 = vpop.permute.xlu0 %6788  ;;  %14152 = vst [vmem:[#allocation24_spill] sm:$0xff] %v10421_v19  ;;  %v1011_v3 = vsel %vm14042_vm4, %v14156_v62, %v14155_v54  ;;  %v3468_v42 = vsel %vm3463_vm11, %v3403_v0, %v6740_v55  ;;  %v904_v10 = vmax.f32 %v10087_v49, %v754_v21  ;;  %v3469_v34 = vsel %vm3463_vm11, %v3404_v27, %v6741_v24 }
 0x1b8   :  { %v6791_v50 = vunpack.i.h.bf16 %v6789_v59  ;;  %v6790_v41 = vunpack.i.l.bf16 %v6789_v59  ;;  %7098 = vrot.lane.b32.xlu1 %v10226_v38, %s8580_s28  ;;  %v1013_v48 = vsel %vm14042_vm4, %v14159_v6, %v14158_v56  ;;  %8348 = vtanh.f32 %v497_v29 }
 0x1b9   :  { %7083 = vrot.lane.b32.xlu0 %v10027_v2, %s8580_s28  ;;  %v6786_v2 = vunpack.i.h.bf16 %v10340_v33  ;;  %v14161_v54 = vmax.f32 %v9832_v22, %v14160_v58  ;;  %v1221_v56 = vmax.f32 %v10156_v36, %v10270_v63  ;;  %v10456_v55 = vmax.f32 %v904_v10, %v1011_v3  ;;  %v14162_v36 = vld [vmem:[#allocation48_spill] sm:$0xff] }
 0x1ba   :  { %v10443_v59 = vpop.permute.xlu1 %6823  ;;  %v1222_v49 = vmax.f32 %v10161_v45, %v10410_v37  ;;  %v6805_v24 = vunpack.i.l.bf16 %v10378_v30  ;;  %v3533_v0 = vsel %vm3528_vm10, %v3468_v42, %v6790_v41  ;;  %v3534_v22 = vsel %vm3528_vm10, %v3469_v34, %v6791_v50 }
 0x1bb   :  { %v6794_v28 = vpop.permute.xlu0 %6793  ;;  %v10450_v62 = vmax.f32 %v14161_v54, %v1013_v48  ;;  %v500_v29 = vadd.f32 %v10401_v35, %v14162_v36  ;;  %v10470_v48 = vmax.f32 %v1221_v56, %v10456_v55  ;;  %v14165_v41 = vunpack.i.l.bf16 %v10154_v4 }
 0x1bc   :  { %v6796_v6 = vunpack.i.h.bf16 %v6794_v28  ;;  %v6795_v33 = vunpack.i.l.bf16 %v6794_v28  ;;  %7103 = vrot.lane.b32.xlu1 %v10230_v39, %s8581_s12  ;;  %v14166_v34 = vunpack.i.h.bf16 %v10154_v4  ;;  %v14168_v4 = vld [vmem:[#allocation40_spill] sm:$0xff] }
 0x1bd   :  { %7088 = vrot.lane.b32.xlu0 %v10052_v47, %s8581_s12  ;;  %14163 = vst [vmem:[#allocation7_spill] sm:$0xff] %v10470_v48  ;;  %v10473_v45 = vmax.f32 %v1222_v49, %v10450_v62  ;;  %v3275_v50 = vsel %vm3268_vm7, %v3210_v31, %v14165_v41  ;;  %v6806_v47 = vunpack.i.h.bf16 %v10378_v30  ;;  %8350 = vtanh.f32 %v500_v29 }
 0x1be   :  { %v3598_v27 = vsel %vm3593_vm12, %v3533_v0, %v6795_v33  ;;  %v3599_v21 = vsel %vm3593_vm12, %v3534_v22, %v6796_v6  ;;  %v6829_v3 = vpop.permute.xlu1 %6828  ;;  %v3276_v28 = vsel %vm3268_vm7, %v3211_v26, %v14166_v34  ;;  %v3340_v58 = vsel %vm3333_vm8, %v3275_v50, %v6780_v61  ;;  %v10487_v6 = vpop.eup %8344 }
 0x1bf   :  { %14164 = vst [vmem:[#allocation6_spill] sm:$0xff] %v10473_v45  ;;  %v10479_v42 = vpop.permute.xlu0 %6798  ;;  %v3660_v10 = vpack.c.bf16 %v3599_v21, %v3598_v27  ;;  %v6831_v54 = vunpack.i.h.bf16 %v6829_v3  ;;  %v6830_v56 = vunpack.i.l.bf16 %v6829_v3  ;;  %14167 = vst [vmem:[#allocation9_spill] sm:$0xff] %v10487_v6  ;;  %v3341_v31 = vsel %vm3333_vm8, %v3276_v28, %v6781_v20  ;;  %v10499_v36 = vpop.eup %8346 }
 0x1c0   :  { %7123 = vrot.lane.b32.xlu1 %v10281_v52, %s8579_s25  ;;  %v3405_v30 = vsel %vm3398_vm9, %v3340_v58, %v6785_v8  ;;  %v1436_v26 = vrot.slane %v14168_v4, 1  ;;  %v3406_v61 = vsel %vm3398_vm9, %v3341_v31, %v6786_v2  ;;  %v13982_v0 = vrot.slane %v14168_v4, 2  ;;  %14169 = vst [vmem:[#allocation8_spill] sm:$0xff] %v10499_v36 }
 0x1c1   :  { %7093 = vrot.lane.b32.xlu0 %v10226_v38, %s8576_s21  ;;  %6537 = vmatprep.mubr.msk.bf16.mxu1 %vm3744_vm13, %v3660_v10  ;;  %v3470_v33 = vsel %vm3463_vm11, %v3405_v30, %v6805_v24  ;;  %v779_v22 = vrot.slane %v10487_v6, 1  ;;  %v3471_v20 = vsel %vm3463_vm11, %v3406_v61, %v6806_v47  ;;  %v13981_v21 = vrot.slane %v10487_v6, 2 }
 0x1c2   :  { %v6834_v49 = vpop.permute.xlu1 %6833  ;;  %v3535_v3 = vsel %vm3528_vm10, %v3470_v33, %v6830_v56  ;;  %v3536_v2 = vsel %vm3528_vm10, %v3471_v20, %v6831_v54  ;;  %v13980_v24 = vrot.slane %v10499_v36, 1  ;;  %v13979_v41 = vrot.slane %v10499_v36, 2  ;;  %v10511_v50 = vpop.eup %8348 }
 0x1c3   :  { %v6836_v8 = vunpack.i.h.bf16 %v6834_v49  ;;  %v6835_v29 = vunpack.i.l.bf16 %v6834_v49  ;;  %v10502_v27 = vpop.permute.xlu0 %6808  ;;  %v14170_v34 = vrot.slane %v9926_v12, 1  ;;  %v14171_v58 = vrot.slane %v9926_v12, 2 }
 0x1c4   :  { %7133 = vrot.lane.b32.xlu1 %v10302_v44, %s8577_s22  ;;  %v14172_v54 = vrot.slane %v9919_v14, 2  ;;  %v10536_v49 = vsel %vm671_vm3, %v779_v22, %v13980_v24  ;;  %v14184_v14 = vrot.slane %v14168_v4, 2  ;;  %v6810_v6 = vunpack.i.l.bf16 %v10502_v27 }
 0x1c5   :  { %v3600_v47 = vsel %vm3593_vm12, %v3535_v3, %v6835_v29  ;;  %v3601_v10 = vsel %vm3593_vm12, %v3536_v2, %v6836_v8  ;;  %7108 = vrot.lane.b32.xlu0 %v10226_v38, %s8582_s17  ;;  %v1437_v28 = vsel %vm671_vm3, %v14170_v34, %v1436_v26  ;;  %v14173_v33 = vmov %v14171_v58  ;;  %v14175_v29 = vld [vmem:[#allocation30_spill] sm:$0xff] }
 0x1c6   :  { %v1564_v56 = vsel %vm14042_vm4, %v14172_v54, %v14171_v58  ;;  %v10525_v31 = vpop.permute.xlu1 %6838  ;;  %v3661_v61 = vpack.c.bf16 %v3601_v10, %v3600_v47  ;;  %v1566_v38 = vsel %vm14042_vm4, %v14173_v33, %v13982_v0  ;;  %14174 = vst [vmem:[#allocation47_spill] sm:$0xff] %v10536_v49  ;;  %v481_v3 = vadd.f32 %v10401_v35, %v14175_v29  ;;  %v14177_v10 = vld [vmem:[#allocation43_spill] sm:$0xff] }
 0x1c7   :  { %v10539_v8 = vpop.permute.xlu0 %6818  ;;  %v10550_v47 = vsel %vm14042_vm4, %v13981_v21, %v13979_v41  ;;  %v10557_v58 = vpack.i.bf16 %v1437_v28, %v10345_v15  ;;  %v1438_v54 = vrot.slane %v10123_v5, 1  ;;  %v13983_v33 = vrot.slane %v10511_v50, 1  ;;  %v10561_v29 = vpop.eup %8350 }
 0x1c8   :  { %14176 = vst [vmem:[#allocation32_spill] sm:$0xff] %v10550_v47  ;;  %7143 = vrot.lane.b32.xlu1 %v10321_v60, %s8576_s21  ;;  %6538 = vmatmul.mubr.msk.bf16.gmra.mrb[4].mxu1 %vm3744_vm13, %v3661_v61  ;;  %14178 = vst [vmem:[#allocation36_spill] sm:$0xff] %v10561_v29  ;;  %v10565_v41 = vpack.i.bf16 %v1566_v38, %v1564_v56  ;;  %v13989_v61 = vrot.slane %v10185_v57, 1  ;;  %v777_v15 = vrot.slane %v10561_v29, 1  ;;  %8352 = vtanh.f32 %v481_v3 }
 0x1c9   :  { %7113 = vrot.lane.b32.xlu0 %v10230_v39, %s8583_s3  ;;  %v10577_v34 = vpack.i.bf16 %v10123_v5, %v14168_v4  ;;  %v1567_v56 = vrot.slane %v10123_v5, 2  ;;  %v10583_v38 = vsel %vm671_vm3, %v1436_v26, %v1438_v54  ;;  %v6776_v0 = vunpack.i.h.bf16 %v10385_v9 }
 0x1ca   :  { %v10567_v24 = vpop.permute.xlu1 %6858  ;;  %v10588_v20 = vsel %vm671_vm3, %v13983_v33, %v777_v15  ;;  %v10591_v30 = vsel %vm671_vm3, %v777_v15, %v779_v22  ;;  %v6775_v3 = vunpack.i.l.bf16 %v10385_v9  ;;  %v6825_v28 = vunpack.i.l.bf16 %v10443_v59 }
 0x1cb   :  { %v10573_v21 = vpop.permute.xlu0 %6843  ;;  %14179 = vst [vmem:[#allocation48_spill] sm:$0xff] %v10588_v20  ;;  %14180 = vst [vmem:[#allocation30_spill] sm:$0xff] %v10591_v30  ;;  %v10606_v22 = vpack.i.bf16 %v10188_v16, %v10185_v57  ;;  %v10611_v9 = vsel %vm671_vm3, %v1438_v54, %v13989_v61  ;;  %v14182_v15 = vrot.slane %v10511_v50, 2  ;;  %v6826_v26 = vunpack.i.h.bf16 %v10443_v59  ;;  %v14186_v59 = vld [vmem:[#allocation34_spill] sm:$0xff] }
 0x1cc   :  { %7148 = vrot.lane.b32.xlu1 %v10321_v60, %s8582_s17  ;;  %v6840_v5 = vunpack.i.l.bf16 %v10525_v31  ;;  %v10625_v36 = vsel %vm14042_vm4, %v14184_v14, %v1567_v56  ;;  %v6800_v61 = vunpack.i.l.bf16 %v10479_v42  ;;  %v6841_v49 = vunpack.i.h.bf16 %v10525_v31  ;;  %v14188_v14 = vld [vmem:[#allocation11_spill] sm:$0xff]  ;;  %v14189_v54 = vld [vmem:[#allocation10_spill] sm:$0xff] }
 0x1cd   :  { %7118 = vrot.lane.b32.xlu0 %v10230_v39, %s8578_s23  ;;  %v14181_v39 = vrot.slane %v10561_v29, 2  ;;  %v1223_v4 = vmax.f32 %v10270_v63, %v10456_v55  ;;  %v3148_v30 = vsel %vm3138_vm5, %v14188_v14, %v6776_v0  ;;  %v3147_v29 = vsel %vm3138_vm5, %v14189_v54, %v6775_v3  ;;  %v14192_v3 = vld [vmem:[#allocation13_spill] sm:$0xff] }
 0x1ce   :  { %v10602_v33 = vpop.permute.xlu1 %6863  ;;  %v6801_v31 = vunpack.i.h.bf16 %v10479_v42  ;;  %v6811_v63 = vunpack.i.h.bf16 %v10502_v27  ;;  %v3150_v42 = vsel %vm3138_vm5, %v14192_v3, %v6826_v26  ;;  %v6846_v14 = vunpack.i.h.bf16 %v10573_v21 }
 0x1cf   :  { %v10618_v2 = vsel %vm14042_vm4, %v14182_v15, %v14181_v39  ;;  %v6849_v12 = vpop.permute.xlu0 %6848  ;;  %v14185_v39 = vld [vmem:[#allocation35_spill] sm:$0xff]  ;;  %v14187_v15 = vmax.f32 %v14157_v32, %v14186_v59  ;;  %v6815_v32 = vunpack.i.l.bf16 %v10408_v25  ;;  %v3215_v27 = vsel %vm3203_vm6, %v3150_v42, %v6841_v49 }
 0x1d0   :  { %14183 = vst [vmem:[#allocation43_spill] sm:$0xff] %v10618_v2  ;;  %7153 = vrot.lane.b32.xlu1 %v10336_v46, %s8583_s3  ;;  %v6850_v2 = vunpack.i.l.bf16 %v6849_v12  ;;  %v6816_v26 = vunpack.i.h.bf16 %v10408_v25  ;;  %v6860_v42 = vunpack.i.l.bf16 %v10567_v24 }
 0x1d1   :  { %v10636_v47 = vmax.f32 %v14187_v15, %v14185_v39  ;;  %7128 = vrot.lane.b32.xlu0 %v10281_v52, %s8577_s22  ;;  %v14190_v39 = vld [vmem:[#allocation12_spill] sm:$0xff]  ;;  %v6845_v52 = vunpack.i.l.bf16 %v10573_v21  ;;  %v14193_v21 = vrot.slane %v10185_v57, 2 }
 0x1d2   :  { %v3149_v59 = vsel %vm3138_vm5, %v14190_v39, %v6825_v28  ;;  %v10652_v15 = vpop.permute.xlu1 %6883  ;;  %v3212_v28 = vsel %vm3203_vm6, %v3147_v29, %v6800_v61  ;;  %v6851_v39 = vunpack.i.h.bf16 %v6849_v12  ;;  %v6821_v29 = vunpack.i.h.bf16 %v10539_v8 }
 0x1d3   :  { %v10655_v0 = vmax.f32 %v1223_v4, %v10636_v47  ;;  %v3214_v54 = vsel %vm3203_vm6, %v3149_v59, %v6840_v5  ;;  %v10662_v20 = vpop.permute.xlu0 %6853  ;;  %v10668_v4 = vpop.eup %8352  ;;  %v3213_v5 = vsel %vm3203_vm6, %v3148_v30, %v6801_v31  ;;  %v3277_v59 = vsel %vm3268_vm7, %v3212_v28, %v6810_v6 }
 0x1d4   :  { %7158 = vrot.lane.b32.xlu1 %v10336_v46, %s8578_s23  ;;  %v10678_v49 = vsel %vm14042_vm4, %v1567_v56, %v14193_v21  ;;  %v3278_v12 = vsel %vm3268_vm7, %v3213_v5, %v6811_v63  ;;  %v6820_v61 = vunpack.i.l.bf16 %v10539_v8  ;;  %v3279_v25 = vsel %vm3268_vm7, %v3214_v54, %v6815_v32 }
 0x1d5   :  { %14191 = vst [vmem:[#allocation35_spill] sm:$0xff] %v10655_v0  ;;  %7138 = vrot.lane.b32.xlu0 %v10302_v44, %s8579_s25  ;;  %v6861_v6 = vunpack.i.h.bf16 %v10567_v24  ;;  %v3280_v30 = vsel %vm3268_vm7, %v3215_v27, %v6816_v26  ;;  %v3342_v44 = vsel %vm3333_vm8, %v3277_v59, %v6845_v52  ;;  %v3343_v31 = vsel %vm3333_vm8, %v3278_v12, %v6846_v14  ;;  %v14195_v52 = vld [vmem:[#allocation33_spill] sm:$0xff] }
 0x1d6   :  { %v10684_v3 = vpop.permute.xlu1 %6893  ;;  %v3407_v63 = vsel %vm3398_vm9, %v3342_v44, %v6850_v2  ;;  %v3408_v28 = vsel %vm3398_vm9, %v3343_v31, %v6851_v39  ;;  %v14194_v54 = vrot.slane %v10380_v23, 1  ;;  %v14196_v27 = vrot.slane %v14195_v52, 1 }
 0x1d7   :  { %v6869_v56 = vpop.permute.xlu0 %6868  ;;  %v14197_v24 = vrot.slane %v10380_v23, 2  ;;  %v14198_v2 = vrot.slane %v14195_v52, 2  ;;  %v1224_v26 = vmax.f32 %v10410_v37, %v10450_v62  ;;  %v6866_v5 = vunpack.i.h.bf16 %v10602_v33 }
 0x1d8   :  { %v6871_v8 = vunpack.i.h.bf16 %v6869_v56  ;;  %7173 = vrot.lane.b32.xlu1 %v10557_v58, %s8580_s28  ;;  %v6870_v32 = vunpack.i.l.bf16 %v6869_v56  ;;  %v760_v14 = vsel %vm671_vm3, %v14196_v27, %v14194_v54  ;;  %v6865_v59 = vunpack.i.l.bf16 %v10602_v33 }
 0x1d9   :  { %7163 = vrot.lane.b32.xlu0 %v10321_v60, %s8580_s28  ;;  %v1017_v39 = vsel %vm14042_vm4, %v14198_v2, %v14197_v24  ;;  %v6886_v60 = vunpack.i.h.bf16 %v10652_v15  ;;  %v907_v12 = vmax.f32 %v14195_v52, %v760_v14  ;;  %v6885_v44 = vunpack.i.l.bf16 %v10652_v15 }
 0x1da   :  { %v10712_v21 = vpop.permute.xlu1 %6903  ;;  %v3472_v31 = vsel %vm3463_vm11, %v3407_v63, %v6820_v61  ;;  %v3473_v56 = vsel %vm3463_vm11, %v3408_v28, %v6821_v29  ;;  %v521_v37 = vadd.f32 %v10401_v35, %v10296_v17  ;;  %v524_v52 = vadd.f32 %v10401_v35, %v10319_v43 }
 0x1db   :  { %v6874_v54 = vpop.permute.xlu0 %6873  ;;  %v10722_v33 = vmax.f32 %v907_v12, %v1017_v39  ;;  %v3537_v15 = vsel %vm3528_vm10, %v3472_v31, %v6870_v32  ;;  %v3538_v61 = vsel %vm3528_vm10, %v3473_v56, %v6871_v8  ;;  %v14199_v17 = vrot.slane %v14177_v10, 1 }
 0x1dc   :  { %v6876_v27 = vunpack.i.h.bf16 %v6874_v54  ;;  %v6875_v24 = vunpack.i.l.bf16 %v6874_v54  ;;  %7178 = vrot.lane.b32.xlu1 %v10565_v41, %s8581_s12  ;;  %8354 = vtanh.f32 %v521_v37  ;;  %v14200_v29 = vrot.slane %v10380_v23, 1 }
 0x1dd   :  { %7168 = vrot.lane.b32.xlu0 %v10336_v46, %s8581_s12  ;;  %v10738_v43 = vmax.f32 %v1224_v26, %v10722_v33  ;;  %v513_v8 = vadd.f32 %v10401_v35, %v10306_v51  ;;  %v3344_v46 = vsel %vm3333_vm8, %v3279_v25, %v6860_v42  ;;  %v3345_v32 = vsel %vm3333_vm8, %v3280_v30, %v6861_v6 }
 0x1de   :  { %v762_v63 = vsel %vm671_vm3, %v14200_v29, %v14199_v17  ;;  %v3602_v28 = vsel %vm3593_vm12, %v3537_v15, %v6875_v24  ;;  %v3603_v14 = vsel %vm3593_vm12, %v3538_v61, %v6876_v27  ;;  %v6909_v2 = vpop.permute.xlu1 %6908  ;;  %8356 = vtanh.f32 %v524_v52 }
 0x1df   :  { %14201 = vst [vmem:[#allocation34_spill] sm:$0xff] %v10738_v43  ;;  %v10744_v39 = vpop.permute.xlu0 %6878  ;;  %v3662_v12 = vpack.c.bf16 %v3603_v14, %v3602_v28  ;;  %v3409_v31 = vsel %vm3398_vm9, %v3344_v46, %v6865_v59  ;;  %v6911_v56 = vunpack.i.h.bf16 %v6909_v2  ;;  %v6910_v54 = vunpack.i.l.bf16 %v6909_v2 }
 0x1e0   :  { %7193 = vrot.lane.b32.xlu1 %v10557_v58, %s8576_s21  ;;  %v908_v26 = vmax.f32 %v10380_v23, %v762_v63  ;;  %v3410_v37 = vsel %vm3398_vm9, %v3345_v32, %v6866_v5  ;;  %v3474_v51 = vsel %vm3463_vm11, %v3409_v31, %v6885_v44  ;;  %v1442_v25 = vrot.slane %v10188_v16, 1  ;;  %v14204_v5 = vld [vmem:[#allocation41_spill] sm:$0xff] }
 0x1e1   :  { %7183 = vrot.lane.b32.xlu0 %v10557_v58, %s8582_s17  ;;  %6541 = vmatprep.mubr.msk.bf16.mxu1 %vm3744_vm13, %v3662_v12  ;;  %v14202_v6 = vrot.slane %v14177_v10, 2  ;;  %v14203_v30 = vrot.slane %v10380_v23, 2  ;;  %v3475_v59 = vsel %vm3463_vm11, %v3410_v37, %v6886_v60  ;;  %8358 = vtanh.f32 %v513_v8  ;;  %v14207_v23 = vld [vmem:[#allocation46_spill] sm:$0xff] }
 0x1e2   :  { %v6914_v27 = vpop.permute.xlu1 %6913  ;;  %v14205_v24 = vrot.slane %v14204_v5, 2  ;;  %v14208_v29 = vmax.f32 %v14177_v10, %v14207_v23  ;;  %v1225_v60 = vmax.f32 %v10456_v55, %v10636_v47  ;;  %v3539_v28 = vsel %vm3528_vm10, %v3474_v51, %v6910_v54 }
 0x1e3   :  { %v1019_v42 = vsel %vm14042_vm4, %v14203_v30, %v14202_v6  ;;  %v14206_v44 = vmov %v14202_v6  ;;  %v6916_v15 = vunpack.i.h.bf16 %v6914_v27  ;;  %v6915_v61 = vunpack.i.l.bf16 %v6914_v27  ;;  %v10769_v17 = vpop.permute.xlu0 %6888 }
 0x1e4   :  { %v1021_v58 = vsel %vm14042_vm4, %v14206_v44, %v14205_v24  ;;  %v10767_v52 = vmax.f32 %v908_v26, %v1019_v42  ;;  %v3540_v14 = vsel %vm3528_vm10, %v3475_v59, %v6911_v56  ;;  %7203 = vrot.lane.b32.xlu1 %v10577_v34, %s8579_s25  ;;  %v1226_v2 = vmax.f32 %v10450_v62, %v10722_v33 }
 0x1e5   :  { %v10774_v63 = vmax.f32 %v14208_v29, %v1021_v58  ;;  %v516_v8 = vadd.f32 %v10401_v35, %v10323_v53  ;;  %v3604_v10 = vsel %vm3593_vm12, %v3539_v28, %v6915_v61  ;;  %v3605_v46 = vsel %vm3593_vm12, %v3540_v14, %v6916_v15  ;;  %7188 = vrot.lane.b32.xlu0 %v10565_v41, %s8583_s3 }
 0x1e6   :  { %v1571_v55 = vrot.slane %v10188_v16, 2  ;;  %v10792_v32 = vmax.f32 %v1225_v60, %v10767_v52  ;;  %v10794_v12 = vpop.permute.xlu1 %6918  ;;  %v3663_v31 = vpack.c.bf16 %v3605_v46, %v3604_v10  ;;  %v1444_v62 = vrot.slane %v10330_v11, 1  ;;  %v10801_v54 = vpop.eup %8354  ;;  %v14223_v16 = vld [vmem:[#allocation17_spill] sm:$0xff] }
 0x1e7   :  { %v14001_v56 = vrot.slane %v10330_v11, 2  ;;  %v10799_v53 = vmax.f32 %v1226_v2, %v10774_v63  ;;  %14211 = vst [vmem:[#allocation12_spill] sm:$0xff] %v10801_v54  ;;  %v10805_v51 = vpop.permute.xlu0 %6898  ;;  %v10809_v6 = vpack.i.bf16 %v10611_v9, %v10583_v38  ;;  %8360 = vtanh.f32 %v516_v8 }
 0x1e8   :  { %14209 = vst [vmem:[#allocation11_spill] sm:$0xff] %v10792_v32  ;;  %7213 = vrot.lane.b32.xlu1 %v10606_v22, %s8577_s22  ;;  %6542 = vmatmul.mubr.msk.bf16.gmra.mrb[8].mxu1 %vm3744_vm13, %v3663_v31  ;;  %v787_v30 = vrot.slane %v10801_v54, 1  ;;  %v14000_v42 = vrot.slane %v10801_v54, 2  ;;  %v10816_v59 = vpop.eup %8356  ;;  %v10823_v38 = vpack.i.bf16 %v10678_v49, %v10625_v36  ;;  %v14213_v9 = vrot.slane %v10185_v57, 1 }
 0x1e9   :  { %14210 = vst [vmem:[#allocation10_spill] sm:$0xff] %v10799_v53  ;;  %14212 = vst [vmem:[#allocation13_spill] sm:$0xff] %v10816_v59  ;;  %7198 = vrot.lane.b32.xlu0 %v10565_v41, %s8578_s23  ;;  %v14214_v44 = vrot.slane %v10185_v57, 2  ;;  %v1445_v61 = vsel %vm671_vm3, %v1442_v25, %v1444_v62  ;;  %v1574_v41 = vsel %vm14042_vm4, %v1571_v55, %v14001_v56  ;;  %v13999_v23 = vrot.slane %v10816_v59, 1 }
 0x1ea   :  { %v1443_v24 = vsel %vm671_vm3, %v14213_v9, %v1442_v25  ;;  %v10831_v15 = vpop.permute.xlu1 %6938  ;;  %v13998_v36 = vrot.slane %v10816_v59, 2  ;;  %v6856_v49 = vunpack.i.h.bf16 %v10662_v20  ;;  %v6855_v29 = vunpack.i.l.bf16 %v10662_v20  ;;  %v14217_v9 = vld [vmem:[#allocation15_spill] sm:$0xff] }
 0x1eb   :  { %v1572_v58 = vsel %vm14042_vm4, %v14214_v44, %v1571_v55  ;;  %v10841_v60 = vpop.permute.xlu0 %6923  ;;  %v14002_v28 = vrot.slane %v10421_v19, 1  ;;  %v10844_v14 = vpop.eup %8358  ;;  %v10851_v25 = vsel %vm671_vm3, %v787_v30, %v13999_v23  ;;  %v10862_v2 = vpack.i.bf16 %v1445_v61, %v1443_v24  ;;  %v14218_v24 = vld [vmem:[#allocation14_spill] sm:$0xff] }
 0x1ec   :  { %7223 = vrot.lane.b32.xlu1 %v10809_v6, %s8582_s17  ;;  %14215 = vst [vmem:[#allocation33_spill] sm:$0xff] %v10851_v25  ;;  %v10858_v20 = vsel %vm14042_vm4, %v14000_v42, %v13998_v36  ;;  %v10864_v8 = vpack.i.bf16 %v1574_v41, %v1572_v58  ;;  %v10872_v55 = vpack.i.bf16 %v10421_v19, %v10330_v11  ;;  %v6896_v36 = vunpack.i.h.bf16 %v10684_v3  ;;  %v14220_v42 = vld [vmem:[#allocation44_spill] sm:$0xff] }
 0x1ed   :  { %14216 = vst [vmem:[#allocation41_spill] sm:$0xff] %v10858_v20  ;;  %7208 = vrot.lane.b32.xlu0 %v10577_v34, %s8577_s22  ;;  %v10876_v31 = vpack.i.bf16 %v10473_v45, %v10470_v48  ;;  %v3152_v34 = vsel %vm3138_vm5, %v14217_v9, %v6856_v49  ;;  %v3151_v44 = vsel %vm3138_vm5, %v14218_v24, %v6855_v29  ;;  %v6895_v23 = vunpack.i.l.bf16 %v10684_v3  ;;  %v14219_v24 = vld [vmem:[#allocation45_spill] sm:$0xff] }
 0x1ee   :  { %v10868_v46 = vpop.permute.xlu1 %6943  ;;  %v10885_v61 = vsel %vm671_vm3, %v1444_v62, %v14002_v28  ;;  %v6906_v10 = vunpack.i.h.bf16 %v10712_v21  ;;  %v6905_v9 = vunpack.i.l.bf16 %v10712_v21  ;;  %v6881_v62 = vunpack.i.h.bf16 %v10744_v39 }
 0x1ef   :  { %v6929_v58 = vpop.permute.xlu0 %6928  ;;  %v14221_v3 = vmax.f32 %v14204_v5, %v14220_v42  ;;  %v1227_v27 = vmax.f32 %v10636_v47, %v10767_v52  ;;  %v6880_v37 = vunpack.i.l.bf16 %v10744_v39  ;;  %v6890_v49 = vunpack.i.l.bf16 %v10769_v17 }
 0x1f0   :  { %7233 = vrot.lane.b32.xlu1 %v10809_v6, %s8576_s21  ;;  %v6921_v5 = vunpack.i.h.bf16 %v10794_v12  ;;  %v6920_v42 = vunpack.i.l.bf16 %v10794_v12  ;;  %v6926_v47 = vunpack.i.h.bf16 %v10841_v60  ;;  %v6925_v39 = vunpack.i.l.bf16 %v10841_v60  ;;  %v14226_v12 = vld [vmem:[#allocation16_spill] sm:$0xff] }
 0x1f1   :  { %v10894_v29 = vpop.eup %8360  ;;  %7218 = vrot.lane.b32.xlu0 %v10606_v22, %s8579_s25  ;;  %v10904_v56 = vmax.f32 %v14221_v3, %v14219_v24  ;;  %v6891_v22 = vunpack.i.h.bf16 %v10769_v17  ;;  %v14222_v3 = vrot.slane %v10844_v14, 1  ;;  %v6931_v41 = vunpack.i.h.bf16 %v6929_v58 }
 0x1f2   :  { %v10909_v26 = vpop.permute.xlu1 %6963  ;;  %v785_v28 = vrot.slane %v10894_v29, 1  ;;  %v6930_v57 = vunpack.i.l.bf16 %v6929_v58  ;;  %v3154_v59 = vsel %vm3138_vm5, %v14223_v16, %v6906_v10  ;;  %v3217_v25 = vsel %vm3203_vm6, %v3152_v34, %v6881_v62 }
 0x1f3   :  { %v10918_v24 = vpop.permute.xlu0 %6933  ;;  %v14225_v58 = vrot.slane %v10844_v14, 2  ;;  %v3153_v54 = vsel %vm3138_vm5, %v14226_v12, %v6905_v9  ;;  %v3282_v16 = vsel %vm3268_vm7, %v3217_v25, %v6891_v22 }
 0x1f4   :  { %7238 = vrot.lane.b32.xlu1 %v10823_v38, %s8578_s23  ;;  %v10927_v21 = vsel %vm671_vm3, %v14222_v3, %v785_v28  ;;  %v10930_v17 = vsel %vm671_vm3, %v785_v28, %v787_v30  ;;  %v3216_v3 = vsel %vm3203_vm6, %v3151_v44, %v6880_v37  ;;  %v14224_v28 = vrot.slane %v10894_v29, 2 }
 0x1f5   :  { %7228 = vrot.lane.b32.xlu0 %v10823_v38, %s8583_s3  ;;  %v3281_v60 = vsel %vm3268_vm7, %v3216_v3, %v6890_v49  ;;  %v10956_v37 = vmax.f32 %v1227_v27, %v10904_v56  ;;  %v3218_v34 = vsel %vm3203_vm6, %v3153_v54, %v6920_v42  ;;  %v3219_v44 = vsel %vm3203_vm6, %v3154_v59, %v6921_v5 }
 0x1f6   :  { %v10942_v30 = vpop.permute.xlu1 %6973  ;;  %v10949_v20 = vsel %vm14042_vm4, %v14225_v58, %v14224_v28  ;;  %v3346_v62 = vsel %vm3333_vm8, %v3281_v60, %v6925_v39  ;;  %v3347_v28 = vsel %vm3333_vm8, %v3282_v16, %v6926_v47  ;;  %v6901_v54 = vunpack.i.h.bf16 %v10805_v51 }
 0x1f7   :  { %v6949_v10 = vpop.permute.xlu0 %6948  ;;  %v3411_v9 = vsel %vm3398_vm9, %v3346_v62, %v6930_v57  ;;  %v3412_v49 = vsel %vm3398_vm9, %v3347_v28, %v6931_v41  ;;  %v6900_v59 = vunpack.i.l.bf16 %v10805_v51  ;;  %v14227_v5 = vrot.slane %v10470_v48, 1 }
 0x1f8   :  { %7253 = vrot.lane.b32.xlu1 %v10862_v2, %s8580_s28  ;;  %v6951_v25 = vunpack.i.h.bf16 %v6949_v10  ;;  %v6950_v22 = vunpack.i.l.bf16 %v6949_v10  ;;  %v14228_v42 = vrot.slane %v10421_v19, 1  ;;  %v1575_v57 = vrot.slane %v10421_v19, 2 }
 0x1f9   :  { %7243 = vrot.lane.b32.xlu0 %v10809_v6, %s8580_s28  ;;  %v6941_v41 = vunpack.i.h.bf16 %v10831_v15  ;;  %v6940_v39 = vunpack.i.l.bf16 %v10831_v15  ;;  %v3283_v6 = vsel %vm3268_vm7, %v3218_v34, %v6895_v23  ;;  %v3284_v12 = vsel %vm3268_vm7, %v3219_v44, %v6896_v36 }
 0x1fa   :  { %v10970_v27 = vpop.permute.xlu1 %6983  ;;  %v10977_v47 = vsel %vm671_vm3, %v14228_v42, %v14227_v5  ;;  %v3476_v60 = vsel %vm3463_vm11, %v3411_v9, %v6900_v59  ;;  %v3477_v3 = vsel %vm3463_vm11, %v3412_v49, %v6901_v54  ;;  %v6946_v10 = vunpack.i.h.bf16 %v10868_v46  ;;  %v14230_v59 = vld [vmem:[#allocation42_spill] sm:$0xff] }
 0x1fb   :  { %v6954_v51 = vpop.permute.xlu0 %6953  ;;  %v6945_v62 = vunpack.i.l.bf16 %v10868_v46  ;;  %v3541_v15 = vsel %vm3528_vm10, %v3476_v60, %v6950_v22  ;;  %v3542_v23 = vsel %vm3528_vm10, %v3477_v3, %v6951_v25  ;;  %v6966_v36 = vunpack.i.h.bf16 %v10909_v26 }
 0x1fc   :  { %v6956_v58 = vunpack.i.h.bf16 %v6954_v51  ;;  %v6955_v16 = vunpack.i.l.bf16 %v6954_v51  ;;  %7258 = vrot.lane.b32.xlu1 %v10864_v8, %s8581_s12  ;;  %v6965_v34 = vunpack.i.l.bf16 %v10909_v26  ;;  %v3348_v49 = vsel %vm3333_vm8, %v3283_v6, %v6940_v39 }
 0x1fd   :  { %7248 = vrot.lane.b32.xlu0 %v10823_v38, %s8581_s12  ;;  %v3349_v46 = vsel %vm3333_vm8, %v3284_v12, %v6941_v41  ;;  %v14229_v25 = vrot.slane %v10668_v4, 1  ;;  %v14231_v38 = vrot.slane %v14230_v59, 1  ;;  %v14232_v39 = vrot.slane %v10668_v4, 2 }
 0x1fe   :  { %v3606_v44 = vsel %vm3593_vm12, %v3541_v15, %v6955_v16  ;;  %v3607_v28 = vsel %vm3593_vm12, %v3542_v23, %v6956_v58  ;;  %v6989_v9 = vpop.permute.xlu1 %6988  ;;  %v14233_v41 = vrot.slane %v14230_v59, 2  ;;  %v3413_v12 = vsel %vm3398_vm9, %v3348_v49, %v6945_v62 }
 0x1ff   :  { %v11000_v54 = vpop.permute.xlu0 %6958  ;;  %v3664_v22 = vpack.c.bf16 %v3607_v28, %v3606_v44  ;;  %v768_v5 = vsel %vm671_vm3, %v14231_v38, %v14229_v25  ;;  %v6991_v42 = vunpack.i.h.bf16 %v6989_v9  ;;  %v6990_v26 = vunpack.i.l.bf16 %v6989_v9 }
 0x200   :  { %7273 = vrot.lane.b32.xlu1 %v10862_v2, %s8576_s21  ;;  %v911_v51 = vmax.f32 %v14230_v59, %v768_v5  ;;  %v1025_v6 = vsel %vm14042_vm4, %v14233_v41, %v14232_v39  ;;  %v3414_v60 = vsel %vm3398_vm9, %v3349_v46, %v6946_v10  ;;  %v1577_v3 = vrot.slane %v10470_v48, 2 }
 0x201   :  { %7263 = vrot.lane.b32.xlu0 %v10862_v2, %s8582_s17  ;;  %6545 = vmatprep.mubr.msk.bf16.mxu1 %vm3744_vm13, %v3664_v22  ;;  %v1228_v58 = vmax.f32 %v10722_v33, %v10774_v63  ;;  %v3478_v16 = vsel %vm3463_vm11, %v3413_v12, %v6965_v34  ;;  %v3479_v15 = vsel %vm3463_vm11, %v3414_v60, %v6966_v36  ;;  %v1450_v44 = vrot.slane %v10473_v45, 1 }
 0x202   :  { %v6994_v23 = vpop.permute.xlu1 %6993  ;;  %v11026_v62 = vmax.f32 %v911_v51, %v1025_v6  ;;  %v14234_v2 = vrot.slane %v10258_v13, 1  ;;  %v14235_v49 = vmov %v14229_v25  ;;  %v14236_v33 = vrot.slane %v10258_v13, 2 }
 0x203   :  { %v6996_v10 = vunpack.i.h.bf16 %v6994_v23  ;;  %v6995_v28 = vunpack.i.l.bf16 %v6994_v23  ;;  %v11028_v9 = vpop.permute.xlu0 %6968  ;;  %v14237_v34 = vmov %v14232_v39  ;;  %v3543_v22 = vsel %vm3528_vm10, %v3478_v16, %v6990_v26 }
 0x204   :  { %v770_v46 = vsel %vm671_vm3, %v14235_v49, %v14234_v2  ;;  %v1027_v36 = vsel %vm14042_vm4, %v14237_v34, %v14236_v33  ;;  %v3544_v25 = vsel %vm3528_vm10, %v3479_v15, %v6991_v42  ;;  %7283 = vrot.lane.b32.xlu1 %v10872_v55, %s8579_s25  ;;  %v11045_v59 = vmax.f32 %v1228_v58, %v11026_v62 }
 0x205   :  { %v912_v38 = vmax.f32 %v10668_v4, %v770_v46  ;;  %v3608_v5 = vsel %vm3593_vm12, %v3543_v22, %v6995_v28  ;;  %v3609_v51 = vsel %vm3593_vm12, %v3544_v25, %v6996_v10  ;;  %7268 = vrot.lane.b32.xlu0 %v10864_v8, %s8583_s3  ;;  %v14238_v39 = vrot.slane %v10190_v40, 2 }
 0x206   :  { %v14239_v26 = vmov %v14236_v33  ;;  %v1229_v41 = vmax.f32 %v10767_v52, %v10904_v56  ;;  %v11059_v6 = vpop.permute.xlu1 %6998  ;;  %v3665_v12 = vpack.c.bf16 %v3609_v51, %v3608_v5  ;;  %v1452_v4 = vrot.slane %v10655_v0, 1 }
 0x207   :  { %v1029_v42 = vsel %vm14042_vm4, %v14239_v26, %v14238_v39  ;;  %v1579_v60 = vrot.slane %v10473_v45, 2  ;;  %v14011_v58 = vrot.slane %v10655_v0, 2  ;;  %v11064_v16 = vpop.permute.xlu0 %6978  ;;  %v11066_v15 = vmax.f32 %v912_v38, %v1027_v36 }
 0x208   :  { %v14240_v23 = vmax.f32 %v10258_v13, %v10294_v1  ;;  %7293 = vrot.lane.b32.xlu1 %v10876_v31, %s8577_s22  ;;  %6546 = vmatmul.mubr.msk.bf16.gmra.mrb[12].mxu1 %vm3744_vm13, %v3665_v12  ;;  %v11078_v52 = vpack.i.bf16 %v10977_v47, %v10885_v61  ;;  %v1230_v28 = vmax.f32 %v10774_v63, %v11026_v62  ;;  %v14241_v13 = vrot.slane %v10330_v11, 2 }
 0x209   :  { %7278 = vrot.lane.b32.xlu0 %v10864_v8, %s8578_s23  ;;  %v1578_v2 = vsel %vm14042_vm4, %v1575_v57, %v1577_v3  ;;  %v14242_v49 = vrot.slane %v10470_v48, 1  ;;  %v11096_v47 = vmax.f32 %v1229_v41, %v11066_v15  ;;  %v1453_v8 = vsel %vm671_vm3, %v1450_v44, %v1452_v4 }
 0x20a   :  { %v11071_v10 = vmax.f32 %v14240_v23, %v1029_v42  ;;  %v1576_v1 = vsel %vm14042_vm4, %v14241_v13, %v1575_v57  ;;  %v11098_v63 = vpop.permute.xlu1 %7018  ;;  %v1580_v46 = vsel %vm14042_vm4, %v1577_v3, %v1579_v60  ;;  %v1582_v33 = vsel %vm14042_vm4, %v1579_v60, %v14011_v58 }
 0x20b   :  { %v1451_v61 = vsel %vm671_vm3, %v14242_v49, %v1450_v44  ;;  %v7004_v57 = vpop.permute.xlu0 %7003  ;;  %v1454_v36 = vrot.slane %v10738_v43, 1  ;;  %v11111_v22 = vpack.i.bf16 %v1578_v2, %v1576_v1  ;;  %v14010_v25 = vrot.slane %v10792_v32, 1  ;;  %v14244_v2 = vld [vmem:[#allocation19_spill] sm:$0xff] }
 0x20c   :  { %v11106_v34 = vmax.f32 %v1230_v28, %v11071_v10  ;;  %7303 = vrot.lane.b32.xlu1 %v11078_v52, %s8582_s17  ;;  %v11116_v3 = vpack.i.bf16 %v1453_v8, %v1451_v61  ;;  %v11118_v44 = vpack.i.bf16 %v1582_v33, %v1580_v46  ;;  %v6936_v38 = vunpack.i.h.bf16 %v10918_v24 }
 0x20d   :  { %7288 = vrot.lane.b32.xlu0 %v10872_v55, %s8577_s22  ;;  %v6935_v5 = vunpack.i.l.bf16 %v10918_v24  ;;  %v11126_v26 = vpack.i.bf16 %v10738_v43, %v10655_v0  ;;  %v11130_v42 = vpack.i.bf16 %v10799_v53, %v10792_v32  ;;  %v11133_v55 = vsel %vm671_vm3, %v1452_v4, %v1454_v36 }
 0x20e   :  { %v11122_v51 = vpop.permute.xlu1 %7023  ;;  %v6960_v41 = vunpack.i.l.bf16 %v11000_v54  ;;  %v11141_v24 = vsel %vm671_vm3, %v1454_v36, %v14010_v25  ;;  %v14243_v12 = vmax.f32 %v10190_v40, %v10235_v7  ;;  %v1231_v4 = vmax.f32 %v10904_v56, %v11066_v15  ;;  %v14245_v40 = vld [vmem:[#allocation18_spill] sm:$0xff] }
 0x20f   :  { %v7009_v39 = vpop.permute.xlu0 %7008  ;;  %v6986_v23 = vunpack.i.h.bf16 %v10970_v27  ;;  %v6985_v28 = vunpack.i.l.bf16 %v10970_v27  ;;  %v6961_v13 = vunpack.i.h.bf16 %v11000_v54  ;;  %v6970_v1 = vunpack.i.l.bf16 %v11028_v9 }
 0x210   :  { %7313 = vrot.lane.b32.xlu1 %v11078_v52, %s8576_s21  ;;  %v11147_v60 = vmax.f32 %v14243_v12, %v10246_v18  ;;  %v3156_v49 = vsel %vm3138_vm5, %v14244_v2, %v6936_v38  ;;  %v3155_v7 = vsel %vm3138_vm5, %v14245_v40, %v6935_v5  ;;  %v6976_v18 = vunpack.i.h.bf16 %v10942_v30  ;;  %v14247_v2 = vld [vmem:[#allocation20_spill] sm:$0xff] }
 0x211   :  { %7298 = vrot.lane.b32.xlu0 %v10876_v31, %s8579_s25  ;;  %v6971_v56 = vunpack.i.h.bf16 %v11028_v9  ;;  %v6975_v27 = vunpack.i.l.bf16 %v10942_v30  ;;  %v7000_v54 = vunpack.i.l.bf16 %v11059_v6  ;;  %v7006_v8 = vunpack.i.h.bf16 %v7004_v57  ;;  %v14246_v9 = vld [vmem:[#allocation21_spill] sm:$0xff] }
 0x212   :  { %v11163_v61 = vpop.permute.xlu1 %7043  ;;  %v7005_v46 = vunpack.i.l.bf16 %v7004_v57  ;;  %v3220_v31 = vsel %vm3203_vm6, %v3155_v7, %v6960_v41  ;;  %v7011_v36 = vunpack.i.h.bf16 %v7009_v39  ;;  %v7010_v38 = vunpack.i.l.bf16 %v7009_v39  ;;  %v6519_v39 = vpop.f32.mrb[60].mxu0 }
 0x213   :  { %v11167_v33 = vpop.permute.xlu0 %7013  ;;  %v11173_v5 = vmax.f32 %v1231_v4, %v11147_v60  ;;  %v3158_v12 = vsel %vm3138_vm5, %v14246_v9, %v6986_v23  ;;  %v3157_v40 = vsel %vm3138_vm5, %v14247_v2, %v6985_v28  ;;  %v3221_v57 = vsel %vm3203_vm6, %v3156_v49, %v6961_v13  ;;  %v528_v9 = vpop.f32.mrb[61].mxu0 }
 0x214   :  { %7318 = vrot.lane.b32.xlu1 %v11111_v22, %s8578_s23  ;;  %v3285_v25 = vsel %vm3268_vm7, %v3220_v31, %v6970_v1  ;;  %v3286_v41 = vsel %vm3268_vm7, %v3221_v57, %v6971_v56  ;;  %v7001_v7 = vunpack.i.h.bf16 %v11059_v6  ;;  %v6981_v4 = vunpack.i.h.bf16 %v11064_v16  ;;  %v6520_v2 = vpop.f32.mrb[62].mxu0 }
 0x215   :  { %7308 = vrot.lane.b32.xlu0 %v11111_v22, %s8583_s3  ;;  %v537_v23 = vadd.f32 %v10401_v35, %v6519_v39  ;;  %v3222_v28 = vsel %vm3203_vm6, %v3157_v40, %v7000_v54  ;;  %v3350_v13 = vsel %vm3333_vm8, %v3285_v25, %v7005_v46  ;;  %v3351_v1 = vsel %vm3333_vm8, %v3286_v41, %v7006_v8  ;;  %v531_v39 = vpop.f32.mrb[63].mxu0  ;;  %v8548_v25 = vld [vmem:[%s13887_s2] ss:$0 sm:$0xff] }
 0x216   :  { %v11186_v58 = vpop.permute.xlu1 %7053  ;;  %v529_v31 = vadd.f32 %v10401_v35, %v528_v9  ;;  %v3415_v56 = vsel %vm3398_vm9, %v3350_v13, %v7010_v38  ;;  %v3416_v6 = vsel %vm3398_vm9, %v3351_v1, %v7011_v36  ;;  %v540_v57 = vadd.f32 %v10401_v35, %v6520_v2 }
 0x217   :  { %v7029_v49 = vpop.permute.xlu0 %7028  ;;  %8362 = vtanh.f32 %v537_v23  ;;  %v532_v8 = vadd.f32 %v8548_v25, %v531_v39  ;;  %v3223_v46 = vsel %vm3203_vm6, %v3158_v12, %v7001_v7  ;;  %v6980_v36 = vunpack.i.l.bf16 %v11064_v16 }
 0x218   :  { %7333 = vrot.lane.b32.xlu1 %v11116_v3, %s8580_s28  ;;  %v7031_v54 = vunpack.i.h.bf16 %v7029_v49  ;;  %v7030_v40 = vunpack.i.l.bf16 %v7029_v49  ;;  %8364 = vtanh.f32 %v529_v31  ;;  %v3287_v38 = vsel %vm3268_vm7, %v3222_v28, %v6975_v27 }
 0x219   :  { %7323 = vrot.lane.b32.xlu0 %v11078_v52, %s8580_s28  ;;  %8366 = vtanh.f32 %v540_v57  ;;  %v7021_v35 = vunpack.i.h.bf16 %v11098_v63  ;;  %v7020_v23 = vunpack.i.l.bf16 %v11098_v63  ;;  %v7026_v52 = vunpack.i.h.bf16 %v11122_v51 }
 0x21a   :  { %v11206_v41 = vpop.permute.xlu1 %7063  ;;  %8368 = vtanh.f32 %v532_v8  ;;  %v3480_v13 = vsel %vm3463_vm11, %v3415_v56, %v6980_v36  ;;  %v3481_v1 = vsel %vm3463_vm11, %v3416_v6, %v6981_v4  ;;  %v7025_v16 = vunpack.i.l.bf16 %v11122_v51  ;;  %v14249_v56 = vld [vmem:[#allocation51_spill] sm:$0xff] }
 0x21b   :  { %v7034_v9 = vpop.permute.xlu0 %7033  ;;  %v7045_v27 = vunpack.i.l.bf16 %v11163_v61  ;;  %v3545_v28 = vsel %vm3528_vm10, %v3480_v13, %v7030_v40  ;;  %v3546_v63 = vsel %vm3528_vm10, %v3481_v1, %v7031_v54  ;;  %v14248_v2 = vrot.slane %v10511_v50, 1 }
 0x21c   :  { %v7036_v12 = vunpack.i.h.bf16 %v7034_v9  ;;  %v7035_v7 = vunpack.i.l.bf16 %v7034_v9  ;;  %7338 = vrot.lane.b32.xlu1 %v11118_v44, %s8581_s12  ;;  %v14250_v6 = vrot.slane %v14249_v56, 1  ;;  %v14251_v57 = vrot.slane %v10511_v50, 2 }
 0x21d   :  { %7328 = vrot.lane.b32.xlu0 %v11111_v22, %s8581_s12  ;;  %v14252_v39 = vrot.slane %v14249_v56, 2  ;;  %v3288_v22 = vsel %vm3268_vm7, %v3223_v46, %v6976_v18  ;;  %v7046_v40 = vunpack.i.h.bf16 %v11163_v61  ;;  %v3352_v9 = vsel %vm3333_vm8, %v3287_v38, %v7020_v23 }
 0x21e   :  { %v3610_v49 = vsel %vm3593_vm12, %v3545_v28, %v7035_v7  ;;  %v3611_v4 = vsel %vm3593_vm12, %v3546_v63, %v7036_v12  ;;  %v7069_v31 = vpop.permute.xlu1 %7068  ;;  %v776_v51 = vsel %vm671_vm3, %v14250_v6, %v14248_v2  ;;  %v1232_v12 = vmax.f32 %v11026_v62, %v11071_v10  ;;  %v14253_v28 = vld [vmem:[#allocation43_spill] sm:$0xff]  ;;  %v14254_v63 = vld [vmem:[#allocation48_spill] sm:$0xff] }
 0x21f   :  { %v1033_v54 = vsel %vm14042_vm4, %v14252_v39, %v14251_v57  ;;  %v11237_v25 = vpop.permute.xlu0 %7038  ;;  %v3666_v8 = vpack.c.bf16 %v3611_v4, %v3610_v49  ;;  %v915_v36 = vmax.f32 %v14249_v56, %v776_v51  ;;  %v7071_v13 = vunpack.i.h.bf16 %v7069_v31 }
 0x220   :  { %v7070_v1 = vunpack.i.l.bf16 %v7069_v31  ;;  %7353 = vrot.lane.b32.xlu1 %v11116_v3, %s8576_s21  ;;  %v3353_v30 = vsel %vm3333_vm8, %v3288_v22, %v7021_v35  ;;  %v3417_v18 = vsel %vm3398_vm9, %v3352_v9, %v7025_v16  ;;  %v14255_v35 = vmax.f32 %v10511_v50, %v14254_v63 }
 0x221   :  { %7343 = vrot.lane.b32.xlu0 %v11116_v3, %s8582_s17  ;;  %6549 = vmatprep.mubr.msk.bf16.mxu1 %vm3744_vm13, %v3666_v8  ;;  %v11250_v61 = vmax.f32 %v915_v36, %v1033_v54  ;;  %v11252_v46 = vpop.eup %8362  ;;  %v3418_v38 = vsel %vm3398_vm9, %v3353_v30, %v7026_v52  ;;  %v3482_v23 = vsel %vm3463_vm11, %v3417_v18, %v7045_v27  ;;  %v1583_v9 = vrot.slane %v10738_v43, 2 }
 0x222   :  { %v7074_v7 = vpop.permute.xlu1 %7073  ;;  %v11260_v49 = vmax.f32 %v14255_v35, %v14253_v28  ;;  %v1233_v3 = vmax.f32 %v11066_v15, %v11147_v60  ;;  %v11264_v16 = vpop.eup %8364  ;;  %v3483_v4 = vsel %vm3463_vm11, %v3418_v38, %v7046_v40  ;;  %v795_v52 = vrot.slane %v11252_v46, 1 }
 0x223   :  { %v7076_v31 = vunpack.i.h.bf16 %v7074_v7  ;;  %v7075_v2 = vunpack.i.l.bf16 %v7074_v7  ;;  %v11267_v56 = vpop.permute.xlu0 %7048  ;;  %v11270_v27 = vpop.eup %8366  ;;  %v3547_v6 = vsel %vm3528_vm10, %v3482_v23, %v7070_v1  ;;  %v3548_v50 = vsel %vm3528_vm10, %v3483_v4, %v7071_v13 }
 0x224   :  { %7363 = vrot.lane.b32.xlu1 %v11126_v26, %s8579_s25  ;;  %v14013_v15 = vrot.slane %v11252_v46, 2  ;;  %v14016_v51 = vrot.slane %v11264_v16, 1  ;;  %v11278_v57 = vpop.eup %8368  ;;  %v14017_v22 = vrot.slane %v11270_v27, 1  ;;  %v14012_v40 = vrot.slane %v11270_v27, 2 }
 0x225   :  { %v3612_v39 = vsel %vm3593_vm12, %v3547_v6, %v7075_v2  ;;  %v3613_v54 = vsel %vm3593_vm12, %v3548_v50, %v7076_v31  ;;  %7348 = vrot.lane.b32.xlu0 %v11118_v44, %s8583_s3  ;;  %v1585_v13 = vrot.slane %v10792_v32, 2  ;;  %v793_v1 = vrot.slane %v11278_v57, 1 }
 0x226   :  { %v11286_v8 = vpop.permute.xlu1 %7078  ;;  %v3667_v36 = vpack.c.bf16 %v3613_v54, %v3612_v39  ;;  %v11295_v18 = vpack.i.bf16 %v11141_v24, %v11133_v55  ;;  %v1458_v38 = vrot.slane %v10799_v53, 1  ;;  %v1460_v23 = vrot.slane %v10956_v37, 1 }
 0x227   :  { %v11291_v30 = vpop.permute.xlu0 %7058  ;;  %v11302_v7 = vsel %vm671_vm3, %v795_v52, %v14017_v22  ;;  %v1587_v28 = vrot.slane %v10799_v53, 2  ;;  %v14018_v63 = vrot.slane %v10956_v37, 2  ;;  %v14015_v24 = vrot.slane %v11264_v16, 2  ;;  %v14259_v22 = vld [vmem:[#allocation22_spill] sm:$0xff] }
 0x228   :  { %7373 = vrot.lane.b32.xlu1 %v11130_v42, %s8577_s22  ;;  %6550 = vmatmul.mubr.msk.bf16.gmra.mrb[16].mxu1 %vm3744_vm13, %v3667_v36  ;;  %v11319_v35 = vsel %vm14042_vm4, %v14013_v15, %v14012_v40  ;;  %v11324_v4 = vsel %vm671_vm3, %v14016_v51, %v793_v1  ;;  %v14256_v2 = vrot.slane %v10655_v0, 2  ;;  %v1586_v6 = vsel %vm14042_vm4, %v1583_v9, %v1585_v13  ;;  %v14258_v51 = vld [vmem:[#allocation23_spill] sm:$0xff] }
 0x229   :  { %7358 = vrot.lane.b32.xlu0 %v11118_v44, %s8578_s23  ;;  %v11333_v50 = vsel %vm671_vm3, %v793_v1, %v795_v52  ;;  %v14257_v36 = vrot.slane %v10792_v32, 1  ;;  %v1461_v55 = vsel %vm671_vm3, %v1458_v38, %v1460_v23  ;;  %v1588_v52 = vsel %vm14042_vm4, %v1585_v13, %v1587_v28 }
 0x22a   :  { %v11326_v31 = vpop.permute.xlu1 %7098  ;;  %v1584_v44 = vsel %vm14042_vm4, %v14256_v2, %v1583_v9  ;;  %v14014_v2 = vrot.slane %v11278_v57, 2  ;;  %v1590_v9 = vsel %vm14042_vm4, %v1587_v28, %v14018_v63  ;;  %v11354_v1 = vmax.f32 %v1232_v12, %v11250_v61 }
 0x22b   :  { %v7084_v54 = vpop.permute.xlu0 %7083  ;;  %v1459_v40 = vsel %vm671_vm3, %v14257_v36, %v1458_v38  ;;  %v11357_v38 = vmax.f32 %v1233_v3, %v11260_v49  ;;  %v11361_v36 = vpack.i.bf16 %v1586_v6, %v1584_v44  ;;  %v14024_v12 = vrot.slane %v11045_v59, 1 }
 0x22c   :  { %7383 = vrot.lane.b32.xlu1 %v11295_v18, %s8582_s17  ;;  %v11368_v13 = vsel %vm14042_vm4, %v14015_v24, %v14014_v2  ;;  %v11372_v62 = vpack.i.bf16 %v1461_v55, %v1459_v40  ;;  %v7016_v3 = vunpack.i.h.bf16 %v11167_v33  ;;  %v7015_v15 = vunpack.i.l.bf16 %v11167_v33 }
 0x22d   :  { %7368 = vrot.lane.b32.xlu0 %v11126_v26, %s8577_s22  ;;  %v11377_v44 = vpack.i.bf16 %v1590_v9, %v1588_v52  ;;  %v7041_v6 = vunpack.i.h.bf16 %v11237_v25  ;;  %v7040_v39 = vunpack.i.l.bf16 %v11237_v25  ;;  %v7066_v2 = vunpack.i.h.bf16 %v11206_v41 }
 0x22e   :  { %v11370_v28 = vpop.permute.xlu1 %7103  ;;  %v7065_v40 = vunpack.i.l.bf16 %v11206_v41  ;;  %v7051_v55 = vunpack.i.h.bf16 %v11267_v56  ;;  %v7050_v24 = vunpack.i.l.bf16 %v11267_v56  ;;  %v7085_v33 = vunpack.i.l.bf16 %v7084_v54  ;;  %v14264_v41 = vld [vmem:[#allocation36_spill] sm:$0xff] }
 0x22f   :  { %v7089_v26 = vpop.permute.xlu0 %7088  ;;  %v11393_v25 = vpack.i.bf16 %v11045_v59, %v10956_v37  ;;  %v11398_v9 = vsel %vm671_vm3, %v1460_v23, %v14024_v12  ;;  %v3160_v56 = vsel %vm3138_vm5, %v14258_v51, %v7016_v3  ;;  %v7086_v63 = vunpack.i.h.bf16 %v7084_v54  ;;  %v14260_v12 = vld [vmem:[#allocation27_spill] sm:$0xff]  ;;  %v14261_v3 = vld [vmem:[#allocation25_spill] sm:$0xff] }
 0x230   :  { %7393 = vrot.lane.b32.xlu1 %v11295_v18, %s8576_s21  ;;  %v7090_v32 = vunpack.i.l.bf16 %v7089_v26  ;;  %v7056_v43 = vunpack.i.h.bf16 %v11186_v58  ;;  %v3225_v48 = vsel %vm3203_vm6, %v3160_v56, %v7041_v6  ;;  %v7091_v23 = vunpack.i.h.bf16 %v7089_v26  ;;  %v14262_v56 = vld [vmem:[#allocation9_spill] sm:$0xff] }
 0x231   :  { %7378 = vrot.lane.b32.xlu0 %v11130_v42, %s8579_s25  ;;  %v3159_v42 = vsel %vm3138_vm5, %v14259_v22, %v7015_v15  ;;  %v3162_v51 = vsel %vm3138_vm5, %v14260_v12, %v7066_v2  ;;  %v3161_v15 = vsel %vm3138_vm5, %v14261_v3, %v7065_v40  ;;  %v3290_v54 = vsel %vm3268_vm7, %v3225_v48, %v7051_v55 }
 0x232   :  { %v11389_v52 = vpop.permute.xlu1 %7123  ;;  %v3224_v0 = vsel %vm3203_vm6, %v3159_v42, %v7040_v39  ;;  %v7081_v39 = vunpack.i.h.bf16 %v11286_v8  ;;  %v14263_v42 = vrot.slane %v14262_v56, 2  ;;  %v14265_v2 = vrot.slane %v14264_v41, 2 }
 0x233   :  { %v11405_v53 = vpop.permute.xlu0 %7093  ;;  %v3289_v22 = vsel %vm3268_vm7, %v3224_v0, %v7050_v24  ;;  %v1234_v0 = vmax.f32 %v11071_v10, %v11250_v61  ;;  %v7080_v48 = vunpack.i.l.bf16 %v11286_v8  ;;  %v3355_v24 = vsel %vm3333_vm8, %v3290_v54, %v7086_v63  ;;  %v14269_v10 = vld [vmem:[#allocation47_spill] sm:$0xff]  ;;  %v14272_v54 = vld [vmem:[#allocation8_spill] sm:$0xff] }
 0x234   :  { %7398 = vrot.lane.b32.xlu1 %v11361_v36, %s8578_s23  ;;  %v3354_v26 = vsel %vm3333_vm8, %v3289_v22, %v7085_v33  ;;  %v1037_v12 = vsel %vm14042_vm4, %v14265_v2, %v14263_v42  ;;  %v14266_v33 = vld [vmem:[#allocation30_spill] sm:$0xff]  ;;  %v3420_v45 = vsel %vm3398_vm9, %v3355_v24, %v7091_v23  ;;  %v14268_v42 = vld [vmem:[#allocation32_spill] sm:$0xff]  ;;  %v14270_v8 = vmax.f32 %v14262_v56, %v14269_v10 }
 0x235   :  { %7388 = vrot.lane.b32.xlu0 %v11361_v36, %s8583_s3  ;;  %v3419_v40 = vsel %vm3398_vm9, %v3354_v26, %v7090_v32  ;;  %v14267_v3 = vmax.f32 %v14264_v41, %v14266_v33  ;;  %v1235_v32 = vmax.f32 %v11147_v60, %v11260_v49  ;;  %v14271_v23 = vrot.slane %v10844_v14, 1 }
 0x236   :  { %v11422_v6 = vpop.permute.xlu1 %7133  ;;  %v11446_v2 = vmax.f32 %v14270_v8, %v14268_v42  ;;  %v14273_v26 = vrot.slane %v14272_v54, 1  ;;  %v14274_v56 = vrot.slane %v10844_v14, 2  ;;  %v14275_v24 = vrot.slane %v14272_v54, 2 }
 0x237   :  { %v7109_v55 = vpop.permute.xlu0 %7108  ;;  %v11437_v22 = vmax.f32 %v14267_v3, %v1037_v12  ;;  %v7061_v60 = vunpack.i.h.bf16 %v11291_v30  ;;  %v7055_v42 = vunpack.i.l.bf16 %v11186_v58  ;;  %v3226_v10 = vsel %vm3203_vm6, %v3161_v15, %v7080_v48 }
 0x238   :  { %v7111_v11 = vunpack.i.h.bf16 %v7109_v55  ;;  %7413 = vrot.lane.b32.xlu1 %v11372_v62, %s8580_s28  ;;  %v7110_v63 = vunpack.i.l.bf16 %v7109_v55  ;;  %v784_v12 = vsel %vm671_vm3, %v14273_v26, %v14271_v23  ;;  %v1041_v33 = vsel %vm14042_vm4, %v14275_v24, %v14274_v56 }
 0x239   :  { %7403 = vrot.lane.b32.xlu0 %v11295_v18, %s8580_s28  ;;  %v11453_v41 = vmax.f32 %v1234_v0, %v11437_v22  ;;  %v7060_v55 = vunpack.i.l.bf16 %v11291_v30  ;;  %v11470_v0 = vmax.f32 %v1235_v32, %v11446_v2  ;;  %v919_v3 = vmax.f32 %v14272_v54, %v784_v12 }
 0x23a   :  { %v11467_v18 = vpop.permute.xlu1 %7143  ;;  %v3227_v8 = vsel %vm3203_vm6, %v3162_v51, %v7081_v39  ;;  %v7100_v23 = vunpack.i.l.bf16 %v11326_v31  ;;  %v3485_v30 = vsel %vm3463_vm11, %v3420_v45, %v7061_v60  ;;  %v7101_v32 = vunpack.i.h.bf16 %v11326_v31 }
 0x23b   :  { %v7114_v26 = vpop.permute.xlu0 %7113  ;;  %v3484_v56 = vsel %vm3463_vm11, %v3419_v40, %v7060_v55  ;;  %v7105_v58 = vunpack.i.l.bf16 %v11370_v28  ;;  %v3550_v51 = vsel %vm3528_vm10, %v3485_v30, %v7111_v11  ;;  %v7106_v39 = vunpack.i.h.bf16 %v11370_v28 }
 0x23c   :  { %v7116_v24 = vunpack.i.h.bf16 %v7114_v26  ;;  %v7115_v19 = vunpack.i.l.bf16 %v7114_v26  ;;  %7418 = vrot.lane.b32.xlu1 %v11377_v44, %s8581_s12  ;;  %v3549_v15 = vsel %vm3528_vm10, %v3484_v56, %v7110_v63  ;;  %v7125_v45 = vunpack.i.l.bf16 %v11389_v52 }
 0x23d   :  { %7408 = vrot.lane.b32.xlu0 %v11361_v36, %s8581_s12  ;;  %v3291_v31 = vsel %vm3268_vm7, %v3226_v10, %v7055_v42  ;;  %v7126_v12 = vunpack.i.h.bf16 %v11389_v52  ;;  %v11497_v11 = vpack.i.bf16 %v11106_v34, %v11096_v47  ;;  %v3292_v36 = vsel %vm3268_vm7, %v3227_v8, %v7056_v43 }
 0x23e   :  { %v3614_v48 = vsel %vm3593_vm12, %v3549_v15, %v7115_v19  ;;  %v3615_v40 = vsel %vm3593_vm12, %v3550_v51, %v7116_v24  ;;  %v7149_v54 = vpop.permute.xlu1 %7148  ;;  %v3356_v28 = vsel %vm3333_vm8, %v3291_v31, %v7100_v23  ;;  %v3357_v42 = vsel %vm3333_vm8, %v3292_v36, %v7101_v32 }
 0x23f   :  { %v11493_v60 = vpop.permute.xlu0 %7118  ;;  %v3668_v63 = vpack.c.bf16 %v3615_v40, %v3614_v48  ;;  %v7151_v55 = vunpack.i.h.bf16 %v7149_v54  ;;  %v7150_v19 = vunpack.i.l.bf16 %v7149_v54  ;;  %v3421_v52 = vsel %vm3398_vm9, %v3356_v28, %v7105_v58 }
 0x240   :  { %7433 = vrot.lane.b32.xlu1 %v11372_v62, %s8576_s21  ;;  %v14276_v10 = vrot.slane %v11096_v47, 1  ;;  %v14277_v43 = vrot.slane %v11045_v59, 1  ;;  %v1591_v23 = vrot.slane %v11045_v59, 2  ;;  %v3422_v26 = vsel %vm3398_vm9, %v3357_v42, %v7106_v39 }
 0x241   :  { %7423 = vrot.lane.b32.xlu0 %v11372_v62, %s8582_s17  ;;  %6553 = vmatprep.mubr.msk.bf16.mxu1 %vm3744_vm13, %v3668_v63  ;;  %v3486_v56 = vsel %vm3463_vm11, %v3421_v52, %v7125_v45  ;;  %v11516_v24 = vmax.f32 %v919_v3, %v1041_v33  ;;  %v1236_v62 = vmax.f32 %v11250_v61, %v11437_v22  ;;  %v1595_v63 = vrot.slane %v11106_v34, 2 }
 0x242   :  { %v1465_v8 = vsel %vm671_vm3, %v14277_v43, %v14276_v10  ;;  %v7154_v30 = vpop.permute.xlu1 %7153  ;;  %v3487_v32 = vsel %vm3463_vm11, %v3422_v26, %v7126_v12  ;;  %v14278_v48 = vmax.f32 %v10844_v14, %v10927_v21  ;;  %v3551_v39 = vsel %vm3528_vm10, %v3486_v56, %v7150_v19 }
 0x243   :  { %v7156_v58 = vunpack.i.h.bf16 %v7154_v30  ;;  %v7155_v15 = vunpack.i.l.bf16 %v7154_v30  ;;  %v11521_v51 = vpop.permute.xlu0 %7128  ;;  %v3552_v33 = vsel %vm3528_vm10, %v3487_v32, %v7151_v55  ;;  %v11534_v61 = vmax.f32 %v1236_v62, %v11516_v24 }
 0x244   :  { %v11527_v40 = vmax.f32 %v14278_v48, %v10949_v20  ;;  %7443 = vrot.lane.b32.xlu1 %v11393_v25, %s8579_s25  ;;  %v1237_v3 = vmax.f32 %v11260_v49, %v11446_v2  ;;  %v1593_v14 = vrot.slane %v11096_v47, 2  ;;  %v1466_v20 = vrot.slane %v11106_v34, 1 }
 0x245   :  { %v3616_v45 = vsel %vm3593_vm12, %v3551_v39, %v7155_v15  ;;  %v3617_v54 = vsel %vm3593_vm12, %v3552_v33, %v7156_v58  ;;  %7428 = vrot.lane.b32.xlu0 %v11377_v44, %s8583_s3  ;;  %v1468_v12 = vrot.slane %v11173_v5, 1  ;;  %v1597_v49 = vrot.slane %v11173_v5, 2  ;;  %v14282_v39 = vld [vmem:[#allocation29_spill] sm:$0xff] }
 0x246   :  { %v11544_v21 = vpop.permute.xlu1 %7158  ;;  %v3669_v31 = vpack.c.bf16 %v3617_v54, %v3616_v45  ;;  %v11552_v28 = vmax.f32 %v1237_v3, %v11527_v40  ;;  %v11560_v55 = vpack.i.bf16 %v1465_v8, %v11398_v9  ;;  %v14280_v19 = vrot.slane %v10956_v37, 2  ;;  %v14283_v54 = vld [vmem:[#allocation12_spill] sm:$0xff] }
 0x247   :  { %v11549_v36 = vpop.permute.xlu0 %7138  ;;  %v1594_v52 = vsel %vm14042_vm4, %v1591_v23, %v1593_v14  ;;  %v1467_v43 = vsel %vm671_vm3, %v14276_v10, %v1466_v20  ;;  %v7096_v26 = vunpack.i.h.bf16 %v11405_v53  ;;  %v1596_v9 = vsel %vm14042_vm4, %v1593_v14, %v1595_v63  ;;  %v14287_v10 = vld [vmem:[#allocation28_spill] sm:$0xff] }
 0x248   :  { %14279 = vst [vmem:[#allocation46_spill] sm:$0xff] %v11552_v28  ;;  %7453 = vrot.lane.b32.xlu1 %v11497_v11, %s8577_s22  ;;  %6554 = vmatmul.mubr.msk.bf16.gmra.mrb[20].mxu1 %vm3744_vm13, %v3669_v31  ;;  %v1592_v42 = vsel %vm14042_vm4, %v14280_v19, %v1591_v23  ;;  %v1598_v8 = vsel %vm14042_vm4, %v1595_v63, %v1597_v49  ;;  %v7095_v23 = vunpack.i.l.bf16 %v11405_v53  ;;  %v14281_v32 = vrot.slane %v11270_v27, 1 }
 0x249   :  { %7438 = vrot.lane.b32.xlu0 %v11377_v44, %s8578_s23  ;;  %v1469_v44 = vsel %vm671_vm3, %v1466_v20, %v1468_v12  ;;  %v11582_v62 = vpack.i.bf16 %v1594_v52, %v1592_v42  ;;  %v11593_v48 = vpack.i.bf16 %v1598_v8, %v1596_v9  ;;  %v3164_v53 = vsel %vm3138_vm5, %v14282_v39, %v7096_v26  ;;  %v14288_v9 = vld [vmem:[#allocation41_spill] sm:$0xff] }
 0x24a   :  { %v11570_v56 = vpop.permute.xlu1 %7173  ;;  %v11587_v58 = vsel %vm671_vm3, %v14281_v32, 0.0  ;;  %v11591_v15 = vpack.i.bf16 %v1469_v44, %v1467_v43  ;;  %v7121_v33 = vunpack.i.h.bf16 %v11493_v60  ;;  %v7120_v3 = vunpack.i.l.bf16 %v11493_v60 }
 0x24b   :  { %v7164_v30 = vpop.permute.xlu0 %7163  ;;  %v14284_v14 = vrot.slane %v14283_v54, 2  ;;  %v14285_v20 = vrot.slane %v10894_v29, 2  ;;  %v7130_v63 = vunpack.i.l.bf16 %v11521_v51  ;;  %v14286_v42 = vmax.f32 %v10894_v29, %v10930_v17 }
 0x24c   :  { %7463 = vrot.lane.b32.xlu1 %v11560_v55, %s8582_s17  ;;  %v1238_v60 = vmax.f32 %v11437_v22, %v11516_v24  ;;  %v3163_v43 = vsel %vm3138_vm5, %v14287_v10, %v7095_v23  ;;  %v7166_v26 = vunpack.i.h.bf16 %v7164_v30  ;;  %v7165_v44 = vunpack.i.l.bf16 %v7164_v30 }
 0x24d   :  { %7448 = vrot.lane.b32.xlu0 %v11393_v25, %s8577_s22  ;;  %v1045_v31 = vsel %vm14042_vm4, %v14285_v20, %v14284_v14  ;;  %v7131_v25 = vunpack.i.h.bf16 %v11521_v51  ;;  %v14289_v51 = vld [vmem:[#allocation33_spill] sm:$0xff]  ;;  %v1239_v30 = vmax.f32 %v11446_v2, %v11527_v40  ;;  %v3228_v23 = vsel %vm3203_vm6, %v3163_v43, %v7120_v3 }
 0x24e   :  { %v11599_v45 = vpop.permute.xlu1 %7178  ;;  %v11611_v52 = vmax.f32 %v14286_v42, %v1045_v31  ;;  %v14290_v8 = vmax.f32 %v14283_v54, %v14289_v51  ;;  %v3229_v39 = vsel %vm3203_vm6, %v3164_v53, %v7121_v33  ;;  %v1470_v54 = vrot.slane %v11354_v1, 1  ;;  %v14293_v31 = vld [vmem:[#allocation13_spill] sm:$0xff] }
 0x24f   :  { %v7169_v19 = vpop.permute.xlu0 %7168  ;;  %v14292_v20 = vrot.slane %v11264_v16, 1  ;;  %v3293_v42 = vsel %vm3268_vm7, %v3228_v23, %v7130_v63  ;;  %v1472_v2 = vrot.slane %v11357_v38, 1  ;;  %v1599_v3 = vrot.slane %v11354_v1, 2 }
 0x250   :  { %7473 = vrot.lane.b32.xlu1 %v11560_v55, %s8576_s21  ;;  %v11623_v32 = vmax.f32 %v14290_v8, %v14288_v9  ;;  %v7171_v29 = vunpack.i.h.bf16 %v7169_v19  ;;  %v7170_v17 = vunpack.i.l.bf16 %v7169_v19  ;;  %v11628_v22 = vmax.f32 %v1238_v60, %v11611_v52 }
 0x251   :  { %7458 = vrot.lane.b32.xlu0 %v11497_v11, %s8579_s25  ;;  %v14294_v19 = vrot.slane %v14293_v31, 1  ;;  %v3294_v60 = vsel %vm3268_vm7, %v3229_v39, %v7131_v25  ;;  %v3358_v53 = vsel %vm3333_vm8, %v3293_v42, %v7165_v44  ;;  %v1601_v43 = vrot.slane %v11357_v38, 2 }
 0x252   :  { %14291 = vst [vmem:[#allocation15_spill] sm:$0xff] %v11628_v22  ;;  %v11634_v14 = vpop.permute.xlu1 %7193  ;;  %v3359_v33 = vsel %vm3333_vm8, %v3294_v60, %v7166_v26  ;;  %v11652_v9 = vmax.f32 %v1239_v30, %v11623_v32  ;;  %v3423_v63 = vsel %vm3398_vm9, %v3358_v53, %v7170_v17  ;;  %v7141_v44 = vunpack.i.h.bf16 %v11549_v36 }
 0x253   :  { %v792_v11 = vsel %vm671_vm3, %v14294_v19, %v14292_v20  ;;  %v7184_v10 = vpop.permute.xlu0 %7183  ;;  %v3424_v25 = vsel %vm3398_vm9, %v3359_v33, %v7171_v29  ;;  %v7140_v26 = vunpack.i.l.bf16 %v11549_v36  ;;  %v927_v39 = vmax.f32 %v11270_v27, %v11587_v58 }
 0x254   :  { %7478 = vrot.lane.b32.xlu1 %v11582_v62, %s8578_s23  ;;  %14295 = vst [vmem:[#allocation14_spill] sm:$0xff] %v11652_v9  ;;  %v7186_v51 = vunpack.i.h.bf16 %v7184_v10  ;;  %v7185_v8 = vunpack.i.l.bf16 %v7184_v10  ;;  %v1471_v17 = vsel %vm671_vm3, %v1468_v12, %v1470_v54  ;;  %v1473_v29 = vsel %vm671_vm3, %v1470_v54, %v1472_v2 }
 0x255   :  { %7468 = vrot.lane.b32.xlu0 %v11582_v62, %s8583_s3  ;;  %v3488_v20 = vsel %vm3463_vm11, %v3423_v63, %v7140_v26  ;;  %v3489_v19 = vsel %vm3463_vm11, %v3424_v25, %v7141_v44  ;;  %v1600_v12 = vsel %vm14042_vm4, %v1597_v49, %v1599_v3  ;;  %v1602_v54 = vsel %vm14042_vm4, %v1599_v3, %v1601_v43 }
 0x256   :  { %v11660_v23 = vpop.permute.xlu1 %7203  ;;  %v3553_v60 = vsel %vm3528_vm10, %v3488_v20, %v7185_v8  ;;  %v3554_v10 = vsel %vm3528_vm10, %v3489_v19, %v7186_v51  ;;  %v923_v25 = vmax.f32 %v14293_v31, %v792_v11  ;;  %v11695_v49 = vpack.i.bf16 %v1473_v29, %v1471_v17 }
 0x257   :  { %v7189_v30 = vpop.permute.xlu0 %7188  ;;  %v14296_v44 = vrot.slane %v11264_v16, 2  ;;  %v14297_v3 = vrot.slane %v14293_v31, 2  ;;  %v11705_v11 = vpack.i.bf16 %v1602_v54, %v1600_v12  ;;  %v1240_v19 = vmax.f32 %v11516_v24, %v11611_v52 }
 0x258   :  { %v7191_v42 = vunpack.i.h.bf16 %v7189_v30  ;;  %v7190_v36 = vunpack.i.l.bf16 %v7189_v30  ;;  %7493 = vrot.lane.b32.xlu1 %v11591_v15, %s8580_s28  ;;  %v7145_v30 = vunpack.i.l.bf16 %v11467_v18  ;;  %v7146_v17 = vunpack.i.h.bf16 %v11467_v18 }
 0x259   :  { %7483 = vrot.lane.b32.xlu0 %v11560_v55, %s8580_s28  ;;  %v11693_v55 = vpack.i.bf16 %v11354_v1, %v11173_v5  ;;  %v1049_v26 = vsel %vm14042_vm4, %v14297_v3, %v14296_v44  ;;  %v7160_v29 = vunpack.i.l.bf16 %v11544_v21  ;;  %v14298_v31 = vmax.f32 %v11264_v16, %v11324_v4  ;;  %v14301_v4 = vld [vmem:[#allocation31_spill] sm:$0xff] }
 0x25a   :  { %v3618_v53 = vsel %vm3593_vm12, %v3553_v60, %v7190_v36  ;;  %v3619_v33 = vsel %vm3593_vm12, %v3554_v10, %v7191_v42  ;;  %v11686_v63 = vpop.permute.xlu1 %7213  ;;  %v11707_v20 = vmax.f32 %v923_v25, %v1049_v26  ;;  %v1241_v36 = vmax.f32 %v11527_v40, %v11623_v32 }
 0x25b   :  { %v11689_v51 = vpop.permute.xlu0 %7198  ;;  %v3670_v8 = vpack.c.bf16 %v3619_v33, %v3618_v53  ;;  %v11720_v42 = vmax.f32 %v14298_v31, %v11368_v13  ;;  %v7161_v24 = vunpack.i.h.bf16 %v11544_v21  ;;  %v7136_v10 = vunpack.i.h.bf16 %v11422_v6  ;;  %v14302_v53 = vld [vmem:[#allocation37_spill] sm:$0xff] }
 0x25c   :  { %7498 = vrot.lane.b32.xlu1 %v11593_v48, %s8581_s12  ;;  %v11726_v18 = vmax.f32 %v1240_v19, %v11707_v20  ;;  %v1474_v12 = vrot.slane %v11453_v41, 1  ;;  %v7135_v16 = vunpack.i.l.bf16 %v11422_v6  ;;  %v3165_v13 = vsel %vm3138_vm5, %v14301_v4, %v7145_v30 }
 0x25d   :  { %7488 = vrot.lane.b32.xlu0 %v11582_v62, %s8581_s12  ;;  %6557 = vmatprep.mubr.msk.bf16.mxu1 %vm3744_vm13, %v3670_v8  ;;  %v11733_v54 = vmax.f32 %v1241_v36, %v11720_v42  ;;  %v1476_v40 = vrot.slane %v11470_v0, 1  ;;  %v1603_v21 = vrot.slane %v11453_v41, 2  ;;  %v3166_v33 = vsel %vm3138_vm5, %v14302_v53, %v7146_v17 }
 0x25e   :  { %v7224_v60 = vpop.permute.xlu1 %7223  ;;  %14299 = vst [vmem:[#allocation45_spill] sm:$0xff] %v11726_v18  ;;  %v3230_v25 = vsel %vm3203_vm6, %v3165_v13, %v7160_v29  ;;  %v7175_v8 = vunpack.i.l.bf16 %v11570_v56  ;;  %v3231_v6 = vsel %vm3203_vm6, %v3166_v33, %v7161_v24  ;;  %v7176_v44 = vunpack.i.h.bf16 %v11570_v56 }
 0x25f   :  { %v11729_v62 = vpop.permute.xlu0 %7208  ;;  %14300 = vst [vmem:[#allocation44_spill] sm:$0xff] %v11733_v54  ;;  %v7180_v3 = vunpack.i.l.bf16 %v11599_v45  ;;  %v1605_v30 = vrot.slane %v11470_v0, 2  ;;  %v7181_v19 = vunpack.i.h.bf16 %v11599_v45  ;;  %v7205_v17 = vunpack.i.l.bf16 %v11660_v23 }
 0x260   :  { %7513 = vrot.lane.b32.xlu1 %v11591_v15, %s8576_s21  ;;  %v3295_v31 = vsel %vm3268_vm7, %v3230_v25, %v7135_v16  ;;  %v7206_v56 = vunpack.i.h.bf16 %v11660_v23  ;;  %v1477_v36 = vsel %vm671_vm3, %v1474_v12, %v1476_v40  ;;  %v1604_v45 = vsel %vm14042_vm4, %v1601_v43, %v1603_v21 }
 0x261   :  { %7503 = vrot.lane.b32.xlu0 %v11591_v15, %s8582_s17  ;;  %v1475_v15 = vsel %vm671_vm3, %v1472_v2, %v1474_v12  ;;  %v3296_v24 = vsel %vm3268_vm7, %v3231_v6, %v7136_v10  ;;  %v3360_v4 = vsel %vm3333_vm8, %v3295_v31, %v7175_v8  ;;  %v7226_v2 = vunpack.i.h.bf16 %v7224_v60 }
 0x262   :  { %v11751_v26 = vpop.permute.xlu1 %7233  ;;  %v7225_v13 = vunpack.i.l.bf16 %v7224_v60  ;;  %v3361_v23 = vsel %vm3333_vm8, %v3296_v24, %v7176_v44  ;;  %v3425_v16 = vsel %vm3398_vm9, %v3360_v4, %v7180_v3  ;;  %v1606_v12 = vsel %vm14042_vm4, %v1603_v21, %v1605_v30 }
 0x263   :  { %v11756_v29 = vpop.permute.xlu0 %7218  ;;  %v14303_v43 = vrot.slane %v11252_v46, 2  ;;  %v14304_v10 = vrot.slane %v11278_v57, 2  ;;  %v3426_v60 = vsel %vm3398_vm9, %v3361_v23, %v7181_v19  ;;  %v3490_v25 = vsel %vm3463_vm11, %v3425_v16, %v7205_v17 }
 0x264   :  { %7518 = vrot.lane.b32.xlu1 %v11693_v55, %s8579_s25  ;;  %v14305_v6 = vmax.f32 %v11278_v57, %v11333_v50  ;;  %v1242_v3 = vmax.f32 %v11611_v52, %v11707_v20  ;;  %v3491_v21 = vsel %vm3463_vm11, %v3426_v60, %v7206_v56  ;;  %v14306_v19 = vmax.f32 %v11252_v46, %v11302_v7 }
 0x265   :  { %7508 = vrot.lane.b32.xlu0 %v11593_v48, %s8583_s3  ;;  %v1053_v33 = vsel %vm14042_vm4, %v14304_v10, %v14303_v43  ;;  %v3555_v57 = vsel %vm3528_vm10, %v3490_v25, %v7225_v13  ;;  %v3556_v50 = vsel %vm3528_vm10, %v3491_v21, %v7226_v2  ;;  %v1243_v56 = vmax.f32 %v11623_v32, %v11720_v42 }
 0x266   :  { %v11777_v53 = vpop.permute.xlu1 %7238  ;;  %v11792_v44 = vmax.f32 %v14305_v6, %v1053_v33  ;;  %v11803_v17 = vmax.f32 %v14306_v19, %v11319_v35  ;;  %v11820_v7 = vpack.i.bf16 %v11453_v41, %v11357_v38  ;;  %v11822_v35 = vpack.i.bf16 %v1477_v36, %v1475_v15 }
 0x267   :  { %v7229_v8 = vpop.permute.xlu0 %7228  ;;  %v11824_v16 = vpack.i.bf16 %v1606_v12, %v1604_v45  ;;  %v14308_v43 = vrot.slane %v11270_v27, 2  ;;  %v7195_v10 = vunpack.i.l.bf16 %v11634_v14  ;;  %v1478_v33 = vrot.slane %v11534_v61, 1 }
 0x268   :  { %v7231_v31 = vunpack.i.h.bf16 %v7229_v8  ;;  %v7230_v24 = vunpack.i.l.bf16 %v7229_v8  ;;  %7523 = vrot.lane.b32.xlu1 %v11695_v49, %s8582_s17  ;;  %v11810_v52 = vmax.f32 %v1242_v3, %v11792_v44  ;;  %v11834_v60 = vmax.f32 %v1243_v56, %v11803_v17 }
 0x269   :  { %7528 = vrot.lane.b32.xlu0 %v11705_v11, %s8583_s3  ;;  %v1120_v32 = vsel %vm14042_vm4, %v14308_v43, 0.0  ;;  %v7196_v15 = vunpack.i.h.bf16 %v11634_v14  ;;  %v7200_v36 = vunpack.i.l.bf16 %v11689_v51  ;;  %v7201_v45 = vunpack.i.h.bf16 %v11689_v51 }
 0x26a   :  { %14307 = vst [vmem:[#allocation17_spill] sm:$0xff] %v11810_v52  ;;  %v3621_v4 = vsel %vm3593_vm12, %v3556_v50, %v7231_v31  ;;  %v3620_v23 = vsel %vm3593_vm12, %v3555_v57, %v7230_v24  ;;  %v11816_v46 = vpop.permute.xlu1 %7253  ;;  %14309 = vst [vmem:[#allocation16_spill] sm:$0xff] %v11834_v60  ;;  %v7210_v12 = vunpack.i.l.bf16 %v11729_v62  ;;  %v11847_v8 = vpack.i.bf16 %v11534_v61, %v11470_v0  ;;  %v14310_v31 = vld [vmem:[#allocation38_spill] sm:$0xff]  ;;  %v14311_v50 = vld [vmem:[#allocation39_spill] sm:$0xff] }
 0x26b   :  { %v7244_v2 = vpop.permute.xlu0 %7243  ;;  %v3671_v13 = vpack.c.bf16 %v3621_v4, %v3620_v23  ;;  %v1480_v6 = vrot.slane %v11552_v28, 1  ;;  %v7211_v14 = vunpack.i.h.bf16 %v11729_v62  ;;  %v3167_v24 = vsel %vm3138_vm5, %v14310_v31, %v7195_v10 }
 0x26c   :  { %7538 = vrot.lane.b32.xlu1 %v11695_v49, %s8576_s21  ;;  %v7245_v3 = vunpack.i.l.bf16 %v7244_v2  ;;  %v7246_v51 = vunpack.i.h.bf16 %v7244_v2  ;;  %v1479_v57 = vsel %vm671_vm3, %v1476_v40, %v1478_v33  ;;  %v3168_v56 = vsel %vm3138_vm5, %v14311_v50, %v7196_v15 }
 0x26d   :  { %7533 = vrot.lane.b32.xlu0 %v11593_v48, %s8578_s23  ;;  %6558 = vmatmul.mubr.msk.bf16.gmra.mrb[24].mxu1 %vm3744_vm13, %v3671_v13  ;;  %v1607_v48 = vrot.slane %v11534_v61, 2  ;;  %v3232_v62 = vsel %vm3203_vm6, %v3167_v24, %v7200_v36  ;;  %v1609_v23 = vrot.slane %v11552_v28, 2  ;;  %v3233_v2 = vsel %vm3203_vm6, %v3168_v56, %v7201_v45 }
 0x26e   :  { %v11843_v25 = vpop.permute.xlu1 %7258  ;;  %v3297_v13 = vsel %vm3268_vm7, %v3232_v62, %v7210_v12  ;;  %v1481_v10 = vsel %vm671_vm3, %v1478_v33, %v1480_v6  ;;  %v11873_v40 = vmax.f32 %v927_v39, %v1120_v32  ;;  %v3298_v15 = vsel %vm3268_vm7, %v3233_v2, %v7211_v14 }
 0x26f   :  { %v7249_v21 = vpop.permute.xlu0 %7248  ;;  %v3362_v36 = vsel %vm3333_vm8, %v3297_v13, %v7245_v3  ;;  %v1611_v45 = vrot.slane %v11628_v22, 2  ;;  %v3363_v12 = vsel %vm3333_vm8, %v3298_v15, %v7246_v51  ;;  %v1484_v27 = vrot.slane %v11652_v9, 1 }
 0x270   :  { %v7250_v19 = vunpack.i.l.bf16 %v7249_v21  ;;  %7543 = vrot.lane.b32.xlu1 %v11705_v11, %s8578_s23  ;;  %v7251_v4 = vunpack.i.h.bf16 %v7249_v21  ;;  %v1482_v21 = vrot.slane %v11628_v22, 1  ;;  %v1244_v58 = vmax.f32 %v11707_v20, %v11792_v44 }
 0x271   :  { %7548 = vrot.lane.b32.xlu0 %v11693_v55, %s8577_s22  ;;  %v7221_v3 = vunpack.i.h.bf16 %v11756_v29  ;;  %v7220_v24 = vunpack.i.l.bf16 %v11756_v29  ;;  %v11899_v56 = vpack.i.bf16 %v1481_v10, %v1479_v57  ;;  %v1610_v62 = vsel %vm14042_vm4, %v1607_v48, %v1609_v23 }
 0x272   :  { %v11867_v43 = vpop.permute.xlu1 %7273  ;;  %v3427_v31 = vsel %vm3398_vm9, %v3362_v36, %v7250_v19  ;;  %v3428_v39 = vsel %vm3398_vm9, %v3363_v12, %v7251_v4  ;;  %v1613_v19 = vrot.slane %v11652_v9, 2  ;;  %v11897_v20 = vmax.f32 %v1244_v58, %v11873_v40 }
 0x273   :  { %v7264_v55 = vpop.permute.xlu0 %7263  ;;  %v3492_v4 = vsel %vm3463_vm11, %v3427_v31, %v7220_v24  ;;  %v3493_v29 = vsel %vm3463_vm11, %v3428_v39, %v7221_v3  ;;  %v1612_v10 = vsel %vm14042_vm4, %v1609_v23, %v1611_v45  ;;  %v1485_v31 = vsel %vm671_vm3, %v1482_v21, %v1484_v27 }
 0x274   :  { %7553 = vrot.lane.b32.xlu1 %v11820_v7, %s8577_s22  ;;  %v7266_v32 = vunpack.i.h.bf16 %v7264_v55  ;;  %v7265_v33 = vunpack.i.l.bf16 %v7264_v55  ;;  %14312 = vst [vmem:[#allocation42_spill] sm:$0xff] %v11897_v20  ;;  %v11939_v3 = vpack.i.bf16 %v11628_v22, %v11552_v28 }
 0x275   :  { %7558 = vrot.lane.b32.xlu0 %v11695_v49, %s8580_s28  ;;  %v1608_v49 = vsel %vm14042_vm4, %v1605_v30, %v1607_v48  ;;  %v11916_v30 = vld [vmem:[%s13889_s4] ss:$0 sm:$0xff]  ;;  %v1483_v48 = vsel %vm671_vm3, %v1480_v6, %v1482_v21  ;;  %v7235_v21 = vunpack.i.l.bf16 %v11751_v26 }
 0x276   :  { %v11893_v51 = vpop.permute.xlu1 %7283  ;;  %v3557_v15 = vsel %vm3528_vm10, %v3492_v4, %v7265_v33  ;;  %v3558_v57 = vsel %vm3528_vm10, %v3493_v29, %v7266_v32  ;;  %v11932_v32 = vpack.i.bf16 %v1610_v62, %v1608_v49  ;;  %v7236_v62 = vunpack.i.h.bf16 %v11751_v26  ;;  %v14313_v26 = vld [vmem:[#allocation40_spill] sm:$0xff] }
 0x277   :  { %v7269_v50 = vpop.permute.xlu0 %7268  ;;  %v7240_v4 = vunpack.i.l.bf16 %v11777_v53 }
 0x278   :  { %v7271_v2 = vunpack.i.h.bf16 %v7269_v50  ;;  %v7270_v13 = vunpack.i.l.bf16 %v7269_v50  ;;  %7563 = vrot.lane.b32.xlu1 %v11822_v35, %s8580_s28  ;;  %v11946_v50 = vpack.i.bf16 %v1485_v31, %v1483_v48  ;;  %v7216_v48 = vunpack.i.h.bf16 %v11686_v63 }
 0x279   :  { %7568 = vrot.lane.b32.xlu0 %v11705_v11, %s8581_s12  ;;  %v1614_v11 = vsel %vm14042_vm4, %v1611_v45, %v1613_v19 }
 0x27a   :  { %v3622_v36 = vsel %vm3593_vm12, %v3557_v15, %v7270_v13  ;;  %v3623_v55 = vsel %vm3593_vm12, %v3558_v57, %v7271_v2  ;;  %v11922_v12 = vpop.permute.xlu1 %7293  ;;  %v11948_v49 = vpack.i.bf16 %v1614_v11, %v1612_v10  ;;  %v7241_v15 = vunpack.i.h.bf16 %v11777_v53 }
 0x27b   :  { %v11930_v58 = vpop.permute.xlu0 %7278  ;;  %v6535_v39 = vpop.f32.mrb[0].mxu1  ;;  %v3672_v6 = vpack.c.bf16 %v3623_v55, %v3622_v36  ;;  %v7215_v10 = vunpack.i.l.bf16 %v11686_v63  ;;  %v3169_v36 = vsel %vm3138_vm5, %v14313_v26, %v7235_v21  ;;  %v1486_v53 = vrot.slane %v11726_v18, 1  ;;  %v14314_v55 = vld [vmem:[#allocation49_spill] sm:$0xff] }
 0x27c   :  { %v3887_v23 = vadd.f32 %v6535_v39, %v11916_v30  ;;  %7573 = vrot.lane.b32.xlu1 %v11824_v16, %s8581_s12  ;;  %v3878_v33 = vpop.f32.mrb[1].mxu1  ;;  %v3170_v31 = vsel %vm3138_vm5, %v14314_v55, %v7236_v62  ;;  %v3234_v11 = vsel %vm3203_vm6, %v3169_v36, %v7240_v4  ;;  %v14028_v63 = vrot.slane %v11733_v54, 1 }
 0x27d   :  { %v3879_v45 = vadd.f32 %v11916_v30, %v3878_v33  ;;  %7578 = vrot.lane.b32.xlu0 %v11820_v7, %s8579_s25  ;;  %v6536_v24 = vpop.f32.mrb[2].mxu1  ;;  %6561 = vmatprep.mubr.msk.bf16.mxu1 %vm3744_vm13, %v3672_v6  ;;  %v1615_v6 = vrot.slane %v11726_v18, 2  ;;  %v7256_v33 = vunpack.i.h.bf16 %v11816_v46  ;;  %v7255_v21 = vunpack.i.l.bf16 %v11816_v46 }
 0x27e   :  { %8370 = vtanh.f32 %v3887_v23  ;;  %v3890_v29 = vadd.f32 %v6536_v24, %v11916_v30  ;;  %v7304_v2 = vpop.permute.xlu1 %7303  ;;  %v3881_v13 = vpop.f32.mrb[3].mxu1  ;;  %v3235_v23 = vsel %vm3203_vm6, %v3170_v31, %v7241_v15  ;;  %v7261_v62 = vunpack.i.h.bf16 %v11843_v25 }
 0x27f   :  { %8372 = vtanh.f32 %v3879_v45  ;;  %v3882_v7 = vadd.f32 %v11916_v30, %v3881_v13  ;;  %v11955_v57 = vpop.permute.xlu0 %7288  ;;  %v7260_v4 = vunpack.i.l.bf16 %v11843_v25  ;;  %v7286_v13 = vunpack.i.h.bf16 %v11893_v51 }
 0x280   :  { %8374 = vtanh.f32 %v3890_v29  ;;  %7583 = vrot.lane.b32.xlu1 %v11847_v8, %s8579_s25  ;;  %v11986_v29 = vpack.i.bf16 %v11726_v18, %v11652_v9  ;;  %v7285_v46 = vunpack.i.l.bf16 %v11893_v51  ;;  %v11995_v15 = vsel %vm671_vm3, %v1484_v27, %v1486_v53 }
 0x281   :  { %8376 = vtanh.f32 %v3882_v7  ;;  %7588 = vrot.lane.b32.xlu0 %v11822_v35, %s8582_s17  ;;  %v3299_v7 = vsel %vm3268_vm7, %v3234_v11, %v7215_v10  ;;  %v3300_v26 = vsel %vm3268_vm7, %v3235_v23, %v7216_v48  ;;  %v7306_v36 = vunpack.i.h.bf16 %v7304_v2 }
 0x282   :  { %v11969_v39 = vpop.permute.xlu1 %7313  ;;  %v7305_v55 = vunpack.i.l.bf16 %v7304_v2  ;;  %v3364_v51 = vsel %vm3333_vm8, %v3299_v7, %v7255_v21  ;;  %v3365_v24 = vsel %vm3333_vm8, %v3300_v26, %v7256_v33  ;;  %v1489_v27 = vsel %vm671_vm3, %v1486_v53, %v14028_v63 }
 0x283   :  { %v11976_v45 = vpop.permute.xlu0 %7298  ;;  %v1616_v25 = vsel %vm14042_vm4, %v1613_v19, %v1615_v6  ;;  %v3429_v48 = vsel %vm3398_vm9, %v3364_v51, %v7260_v4  ;;  %v3430_v2 = vsel %vm3398_vm9, %v3365_v24, %v7261_v62  ;;  %v7276_v21 = vunpack.i.h.bf16 %v11867_v43 }
 0x284   :  { %7593 = vrot.lane.b32.xlu1 %v11899_v56, %s8582_s17  ;;  %v3494_v7 = vsel %vm3463_vm11, %v3429_v48, %v7285_v46  ;;  %v3495_v53 = vsel %vm3463_vm11, %v3430_v2, %v7286_v13  ;;  %v14315_v19 = vrot.slane %v11733_v54, 2 }
 0x285   :  { %7598 = vrot.lane.b32.xlu0 %v11824_v16, %s8583_s3  ;;  %v3559_v26 = vsel %vm3528_vm10, %v3494_v7, %v7305_v55  ;;  %v7275_v55 = vunpack.i.l.bf16 %v11867_v43  ;;  %v7291_v43 = vunpack.i.h.bf16 %v11955_v57 }
 0x286   :  { %v12000_v31 = vpop.permute.xlu1 %7318  ;;  %v1618_v4 = vsel %vm14042_vm4, %v1615_v6, %v14315_v19 }
 0x287   :  { %v7309_v14 = vpop.permute.xlu0 %7308 }
 0x288   :  { %v8371_v10 = vpop.eup %8370  ;;  %v7311_v11 = vunpack.i.h.bf16 %v7309_v14  ;;  %v7310_v23 = vunpack.i.l.bf16 %v7309_v14  ;;  %7603 = vrot.lane.b32.xlu1 %v11822_v35, %s8576_s21  ;;  %v3560_v35 = vsel %vm3528_vm10, %v3495_v53, %v7306_v36  ;;  %v7281_v36 = vunpack.i.h.bf16 %v11930_v58 }
 0x289   :  { %v8373_v33 = vpop.eup %8372  ;;  %7608 = vrot.lane.b32.xlu0 %v11932_v32, %s8583_s3  ;;  %v4192_v62 = vrot.slane %v8371_v10, 1  ;;  %v4292_v14 = vrot.slane %v8371_v10, 2 }
 0x28a   :  { %v8375_v24 = vpop.eup %8374  ;;  %v12024_v51 = vpop.permute.xlu1 %7333  ;;  %v4189_v13 = vrot.slane %v8373_v33, 1  ;;  %v4289_v2 = vrot.slane %v8373_v33, 2  ;;  %v3625_v22 = vsel %vm3593_vm12, %v3560_v35, %v7311_v11  ;;  %v3624_v6 = vsel %vm3593_vm12, %v3559_v26, %v7310_v23 }
 0x28b   :  { %v8377_v63 = vpop.eup %8376  ;;  %v4193_v46 = vrot.slane %v8375_v24, 1  ;;  %v4293_v48 = vrot.slane %v8375_v24, 2  ;;  %v7324_v9 = vpop.permute.xlu0 %7323  ;;  %v7290_v35 = vunpack.i.l.bf16 %v11955_v57 }
 0x28c   :  { %v4190_v18 = vrot.slane %v8377_v63, 1  ;;  %v4290_v28 = vrot.slane %v8377_v63, 2  ;;  %7613 = vrot.lane.b32.xlu1 %v11899_v56, %s8576_s21  ;;  %v7280_v63 = vunpack.i.l.bf16 %v11930_v58  ;;  %v7326_v58 = vunpack.i.h.bf16 %v7324_v9 }
 0x28d   :  { %v4194_v7 = vsel %vm671_vm3, %v4192_v62, %v4193_v46  ;;  %v4294_v53 = vsel %vm14042_vm4, %v4292_v14, %v4293_v48  ;;  %7618 = vrot.lane.b32.xlu0 %v11824_v16, %s8578_s23  ;;  %v3673_v62 = vpack.c.bf16 %v3625_v22, %v3624_v6  ;;  %v14316_v14 = vld [vmem:[#allocation50_spill] sm:$0xff]  ;;  %v12063_v6 = vpack.i.bf16 %v1618_v4, %v1616_v25 }
 0x28e   :  { %v4270_v19 = vmax.f32 %v8371_v10, %v4194_v7  ;;  %v4191_v11 = vsel %vm671_vm3, %v4189_v13, %v4190_v18  ;;  %v4291_v23 = vsel %vm14042_vm4, %v4289_v2, %v4290_v28  ;;  %v12039_v24 = vpop.permute.xlu1 %7338  ;;  %v3172_v48 = vsel %vm3138_vm5, %v14316_v14, %v7276_v21  ;;  %v14317_v28 = vld [vmem:[#allocation5_spill] sm:$0xff] }
 0x28f   :  { %v4269_v26 = vmax.f32 %v8373_v33, %v4191_v11  ;;  %v7329_v46 = vpop.permute.xlu0 %7328  ;;  %v7325_v10 = vunpack.i.l.bf16 %v7324_v9  ;;  %v3171_v18 = vsel %vm3138_vm5, %v14317_v28, %v7275_v55  ;;  %6562 = vmatmul.mubr.msk.bf16.gmra.mrb[28].mxu1 %vm3744_vm13, %v3673_v62  ;;  %v3237_v21 = vsel %vm3203_vm6, %v3172_v48, %v7281_v36 }
 0x290   :  { %v12045_v16 = vmax.f32 %v4270_v19, %v4294_v53  ;;  %7623 = vrot.lane.b32.xlu1 %v11932_v32, %s8578_s23  ;;  %v7331_v57 = vunpack.i.h.bf16 %v7329_v46  ;;  %v7330_v22 = vunpack.i.l.bf16 %v7329_v46  ;;  %v3236_v13 = vsel %vm3203_vm6, %v3171_v18, %v7280_v63 }
 0x291   :  { %v12051_v33 = vmax.f32 %v4269_v26, %v4291_v23  ;;  %7628 = vrot.lane.b32.xlu0 %v11847_v8, %s8577_s22  ;;  %v12061_v2 = vpack.i.bf16 %v1489_v27, %v11995_v15  ;;  %v3301_v55 = vsel %vm3268_vm7, %v3236_v13, %v7290_v35  ;;  %v3302_v7 = vsel %vm3268_vm7, %v3237_v21, %v7291_v43 }
 0x292   :  { %v12058_v9 = vpop.permute.xlu1 %7353  ;;  %v1490_v19 = vrot.slane %v11810_v52, 1  ;;  %v1492_v8 = vrot.slane %v11834_v60, 1  ;;  %v3366_v36 = vsel %vm3333_vm8, %v3301_v55, %v7325_v10  ;;  %v3367_v63 = vsel %vm3333_vm8, %v3302_v7, %v7326_v58 }
 0x293   :  { %v7344_v53 = vpop.permute.xlu0 %7343  ;;  %v1619_v15 = vrot.slane %v11810_v52, 2  ;;  %v1621_v25 = vrot.slane %v11834_v60, 2  ;;  %v3431_v27 = vsel %vm3398_vm9, %v3366_v36, %v7330_v22  ;;  %v3432_v4 = vsel %vm3398_vm9, %v3367_v63, %v7331_v57 }
 0x294   :  { %7633 = vrot.lane.b32.xlu1 %v11939_v3, %s8577_s22  ;;  %v7346_v11 = vunpack.i.h.bf16 %v7344_v53  ;;  %v7345_v23 = vunpack.i.l.bf16 %v7344_v53  ;;  %v7301_v26 = vunpack.i.h.bf16 %v11976_v45  ;;  %v7300_v43 = vunpack.i.l.bf16 %v11976_v45 }
 0x295   :  { %7638 = vrot.lane.b32.xlu0 %v11899_v56, %s8580_s28  ;;  %v14318_v46 = vrot.slane %v11733_v54, 1  ;;  %v1493_v48 = vsel %vm671_vm3, %v1490_v19, %v1492_v8  ;;  %v14319_v57 = vrot.slane %v11733_v54, 2  ;;  %v1622_v21 = vsel %vm14042_vm4, %v1619_v15, %v1621_v25 }
 0x296   :  { %v12081_v35 = vpop.permute.xlu1 %7363  ;;  %v3496_v58 = vsel %vm3463_vm11, %v3431_v27, %v7300_v43  ;;  %v3497_v10 = vsel %vm3463_vm11, %v3432_v4, %v7301_v26  ;;  %v12109_v53 = vpack.i.bf16 %v11810_v52, %v11733_v54  ;;  %v7316_v26 = vunpack.i.h.bf16 %v11969_v39  ;;  %v14324_v52 = vld [vmem:[#allocation7_spill] sm:$0xff] }
 0x297   :  { %v7349_v62 = vpop.permute.xlu0 %7348  ;;  %v1491_v14 = vsel %vm671_vm3, %v14318_v46, %v1490_v19  ;;  %v3561_v45 = vsel %vm3528_vm10, %v3496_v58, %v7345_v23  ;;  %v3562_v18 = vsel %vm3528_vm10, %v3497_v10, %v7346_v11  ;;  %v1620_v22 = vsel %vm14042_vm4, %v14319_v57, %v1619_v15 }
 0x298   :  { %v7351_v56 = vunpack.i.h.bf16 %v7349_v62  ;;  %v7350_v28 = vunpack.i.l.bf16 %v7349_v62  ;;  %7643 = vrot.lane.b32.xlu1 %v11946_v50, %s8580_s28  ;;  %v12113_v63 = vpack.i.bf16 %v1493_v48, %v1491_v14  ;;  %v12118_v4 = vpack.i.bf16 %v1622_v21, %v1620_v22 }
 0x299   :  { %7648 = vrot.lane.b32.xlu0 %v11932_v32, %s8581_s12  ;;  %v14320_v11 = vmax.f32 %v11720_v42, %v11803_v17  ;;  %v7315_v46 = vunpack.i.l.bf16 %v11969_v39  ;;  %v7321_v14 = vunpack.i.h.bf16 %v12000_v31  ;;  %v7320_v10 = vunpack.i.l.bf16 %v12000_v31 }
 0x29a   :  { %v3626_v13 = vsel %vm3593_vm12, %v3561_v45, %v7350_v28  ;;  %v3627_v55 = vsel %vm3593_vm12, %v3562_v18, %v7351_v56  ;;  %v12105_v7 = vpop.permute.xlu1 %7373  ;;  %v1494_v39 = vrot.slane %v11897_v20, 1  ;;  %v14321_v18 = vld [vmem:[#allocation24_spill] sm:$0xff]  ;;  %v1623_v57 = vrot.slane %v11897_v20, 2 }
 0x29b   :  { %v12111_v19 = vpop.permute.xlu0 %7358  ;;  %v6539_v32 = vpop.f32.mrb[4].mxu1  ;;  %v3674_v36 = vpack.c.bf16 %v3627_v55, %v3626_v13  ;;  %v12123_v23 = vmax.f32 %v14320_v11, 0.0  ;;  %v3174_v31 = vsel %vm3138_vm5, %v14321_v18, %v7316_v26  ;;  %v7296_v21 = vunpack.i.h.bf16 %v11922_v12  ;;  %v14322_v13 = vld [vmem:[#allocation26_spill] sm:$0xff] }
 0x29c   :  { %v3903_v27 = vadd.f32 %v6539_v32, %v11916_v30  ;;  %7653 = vrot.lane.b32.xlu1 %v11948_v49, %s8581_s12  ;;  %v3894_v15 = vpop.f32.mrb[5].mxu1  ;;  %v3173_v55 = vsel %vm3138_vm5, %v14322_v13, %v7315_v46  ;;  %v3239_v32 = vsel %vm3203_vm6, %v3174_v31, %v7321_v14  ;;  %v7335_v11 = vunpack.i.l.bf16 %v12024_v51 }
 0x29d   :  { %v3895_v43 = vadd.f32 %v11916_v30, %v3894_v15  ;;  %7658 = vrot.lane.b32.xlu0 %v11939_v3, %s8579_s25  ;;  %v6540_v62 = vpop.f32.mrb[6].mxu1  ;;  %6565 = vmatprep.mubr.msk.bf16.mxu1 %vm3744_vm13, %v3674_v36  ;;  %v12143_v3 = vpack.i.bf16 %v11897_v20, %v11834_v60  ;;  %v14034_v45 = vrot.slane %v12123_v23, 1  ;;  %v14033_v22 = vrot.slane %v12123_v23, 2 }
 0x29e   :  { %8378 = vtanh.f32 %v3903_v27  ;;  %v3906_v48 = vadd.f32 %v6540_v62, %v11916_v30  ;;  %v12133_v42 = vpop.permute.xlu1 %7383  ;;  %v3897_v58 = vpop.f32.mrb[7].mxu1  ;;  %v7336_v36 = vunpack.i.h.bf16 %v12024_v51  ;;  %v3238_v15 = vsel %vm3203_vm6, %v3173_v55, %v7320_v10 }
 0x29f   :  { %8380 = vtanh.f32 %v3895_v43  ;;  %v3898_v56 = vadd.f32 %v11916_v30, %v3897_v58  ;;  %v12137_v28 = vpop.permute.xlu0 %7368  ;;  %v7341_v26 = vunpack.i.h.bf16 %v12039_v24  ;;  %v7340_v46 = vunpack.i.l.bf16 %v12039_v24 }
 0x2a0   :  { %8382 = vtanh.f32 %v3906_v48  ;;  %7663 = vrot.lane.b32.xlu1 %v11986_v29, %s8579_s25  ;;  %v7295_v48 = vunpack.i.l.bf16 %v11922_v12  ;;  %v12174_v14 = vsel %vm671_vm3, %v1492_v8, %v1494_v39  ;;  %v12179_v51 = vsel %vm671_vm3, %v1494_v39, %v14034_v45 }
 0x2a1   :  { %8384 = vtanh.f32 %v3898_v56  ;;  %7668 = vrot.lane.b32.xlu0 %v11946_v50, %s8582_s17  ;;  %v3304_v58 = vsel %vm3268_vm7, %v3239_v32, %v7296_v21  ;;  %v7366_v10 = vunpack.i.h.bf16 %v12081_v35  ;;  %v7365_v12 = vunpack.i.l.bf16 %v12081_v35 }
 0x2a2   :  { %v12158_v27 = vpop.permute.xlu1 %7393  ;;  %v12189_v24 = vsel %vm14042_vm4, %v1621_v25, %v1623_v57  ;;  %v3303_v8 = vsel %vm3268_vm7, %v3238_v15, %v7295_v48  ;;  %v3369_v56 = vsel %vm3333_vm8, %v3304_v58, %v7336_v36  ;;  %v7386_v39 = vunpack.i.h.bf16 %v12133_v42 }
 0x2a3   :  { %v12163_v43 = vpop.permute.xlu0 %7378  ;;  %v7385_v18 = vunpack.i.l.bf16 %v12133_v42  ;;  %v3368_v35 = vsel %vm3333_vm8, %v3303_v8, %v7335_v11  ;;  %v3434_v21 = vsel %vm3398_vm9, %v3369_v56, %v7341_v26  ;;  %v12202_v25 = vsel %vm14042_vm4, %v1623_v57, %v14033_v22 }
 0x2a4   :  { %7673 = vrot.lane.b32.xlu1 %v12061_v2, %s8582_s17  ;;  %v1247_v55 = vmax.f32 %v11803_v17, 0.0  ;;  %v3433_v36 = vsel %vm3398_vm9, %v3368_v35, %v7340_v46  ;;  %v7356_v15 = vunpack.i.h.bf16 %v12058_v9  ;;  %v7355_v26 = vunpack.i.l.bf16 %v12058_v9 }
 0x2a5   :  { %7678 = vrot.lane.b32.xlu0 %v11948_v49, %s8583_s3  ;;  %v3498_v58 = vsel %vm3463_vm11, %v3433_v36, %v7365_v12  ;;  %v3499_v57 = vsel %vm3463_vm11, %v3434_v21, %v7366_v10  ;;  %v7361_v8 = vunpack.i.h.bf16 %v12111_v19 }
 0x2a6   :  { %v12195_v31 = vpop.permute.xlu1 %7398  ;;  %v3563_v35 = vsel %vm3528_vm10, %v3498_v58, %v7385_v18  ;;  %v7360_v18 = vunpack.i.l.bf16 %v12111_v19 }
 0x2a7   :  { %v7389_v13 = vpop.permute.xlu0 %7388 }
 0x2a8   :  { %v8379_v32 = vpop.eup %8378  ;;  %v7391_v42 = vunpack.i.h.bf16 %v7389_v13  ;;  %v7390_v48 = vunpack.i.l.bf16 %v7389_v13  ;;  %7683 = vrot.lane.b32.xlu1 %v12063_v6, %s8583_s3  ;;  %v3564_v13 = vsel %vm3528_vm10, %v3499_v57, %v7386_v39  ;;  %v7371_v57 = vunpack.i.h.bf16 %v12137_v28 }
 0x2a9   :  { %v8381_v11 = vpop.eup %8380  ;;  %7688 = vrot.lane.b32.xlu0 %v11946_v50, %s8576_s21  ;;  %v4198_v46 = vrot.slane %v8379_v32, 1  ;;  %v4298_v56 = vrot.slane %v8379_v32, 2 }
 0x2aa   :  { %v8383_v17 = vpop.eup %8382  ;;  %v12217_v22 = vpop.permute.xlu1 %7413  ;;  %v4195_v12 = vrot.slane %v8381_v11, 1  ;;  %v4295_v36 = vrot.slane %v8381_v11, 2  ;;  %v3629_v20 = vsel %vm3593_vm12, %v3564_v13, %v7391_v42  ;;  %v3628_v50 = vsel %vm3593_vm12, %v3563_v35, %v7390_v48 }
 0x2ab   :  { %v8385_v45 = vpop.eup %8384  ;;  %v4199_v9 = vrot.slane %v8383_v17, 1  ;;  %v4299_v62 = vrot.slane %v8383_v17, 2  ;;  %v7404_v10 = vpop.permute.xlu0 %7403  ;;  %v7370_v48 = vunpack.i.l.bf16 %v12137_v28 }
 0x2ac   :  { %v4196_v21 = vrot.slane %v8385_v45, 1  ;;  %v4296_v60 = vrot.slane %v8385_v45, 2  ;;  %7693 = vrot.lane.b32.xlu1 %v12061_v2, %s8576_s21  ;;  %v7406_v19 = vunpack.i.h.bf16 %v7404_v10  ;;  %v7405_v54 = vunpack.i.l.bf16 %v7404_v10 }
 0x2ad   :  { %v4200_v39 = vsel %vm671_vm3, %v4198_v46, %v4199_v9  ;;  %v4300_v58 = vsel %vm14042_vm4, %v4298_v56, %v4299_v62  ;;  %7698 = vrot.lane.b32.xlu0 %v11948_v49, %s8578_s23  ;;  %v3675_v46 = vpack.c.bf16 %v3629_v20, %v3628_v50  ;;  %v14323_v62 = vld [vmem:[#allocation6_spill] sm:$0xff]  ;;  %v3175_v49 = vsel %vm3138_vm5, %v14324_v52, %v7355_v26 }
 0x2ae   :  { %v4272_v17 = vmax.f32 %v8379_v32, %v4200_v39  ;;  %v4197_v45 = vsel %vm671_vm3, %v4195_v12, %v4196_v21  ;;  %v4297_v42 = vsel %vm14042_vm4, %v4295_v36, %v4296_v60  ;;  %v12232_v35 = vpop.permute.xlu1 %7418  ;;  %v3176_v56 = vsel %vm3138_vm5, %v14323_v62, %v7356_v15 }
 0x2af   :  { %v4271_v13 = vmax.f32 %v8381_v11, %v4197_v45  ;;  %v7409_v9 = vpop.permute.xlu0 %7408  ;;  %v3241_v60 = vsel %vm3203_vm6, %v3176_v56, %v7361_v8  ;;  %v3240_v28 = vsel %vm3203_vm6, %v3175_v49, %v7360_v18  ;;  %6566 = vmatmul.mubr.msk.bf16.gmra.mrb[32].mxu1 %vm3744_vm13, %v3675_v46  ;;  %v14325_v36 = vmax.f32 %v11792_v44, %v11873_v40 }
 0x2b0   :  { %v12238_v32 = vmax.f32 %v4272_v17, %v4300_v58  ;;  %v7411_v12 = vunpack.i.h.bf16 %v7409_v9  ;;  %7703 = vrot.lane.b32.xlu1 %v12063_v6, %s8578_s23  ;;  %v7410_v20 = vunpack.i.l.bf16 %v7409_v9  ;;  %v3305_v52 = vsel %vm3268_vm7, %v3240_v28, %v7370_v48 }
 0x2b1   :  { %v12244_v11 = vmax.f32 %v4271_v13, %v4297_v42  ;;  %7708 = vrot.lane.b32.xlu0 %v11986_v29, %s8577_s22  ;;  %v3306_v15 = vsel %vm3268_vm7, %v3241_v60, %v7371_v57  ;;  %v12256_v8 = vmax.f32 %v14325_v36, 0.0  ;;  %v12258_v10 = vmax.f32 %v1247_v55, 0.0 }
 0x2b2   :  { %v12251_v26 = vpop.permute.xlu1 %7433  ;;  %v3370_v21 = vsel %vm3333_vm8, %v3305_v52, %v7405_v54  ;;  %v3371_v50 = vsel %vm3333_vm8, %v3306_v15, %v7406_v19  ;;  %v12264_v29 = vpack.i.bf16 %v12179_v51, %v12174_v14  ;;  %v12268_v39 = vpack.i.bf16 %v12202_v25, %v12189_v24 }
 0x2b3   :  { %v7424_v18 = vpop.permute.xlu0 %7423  ;;  %v3435_v58 = vsel %vm3398_vm9, %v3370_v21, %v7410_v20  ;;  %v3436_v44 = vsel %vm3398_vm9, %v3371_v50, %v7411_v12  ;;  %v4391_v54 = vmax.f32 %v12244_v11, %v12238_v32  ;;  %v4390_v14 = vmax.f32 %v12045_v16, %v12244_v11 }
 0x2b4   :  { %7713 = vrot.lane.b32.xlu1 %v12109_v53, %s8577_s22  ;;  %v7426_v55 = vunpack.i.h.bf16 %v7424_v18  ;;  %v7425_v57 = vunpack.i.l.bf16 %v7424_v18  ;;  %v14326_v51 = vmax.f32 %v12051_v33, %v12045_v16  ;;  %v7381_v25 = vunpack.i.h.bf16 %v12163_v43 }
 0x2b5   :  { %7718 = vrot.lane.b32.xlu0 %v12061_v2, %s8580_s28  ;;  %v7380_v17 = vunpack.i.l.bf16 %v12163_v43  ;;  %v1498_v42 = vrot.slane %v12256_v8, 1  ;;  %v14040_v48 = vrot.slane %v12258_v10, 1  ;;  %v12293_v13 = vmax.f32 %v4390_v14, %v12238_v32 }
 0x2b6   :  { %v12284_v24 = vmax.f32 %v14326_v51, %v12244_v11  ;;  %v12288_v45 = vpop.permute.xlu1 %7443  ;;  %v3501_v16 = vsel %vm3463_vm11, %v3436_v44, %v7381_v25  ;;  %v1627_v62 = vrot.slane %v12256_v8, 2  ;;  %v14039_v56 = vrot.slane %v12258_v10, 2 }
 0x2b7   :  { %v7429_v2 = vpop.permute.xlu0 %7428  ;;  %v3500_v19 = vsel %vm3463_vm11, %v3435_v58, %v7380_v17  ;;  %v3566_v9 = vsel %vm3528_vm10, %v3501_v16, %v7426_v55  ;;  %v14327_v28 = vrot.slane %v12123_v23, 1  ;;  %v1501_v52 = vsel %vm671_vm3, %v1498_v42, %v14040_v48 }
 0x2b8   :  { %v7431_v33 = vunpack.i.h.bf16 %v7429_v2  ;;  %v7430_v46 = vunpack.i.l.bf16 %v7429_v2  ;;  %7723 = vrot.lane.b32.xlu1 %v12113_v63, %s8580_s28  ;;  %v3565_v43 = vsel %vm3528_vm10, %v3500_v19, %v7425_v57  ;;  %v1248_v50 = vmax.f32 %v11873_v40, 0.0 }
 0x2b9   :  { %7728 = vrot.lane.b32.xlu0 %v12063_v6, %s8581_s12  ;;  %v1499_v20 = vsel %vm671_vm3, %v14327_v28, %v1498_v42  ;;  %v7395_v6 = vunpack.i.l.bf16 %v12158_v27  ;;  %v7396_v18 = vunpack.i.h.bf16 %v12158_v27  ;;  %v7400_v58 = vunpack.i.l.bf16 %v12195_v31 }
 0x2ba   :  { %v3630_v49 = vsel %vm3593_vm12, %v3565_v43, %v7430_v46  ;;  %v3631_v12 = vsel %vm3593_vm12, %v3566_v9, %v7431_v33  ;;  %v12307_v60 = vpop.permute.xlu1 %7453  ;;  %v12326_v57 = vpack.i.bf16 %v12256_v8, %v12123_v23  ;;  %v7401_v14 = vunpack.i.h.bf16 %v12195_v31 }
 0x2bb   :  { %v12316_v15 = vpop.permute.xlu0 %7438  ;;  %v6543_v36 = vpop.f32.mrb[8].mxu1  ;;  %v3676_v21 = vpack.c.bf16 %v3631_v12, %v3630_v49  ;;  %v12333_v27 = vpack.i.bf16 %v1501_v52, %v1499_v20  ;;  %v14328_v2 = vrot.slane %v12123_v23, 2  ;;  %v1630_v19 = vsel %vm14042_vm4, %v1627_v62, %v14039_v56  ;;  %v14330_v49 = vld [vmem:[#allocation34_spill] sm:$0xff] }
 0x2bc   :  { %v3919_v44 = vadd.f32 %v6543_v36, %v11916_v30  ;;  %7733 = vrot.lane.b32.xlu1 %v12118_v4, %s8581_s12  ;;  %v3910_v55 = vpop.f32.mrb[9].mxu1  ;;  %v12349_v43 = vmax.f32 %v1248_v50, 0.0  ;;  %v7376_v9 = vunpack.i.h.bf16 %v12105_v7  ;;  %v3178_v12 = vsel %vm3138_vm5, %v14330_v49, %v7396_v18 }
 0x2bd   :  { %v3911_v51 = vadd.f32 %v11916_v30, %v3910_v55  ;;  %7738 = vrot.lane.b32.xlu0 %v12109_v53, %s8579_s25  ;;  %v6544_v40 = vpop.f32.mrb[10].mxu1  ;;  %6569 = vmatprep.mubr.msk.bf16.mxu1 %vm3744_vm13, %v3676_v21  ;;  %v1628_v31 = vsel %vm14042_vm4, %v14328_v2, %v1627_v62  ;;  %v14329_v53 = vld [vmem:[#allocation35_spill] sm:$0xff]  ;;  %v3243_v62 = vsel %vm3203_vm6, %v3178_v12, %v7401_v14  ;;  %v7416_v20 = vunpack.i.h.bf16 %v12217_v22  ;;  %v14331_v2 = vld [vmem:[#allocation10_spill] sm:$0xff] }
 0x2be   :  { %8386 = vtanh.f32 %v3919_v44  ;;  %v3922_v25 = vadd.f32 %v6544_v40, %v11916_v30  ;;  %v12336_v17 = vpop.permute.xlu1 %7463  ;;  %v3913_v42 = vpop.f32.mrb[11].mxu1  ;;  %v3177_v16 = vsel %vm3138_vm5, %v14329_v53, %v7395_v6  ;;  %v7375_v52 = vunpack.i.l.bf16 %v12105_v7 }
 0x2bf   :  { %8388 = vtanh.f32 %v3911_v51  ;;  %v3914_v33 = vadd.f32 %v11916_v30, %v3913_v42  ;;  %v12347_v46 = vpop.permute.xlu0 %7448  ;;  %v3242_v28 = vsel %vm3203_vm6, %v3177_v16, %v7400_v58  ;;  %v7415_v30 = vunpack.i.l.bf16 %v12217_v22  ;;  %v14332_v16 = vld [vmem:[#allocation11_spill] sm:$0xff] }
 0x2c0   :  { %8390 = vtanh.f32 %v3922_v25  ;;  %7743 = vrot.lane.b32.xlu1 %v12143_v3, %s8579_s25  ;;  %v7421_v6 = vunpack.i.h.bf16 %v12232_v35  ;;  %v7420_v36 = vunpack.i.l.bf16 %v12232_v35  ;;  %v7436_v21 = vunpack.i.h.bf16 %v12251_v26 }
 0x2c1   :  { %8392 = vtanh.f32 %v3914_v33  ;;  %7748 = vrot.lane.b32.xlu0 %v12113_v63, %s8582_s17  ;;  %v7435_v18 = vunpack.i.l.bf16 %v12251_v26  ;;  %v7446_v58 = vunpack.i.h.bf16 %v12288_v45  ;;  %v7445_v22 = vunpack.i.l.bf16 %v12288_v45 }
 0x2c2   :  { %v12366_v50 = vpop.permute.xlu1 %7473  ;;  %v12373_v55 = vpack.i.bf16 %v1630_v19, %v1628_v31  ;;  %v3307_v7 = vsel %vm3268_vm7, %v3242_v28, %v7375_v52  ;;  %v3308_v14 = vsel %vm3268_vm7, %v3243_v62, %v7376_v9  ;;  %v12381_v35 = vpack.i.bf16 %v12349_v43, %v12258_v10 }
 0x2c3   :  { %v12371_v44 = vpop.permute.xlu0 %7458  ;;  %v3372_v26 = vsel %vm3333_vm8, %v3307_v7, %v7415_v30  ;;  %v3373_v51 = vsel %vm3333_vm8, %v3308_v14, %v7416_v20  ;;  %v7465_v45 = vunpack.i.l.bf16 %v12336_v17  ;;  %v3180_v31 = vsel %vm3138_vm5, %v14331_v2, %v7436_v21 }
 0x2c4   :  { %7753 = vrot.lane.b32.xlu1 %v12264_v29, %s8582_s17  ;;  %v3437_v25 = vsel %vm3398_vm9, %v3372_v26, %v7420_v36  ;;  %v3438_v42 = vsel %vm3398_vm9, %v3373_v51, %v7421_v6  ;;  %v7466_v19 = vunpack.i.h.bf16 %v12336_v17  ;;  %v3179_v33 = vsel %vm3138_vm5, %v14332_v16, %v7435_v18 }
 0x2c5   :  { %7758 = vrot.lane.b32.xlu0 %v12118_v4, %s8583_s3  ;;  %v3502_v9 = vsel %vm3463_vm11, %v3437_v25, %v7445_v22  ;;  %v3503_v49 = vsel %vm3463_vm11, %v3438_v42, %v7446_v58  ;;  %v7441_v30 = vunpack.i.h.bf16 %v12316_v15  ;;  %v7440_v36 = vunpack.i.l.bf16 %v12316_v15 }
 0x2c6   :  { %v12394_v53 = vpop.permute.xlu1 %7478  ;;  %v3567_v21 = vsel %vm3528_vm10, %v3502_v9, %v7465_v45  ;;  %v7451_v18 = vunpack.i.h.bf16 %v12347_v46  ;;  %v7450_v58 = vunpack.i.l.bf16 %v12347_v46  ;;  %v3568_v26 = vsel %vm3528_vm10, %v3503_v49, %v7466_v19 }
 0x2c7   :  { %v7469_v28 = vpop.permute.xlu0 %7468  ;;  %v7476_v51 = vunpack.i.h.bf16 %v12366_v50  ;;  %v7475_v48 = vunpack.i.l.bf16 %v12366_v50  ;;  %v3245_v50 = vsel %vm3203_vm6, %v3180_v31, %v7441_v30 }
 0x2c8   :  { %v8387_v62 = vpop.eup %8386  ;;  %v7471_v52 = vunpack.i.h.bf16 %v7469_v28  ;;  %v7470_v6 = vunpack.i.l.bf16 %v7469_v28  ;;  %7763 = vrot.lane.b32.xlu1 %v12113_v63, %s8576_s21 }
 0x2c9   :  { %v8389_v17 = vpop.eup %8388  ;;  %7768 = vrot.lane.b32.xlu0 %v12268_v39, %s8583_s3  ;;  %v4204_v7 = vrot.slane %v8387_v62, 1  ;;  %v4304_v14 = vrot.slane %v8387_v62, 2  ;;  %v3182_v31 = vsel %vm3138_vm5, %v11045_v59, %v7476_v51 }
 0x2ca   :  { %v8391_v22 = vpop.eup %8390  ;;  %v12413_v63 = vpop.permute.xlu1 %7493  ;;  %v4201_v45 = vrot.slane %v8389_v17, 1  ;;  %v4301_v2 = vrot.slane %v8389_v17, 2  ;;  %v3633_v28 = vsel %vm3593_vm12, %v3568_v26, %v7471_v52  ;;  %v3632_v56 = vsel %vm3593_vm12, %v3567_v21, %v7470_v6 }
 0x2cb   :  { %v8393_v25 = vpop.eup %8392  ;;  %v4205_v15 = vrot.slane %v8391_v22, 1  ;;  %v4305_v42 = vrot.slane %v8391_v22, 2  ;;  %v7484_v16 = vpop.permute.xlu0 %7483  ;;  %v7481_v22 = vunpack.i.h.bf16 %v12394_v53  ;;  %v7480_v6 = vunpack.i.l.bf16 %v12394_v53 }
 0x2cc   :  { %v4202_v9 = vrot.slane %v8393_v25, 1  ;;  %v4302_v46 = vrot.slane %v8393_v25, 2  ;;  %7773 = vrot.lane.b32.xlu1 %v12264_v29, %s8576_s21  ;;  %v7486_v12 = vunpack.i.h.bf16 %v7484_v16 }
 0x2cd   :  { %v4206_v19 = vsel %vm671_vm3, %v4204_v7, %v4205_v15  ;;  %v4306_v49 = vsel %vm14042_vm4, %v4304_v14, %v4305_v42  ;;  %7778 = vrot.lane.b32.xlu0 %v12118_v4, %s8578_s23  ;;  %v7485_v7 = vunpack.i.l.bf16 %v7484_v16  ;;  %v3677_v15 = vpack.c.bf16 %v3633_v28, %v3632_v56 }
 0x2ce   :  { %v4274_v40 = vmax.f32 %v8387_v62, %v4206_v19  ;;  %v4203_v25 = vsel %vm671_vm3, %v4201_v45, %v4202_v9  ;;  %v4303_v52 = vsel %vm14042_vm4, %v4301_v2, %v4302_v46  ;;  %v7499_v21 = vpop.permute.xlu1 %7498  ;;  %v3244_v42 = vsel %vm3203_vm6, %v3179_v33, %v7440_v36 }
 0x2cf   :  { %v4273_v26 = vmax.f32 %v8389_v17, %v4203_v25  ;;  %v7489_v14 = vpop.permute.xlu0 %7488  ;;  %v3309_v53 = vsel %vm3268_vm7, %v3244_v42, %v7450_v58  ;;  %v3181_v17 = vsel %vm3138_vm5, %v10956_v37, %v7475_v48  ;;  %6570 = vmatmul.mubr.msk.bf16.gmra.mrb[36].mxu1 %vm3744_vm13, %v3677_v15  ;;  %v7461_v33 = vunpack.i.h.bf16 %v12371_v44 }
 0x2d0   :  { %v12430_v20 = vmax.f32 %v4274_v40, %v4306_v49  ;;  %v7491_v4 = vunpack.i.h.bf16 %v7489_v14  ;;  %7783 = vrot.lane.b32.xlu1 %v12268_v39, %s8578_s23  ;;  %v7490_v56 = vunpack.i.l.bf16 %v7489_v14  ;;  %v3310_v40 = vsel %vm3268_vm7, %v3245_v50, %v7451_v18 }
 0x2d1   :  { %v12434_v62 = vmax.f32 %v4273_v26, %v4303_v52  ;;  %7788 = vrot.lane.b32.xlu0 %v12143_v3, %s8577_s22  ;;  %v3246_v30 = vsel %vm3203_vm6, %v3181_v17, %v7480_v6  ;;  %v3247_v58 = vsel %vm3203_vm6, %v3182_v31, %v7481_v22  ;;  %v7496_v37 = vunpack.i.h.bf16 %v12413_v63 }
 0x2d2   :  { %v12447_v36 = vpop.permute.xlu1 %7513  ;;  %v3374_v48 = vsel %vm3333_vm8, %v3309_v53, %v7485_v7  ;;  %v3375_v45 = vsel %vm3333_vm8, %v3310_v40, %v7486_v12  ;;  %v7495_v18 = vunpack.i.l.bf16 %v12413_v63  ;;  %v7460_v46 = vunpack.i.l.bf16 %v12371_v44 }
 0x2d3   :  { %v7504_v3 = vpop.permute.xlu0 %7503  ;;  %v3439_v2 = vsel %vm3398_vm9, %v3374_v48, %v7490_v56  ;;  %v3440_v59 = vsel %vm3398_vm9, %v3375_v45, %v7491_v4  ;;  %v4392_v51 = vmax.f32 %v12238_v32, %v12434_v62  ;;  %v12466_v12 = vmax.f32 %v4391_v54, %v12434_v62 }
 0x2d4   :  { %7793 = vrot.lane.b32.xlu1 %v12326_v57, %s8577_s22  ;;  %v7506_v16 = vunpack.i.h.bf16 %v7504_v3  ;;  %v7505_v9 = vunpack.i.l.bf16 %v7504_v3  ;;  %v4393_v63 = vmax.f32 %v12434_v62, %v12430_v20  ;;  %v7501_v28 = vunpack.i.h.bf16 %v7499_v21  ;;  %v12499_v3 = vld [vmem:[%s13889_s4] ss:$0 sm:$0xff] }
 0x2d5   :  { %7798 = vrot.lane.b32.xlu0 %v12264_v29, %s8580_s28  ;;  %v7500_v19 = vunpack.i.l.bf16 %v7499_v21  ;;  %v12472_v22 = vmax.f32 %v4392_v51, %v12430_v20  ;;  %v14333_v25 = vunpack.i.l.bf16 %v12307_v60  ;;  %v14334_v52 = vunpack.i.h.bf16 %v12307_v60 }
 0x2d6   :  { %v7519_v49 = vpop.permute.xlu1 %7518  ;;  %v3505_v11 = vsel %vm3463_vm11, %v3440_v59, %v7461_v33  ;;  %v3504_v44 = vsel %vm3463_vm11, %v3439_v2, %v7460_v46  ;;  %v1631_v46 = vrot.slane %v12349_v43, 2 }
 0x2d7   :  { %v3311_v29 = vsel %vm3268_vm7, %v3246_v30, %v14333_v25  ;;  %v3312_v32 = vsel %vm3268_vm7, %v3247_v58, %v14334_v52  ;;  %v7520_v54 = vunpack.i.l.bf16 %v7519_v49  ;;  %v7509_v6 = vpop.permute.xlu0 %7508  ;;  %v7521_v26 = vunpack.i.h.bf16 %v7519_v49 }
 0x2d8   :  { %v7511_v21 = vunpack.i.h.bf16 %v7509_v6  ;;  %v7510_v7 = vunpack.i.l.bf16 %v7509_v6  ;;  %7803 = vrot.lane.b32.xlu1 %v12333_v27, %s8580_s28  ;;  %v3376_v15 = vsel %vm3333_vm8, %v3311_v29, %v7495_v18  ;;  %v3377_v14 = vsel %vm3333_vm8, %v3312_v32, %v7496_v37 }
 0x2d9   :  { %v3569_v60 = vsel %vm3528_vm10, %v3504_v44, %v7505_v9  ;;  %v3570_v50 = vsel %vm3528_vm10, %v3505_v11, %v7506_v16  ;;  %7808 = vrot.lane.b32.xlu0 %v12268_v39, %s8581_s12  ;;  %v3441_v42 = vsel %vm3398_vm9, %v3376_v15, %v7500_v19  ;;  %v3442_v4 = vsel %vm3398_vm9, %v3377_v14, %v7501_v28 }
 0x2da   :  { %v3634_v53 = vsel %vm3593_vm12, %v3569_v60, %v7510_v7  ;;  %v3635_v17 = vsel %vm3593_vm12, %v3570_v50, %v7511_v21  ;;  %v7524_v56 = vpop.permute.xlu1 %7523  ;;  %v3506_v40 = vsel %vm3463_vm11, %v3441_v42, %v7520_v54  ;;  %v3507_v48 = vsel %vm3463_vm11, %v3442_v4, %v7521_v26 }
 0x2db   :  { %v7526_v31 = vunpack.i.h.bf16 %v7524_v56  ;;  %v7525_v33 = vunpack.i.l.bf16 %v7524_v56  ;;  %v7529_v30 = vpop.permute.xlu0 %7528  ;;  %v6547_v58 = vpop.f32.mrb[12].mxu1  ;;  %v3678_v37 = vpack.c.bf16 %v3635_v17, %v3634_v53  ;;  %v14336_v11 = vrot.slane %v12258_v10, 1 }
 0x2dc   :  { %v7531_v45 = vunpack.i.h.bf16 %v7529_v30  ;;  %v7530_v39 = vunpack.i.l.bf16 %v7529_v30  ;;  %v3935_v18 = vadd.f32 %v12499_v3, %v6547_v58  ;;  %7813 = vrot.lane.b32.xlu1 %v12373_v55, %s8581_s12  ;;  %v3926_v2 = vpop.f32.mrb[13].mxu1  ;;  %v14338_v14 = vrot.slane %v12258_v10, 2 }
 0x2dd   :  { %v3571_v59 = vsel %vm3528_vm10, %v3506_v40, %v7525_v33  ;;  %v3572_v51 = vsel %vm3528_vm10, %v3507_v48, %v7526_v31  ;;  %v3927_v16 = vadd.f32 %v12499_v3, %v3926_v2  ;;  %7818 = vrot.lane.b32.xlu0 %v12326_v57, %s8579_s25  ;;  %v6548_v9 = vpop.f32.mrb[14].mxu1  ;;  %6573 = vmatprep.mubr.msk.bf16.mxu1 %vm3744_vm13, %v3678_v37  ;;  %v14335_v57 = vrot.slane %v12349_v43, 1 }
 0x2de   :  { %v3637_v28 = vsel %vm3593_vm12, %v3572_v51, %v7531_v45  ;;  %v3636_v19 = vsel %vm3593_vm12, %v3571_v59, %v7530_v39  ;;  %8394 = vtanh.f32 %v3935_v18  ;;  %v3938_v49 = vadd.f32 %v12499_v3, %v6548_v9  ;;  %v12514_v25 = vpop.permute.xlu1 %7538  ;;  %v3929_v29 = vpop.f32.mrb[15].mxu1  ;;  %v8195_v9 = vld [vmem:[%s13890_s5] sm:$0xff]  }
 0x2df   :  { %8396 = vtanh.f32 %v3927_v16  ;;  %v3930_v52 = vadd.f32 %v12499_v3, %v3929_v29  ;;  %v12517_v32 = vpop.permute.xlu0 %7533  ;;  %v1503_v54 = vsel %vm671_vm3, %v14336_v11, %v14335_v57  ;;  %v14337_v6 = vmov %v14335_v57 }
 0x2e0   :  { %v1505_v44 = vsel %vm671_vm3, %v14337_v6, 0.0  ;;  %8398 = vtanh.f32 %v3938_v49  ;;  %7823 = vrot.lane.b32.xlu1 %v12381_v35, %s8579_s25  ;;  %v3679_v26 = vpack.c.bf16 %v3637_v28, %v3636_v19  ;;  %v1632_v60 = vsel %vm14042_vm4, %v14338_v14, %v1631_v46 }
 0x2e1   :  { %8400 = vtanh.f32 %v3930_v52  ;;  %7828 = vrot.lane.b32.xlu0 %v12333_v27, %s8582_s17  ;;  %v12534_v7 = vpack.i.bf16 %v1505_v44, %v1503_v54  ;;  %v1634_v50 = vsel %vm14042_vm4, %v1631_v46, 0.0  ;;  %v7516_v42 = vunpack.i.h.bf16 %v12447_v36 }
 0x2e2   :  { %6574 = vmatmul.mubr.msk.bf16.gmra.mrb[40].mxu1 %vm3744_vm13, %v3679_v26  ;;  %v12532_v21 = vpop.permute.xlu1 %7543  ;;  %v7515_v4 = vunpack.i.l.bf16 %v12447_v36  ;;  %v7541_v53 = vunpack.i.h.bf16 %v12514_v25  ;;  %v12551_v56 = vpack.i.bf16 %v1634_v50, %v1632_v60  ;;  %v4438_v33 = vrot.slane %v12293_v13, 1 }
 0x2e3   :  { %v12536_v15 = vpop.permute.xlu0 %7548  ;;  %v4437_v30 = vrot.slane %v12284_v24, 1  ;;  %v4471_v36 = vrot.slane %v12293_v13, 2  ;;  %v4470_v58 = vrot.slane %v12284_v24, 2  ;;  %v3184_v48 = vsel %vm3138_vm5, %v11106_v34, %v7516_v42  ;;  %v8196_v42 = vld [vmem:[%s13890_s5 + $0x48] sm:$0xff]  }
 0x2e4   :  { %7833 = vrot.lane.b32.xlu1 %v12534_v7, %s8582_s17  ;;  %v3183_v45 = vsel %vm3138_vm5, %v11096_v47, %v7515_v4  ;;  %v7540_v39 = vunpack.i.l.bf16 %v12514_v25  ;;  %v7536_v18 = vunpack.i.h.bf16 %v12517_v32  ;;  %v3186_v2 = vsel %vm3138_vm5, %v11354_v1, %v7541_v53  ;;  %v8194_v47 = vld [vmem:[%s13890_s5 + $0x40] sm:$0xff]  }
 0x2e5   :  { %7838 = vrot.lane.b32.xlu0 %v12373_v55, %s8583_s3  ;;  %v7535_v59 = vunpack.i.l.bf16 %v12517_v32  ;;  %v7546_v51 = vunpack.i.h.bf16 %v12532_v21  ;;  %v7545_v34 = vunpack.i.l.bf16 %v12532_v21  ;;  %6376 = vmatprep.subr.bf16.mxu0 %v8194_v47  ;;  %v7551_v6 = vunpack.i.h.bf16 %v12536_v15 }
 0x2e6   :  { %v12549_v17 = vpop.permute.xlu1 %7553  ;;  %v7550_v44 = vunpack.i.l.bf16 %v12536_v15  ;;  %6377 = vmatpush3.bf16.msra.mxu0 %v8195_v9  ;;  %v8197_v15 = vld [vmem:[%s13890_s5 + $0x8] sm:$0xff]   ;;  %v3249_v53 = vsel %vm3203_vm6, %v3184_v48, %v7536_v18 }
 0x2e7   :  { %v12553_v40 = vpop.permute.xlu0 %7558  ;;  %v7555_v60 = vunpack.i.l.bf16 %v12549_v17  ;;  %6378 = vmatprep.subr.bf16.mxu0 %v8196_v42 }
 0x2e8   :  { %v8395_v31 = vpop.eup %8394  ;;  %7843 = vrot.lane.b32.xlu1 %v12333_v27, %s8576_s21  ;;  %v7561_v48 = vunpack.i.h.bf16 %v12553_v40 }
 0x2e9   :  { %v8397_v37 = vpop.eup %8396  ;;  %7848 = vrot.lane.b32.xlu0 %v12551_v56, %s8583_s3  ;;  %v4210_v28 = vrot.slane %v8395_v31, 1  ;;  %v4310_v1 = vrot.slane %v8395_v31, 2 }
 0x2ea   :  { %v8399_v27 = vpop.eup %8398  ;;  %v12574_v16 = vpop.permute.xlu1 %7563  ;;  %v4207_v29 = vrot.slane %v8397_v37, 1  ;;  %v4307_v32 = vrot.slane %v8397_v37, 2  ;;  %6379 = vmatpush3.bf16.msra.mxu0 %v8197_v15 }
 0x2eb   :  { %v8401_v46 = vpop.eup %8400  ;;  %v4211_v19 = vrot.slane %v8399_v27, 1  ;;  %v4311_v49 = vrot.slane %v8399_v27, 2  ;;  %v12582_v25 = vpop.permute.xlu0 %7568  ;;  %v7565_v18 = vunpack.i.l.bf16 %v12574_v16 }
 0x2ec   :  { %v4208_v52 = vrot.slane %v8401_v46, 1  ;;  %v4308_v57 = vrot.slane %v8401_v46, 2  ;;  %7853 = vrot.lane.b32.xlu1 %v12534_v7, %s8576_s21  ;;  %v7556_v46 = vunpack.i.h.bf16 %v12549_v17  ;;  %v8198_v17 = vld [vmem:[%s13890_s5 + $0x50] sm:$0xff]   ;;  %s8586_s21 = smov 112  }
 0x2ed   :  { %v4212_v11 = vsel %vm671_vm3, %v4210_v28, %v4211_v19  ;;  %v4312_v54 = vsel %vm14042_vm4, %v4310_v1, %v4311_v49  ;;  %7858 = vrot.lane.b32.xlu0 %v12373_v55, %s8578_s23  ;;  %v3185_v55 = vsel %vm3138_vm5, %v11173_v5, %v7540_v39  ;;  %v7560_v28 = vunpack.i.l.bf16 %v12553_v40  ;;  %v8199_v40 = vld [vmem:[%s13890_s5 + $0x10] sm:$0xff]   ;;  %6380 = vmatprep.subr.bf16.mxu0 %v8198_v17 }
 0x2ee   :  { %v4276_v26 = vmax.f32 %v8395_v31, %v4212_v11  ;;  %v4209_v21 = vsel %vm671_vm3, %v4207_v29, %v4208_v52  ;;  %v4309_v14 = vsel %vm14042_vm4, %v4307_v32, %v4308_v57  ;;  %v12595_v50 = vpop.permute.xlu1 %7573  ;;  %v3248_v31 = vsel %vm3203_vm6, %v3183_v45, %v7535_v59  ;;  %v8200_v11 = vld [vmem:[%s13890_s5 + $0x58] sm:$0xff]   ;;  %6381 = vmatpush3.bf16.msra.mxu0 %v8199_v40 }
 0x2ef   :  { %v4275_v4 = vmax.f32 %v8397_v37, %v4209_v21  ;;  %v7579_v27 = vpop.permute.xlu0 %7578  ;;  %v3250_v9 = vsel %vm3203_vm6, %v3185_v55, %v7545_v34  ;;  %v3251_v5 = vsel %vm3203_vm6, %v3186_v2, %v7546_v51  ;;  %v3313_v37 = vsel %vm3268_vm7, %v3248_v31, %v7550_v44  ;;  %6382 = vmatprep.subr.bf16.mxu0 %v8200_v11 }
 0x2f0   :  { %v12607_v47 = vmax.f32 %v4276_v26, %v4312_v54  ;;  %7863 = vrot.lane.b32.xlu1 %v12551_v56, %s8578_s23  ;;  %v3314_v45 = vsel %vm3268_vm7, %v3249_v53, %v7551_v6  ;;  %v3315_v39 = vsel %vm3268_vm7, %v3250_v9, %v7555_v60  ;;  %v7570_v59 = vunpack.i.l.bf16 %v12582_v25  ;;  %v8201_v60 = vld [vmem:[%s13890_s5 + $0x18] sm:$0xff]   ;;  %v8202_v9 = vld [vmem:[%s13890_s5 + $0x60] sm:$0xff]   ;;  %s8590_s23 = smov 72  }
 0x2f1   :  { %v12614_v19 = vmax.f32 %v4275_v4, %v4309_v14  ;;  %7868 = vrot.lane.b32.xlu0 %v12381_v35, %s8577_s22  ;;  %v7571_v35 = vunpack.i.h.bf16 %v12582_v25  ;;  %v7580_v51 = vunpack.i.l.bf16 %v7579_v27  ;;  %v3316_v29 = vsel %vm3268_vm7, %v3251_v5, %v7556_v46 }
 0x2f2   :  { %v7584_v2 = vpop.permute.xlu1 %7583  ;;  %v3378_v52 = vsel %vm3333_vm8, %v3313_v37, %v7560_v28  ;;  %v7581_v32 = vunpack.i.h.bf16 %v7579_v27  ;;  %v8584_v57 = vmov 0.0   ;;  %v3379_v54 = vsel %vm3333_vm8, %v3314_v45, %v7561_v48  ;;  %6383 = vmatpush3.bf16.msra.mxu0 %v8201_v60 }
 0x2f3   :  { %v7589_v34 = vpop.permute.xlu0 %7588  ;;  %v4395_v1 = vmax.f32 %v12614_v19, %v12607_v47  ;;  %v4394_v49 = vmax.f32 %v12430_v20, %v12614_v19  ;;  %v12644_v25 = vmax.f32 %v4393_v63, %v12614_v19  ;;  %v7566_v21 = vunpack.i.h.bf16 %v12574_v16  ;;  %6384 = vmatprep.subr.bf16.mxu0 %v8202_v9 }
 0x2f4   :  { %2146 = vrot.lane.b32.xlu1 %v8584_v57, %s8577_s22  ;;  %v7591_v6 = vunpack.i.h.bf16 %v7589_v34  ;;  %v7590_v44 = vunpack.i.l.bf16 %v7589_v34  ;;  %v3380_v20 = vsel %vm3333_vm8, %v3315_v39, %v7565_v18  ;;  %v3443_v62 = vsel %vm3398_vm9, %v3378_v52, %v7570_v59  ;;  %v8203_v18 = vld [vmem:[%s13890_s5 + $0x20] sm:$0xff]  }
 0x2f5   :  { %7873 = vrot.lane.b32.xlu0 %v12534_v7, %s8580_s28  ;;  %v12653_v26 = vmax.f32 %v4394_v49, %v12607_v47  ;;  %v7575_v63 = vunpack.i.l.bf16 %v12595_v50  ;;  %v3444_v42 = vsel %vm3398_vm9, %v3379_v54, %v7571_v35  ;;  %v7576_v7 = vunpack.i.h.bf16 %v12595_v50 }
 0x2f6   :  { %v7594_v14 = vpop.permute.xlu1 %7593  ;;  %v3508_v15 = vsel %vm3463_vm11, %v3443_v62, %v7580_v51  ;;  %v7585_v55 = vunpack.i.l.bf16 %v7584_v2  ;;  %v3509_v4 = vsel %vm3463_vm11, %v3444_v42, %v7581_v32  ;;  %v7586_v53 = vunpack.i.h.bf16 %v7584_v2  ;;  %6385 = vmatpush3.bf16.msra.mxu0 %v8203_v18  ;;  %v8204_v42 = vld [vmem:[%s13890_s5 + $0x68] sm:$0xff]  }
 0x2f7   :  { %v7599_v16 = vpop.permute.xlu0 %7598  ;;  %v3573_v46 = vsel %vm3528_vm10, %v3508_v15, %v7590_v44  ;;  %v3574_v50 = vsel %vm3528_vm10, %v3509_v4, %v7591_v6  ;;  %v7596_v28 = vunpack.i.h.bf16 %v7594_v14  ;;  %v7595_v5 = vunpack.i.l.bf16 %v7594_v14  ;;  %v8205_v4 = vld [vmem:[%s13890_s5 + $0x28] sm:$0xff]   ;;  %6386 = vmatprep.subr.bf16.mxu0 %v8204_v42 }
 0x2f8   :  { %v7601_v31 = vunpack.i.h.bf16 %v7599_v16  ;;  %v7600_v27 = vunpack.i.l.bf16 %v7599_v16  ;;  %2524 = vrot.lane.b32.xlu1 %v8584_v57, %s8581_s12  ;;  %v3381_v37 = vsel %vm3333_vm8, %v3316_v29, %v7566_v21  ;;  %v3445_v48 = vsel %vm3398_vm9, %v3380_v20, %v7575_v63 }
 0x2f9   :  { %7878 = vrot.lane.b32.xlu0 %v12551_v56, %s8581_s12  ;;  %v3446_v59 = vsel %vm3398_vm9, %v3381_v37, %v7576_v7  ;;  %v3510_v2 = vsel %vm3463_vm11, %v3445_v48, %v7585_v55  ;;  %v4440_v51 = vrot.slane %v12466_v12, 1  ;;  %v4442_v21 = vrot.slane %v12472_v22, 1 }
 0x2fa   :  { %v3638_v17 = vsel %vm3593_vm12, %v3573_v46, %v7600_v27  ;;  %v3639_v45 = vsel %vm3593_vm12, %v3574_v50, %v7601_v31  ;;  %v12679_v39 = vpop.permute.xlu1 %7603  ;;  %v3511_v34 = vsel %vm3463_vm11, %v3446_v59, %v7586_v53  ;;  %v3575_v11 = vsel %vm3528_vm10, %v3510_v2, %v7595_v5  ;;  %6387 = vmatpush3.bf16.msra.mxu0 %v8205_v4 }
 0x2fb   :  { %v7609_v56 = vpop.permute.xlu0 %7608  ;;  %v6551_v40 = vpop.f32.mrb[16].mxu1  ;;  %v3680_v35 = vpack.c.bf16 %v3639_v45, %v3638_v17  ;;  %v3576_v54 = vsel %vm3528_vm10, %v3511_v34, %v7596_v28  ;;  %v4473_v55 = vrot.slane %v12466_v12, 2  ;;  %v4475_v16 = vrot.slane %v12472_v22, 2 }
 0x2fc   :  { %v7611_v49 = vunpack.i.h.bf16 %v7609_v56  ;;  %v7610_v29 = vunpack.i.l.bf16 %v7609_v56  ;;  %v3951_v52 = vadd.f32 %v12499_v3, %v6551_v40  ;;  %2892 = vrot.lane.b32.xlu1 %v8584_v57, %s8582_s17  ;;  %v3942_v32 = vpop.f32.mrb[17].mxu1  ;;  %v4444_v31 = vrot.slane %v12644_v25, 1 }
 0x2fd   :  { %v3943_v6 = vadd.f32 %v12499_v3, %v3942_v32  ;;  %2709 = vrot.lane.b32.xlu0 %v8584_v57, %s8579_s25  ;;  %v6552_v44 = vpop.f32.mrb[18].mxu1  ;;  %6577 = vmatprep.mubr.msk.bf16.mxu1 %vm3744_vm13, %v3680_v35  ;;  %v12725_v27 = vsel %vm671_vm3, %v4440_v51, %v4442_v21  ;;  %v4446_v9 = vrot.slane %v12653_v26, 1  ;;  %v7882_v50 = vpack.i.bf16 %v12466_v12, %v12293_v13 }
 0x2fe   :  { %v3641_v20 = vsel %vm3593_vm12, %v3576_v54, %v7611_v49  ;;  %v3640_v62 = vsel %vm3593_vm12, %v3575_v11, %v7610_v29  ;;  %8402 = vtanh.f32 %v3951_v52  ;;  %v3954_v63 = vadd.f32 %v12499_v3, %v6552_v44  ;;  %v12701_v14 = vpop.permute.xlu1 %7613  ;;  %v3945_v60 = vpop.f32.mrb[19].mxu1 }
 0x2ff   :  { %8404 = vtanh.f32 %v3943_v6  ;;  %v3946_v7 = vadd.f32 %v12499_v3, %v3945_v60  ;;  %v12707_v15 = vpop.permute.xlu0 %7618  ;;  %v3681_v53 = vpack.c.bf16 %v3641_v20, %v3640_v62  ;;  %v12719_v3 = vsel %vm671_vm3, %v4438_v33, %v4440_v51 }
 0x300   :  { %8406 = vtanh.f32 %v3954_v63  ;;  %4818 = vrot.lane.b32.xlu1 %v8584_v57, %s8585_s30  ;;  %v4439_v28 = vsel %vm671_vm3, %v4437_v30, %v4438_v33  ;;  %v12743_v5 = vsel %vm14042_vm4, %v4470_v58, %v4471_v36  ;;  %v7887_v48 = vpack.i.bf16 %v12472_v22, %v12466_v12  ;;  %v8206_v63 = vld [vmem:[%s13890_s5 + $0x70] sm:$0xff]  }
 0x301   :  { %8408 = vtanh.f32 %v3946_v7  ;;  %4773 = vrot.lane.b32.xlu0 %v8584_v57, %s8586_s21  ;;  %6578 = vmatmul.mubr.msk.bf16.gmra.mrb[44].mxu1 %vm3744_vm13, %v3681_v53  ;;  %v7892_v17 = vpack.i.bf16 %v12719_v3, %v4439_v28  ;;  %v12753_v45 = vsel %vm14042_vm4, %v4471_v36, %v4473_v55  ;;  %v12756_v33 = vsel %vm14042_vm4, %v4473_v55, %v4475_v16 }
 0x302   :  { %v12729_v46 = vpop.permute.xlu1 %7623  ;;  %v7606_v30 = vunpack.i.h.bf16 %v12679_v39  ;;  %v7902_v58 = vpack.i.bf16 %v12725_v27, %v12719_v3  ;;  %v12764_v18 = vsel %vm671_vm3, %v4442_v21, %v4444_v31  ;;  %v4477_v59 = vrot.slane %v12644_v25, 2  ;;  %6388 = vmatprep.subr.bf16.mxu0 %v8206_v63 }
 0x303   :  { %v12745_v37 = vpop.permute.xlu0 %7628  ;;  %v7605_v36 = vunpack.i.l.bf16 %v12679_v39  ;;  %v7616_v2 = vunpack.i.h.bf16 %v12701_v14  ;;  %v7615_v56 = vunpack.i.l.bf16 %v12701_v14  ;;  %v12774_v40 = vsel %vm671_vm3, %v4444_v31, %v4446_v9 }
 0x304   :  { %4863 = vrot.lane.b32.xlu1 %v8584_v57, %s8587_s13  ;;  %v7621_v35 = vunpack.i.h.bf16 %v12707_v15  ;;  %v7907_v34 = vpack.i.bf16 %v12756_v33, %v12753_v45  ;;  %v7897_v39 = vpack.i.bf16 %v12753_v45, %v12743_v5  ;;  %v4479_v49 = vrot.slane %v12653_v26, 2 }
 0x305   :  { %7888 = vrot.lane.b32.xlu0 %v7887_v48, %s8586_s21  ;;  %v12788_v52 = vpack.i.bf16 %v12756_v33, %v8584_v57  ;;  %v12792_v32 = vpack.i.bf16 %v12725_v27, %v8584_v57  ;;  %v7927_v11 = vpack.i.bf16 %v12653_v26, %v12644_v25  ;;  %v7922_v54 = vpack.i.bf16 %v12644_v25, %v12472_v22 }
 0x306   :  { %v12777_v51 = vpop.permute.xlu1 %7633  ;;  %v3188_v44 = vsel %vm3138_vm5, %v11453_v41, %v7606_v30  ;;  %v12803_v21 = vpack.i.bf16 %v12774_v40, %v12764_v18  ;;  %v7932_v20 = vpack.i.bf16 %v12764_v18, %v12725_v27  ;;  %v12808_v62 = vsel %vm14042_vm4, %v4475_v16, %v4477_v59 }
 0x307   :  { %v12784_v29 = vpop.permute.xlu0 %7638  ;;  %v3187_v41 = vsel %vm3138_vm5, %v11357_v38, %v7605_v36  ;;  %v3190_v60 = vsel %vm3138_vm5, %v11534_v61, %v7616_v2  ;;  %v3189_v42 = vsel %vm3138_vm5, %v11470_v0, %v7615_v56  ;;  %v7620_v7 = vunpack.i.l.bf16 %v12707_v15 }
 0x308   :  { %v8403_v6 = vpop.eup %8402  ;;  %7883 = vrot.lane.b32.xlu1 %v7882_v50, %s8588_s0  ;;  %v3253_v16 = vsel %vm3203_vm6, %v3188_v44, %v7621_v35  ;;  %v7626_v4 = vunpack.i.h.bf16 %v12729_v46  ;;  %v7625_v53 = vunpack.i.l.bf16 %v12729_v46  ;;  %v12829_v38 = vsel %vm14042_vm4, %v4477_v59, %v4479_v49 }
 0x309   :  { %v8405_v14 = vpop.eup %8404  ;;  %7903 = vrot.lane.b32.xlu0 %v7902_v58, %s8589_s16  ;;  %v4216_v61 = vrot.slane %v8403_v6, 1  ;;  %v4316_v31 = vrot.slane %v8403_v6, 2  ;;  %v7631_v59 = vunpack.i.h.bf16 %v12745_v37  ;;  %v7630_v36 = vunpack.i.l.bf16 %v12745_v37 }
 0x30a   :  { %v8407_v55 = vpop.eup %8406  ;;  %v12824_v3 = vpop.permute.xlu1 %7643  ;;  %v4213_v5 = vrot.slane %v8405_v14, 1  ;;  %v4313_v45 = vrot.slane %v8405_v14, 2  ;;  %v7635_v44 = vunpack.i.l.bf16 %v12777_v51  ;;  %v12844_v37 = vpack.i.bf16 %v12829_v38, %v12808_v62 }
 0x30b   :  { %v8409_v0 = vpop.eup %8408  ;;  %v4217_v15 = vrot.slane %v8407_v55, 1  ;;  %v4317_v50 = vrot.slane %v8407_v55, 2  ;;  %v7649_v28 = vpop.permute.xlu0 %7648  ;;  %v3252_v55 = vsel %vm3203_vm6, %v3187_v41, %v7620_v7 }
 0x30c   :  { %v4214_v48 = vrot.slane %v8409_v0, 1  ;;  %v4314_v30 = vrot.slane %v8409_v0, 2  ;;  %7893 = vrot.lane.b32.xlu1 %v7892_v17, %s8580_s28  ;;  %v3254_v0 = vsel %vm3203_vm6, %v3189_v42, %v7625_v53  ;;  %v3317_v41 = vsel %vm3268_vm7, %v3252_v55, %v7630_v36 }
 0x30d   :  { %v4218_v46 = vsel %vm671_vm3, %v4216_v61, %v4217_v15  ;;  %v4318_v58 = vsel %vm14042_vm4, %v4316_v31, %v4317_v50  ;;  %7908 = vrot.lane.b32.xlu0 %v7907_v34, %s8590_s23  ;;  %v7636_v34 = vunpack.i.h.bf16 %v12777_v51  ;;  %v7640_v31 = vunpack.i.l.bf16 %v12784_v29 }
 0x30e   :  { %v4278_v2 = vmax.f32 %v8403_v6, %v4218_v46  ;;  %v4215_v56 = vsel %vm671_vm3, %v4213_v5, %v4214_v48  ;;  %v4315_v35 = vsel %vm14042_vm4, %v4313_v45, %v4314_v30  ;;  %v7654_v63 = vpop.permute.xlu1 %7653  ;;  %v7641_v6 = vunpack.i.h.bf16 %v12784_v29 }
 0x30f   :  { %v4277_v17 = vmax.f32 %v8405_v14, %v4215_v56  ;;  %v7659_v61 = vpop.permute.xlu0 %7658  ;;  %v3255_v14 = vsel %vm3203_vm6, %v3190_v60, %v7626_v4  ;;  %v3318_v42 = vsel %vm3268_vm7, %v3253_v16, %v7631_v59  ;;  %v3319_v7 = vsel %vm3268_vm7, %v3254_v0, %v7635_v44 }
 0x310   :  { %v4378_v15 = vmax.f32 %v4278_v2, %v4318_v58  ;;  %7898 = vrot.lane.b32.xlu1 %v7897_v39, %s8583_s3  ;;  %v7645_v51 = vunpack.i.l.bf16 %v12824_v3  ;;  %v7651_v53 = vunpack.i.h.bf16 %v7649_v28  ;;  %v7650_v5 = vunpack.i.l.bf16 %v7649_v28 }
 0x311   :  { %v4377_v50 = vmax.f32 %v4277_v17, %v4315_v35  ;;  %7918 = vrot.lane.b32.xlu0 %v12788_v52, %s8583_s3  ;;  %v7661_v60 = vunpack.i.h.bf16 %v7659_v61  ;;  %v7660_v4 = vunpack.i.l.bf16 %v7659_v61  ;;  %v3320_v45 = vsel %vm3268_vm7, %v3255_v14, %v7636_v34 }
 0x312   :  { %v7664_v48 = vpop.permute.xlu1 %7663  ;;  %v3382_v52 = vsel %vm3333_vm8, %v3317_v41, %v7640_v31  ;;  %v3383_v30 = vsel %vm3333_vm8, %v3318_v42, %v7641_v6  ;;  %v7646_v46 = vunpack.i.h.bf16 %v12824_v3  ;;  %v7655_v28 = vunpack.i.l.bf16 %v7654_v63  ;;  %v8207_v31 = vld [vmem:[%s13890_s5 + $0x30] sm:$0xff]  }
 0x313   :  { %v4396_v29 = vmax.f32 %v12607_v47, %v4377_v50  ;;  %v12861_v39 = vmax.f32 %v4395_v1, %v4377_v50  ;;  %v7669_v16 = vpop.permute.xlu0 %7668  ;;  %v3447_v19 = vsel %vm3398_vm9, %v3382_v52, %v7650_v5  ;;  %v3448_v1 = vsel %vm3398_vm9, %v3383_v30, %v7651_v53  ;;  %6389 = vmatpush3.bf16.msra.mxu0 %v8207_v31  ;;  %v8208_v52 = vld [vmem:[%s13890_s5 + $0x78] sm:$0xff]   ;;  %v8209_v30 = vld [vmem:[%s13890_s5 + $0x80] sm:$0xff]  }
 0x314   :  { %7913 = vrot.lane.b32.xlu1 %v12792_v32, %s8580_s28  ;;  %v7671_v58 = vunpack.i.h.bf16 %v7669_v16  ;;  %v7670_v59 = vunpack.i.l.bf16 %v7669_v16  ;;  %v7656_v36 = vunpack.i.h.bf16 %v7654_v63  ;;  %v7665_v2 = vunpack.i.l.bf16 %v7664_v48  ;;  %6390 = vmatprep.subr.bf16.mxu0 %v8208_v52 }
 0x315   :  { %7928 = vrot.lane.b32.xlu0 %v7927_v11, %s8586_s21  ;;  %v12873_v47 = vmax.f32 %v4396_v29, %v4378_v15  ;;  %v3384_v56 = vsel %vm3333_vm8, %v3319_v7, %v7645_v51  ;;  %v3512_v32 = vsel %vm3463_vm11, %v3447_v19, %v7660_v4  ;;  %v3513_v35 = vsel %vm3463_vm11, %v3448_v1, %v7661_v60  ;;  %v8211_v1 = vld [vmem:[%s13890_s5 + $0x88] sm:$0xff]  }
 0x316   :  { %v7674_v3 = vpop.permute.xlu1 %7673  ;;  %v7666_v44 = vunpack.i.h.bf16 %v7664_v48  ;;  %v3385_v63 = vsel %vm3333_vm8, %v3320_v45, %v7646_v46  ;;  %v3449_v15 = vsel %vm3398_vm9, %v3384_v56, %v7655_v28  ;;  %v3577_v34 = vsel %vm3528_vm10, %v3512_v32, %v7670_v59  ;;  %v8210_v46 = vld [vmem:[%s13890_s5 + $0x38] sm:$0xff]   ;;  %6597 = vmatprep.subr.bf16.mxu1 %v8209_v30  ;;  %v8212_v56 = vld [vmem:[%s13890_s5 + $0x90] sm:$0xff]  }
 0x317   :  { %v7679_v17 = vpop.permute.xlu0 %7678  ;;  %v7676_v55 = vunpack.i.h.bf16 %v7674_v3  ;;  %v7675_v0 = vunpack.i.l.bf16 %v7674_v3  ;;  %v3578_v6 = vsel %vm3528_vm10, %v3513_v35, %v7671_v58  ;;  %v3450_v50 = vsel %vm3398_vm9, %v3385_v63, %v7656_v36  ;;  %6391 = vmatpush3.bf16.msra.mxu0 %v8210_v46  ;;  %6598 = vmatpush3.bf16.msra.mxu1 %v8209_v30 }
 0x318   :  { %v7681_v11 = vunpack.i.h.bf16 %v7679_v17  ;;  %v7680_v61 = vunpack.i.l.bf16 %v7679_v17  ;;  %7923 = vrot.lane.b32.xlu1 %v7922_v54, %s8588_s0  ;;  %v3514_v14 = vsel %vm3463_vm11, %v3449_v15, %v7665_v2  ;;  %v3515_v7 = vsel %vm3463_vm11, %v3450_v50, %v7666_v44  ;;  %6599 = vmatprep.subr.bf16.mxu1 %v8211_v1  ;;  %v14339_v50 = vld [vmem:[#allocation15_spill] sm:$0xff] }
 0x319   :  { %7943 = vrot.lane.b32.xlu0 %v12803_v21, %s8589_s16  ;;  %v3579_v60 = vsel %vm3528_vm10, %v3514_v14, %v7675_v0  ;;  %v3580_v4 = vsel %vm3528_vm10, %v3515_v7, %v7676_v55  ;;  %v4448_v45 = vrot.slane %v12861_v39, 1  ;;  %v7937_v19 = vpack.i.bf16 %v12808_v62, %v12756_v33  ;;  %v8213_v55 = vld [vmem:[%s13890_s5 + $0x98] sm:$0xff]  }
 0x31a   :  { %v3642_v54 = vsel %vm3593_vm12, %v3577_v34, %v7680_v61  ;;  %v3643_v41 = vsel %vm3593_vm12, %v3578_v6, %v7681_v11  ;;  %v7684_v42 = vpop.permute.xlu1 %7683  ;;  %v7967_v2 = vpack.i.bf16 %v12873_v47, %v12861_v39  ;;  %v4481_v62 = vrot.slane %v12861_v39, 2 }
 0x31b   :  { %v7686_v51 = vunpack.i.h.bf16 %v7684_v42  ;;  %v7685_v53 = vunpack.i.l.bf16 %v7684_v42  ;;  %v12898_v5 = vpop.permute.xlu0 %7688  ;;  %v6555_v48 = vpop.f32.mrb[20].mxu1  ;;  %v3682_v29 = vpack.c.bf16 %v3643_v41, %v3642_v54  ;;  %v4449_v33 = vsel %vm671_vm3, %v4446_v9, %v4448_v45  ;;  %6600 = vmatpush3.bf16.msra.mxu1 %v8211_v1  ;;  %v8216_v41 = vld [vmem:[%s13890_s5 + $0xb0] ss:$0 sps:$4 sm:$0xff]  }
 0x31c   :  { %v3958_v16 = vpop.f32.mrb[21].mxu1  ;;  %7933 = vrot.lane.b32.xlu1 %v7932_v20, %s8585_s30  ;;  %v7972_v35 = vpack.i.bf16 %v4449_v33, %v12774_v40  ;;  %v4482_v9 = vsel %vm14042_vm4, %v4479_v49, %v4481_v62  ;;  %v4450_v44 = vrot.slane %v12873_v47, 1  ;;  %6601 = vmatprep.subr.bf16.mxu1 %v8212_v56  ;;  %v4483_v0 = vrot.slane %v12873_v47, 2  ;;  %v14340_v42 = vld [vmem:[#allocation46_spill] sm:$0xff] }
 0x31d   :  { %v3644_v28 = vsel %vm3593_vm12, %v3579_v60, %v7685_v53  ;;  %v3645_v58 = vsel %vm3593_vm12, %v3580_v4, %v7686_v51  ;;  %v6556_v27 = vpop.f32.mrb[22].mxu1  ;;  %6581 = vmatprep.mubr.msk.bf16.mxu1 %vm3744_vm13, %v3682_v29  ;;  %7953 = vrot.lane.b32.xlu0 %v12844_v37, %s8590_s23  ;;  %v7691_v11 = vunpack.i.h.bf16 %v12898_v5  ;;  %v7690_v61 = vunpack.i.l.bf16 %v12898_v5  ;;  %v8215_v29 = vld [vmem:[%s13890_s5 + $0xa8] sm:$0xff]  }
 0x31e   :  { %v12921_v18 = vpop.permute.xlu1 %7693  ;;  %v3960_v20 = vpop.f32.mrb[23].mxu1  ;;  %v3683_v59 = vpack.c.bf16 %v3645_v58, %v3644_v28  ;;  %v12968_v49 = vsel %vm671_vm3, %v4448_v45, %v4450_v44  ;;  %v12985_v31 = vsel %vm14042_vm4, %v4481_v62, %v4483_v0  ;;  %v14341_v60 = vld [vmem:[#allocation45_spill] sm:$0xff]  ;;  %v14342_v27 = vld [vmem:[#allocation14_spill] sm:$0xff]  ;;  %vm4963_vm4 = vcmask 916480  }
 0x31f   :  { %v12928_v36 = vpop.permute.xlu0 %7698  ;;  %6602 = vmatpush3.bf16.msra.mxu1 %v8212_v56  ;;  %v7696_v15 = vunpack.i.h.bf16 %v12921_v18  ;;  %v7982_v6 = vpack.i.bf16 %v12968_v49, %v4449_v33  ;;  %v3192_v14 = vsel %vm3138_vm5, %v14339_v50, %v7691_v11  ;;  %v7695_v54 = vunpack.i.l.bf16 %v12921_v18 }
 0x320   :  { %6582 = vmatmul.mubr.msk.bf16.gmra.mrb[48].mxu1 %vm3744_vm13, %v3683_v59  ;;  %7938 = vrot.lane.b32.xlu1 %v7937_v19, %s8587_s13  ;;  %v3191_v7 = vsel %vm3138_vm5, %v14340_v42, %v7690_v61  ;;  %v7701_v51 = vunpack.i.h.bf16 %v12928_v36  ;;  %v7700_v53 = vunpack.i.l.bf16 %v12928_v36  ;;  %v7992_v48 = vpack.i.bf16 %v12985_v31, %v4482_v9 }
 0x321   :  { %7968 = vrot.lane.b32.xlu0 %v7967_v2, %s8586_s21  ;;  %6603 = vmatprep.subr.bf16.mxu1 %v8213_v55  ;;  %v3194_v4 = vsel %vm3138_vm5, %v14341_v60, %v7696_v15  ;;  %v3193_v18 = vsel %vm3138_vm5, %v14342_v27, %v7695_v54  ;;  %v5249_v19 = vsel %vm14041_vm0, %v8216_v41, 0 }
 0x322   :  { %v12939_v3 = vpop.permute.xlu1 %7703  ;;  %v3256_v1 = vsel %vm3203_vm6, %v3191_v7, %v7700_v53  ;;  %v3257_v36 = vsel %vm3203_vm6, %v3192_v14, %v7701_v51 }
 0x323   :  { %v12944_v32 = vpop.permute.xlu0 %7708  ;;  %6604 = vmatpush3.bf16.msra.mxu1 %v8213_v55  ;;  %v7706_v16 = vunpack.i.h.bf16 %v12939_v3  ;;  %v7705_v45 = vunpack.i.l.bf16 %v12939_v3 }
 0x324   :  { %7948 = vrot.lane.b32.xlu1 %v12803_v21, %s8580_s28  ;;  %v7977_v21 = vpack.i.bf16 %v4482_v9, %v12829_v38  ;;  %v7962_v38 = vpack.i.bf16 %v12861_v39, %v12653_v26  ;;  %v7711_v30 = vunpack.i.h.bf16 %v12944_v32  ;;  %v7710_v46 = vunpack.i.l.bf16 %v12944_v32 }
 0x325   :  { %7973 = vrot.lane.b32.xlu0 %v7972_v35, %s8585_s30  ;;  %v3258_v3 = vsel %vm3203_vm6, %v3193_v18, %v7705_v45  ;;  %v3259_v56 = vsel %vm3203_vm6, %v3194_v4, %v7706_v16 }
 0x326   :  { %v12954_v17 = vpop.permute.xlu1 %7713  ;;  %v3322_v55 = vsel %vm3268_vm7, %v3257_v36, %v7711_v30 }
 0x327   :  { %v12959_v40 = vpop.permute.xlu0 %7718  ;;  %v7716_v28 = vunpack.i.h.bf16 %v12954_v17  ;;  %v7715_v58 = vunpack.i.l.bf16 %v12954_v17  ;;  %v3321_v17 = vsel %vm3268_vm7, %v3256_v1, %v7710_v46 }
 0x328   :  { %7958 = vrot.lane.b32.xlu1 %v12844_v37, %s8583_s3  ;;  %v8214_v37 = vld [vmem:[%s13890_s5 + $0xa0] sm:$0xff]   ;;  %v7721_v20 = vunpack.i.h.bf16 %v12959_v40  ;;  %v7720_v59 = vunpack.i.l.bf16 %v12959_v40 }
 0x329   :  { %7978 = vrot.lane.b32.xlu0 %v7977_v21, %s8587_s13  ;;  %6605 = vmatprep.subr.bf16.mxu1 %v8214_v37  ;;  %v3323_v40 = vsel %vm3268_vm7, %v3258_v3, %v7715_v58  ;;  %v3324_v21 = vsel %vm3268_vm7, %v3259_v56, %v7716_v28 }
 0x32a   :  { %v12973_v63 = vpop.permute.xlu1 %7723  ;;  %6606 = vmatpush3.bf16.msra.mxu1 %v8214_v37  ;;  %v3386_v11 = vsel %vm3333_vm8, %v3321_v17, %v7720_v59  ;;  %v3387_v61 = vsel %vm3333_vm8, %v3322_v55, %v7721_v20 }
 0x32b   :  { %v7729_v34 = vpop.permute.xlu0 %7728  ;;  %6607 = vmatprep.subr.bf16.mxu1 %v8215_v29  ;;  %v7726_v15 = vunpack.i.h.bf16 %v12973_v63 }
 0x32c   :  { %7963 = vrot.lane.b32.xlu1 %v7962_v38, %s8588_s0  ;;  %v7731_v2 = vunpack.i.h.bf16 %v7729_v34  ;;  %v7730_v33 = vunpack.i.l.bf16 %v7729_v34  ;;  %v7725_v34 = vunpack.i.l.bf16 %v12973_v63 }
 0x32d   :  { %7983 = vrot.lane.b32.xlu0 %v7982_v6, %s8589_s16 }
 0x32e   :  { %v12999_v5 = vpop.permute.xlu1 %7733  ;;  %6608 = vmatpush3.bf16.msra.mxu1 %v8215_v29  ;;  %v3452_v50 = vsel %vm3398_vm9, %v3387_v61, %v7731_v2 }
 0x32f   :  { %v7739_v52 = vpop.permute.xlu0 %7738  ;;  %6628 = vmatprep.subr.msk.bf16.mxu1 %vm14041_vm0, %v8216_v41  ;;  %v7736_v54 = vunpack.i.h.bf16 %v12999_v5  ;;  %v7735_v42 = vunpack.i.l.bf16 %v12999_v5  ;;  %v3388_v41 = vsel %vm3333_vm8, %v3323_v40, %v7725_v34  ;;  %v3389_v5 = vsel %vm3333_vm8, %v3324_v21, %v7726_v15 }
 0x330   :  { %7988 = vrot.lane.b32.xlu1 %v7982_v6, %s8580_s28  ;;  %v7741_v32 = vunpack.i.h.bf16 %v7739_v52  ;;  %v7740_v35 = vunpack.i.l.bf16 %v7739_v52  ;;  %v3451_v6 = vsel %vm3398_vm9, %v3386_v11, %v7730_v33  ;;  %vm4912_vm0 = vcmask 982016  }
 0x331   :  { %7993 = vrot.lane.b32.xlu0 %v7992_v48, %s8590_s23  ;;  %v3453_v58 = vsel %vm3398_vm9, %v3388_v41, %v7735_v42  ;;  %v3454_v27 = vsel %vm3398_vm9, %v3389_v5, %v7736_v54  ;;  %v14345_v5 = vld [vmem:[#allocation42_spill] sm:$0xff] }
 0x332   :  { %v7744_v62 = vpop.permute.xlu1 %7743  ;;  %v3516_v7 = vsel %vm3463_vm11, %v3451_v6, %v7740_v35  ;;  %v3517_v51 = vsel %vm3463_vm11, %v3452_v50, %v7741_v32  ;;  %6610 = vmatpush3.bf16.msra.mxu1 %v5249_v19 }
 0x333   :  { %v7749_v9 = vpop.permute.xlu0 %7748  ;;  %v7745_v29 = vunpack.i.l.bf16 %v7744_v62 }
 0x334   :  { %7998 = vrot.lane.b32.xlu1 %v7992_v48, %s8583_s3  ;;  %v7751_v38 = vunpack.i.h.bf16 %v7749_v9  ;;  %v7750_v37 = vunpack.i.l.bf16 %v7749_v9  ;;  %v7746_v48 = vunpack.i.h.bf16 %v7744_v62 }
 0x335   :  { %v3518_v59 = vsel %vm3463_vm11, %v3453_v58, %v7745_v29 }
 0x336   :  { %v7754_v14 = vpop.permute.xlu1 %7753  ;;  %v3581_v4 = vsel %vm3528_vm10, %v3516_v7, %v7750_v37  ;;  %v3582_v16 = vsel %vm3528_vm10, %v3517_v51, %v7751_v38  ;;  %v3519_v1 = vsel %vm3463_vm11, %v3454_v27, %v7746_v48  ;;  %v14343_v51 = vld [vmem:[#allocation17_spill] sm:$0xff]  ;;  %v14344_v48 = vld [vmem:[#allocation44_spill] sm:$0xff] }
 0x337   :  { %v7759_v53 = vpop.permute.xlu0 %7758  ;;  %v7756_v45 = vunpack.i.h.bf16 %v7754_v14  ;;  %v7755_v52 = vunpack.i.l.bf16 %v7754_v14 }
 0x338   :  { %v7761_v60 = vunpack.i.h.bf16 %v7759_v53  ;;  %v7760_v63 = vunpack.i.l.bf16 %v7759_v53 }
 0x339   :  { %v3583_v2 = vsel %vm3528_vm10, %v3518_v59, %v7755_v52  ;;  %v3584_v33 = vsel %vm3528_vm10, %v3519_v1, %v7756_v45 }
 0x33a   :  { %v3646_v30 = vsel %vm3593_vm12, %v3581_v4, %v7760_v63  ;;  %v3647_v46 = vsel %vm3593_vm12, %v3582_v16, %v7761_v60  ;;  %v7764_v28 = vpop.permute.xlu1 %7763 }
 0x33b   :  { %v3684_v18 = vpack.c.bf16 %v3647_v46, %v3646_v30  ;;  %v7769_v20 = vpop.permute.xlu0 %7768  ;;  %v7766_v15 = vunpack.i.h.bf16 %v7764_v28  ;;  %v7765_v34 = vunpack.i.l.bf16 %v7764_v28  ;;  %v14346_v46 = vld [vmem:[#allocation16_spill] sm:$0xff] }
 0x33c   :  { %v7771_v19 = vunpack.i.h.bf16 %v7769_v20  ;;  %v7770_v36 = vunpack.i.l.bf16 %v7769_v20 }
 0x33d   :  { %6585 = vmatprep.mubr.msk.bf16.mxu1 %vm3744_vm13, %v3684_v18  ;;  %v3196_v53 = vsel %vm3138_vm5, %v14343_v51, %v7766_v15  ;;  %v3195_v29 = vsel %vm3138_vm5, %v14344_v48, %v7765_v34 }
 0x33e   :  { %v3649_v62 = vsel %vm3593_vm12, %v3584_v33, %v7771_v19  ;;  %v3648_v3 = vsel %vm3593_vm12, %v3583_v2, %v7770_v36  ;;  %v7774_v56 = vpop.permute.xlu1 %7773 }
 0x33f   :  { %v3685_v32 = vpack.c.bf16 %v3649_v62, %v3648_v3  ;;  %v7779_v35 = vpop.permute.xlu0 %7778  ;;  %v7776_v50 = vunpack.i.h.bf16 %v7774_v56  ;;  %v7775_v14 = vunpack.i.l.bf16 %v7774_v56 }
 0x340   :  { %v6559_v9 = vpop.f32.mrb[24].mxu1  ;;  %v7781_v54 = vunpack.i.h.bf16 %v7779_v35  ;;  %v7780_v42 = vunpack.i.l.bf16 %v7779_v35 }
 0x341   :  { %v3970_v17 = vpop.f32.mrb[25].mxu1  ;;  %6586 = vmatmul.mubr.msk.bf16.gmra.mrb[52].mxu1 %vm3744_vm13, %v3685_v32  ;;  %v3198_v30 = vsel %vm3138_vm5, %v14345_v5, %v7776_v50  ;;  %v3197_v28 = vsel %vm3138_vm5, %v14346_v46, %v7775_v14 }
 0x342   :  { %v7784_v55 = vpop.permute.xlu1 %7783  ;;  %v6560_v40 = vpop.f32.mrb[26].mxu1  ;;  %v3261_v18 = vsel %vm3203_vm6, %v3196_v53, %v7781_v54  ;;  %v3260_v20 = vsel %vm3203_vm6, %v3195_v29, %v7780_v42 }
 0x343   :  { %v7789_v21 = vpop.permute.xlu0 %7788  ;;  %v3972_v11 = vpop.f32.mrb[27].mxu1  ;;  %v7786_v60 = vunpack.i.h.bf16 %v7784_v55  ;;  %v7785_v63 = vunpack.i.l.bf16 %v7784_v55 }
 0x344   :  { %v7791_v16 = vunpack.i.h.bf16 %v7789_v21  ;;  %v7790_v45 = vunpack.i.l.bf16 %v7789_v21 }
 0x345   :  { %v3262_v36 = vsel %vm3203_vm6, %v3197_v28, %v7785_v63  ;;  %v3263_v2 = vsel %vm3203_vm6, %v3198_v30, %v7786_v60 }
 0x346   :  { %v7794_v61 = vpop.permute.xlu1 %7793  ;;  %v3325_v56 = vsel %vm3268_vm7, %v3260_v20, %v7790_v45  ;;  %v3326_v32 = vsel %vm3268_vm7, %v3261_v18, %v7791_v16 }
 0x347   :  { %v7799_v38 = vpop.permute.xlu0 %7798  ;;  %v7796_v52 = vunpack.i.h.bf16 %v7794_v61  ;;  %v7795_v41 = vunpack.i.l.bf16 %v7794_v61 }
 0x348   :  { %v7801_v58 = vunpack.i.h.bf16 %v7799_v38  ;;  %v7800_v27 = vunpack.i.l.bf16 %v7799_v38 }
 0x349   :  { %v3327_v35 = vsel %vm3268_vm7, %v3262_v36, %v7795_v41  ;;  %v3328_v9 = vsel %vm3268_vm7, %v3263_v2, %v7796_v52 }
 0x34a   :  { %v7804_v37 = vpop.permute.xlu1 %7803  ;;  %v3390_v17 = vsel %vm3333_vm8, %v3325_v56, %v7800_v27  ;;  %v3391_v55 = vsel %vm3333_vm8, %v3326_v32, %v7801_v58 }
 0x34b   :  { %v7809_v6 = vpop.permute.xlu0 %7808  ;;  %v7806_v11 = vunpack.i.h.bf16 %v7804_v37  ;;  %v7805_v61 = vunpack.i.l.bf16 %v7804_v37 }
 0x34c   :  { %v7811_v59 = vunpack.i.h.bf16 %v7809_v6  ;;  %v7810_v1 = vunpack.i.l.bf16 %v7809_v6 }
 0x34d   :  { %v3392_v16 = vsel %vm3333_vm8, %v3327_v35, %v7805_v61  ;;  %v3393_v45 = vsel %vm3333_vm8, %v3328_v9, %v7806_v11 }
 0x34e   :  { %v7814_v7 = vpop.permute.xlu1 %7813  ;;  %v3455_v38 = vsel %vm3398_vm9, %v3390_v17, %v7810_v1  ;;  %v3456_v15 = vsel %vm3398_vm9, %v3391_v55, %v7811_v59 }
 0x34f   :  { %v7819_v4 = vpop.permute.xlu0 %7818  ;;  %v7816_v6 = vunpack.i.h.bf16 %v7814_v7  ;;  %v7815_v50 = vunpack.i.l.bf16 %v7814_v7 }
 0x350   :  { %v7821_v33 = vunpack.i.h.bf16 %v7819_v4  ;;  %v7820_v62 = vunpack.i.l.bf16 %v7819_v4 }
 0x351   :  { %v3457_v5 = vsel %vm3398_vm9, %v3392_v16, %v7815_v50  ;;  %v3458_v30 = vsel %vm3398_vm9, %v3393_v45, %v7816_v6 }
 0x352   :  { %v7824_v19 = vpop.permute.xlu1 %7823  ;;  %v3520_v14 = vsel %vm3463_vm11, %v3455_v38, %v7820_v62  ;;  %v3521_v54 = vsel %vm3463_vm11, %v3456_v15, %v7821_v33 }
 0x353   :  { %v7829_v3 = vpop.permute.xlu0 %7828  ;;  %v7826_v51 = vunpack.i.h.bf16 %v7824_v19  ;;  %v7825_v53 = vunpack.i.l.bf16 %v7824_v19 }
 0x354   :  { %v7831_v40 = vunpack.i.h.bf16 %v7829_v3  ;;  %v7830_v21 = vunpack.i.l.bf16 %v7829_v3 }
 0x355   :  { %v3522_v58 = vsel %vm3463_vm11, %v3457_v5, %v7825_v53  ;;  %v3523_v27 = vsel %vm3463_vm11, %v3458_v30, %v7826_v51 }
 0x356   :  { %v7834_v34 = vpop.permute.xlu1 %7833  ;;  %v3585_v60 = vsel %vm3528_vm10, %v3520_v14, %v7830_v21  ;;  %v3586_v37 = vsel %vm3528_vm10, %v3521_v54, %v7831_v40 }
 0x357   :  { %v7839_v42 = vpop.permute.xlu0 %7838  ;;  %v7836_v63 = vunpack.i.h.bf16 %v7834_v34  ;;  %v7835_v4 = vunpack.i.l.bf16 %v7834_v34 }
 0x358   :  { %v7841_v48 = vunpack.i.h.bf16 %v7839_v42  ;;  %v7840_v29 = vunpack.i.l.bf16 %v7839_v42 }
 0x359   :  { %v3587_v59 = vsel %vm3528_vm10, %v3522_v58, %v7835_v4  ;;  %v3588_v1 = vsel %vm3528_vm10, %v3523_v27, %v7836_v63 }
 0x35a   :  { %v3650_v7 = vsel %vm3593_vm12, %v3585_v60, %v7840_v29  ;;  %v3651_v52 = vsel %vm3593_vm12, %v3586_v37, %v7841_v48  ;;  %v7844_v41 = vpop.permute.xlu1 %7843 }
 0x35b   :  { %v3686_v46 = vpack.c.bf16 %v3651_v52, %v3650_v7  ;;  %v7849_v28 = vpop.permute.xlu0 %7848  ;;  %v7846_v50 = vunpack.i.h.bf16 %v7844_v41  ;;  %v7845_v14 = vunpack.i.l.bf16 %v7844_v41 }
 0x35c   :  { %v7851_v18 = vunpack.i.h.bf16 %v7849_v28  ;;  %v7850_v20 = vunpack.i.l.bf16 %v7849_v28 }
 0x35d   :  { %6589 = vmatprep.mubr.msk.bf16.mxu1 %vm3744_vm13, %v3686_v46  ;;  %v3200_v37 = vsel %vm3138_vm5, %v12256_v8, %v7846_v50  ;;  %v3199_v63 = vsel %vm3138_vm5, %v12123_v23, %v7845_v14 }
 0x35e   :  { %v3653_v19 = vsel %vm3593_vm12, %v3588_v1, %v7851_v18  ;;  %v3652_v36 = vsel %vm3593_vm12, %v3587_v59, %v7850_v20  ;;  %v7854_v2 = vpop.permute.xlu1 %7853 }
 0x35f   :  { %v3687_v33 = vpack.c.bf16 %v3653_v19, %v3652_v36  ;;  %v7859_v62 = vpop.permute.xlu0 %7858  ;;  %v7855_v48 = vunpack.i.l.bf16 %v7854_v2  ;;  %v7856_v4 = vunpack.i.h.bf16 %v7854_v2 }
 0x360   :  { %v7860_v54 = vunpack.i.l.bf16 %v7859_v62  ;;  %v7861_v29 = vunpack.i.h.bf16 %v7859_v62 }
 0x361   :  { %6590 = vmatmul.mubr.msk.bf16.gmra.mrb[56].mxu1 %vm3744_vm13, %v3687_v33  ;;  %v3201_v23 = vsel %vm3138_vm5, %v12258_v10, %v7855_v48  ;;  %v3202_v19 = vsel %vm3138_vm5, %v12349_v43, %v7856_v4  ;;  %vm5223_vm5 = vcmask 850944  }
 0x362   :  { %v7864_v3 = vpop.permute.xlu1 %7863  ;;  %v6563_v32 = vpop.f32.mrb[28].mxu1  ;;  %v3264_v16 = vsel %vm3203_vm6, %v3199_v63, %v7860_v54  ;;  %v3265_v58 = vsel %vm3203_vm6, %v3200_v37, %v7861_v29 }
 0x363   :  { %v7869_v56 = vpop.permute.xlu0 %7868  ;;  %v3982_v35 = vpop.f32.mrb[29].mxu1  ;;  %v7866_v41 = vunpack.i.h.bf16 %v7864_v3  ;;  %v7865_v5 = vunpack.i.l.bf16 %v7864_v3 }
 0x364   :  { %v6564_v9 = vpop.f32.mrb[30].mxu1  ;;  %v7870_v60 = vunpack.i.l.bf16 %v7869_v56  ;;  %v7871_v45 = vunpack.i.h.bf16 %v7869_v56 }
 0x365   :  { %v3984_v55 = vpop.f32.mrb[31].mxu1  ;;  %v3266_v62 = vsel %vm3203_vm6, %v3201_v23, %v7865_v5  ;;  %v3267_v3 = vsel %vm3203_vm6, %v3202_v19, %v7866_v41  ;;  %vm14347_vm6 = vcmask 1045504  }
 0x366   :  { %v13094_v17 = vpop.permute.xlu1 %2146  ;;  %v3329_v8 = vsel %vm3268_vm7, %v3264_v16, %v7870_v60  ;;  %v3330_v1 = vsel %vm3268_vm7, %v3265_v58, %v7871_v45 }
 0x367   :  { %v7874_v40 = vpop.permute.xlu0 %7873 }
 0x368   :  { %v7875_v7 = vunpack.i.l.bf16 %v7874_v40  ;;  %v7876_v30 = vunpack.i.h.bf16 %v7874_v40 }
 0x36a   :  { %v13096_v21 = vpop.permute.xlu1 %2524  ;;  %v3394_v36 = vsel %vm3333_vm8, %v3329_v8, %v7875_v7  ;;  %v3395_v10 = vsel %vm3333_vm8, %v3330_v1, %v7876_v30  ;;  %v13155_v30 = vld [vmem:[%s13889_s4] ss:$0 sm:$0xff] }
 0x36b   :  { %v7879_v11 = vpop.permute.xlu0 %7878 }
 0x36c   :  { %v7880_v46 = vunpack.i.l.bf16 %v7879_v11  ;;  %v7881_v2 = vunpack.i.h.bf16 %v7879_v11 }
 0x36e   :  { %v13098_v61 = vpop.permute.xlu1 %2892  ;;  %v3459_v56 = vsel %vm3398_vm9, %v3394_v36, %v7880_v46  ;;  %v3460_v50 = vsel %vm3398_vm9, %v3395_v10, %v7881_v2 }
 0x36f   :  { %v13100_v38 = vpop.permute.xlu0 %2709 }
 0x370   :  { %v3524_v14 = vsel %vm3463_vm11, %v3459_v56, %v13100_v38  ;;  %v3525_v5 = vsel %vm3463_vm11, %v3460_v50, %v13100_v38 }
 0x371   :  { %v3590_v56 = vsel %vm3528_vm10, %v3525_v5, %v13098_v61 }
 0x372   :  { %v4819_v15 = vpop.permute.xlu1 %4818 }
 0x373   :  { %v13102_v34 = vpop.permute.xlu0 %4773 }
 0x374   :  { %v4995_v6 = vsel %vm4980_vm14, %v13102_v34, %v4819_v15 }
 0x376   :  { %v4864_v42 = vpop.permute.xlu1 %4863 }
 0x377   :  { %v13107_v51 = vsel %vm4996_vm15, %v4995_v6, %v4864_v42  ;;  %v13109_v53 = vpop.permute.xlu0 %7888 }
 0x378   :  { %v7891_v15 = vunpack.i.h.bf16 %v13109_v53  ;;  %v7890_v43 = vunpack.i.l.bf16 %v13109_v53 }
 0x37a   :  { %v7884_v52 = vpop.permute.xlu1 %7883 }
 0x37b   :  { %v7904_v28 = vpop.permute.xlu0 %7903  ;;  %v7886_v27 = vunpack.i.h.bf16 %v7884_v52  ;;  %v7885_v18 = vunpack.i.l.bf16 %v7884_v52 }
 0x37c   :  { %v7906_v20 = vunpack.i.h.bf16 %v7904_v28  ;;  %v7905_v59 = vunpack.i.l.bf16 %v7904_v28 }
 0x37e   :  { %v7894_v33 = vpop.permute.xlu1 %7893  ;;  %v4931_v11 = vsel %vm4929_vm1, %v7886_v27, %v7906_v20  ;;  %v4930_v6 = vsel %vm4929_vm1, %v7885_v18, %v7905_v59 }
 0x37f   :  { %v7909_v32 = vpop.permute.xlu0 %7908  ;;  %v7896_v35 = vunpack.i.h.bf16 %v7894_v33  ;;  %v7895_v9 = vunpack.i.l.bf16 %v7894_v33 }
 0x380   :  { %v7911_v55 = vunpack.i.h.bf16 %v7909_v32  ;;  %v7910_v40 = vunpack.i.l.bf16 %v7909_v32  ;;  %v3331_v32 = vsel %vm3268_vm7, %v3266_v62, %v13094_v17 }
 0x381   :  { %v4881_v16 = vsel %vm3333_vm8, %v12293_v13, %v7896_v35  ;;  %v4880_v45 = vsel %vm3333_vm8, %v12284_v24, %v7895_v9  ;;  %v3589_v24 = vsel %vm3528_vm10, %v3524_v14, %v13098_v61  ;;  %v3332_v35 = vsel %vm3268_vm7, %v3267_v3, %v13094_v17  ;;  %vm14348_vm7 = vmmov %vm14347_vm6 }
 0x382   :  { %v4947_v54 = vsel %vm4946_vm2, %v4930_v6, %v7910_v40  ;;  %v4948_v42 = vsel %vm4946_vm2, %v4931_v11, %v7911_v55  ;;  %v7899_v48 = vpop.permute.xlu1 %7898  ;;  %v6567_v7 = vpop.f32.mrb[32].mxu1 }
 0x383   :  { %v7901_v29 = vunpack.i.h.bf16 %v7899_v48  ;;  %v7900_v60 = vunpack.i.l.bf16 %v7899_v48  ;;  %v13137_v37 = vpop.permute.xlu0 %7918  ;;  %v4964_v63 = vsel %vm4963_vm4, %v4947_v54, %v7890_v43  ;;  %v4965_v4 = vsel %vm4963_vm4, %v4948_v42, %v7891_v15  ;;  %v3994_v28 = vpop.f32.mrb[33].mxu1 }
 0x384   :  { %v7920_v52 = vunpack.i.l.bf16 %v13137_v37  ;;  %v5013_v41 = vpack.c.bf16 %v4965_v4, %v4964_v63  ;;  %v4003_v46 = vadd.f32 %v13155_v30, %v6567_v7  ;;  %v3995_v8 = vadd.f32 %v13155_v30, %v3994_v28  ;;  %v6568_v23 = vpop.f32.mrb[34].mxu1 }
 0x385   :  { %v4896_v13 = vsel %vm3593_vm12, %v4880_v45, %v7900_v60  ;;  %v4897_v58 = vsel %vm3593_vm12, %v4881_v16, %v7901_v29  ;;  %v4006_v19 = vadd.f32 %v13155_v30, %v6568_v23  ;;  %v3997_v2 = vpop.f32.mrb[35].mxu1 }
 0x386   :  { %v4913_v20 = vsel %vm4912_vm0, %v4896_v13, %v7885_v18  ;;  %v4914_v59 = vsel %vm4912_vm0, %v4897_v58, %v7886_v27  ;;  %5283 = vmatprep.mubr.bf16.mxu0 %v5013_v41  ;;  %v13165_v1 = vpop.permute.xlu1 %7913  ;;  %8410 = vtanh.f32 %v4003_v46  ;;  %v3654_v10 = vsel %vm3593_vm12, %v3589_v24, %v7920_v52 }
 0x387   :  { %v5012_v36 = vpack.c.bf16 %v4914_v59, %v4913_v20  ;;  %v13168_v33 = vpop.permute.xlu0 %7928  ;;  %8412 = vtanh.f32 %v3995_v8  ;;  %v3998_v18 = vadd.f32 %v13155_v30, %v3997_v2  ;;  %v7915_v27 = vunpack.i.l.bf16 %v13165_v1 }
 0x388   :  { %8414 = vtanh.f32 %v4006_v19  ;;  %v3655_v9 = vsel %vm3593_vm12, %v3590_v56, %v7920_v52  ;;  %v7916_v5 = vunpack.i.h.bf16 %v13165_v1  ;;  %v7931_v58 = vunpack.i.h.bf16 %v13168_v33 }
 0x389   :  { %5284 = vmatmul.mubr.bf16.vlgmr.msra.gmra.mrb[64].mxu0 %v5012_v36  ;;  %8416 = vtanh.f32 %v3998_v18  ;;  %v3396_v55 = vsel %vm3333_vm8, %v3331_v32, %v7915_v27  ;;  %v3397_v40 = vsel %vm3333_vm8, %v3332_v35, %v7915_v27  ;;  %v3688_v11 = vpack.c.bf16 %v3655_v9, %v3654_v10 }
 0x38a   :  { %v13182_v6 = vpop.permute.xlu1 %7923  ;;  %v3461_v50 = vsel %vm3398_vm9, %v3396_v55, %v13096_v21  ;;  %v3462_v62 = vsel %vm3398_vm9, %v3397_v40, %v13096_v21  ;;  %v7930_v24 = vunpack.i.l.bf16 %v13168_v33  ;;  %vm14349_vm9 = vmmov %vm14347_vm6 }
 0x38b   :  { %v7944_v14 = vpop.permute.xlu0 %7943  ;;  %v3526_v17 = vsel %vm3463_vm11, %v3461_v50, %v13100_v38  ;;  %v3527_v3 = vsel %vm3463_vm11, %v3462_v62, %v13100_v38  ;;  %6593 = vmatprep.mubr.msk.bf16.mxu1 %vm3744_vm13, %v3688_v11  ;;  %v7926_v54 = vunpack.i.h.bf16 %v13182_v6  ;;  %v7925_v42 = vunpack.i.l.bf16 %v13182_v6  ;;  %vm14351_vm11 = vmmov %vm14347_vm6 }
 0x38c   :  { %v7946_v48 = vunpack.i.h.bf16 %v7944_v14  ;;  %v7945_v29 = vunpack.i.l.bf16 %v7944_v14  ;;  %v3591_v60 = vsel %vm3528_vm10, %v3526_v17, %v13098_v61  ;;  %v3592_v21 = vsel %vm3528_vm10, %v3527_v3, %v13098_v61  ;;  %vm14350_vm10 = vmmov %vm14347_vm6 }
 0x38d   :  { %v3656_v4 = vsel %vm3593_vm12, %v3591_v60, %v7920_v52  ;;  %v3657_v16 = vsel %vm3593_vm12, %v3592_v21, %v7920_v52 }
 0x38e   :  { %v7934_v63 = vpop.permute.xlu1 %7933  ;;  %v3689_v41 = vpack.c.bf16 %v3657_v16, %v3656_v4  ;;  %v4932_v61 = vsel %vm4929_vm1, %v7925_v42, %v7945_v29  ;;  %v4933_v52 = vsel %vm4929_vm1, %v7926_v54, %v7946_v48 }
 0x38f   :  { %v7936_v38 = vunpack.i.h.bf16 %v7934_v63  ;;  %v7935_v45 = vunpack.i.l.bf16 %v7934_v63  ;;  %v7954_v7 = vpop.permute.xlu0 %7953 }
 0x390   :  { %v7956_v46 = vunpack.i.h.bf16 %v7954_v7  ;;  %v7955_v28 = vunpack.i.l.bf16 %v7954_v7  ;;  %v8411_v13 = vpop.eup %8410  ;;  %6594 = vmatmul.mubr.msk.bf16.gmra.mrb[60].mxu1 %vm3744_vm13, %v3689_v41  ;;  %vm14352_vm13 = vmmov %vm14347_vm6 }
 0x391   :  { %v8413_v8 = vpop.eup %8412  ;;  %v4222_v23 = vrot.slane %v8411_v13, 1  ;;  %v4322_v20 = vrot.slane %v8411_v13, 2  ;;  %v4982_v59 = vsel %vm4980_vm14, %v7891_v15, %v7936_v38  ;;  %v4981_v1 = vsel %vm4980_vm14, %v7890_v43, %v7935_v45 }
 0x392   :  { %v7939_v19 = vpop.permute.xlu1 %7938  ;;  %v8415_v36 = vpop.eup %8414  ;;  %v4949_v2 = vsel %vm4946_vm2, %v4932_v61, %v7955_v28  ;;  %v4950_v33 = vsel %vm4946_vm2, %v4933_v52, %v7956_v46  ;;  %v4219_v9 = vrot.slane %v8413_v8, 1  ;;  %v4319_v55 = vrot.slane %v8413_v8, 2 }
 0x393   :  { %v7941_v10 = vunpack.i.h.bf16 %v7939_v19  ;;  %v7940_v56 = vunpack.i.l.bf16 %v7939_v19  ;;  %v13219_v18 = vpop.permute.xlu0 %7968  ;;  %v8417_v27 = vpop.eup %8416  ;;  %v4223_v32 = vrot.slane %v8415_v36, 1  ;;  %v4323_v35 = vrot.slane %v8415_v36, 2 }
 0x394   :  { %v4220_v15 = vrot.slane %v8417_v27, 1  ;;  %v4320_v40 = vrot.slane %v8417_v27, 2  ;;  %v4966_v17 = vsel %vm4963_vm4, %v4949_v2, %v7930_v24  ;;  %v4967_v4 = vsel %vm4963_vm4, %v4950_v33, %v7931_v58 }
 0x395   :  { %v4997_v53 = vsel %vm4996_vm15, %v4981_v1, %v7940_v56  ;;  %v4998_v43 = vsel %vm4996_vm15, %v4982_v59, %v7941_v10  ;;  %v4224_v11 = vsel %vm671_vm3, %v4222_v23, %v4223_v32  ;;  %v4324_v50 = vsel %vm14347_vm6, %v4322_v20, %v4323_v35 }
 0x396   :  { %v5014_v62 = vpack.c.bf16 %v4998_v43, %v4997_v53  ;;  %v7949_v14 = vpop.permute.xlu1 %7948  ;;  %v4280_v3 = vmax.f32 %v8411_v13, %v4224_v11  ;;  %v4221_v48 = vsel %vm671_vm3, %v4219_v9, %v4220_v15  ;;  %v4321_v29 = vsel %vm14348_vm7, %v4319_v55, %v4320_v40  ;;  %vm14353_vm7 = vmmov %vm14347_vm6 }
 0x397   :  { %v7974_v60 = vpop.permute.xlu0 %7973  ;;  %v4279_v21 = vmax.f32 %v8413_v8, %v4221_v48  ;;  %v7950_v63 = vunpack.i.l.bf16 %v7949_v14  ;;  %v5016_v38 = vpack.c.bf16 %v4967_v4, %v4966_v17  ;;  %v4882_v46 = vsel %vm3333_vm8, %v12466_v12, %v7916_v5 }
 0x398   :  { %6611 = vmatprep.mubr.msk.bf16.mxu1 %vm5223_vm5, %v5014_v62  ;;  %v13230_v16 = vmax.f32 %v4280_v3, %v4324_v50  ;;  %v7976_v45 = vunpack.i.h.bf16 %v7974_v60  ;;  %v7975_v7 = vunpack.i.l.bf16 %v7974_v60  ;;  %v7921_v13 = vunpack.i.h.bf16 %v13137_v37 }
 0x399   :  { %v13232_v41 = vmax.f32 %v4279_v21, %v4321_v29  ;;  %5291 = vmatprep.mubr.bf16.mxu0 %v5016_v38  ;;  %v4883_v23 = vsel %vm3333_vm8, %v12472_v22, %v7950_v63  ;;  %v7951_v9 = vunpack.i.h.bf16 %v7949_v14  ;;  %v7971_v6 = vunpack.i.h.bf16 %v13219_v18 }
 0x39a   :  { %v7959_v28 = vpop.permute.xlu1 %7958  ;;  %v4983_v1 = vsel %vm4980_vm14, %v7930_v24, %v7975_v7  ;;  %v4984_v19 = vsel %vm4980_vm14, %v7931_v58, %v7976_v45  ;;  %v4898_v5 = vsel %vm3593_vm12, %v4882_v46, %v7921_v13 }
 0x39b   :  { %v7960_v61 = vunpack.i.l.bf16 %v7959_v28  ;;  %v7979_v52 = vpop.permute.xlu0 %7978  ;;  %v4397_v8 = vmax.f32 %v13232_v41, %v13230_v16  ;;  %v4915_v33 = vsel %vm4912_vm0, %v4898_v5, %v7925_v42  ;;  %v7961_v11 = vunpack.i.h.bf16 %v7959_v28 }
 0x39c   :  { %v7981_v20 = vunpack.i.h.bf16 %v7979_v52  ;;  %v7980_v59 = vunpack.i.l.bf16 %v7979_v52  ;;  %v4884_v3 = vsel %vm3333_vm8, %v12644_v25, %v7951_v9 }
 0x39d   :  { %v4899_v12 = vsel %vm3593_vm12, %v4883_v23, %v7960_v61  ;;  %v4900_v13 = vsel %vm3593_vm12, %v4884_v3, %v7961_v11 }
 0x39e   :  { %v4999_v37 = vsel %vm4996_vm15, %v4983_v1, %v7980_v59  ;;  %v5000_v36 = vsel %vm4996_vm15, %v4984_v19, %v7981_v20  ;;  %v7964_v2 = vpop.permute.xlu1 %7963  ;;  %v4916_v22 = vsel %vm4912_vm0, %v4899_v12, %v7926_v54  ;;  %v7970_v54 = vunpack.i.l.bf16 %v13219_v18 }
 0x39f   :  { %v5017_v24 = vpack.c.bf16 %v5000_v36, %v4999_v37  ;;  %v7984_v10 = vpop.permute.xlu0 %7983  ;;  %v5015_v58 = vpack.c.bf16 %v4916_v22, %v4915_v33  ;;  %v7966_v56 = vunpack.i.h.bf16 %v7964_v2  ;;  %v7965_v27 = vunpack.i.l.bf16 %v7964_v2 }
 0x3a0   :  { %v7986_v32 = vunpack.i.h.bf16 %v7984_v10  ;;  %v7985_v35 = vunpack.i.l.bf16 %v7984_v10 }
 0x3a1   :  { %5292 = vmatmul.mubr.bf16.gmra.mrb[68].mxu0 %v5015_v58  ;;  %6612 = vmatmul.mubr.msk.bf16.vlgmr.msra.gmra.mrb[64].mxu1 %vm5223_vm5, %v5017_v24  ;;  %v4917_v52 = vsel %vm4912_vm0, %v4900_v13, %v7965_v27 }
 0x3a2   :  { %v13254_v55 = vpop.permute.xlu1 %7988  ;;  %v6571_v40 = vpop.f32.mrb[36].mxu1  ;;  %v4934_v50 = vsel %vm4929_vm1, %v7965_v27, %v7985_v35  ;;  %v4935_v62 = vsel %vm4929_vm1, %v7966_v56, %v7986_v32 }
 0x3a3   :  { %v7990_v15 = vunpack.i.l.bf16 %v13254_v55  ;;  %v7994_v42 = vpop.permute.xlu0 %7993  ;;  %v4019_v17 = vadd.f32 %v13155_v30, %v6571_v40  ;;  %v4010_v14 = vpop.f32.mrb[37].mxu1 }
 0x3a4   :  { %v7996_v53 = vunpack.i.h.bf16 %v7994_v42  ;;  %v7995_v43 = vunpack.i.l.bf16 %v7994_v42  ;;  %v4011_v48 = vadd.f32 %v13155_v30, %v4010_v14  ;;  %v6572_v29 = vpop.f32.mrb[38].mxu1 }
 0x3a5   :  { %8418 = vtanh.f32 %v4019_v17  ;;  %v4022_v4 = vadd.f32 %v13155_v30, %v6572_v29  ;;  %v4885_v38 = vsel %vm3333_vm8, %v12653_v26, %v7990_v15  ;;  %v4013_v45 = vpop.f32.mrb[39].mxu1 }
 0x3a6   :  { %v4951_v60 = vsel %vm4946_vm2, %v4934_v50, %v7995_v43  ;;  %v4952_v21 = vsel %vm4946_vm2, %v4935_v62, %v7996_v53  ;;  %v13267_v63 = vpop.permute.xlu1 %7998  ;;  %8420 = vtanh.f32 %v4011_v48  ;;  %v4014_v25 = vadd.f32 %v13155_v30, %v4013_v45 }
 0x3a7   :  { %v8000_v7 = vunpack.i.l.bf16 %v13267_v63  ;;  %v4968_v46 = vsel %vm4963_vm4, %v4951_v60, %v7970_v54  ;;  %v4969_v28 = vsel %vm4963_vm4, %v4952_v21, %v7971_v6  ;;  %8422 = vtanh.f32 %v4022_v4 }
 0x3a8   :  { %v5019_v26 = vpack.c.bf16 %v4969_v28, %v4968_v46  ;;  %8424 = vtanh.f32 %v4014_v25 }
 0x3a9   :  { %v4901_v61 = vsel %vm3593_vm12, %v4885_v38, %v8000_v7 }
 0x3aa   :  { %v4918_v23 = vsel %vm4912_vm0, %v4901_v61, %v7966_v56  ;;  %5299 = vmatprep.mubr.bf16.mxu0 %v5019_v26 }
 0x3ab   :  { %v5018_v20 = vpack.c.bf16 %v4918_v23, %v4917_v52 }
 0x3ad   :  { %5300 = vmatmul.mubr.bf16.gmra.mrb[72].mxu0 %v5018_v20 }
 0x3af   :  { %v8419_v59 = vpop.eup %8418 }
 0x3b0   :  { %v8421_v1 = vpop.eup %8420  ;;  %v4228_v5 = vrot.slane %v8419_v59, 1  ;;  %v4328_v36 = vrot.slane %v8419_v59, 2 }
 0x3b1   :  { %v8423_v19 = vpop.eup %8422  ;;  %v4225_v33 = vrot.slane %v8421_v1, 1  ;;  %v4325_v24 = vrot.slane %v8421_v1, 2 }
 0x3b2   :  { %v8425_v12 = vpop.eup %8424  ;;  %v4229_v37 = vrot.slane %v8423_v19, 1  ;;  %v4329_v2 = vrot.slane %v8423_v19, 2 }
 0x3b3   :  { %v4226_v22 = vrot.slane %v8425_v12, 1  ;;  %v4326_v10 = vrot.slane %v8425_v12, 2 }
 0x3b4   :  { %v4230_v27 = vsel %vm671_vm3, %v4228_v5, %v4229_v37  ;;  %v4330_v56 = vsel %vm14349_vm9, %v4328_v36, %v4329_v2  ;;  %vm14354_vm9 = vmmov %vm14347_vm6 }
 0x3b5   :  { %v6575_v58 = vpop.f32.mrb[40].mxu1  ;;  %v4282_v9 = vmax.f32 %v8419_v59, %v4230_v27  ;;  %v4227_v15 = vsel %vm671_vm3, %v4225_v33, %v4226_v22  ;;  %v4327_v42 = vsel %vm14350_vm10, %v4325_v24, %v4326_v10  ;;  %vm14355_vm10 = vmmov %vm14347_vm6 }
 0x3b6   :  { %v4035_v32 = vadd.f32 %v13155_v30, %v6575_v58  ;;  %v4026_v35 = vpop.f32.mrb[41].mxu1  ;;  %v4281_v43 = vmax.f32 %v8421_v1, %v4227_v15 }
 0x3b7   :  { %v4027_v40 = vadd.f32 %v13155_v30, %v4026_v35  ;;  %v6576_v53 = vpop.f32.mrb[42].mxu1  ;;  %v4382_v62 = vmax.f32 %v4282_v9, %v4330_v56 }
 0x3b8   :  { %8426 = vtanh.f32 %v4035_v32  ;;  %v4038_v11 = vadd.f32 %v13155_v30, %v6576_v53  ;;  %v4029_v50 = vpop.f32.mrb[43].mxu1  ;;  %v4381_v14 = vmax.f32 %v4281_v43, %v4327_v42 }
 0x3b9   :  { %8428 = vtanh.f32 %v4027_v40  ;;  %v4030_v17 = vadd.f32 %v13155_v30, %v4029_v50 }
 0x3ba   :  { %8430 = vtanh.f32 %v4038_v11  ;;  %v13295_v3 = vmax.f32 %v4397_v8, %v4381_v14  ;;  %v4398_v48 = vmax.f32 %v13230_v16, %v4381_v14  ;;  %v4399_v29 = vmax.f32 %v4381_v14, %v4382_v62 }
 0x3bb   :  { %8432 = vtanh.f32 %v4030_v17 }
 0x3bc   :  { %v8002_v60 = vpack.i.bf16 %v13295_v3, %v12873_v47  ;;  %v4452_v21 = vrot.slane %v13295_v3, 1  ;;  %v13301_v4 = vmax.f32 %v4398_v48, %v4382_v62  ;;  %v4485_v38 = vrot.slane %v13295_v3, 2 }
 0x3be   :  { %8003 = vrot.lane.b32.xlu0 %v8002_v60, %s8588_s0  ;;  %v4453_v41 = vsel %vm671_vm3, %v4450_v44, %v4452_v21  ;;  %v4454_v8 = vrot.slane %v13301_v4, 1  ;;  %v4486_v45 = vsel %vm14351_vm11, %v4483_v0, %v4485_v38  ;;  %v4487_v7 = vrot.slane %v13301_v4, 2  ;;  %vm14356_vm11 = vmmov %vm14347_vm6 }
 0x3bf   :  { %v8012_v16 = vpack.i.bf16 %v4453_v41, %v12968_v49  ;;  %v8007_v46 = vpack.i.bf16 %v13301_v4, %v13295_v3  ;;  %v8017_v49 = vpack.i.bf16 %v4486_v45, %v12985_v31 }
 0x3c0   :  { %v4455_v28 = vsel %vm671_vm3, %v4452_v21, %v4454_v8  ;;  %v4488_v59 = vsel %vm14352_vm13, %v4485_v38, %v4487_v7  ;;  %vm14357_vm13 = vmmov %vm14347_vm6 }
 0x3c1   :  { %8013 = vrot.lane.b32.xlu1 %v8012_v16, %s8585_s30  ;;  %v8022_v20 = vpack.i.bf16 %v4455_v28, %v4453_v41  ;;  %v8032_v24 = vpack.i.bf16 %v4488_v59, %v4486_v45 }
 0x3c2   :  { %v8427_v25 = vpop.eup %8426  ;;  %8008 = vrot.lane.b32.xlu0 %v8007_v46, %s8586_s21 }
 0x3c3   :  { %v8429_v13 = vpop.eup %8428  ;;  %v4234_v61 = vrot.slane %v8427_v25, 1  ;;  %v4334_v26 = vrot.slane %v8427_v25, 2 }
 0x3c4   :  { %v8431_v44 = vpop.eup %8430  ;;  %v4231_v1 = vrot.slane %v8429_v13, 1  ;;  %v4331_v12 = vrot.slane %v8429_v13, 2 }
 0x3c5   :  { %v8433_v52 = vpop.eup %8432  ;;  %v4235_v0 = vrot.slane %v8431_v44, 1  ;;  %v4335_v23 = vrot.slane %v8431_v44, 2  ;;  %8023 = vrot.lane.b32.xlu1 %v8022_v20, %s8589_s16 }
 0x3c6   :  { %v4232_v19 = vrot.slane %v8433_v52, 1  ;;  %v4332_v5 = vrot.slane %v8433_v52, 2  ;;  %8018 = vrot.lane.b32.xlu0 %v8017_v49, %s8587_s13 }
 0x3c7   :  { %v4236_v37 = vsel %vm671_vm3, %v4234_v61, %v4235_v0  ;;  %v4336_v36 = vsel %vm14347_vm6, %v4334_v26, %v4335_v23 }
 0x3c8   :  { %v4284_v2 = vmax.f32 %v8427_v25, %v4236_v37  ;;  %v4233_v33 = vsel %vm671_vm3, %v4231_v1, %v4232_v19  ;;  %v4333_v31 = vsel %vm14353_vm7, %v4331_v12, %v4332_v5  ;;  %vm14358_vm7 = vmmov %vm14347_vm6 }
 0x3c9   :  { %v4283_v22 = vmax.f32 %v8429_v13, %v4233_v33  ;;  %8033 = vrot.lane.b32.xlu1 %v8032_v24, %s8590_s23 }
 0x3ca   :  { %v13327_v10 = vmax.f32 %v4284_v2, %v4336_v36  ;;  %8028 = vrot.lane.b32.xlu0 %v8022_v20, %s8580_s28 }
 0x3cb   :  { %v13329_v58 = vmax.f32 %v4283_v22, %v4333_v31 }
 0x3cd   :  { %v13334_v27 = vmax.f32 %v4399_v29, %v13329_v58  ;;  %v4400_v56 = vmax.f32 %v4382_v62, %v13329_v58  ;;  %v4401_v32 = vmax.f32 %v13329_v58, %v13327_v10 }
 0x3ce   :  { %8038 = vrot.lane.b32.xlu0 %v8032_v24, %s8583_s3 }
 0x3cf   :  { %v8042_v35 = vpack.i.bf16 %v13334_v27, %v13301_v4  ;;  %v13342_v9 = vmax.f32 %v4400_v56, %v13327_v10  ;;  %v4456_v15 = vrot.slane %v13334_v27, 1  ;;  %v4489_v42 = vrot.slane %v13334_v27, 2 }
 0x3d1   :  { %8043 = vrot.lane.b32.xlu1 %v8042_v35, %s8588_s0  ;;  %v8047_v40 = vpack.i.bf16 %v13342_v9, %v13334_v27  ;;  %v4457_v53 = vsel %vm671_vm3, %v4454_v8, %v4456_v15  ;;  %v4458_v43 = vrot.slane %v13342_v9, 1  ;;  %v4491_v62 = vrot.slane %v13342_v9, 2 }
 0x3d2   :  { %v8052_v11 = vpack.i.bf16 %v4457_v53, %v4455_v28  ;;  %v4490_v14 = vsel %vm14354_vm9, %v4487_v7, %v4489_v42  ;;  %vm14359_vm9 = vmmov %vm14347_vm6 }
 0x3d3   :  { %v4459_v50 = vsel %vm671_vm3, %v4456_v15, %v4458_v43  ;;  %8048 = vrot.lane.b32.xlu0 %v8047_v40, %s8586_s21  ;;  %v8057_v41 = vpack.i.bf16 %v4490_v14, %v4488_v59  ;;  %v13362_v8 = vsel %vm14355_vm10, %v4489_v42, %v4491_v62  ;;  %vm14360_vm10 = vmmov %vm14347_vm6 }
 0x3d4   :  { %v8062_v17 = vpack.i.bf16 %v4459_v50, %v4457_v53  ;;  %v6579_v48 = vpop.f32.mrb[44].mxu1  ;;  %v8072_v25 = vpack.i.bf16 %v13362_v8, %v4490_v14 }
 0x3d5   :  { %8053 = vrot.lane.b32.xlu1 %v8052_v11, %s8585_s30  ;;  %v4051_v29 = vadd.f32 %v13155_v30, %v6579_v48  ;;  %v4042_v60 = vpop.f32.mrb[45].mxu1 }
 0x3d6   :  { %v4043_v21 = vadd.f32 %v13155_v30, %v4042_v60  ;;  %v6580_v38 = vpop.f32.mrb[46].mxu1 }
 0x3d7   :  { %8434 = vtanh.f32 %v4051_v29  ;;  %v4054_v16 = vadd.f32 %v13155_v30, %v6580_v38  ;;  %8063 = vrot.lane.b32.xlu0 %v8062_v17, %s8589_s16  ;;  %v4045_v45 = vpop.f32.mrb[47].mxu1 }
 0x3d8   :  { %8436 = vtanh.f32 %v4043_v21  ;;  %v4046_v7 = vadd.f32 %v13155_v30, %v4045_v45 }
 0x3d9   :  { %8058 = vrot.lane.b32.xlu1 %v8057_v41, %s8587_s13  ;;  %8438 = vtanh.f32 %v4054_v16 }
 0x3da   :  { %8440 = vtanh.f32 %v4046_v7 }
 0x3db   :  { %8073 = vrot.lane.b32.xlu0 %v8072_v25, %s8590_s23 }
 0x3dd   :  { %8068 = vrot.lane.b32.xlu1 %v8062_v17, %s8580_s28 }
 0x3e1   :  { %8078 = vrot.lane.b32.xlu1 %v8072_v25, %s8583_s3  ;;  %v8435_v46 = vpop.eup %8434 }
 0x3e2   :  { %v8437_v28 = vpop.eup %8436  ;;  %v4240_v61 = vrot.slane %v8435_v46, 1  ;;  %v4340_v49 = vrot.slane %v8435_v46, 2 }
 0x3e3   :  { %v8439_v13 = vpop.eup %8438  ;;  %v4237_v0 = vrot.slane %v8437_v28, 1  ;;  %v4337_v20 = vrot.slane %v8437_v28, 2 }
 0x3e4   :  { %v8441_v44 = vpop.eup %8440  ;;  %v4241_v26 = vrot.slane %v8439_v13, 1  ;;  %v4341_v52 = vrot.slane %v8439_v13, 2 }
 0x3e5   :  { %v4238_v23 = vrot.slane %v8441_v44, 1  ;;  %v4338_v59 = vrot.slane %v8441_v44, 2 }
 0x3e6   :  { %v4242_v1 = vsel %vm671_vm3, %v4240_v61, %v4241_v26  ;;  %v4342_v19 = vsel %vm14356_vm11, %v4340_v49, %v4341_v52  ;;  %vm14361_vm11 = vmmov %vm14347_vm6 }
 0x3e7   :  { %v4286_v12 = vmax.f32 %v8435_v46, %v4242_v1  ;;  %v4239_v5 = vsel %vm671_vm3, %v4237_v0, %v4238_v23  ;;  %v4339_v37 = vsel %vm14357_vm13, %v4337_v20, %v4338_v59  ;;  %vm14362_vm13 = vmmov %vm14347_vm6 }
 0x3e8   :  { %v4285_v36 = vmax.f32 %v8437_v28, %v4239_v5 }
 0x3e9   :  { %v13376_v2 = vmax.f32 %v4286_v12, %v4342_v19 }
 0x3ea   :  { %v4385_v33 = vmax.f32 %v4285_v36, %v4339_v37 }
 0x3ec   :  { %v13378_v31 = vmax.f32 %v4401_v32, %v4385_v33  ;;  %v4402_v22 = vmax.f32 %v13327_v10, %v4385_v33  ;;  %v4403_v24 = vmax.f32 %v4385_v33, %v13376_v2 }
 0x3ee   :  { %v8082_v58 = vpack.i.bf16 %v13378_v31, %v13342_v9  ;;  %v4460_v56 = vrot.slane %v13378_v31, 1  ;;  %v13386_v35 = vmax.f32 %v4402_v22, %v13376_v2  ;;  %v4493_v15 = vrot.slane %v13378_v31, 2 }
 0x3f0   :  { %8083 = vrot.lane.b32.xlu0 %v8082_v58, %s8588_s0  ;;  %v4461_v42 = vsel %vm671_vm3, %v4458_v43, %v4460_v56  ;;  %v4462_v32 = vrot.slane %v13386_v35, 1  ;;  %v8087_v53 = vpack.i.bf16 %v13386_v35, %v13378_v31  ;;  %v4495_v17 = vrot.slane %v13386_v35, 2 }
 0x3f1   :  { %v8092_v40 = vpack.i.bf16 %v4461_v42, %v4459_v50  ;;  %v4494_v43 = vsel %vm14347_vm6, %v4491_v62, %v4493_v15 }
 0x3f2   :  { %v4463_v11 = vsel %vm671_vm3, %v4460_v56, %v4462_v32  ;;  %v8097_v16 = vpack.i.bf16 %v4494_v43, %v13362_v8  ;;  %v4496_v45 = vsel %vm14358_vm7, %v4493_v15, %v4495_v17  ;;  %vm14363_vm7 = vmmov %vm14347_vm6 }
 0x3f3   :  { %v6583_v10 = vpop.f32.mrb[48].mxu1  ;;  %8093 = vrot.lane.b32.xlu1 %v8092_v40, %s8585_s30  ;;  %v8102_v38 = vpack.i.bf16 %v4463_v11, %v4461_v42  ;;  %v8112_v62 = vpack.i.bf16 %v4496_v45, %v4494_v43 }
 0x3f4   :  { %v4067_v14 = vadd.f32 %v13155_v30, %v6583_v10  ;;  %v4058_v48 = vpop.f32.mrb[49].mxu1  ;;  %8088 = vrot.lane.b32.xlu0 %v8087_v53, %s8586_s21 }
 0x3f5   :  { %v4059_v29 = vadd.f32 %v13155_v30, %v4058_v48  ;;  %v6584_v50 = vpop.f32.mrb[50].mxu1 }
 0x3f6   :  { %8442 = vtanh.f32 %v4067_v14  ;;  %v4070_v60 = vadd.f32 %v13155_v30, %v6584_v50  ;;  %v4061_v21 = vpop.f32.mrb[51].mxu1 }
 0x3f7   :  { %8444 = vtanh.f32 %v4059_v29  ;;  %v4062_v41 = vadd.f32 %v13155_v30, %v4061_v21  ;;  %8103 = vrot.lane.b32.xlu1 %v8102_v38, %s8589_s16 }
 0x3f8   :  { %8446 = vtanh.f32 %v4070_v60  ;;  %8098 = vrot.lane.b32.xlu0 %v8097_v16, %s8587_s13 }
 0x3f9   :  { %8448 = vtanh.f32 %v4062_v41 }
 0x3fb   :  { %8113 = vrot.lane.b32.xlu1 %v8112_v62, %s8590_s23 }
 0x3fc   :  { %8108 = vrot.lane.b32.xlu0 %v8102_v38, %s8580_s28 }
 0x400   :  { %v8443_v7 = vpop.eup %8442  ;;  %8118 = vrot.lane.b32.xlu0 %v8112_v62, %s8583_s3 }
 0x401   :  { %v8445_v25 = vpop.eup %8444  ;;  %v4246_v8 = vrot.slane %v8443_v7, 1  ;;  %v4346_v13 = vrot.slane %v8443_v7, 2 }
 0x402   :  { %v8447_v30 = vpop.eup %8446  ;;  %v4243_v61 = vrot.slane %v8445_v25, 1  ;;  %v4343_v49 = vrot.slane %v8445_v25, 2 }
 0x403   :  { %v8449_v46 = vpop.eup %8448  ;;  %v4247_v28 = vrot.slane %v8447_v30, 1  ;;  %v4347_v44 = vrot.slane %v8447_v30, 2 }
 0x404   :  { %v4244_v26 = vrot.slane %v8449_v46, 1  ;;  %v4344_v52 = vrot.slane %v8449_v46, 2 }
 0x405   :  { %v4248_v0 = vsel %vm671_vm3, %v4246_v8, %v4247_v28  ;;  %v4348_v23 = vsel %vm14359_vm9, %v4346_v13, %v4347_v44  ;;  %vm14364_vm9 = vmmov %vm14347_vm6 }
 0x406   :  { %v4288_v20 = vmax.f32 %v8443_v7, %v4248_v0  ;;  %v4245_v59 = vsel %vm671_vm3, %v4243_v61, %v4244_v26  ;;  %v4345_v1 = vsel %vm14360_vm10, %v4343_v49, %v4344_v52  ;;  %vm14365_vm10 = vmmov %vm14347_vm6 }
 0x407   :  { %v4287_v19 = vmax.f32 %v8445_v25, %v4245_v59 }
 0x408   :  { %v4388_v12 = vmax.f32 %v4288_v20, %v4348_v23 }
 0x409   :  { %v4387_v5 = vmax.f32 %v4287_v19, %v4345_v1 }
 0x40b   :  { %v4404_v37 = vmax.f32 %v13376_v2, %v4387_v5  ;;  %v13417_v36 = vmax.f32 %v4403_v24, %v4387_v5 }
 0x40d   :  { %v8122_v33 = vpack.i.bf16 %v13417_v36, %v13386_v35  ;;  %v13421_v22 = vmax.f32 %v4404_v37, %v4388_v12  ;;  %v4464_v58 = vrot.slane %v13417_v36, 1  ;;  %v4497_v56 = vrot.slane %v13417_v36, 2 }
 0x40f   :  { %8123 = vrot.lane.b32.xlu1 %v8122_v33, %s8588_s0  ;;  %v8127_v15 = vpack.i.bf16 %v13421_v22, %v13417_v36  ;;  %v4465_v42 = vsel %vm671_vm3, %v4462_v32, %v4464_v58  ;;  %v4466_v2 = vrot.slane %v13421_v22, 1  ;;  %v4498_v24 = vsel %vm14361_vm11, %v4495_v17, %v4497_v56 }
 0x410   :  { %v8137_v40 = vpack.i.bf16 %v4465_v42, %v4463_v11  ;;  %v8132_v10 = vpack.i.bf16 %v8584_v57, %v13421_v22  ;;  %v4499_v48 = vrot.slane %v13421_v22, 2  ;;  %v8142_v32 = vpack.i.bf16 %v4498_v24, %v4496_v45 }
 0x411   :  { %8128 = vrot.lane.b32.xlu0 %v8127_v15, %s8586_s21  ;;  %v4467_v14 = vsel %vm671_vm3, %v4464_v58, %v4466_v2  ;;  %v4469_v38 = vsel %vm671_vm3, %v4466_v2, 0.0 }
 0x412   :  { %v8147_v50 = vpack.i.bf16 %v4467_v14, %v4465_v42  ;;  %v4500_v17 = vsel %vm14362_vm13, %v4497_v56, %v4499_v48  ;;  %v4502_v21 = vsel %vm14347_vm6, %v4499_v48, 0.0  ;;  %v8162_v16 = vpack.i.bf16 %v4469_v38, %v4467_v14 }
 0x413   :  { %8138 = vrot.lane.b32.xlu1 %v8137_v40, %s8585_s30  ;;  %v8157_v60 = vpack.i.bf16 %v4500_v17, %v4498_v24  ;;  %v8167_v41 = vpack.i.bf16 %v4502_v21, %v4500_v17  ;;  %v8172_v45 = vpack.i.bf16 %v8584_v57, %v4469_v38  ;;  %v8177_v62 = vpack.i.bf16 %v8584_v57, %v4502_v21 }
 0x414   :  { %v6587_v53 = vpop.f32.mrb[52].mxu1 }
 0x415   :  { %v4074_v43 = vpop.f32.mrb[53].mxu1  ;;  %8133 = vrot.lane.b32.xlu0 %v8132_v10, %s8588_s0  ;;  %v8001_v53 = vunpack.i.h.bf16 %v13267_v63 }
 0x416   :  { %v6588_v11 = vpop.f32.mrb[54].mxu1 }
 0x417   :  { %v4076_v29 = vpop.f32.mrb[55].mxu1  ;;  %8143 = vrot.lane.b32.xlu1 %v8142_v32, %s8587_s13 }
 0x419   :  { %8148 = vrot.lane.b32.xlu0 %v8147_v50, %s8589_s16 }
 0x41b   :  { %4579 = vrot.lane.b32.xlu1 %v4498_v24, %s8583_s3 }
 0x41d   :  { %8158 = vrot.lane.b32.xlu0 %v8157_v60, %s8590_s23 }
 0x41f   :  { %8153 = vrot.lane.b32.xlu1 %v8147_v50, %s8580_s28 }
 0x421   :  { %8168 = vrot.lane.b32.xlu0 %v8167_v41, %s8587_s13 }
 0x423   :  { %8163 = vrot.lane.b32.xlu1 %v8162_v16, %s8585_s30 }
 0x425   :  { %4534 = vrot.lane.b32.xlu0 %v4469_v38, %s8580_s28 }
 0x427   :  { %8173 = vrot.lane.b32.xlu1 %v8172_v45, %s8589_s16 }
 0x429   :  { %8183 = vrot.lane.b32.xlu0 %v8167_v41, %s8583_s3 }
 0x42b   :  { %8178 = vrot.lane.b32.xlu1 %v8177_v62, %s8590_s23 }
 0x430   :  { %v8004_v7 = vpop.permute.xlu0 %8003 }
 0x431   :  { %v8006_v1 = vunpack.i.h.bf16 %v8004_v7  ;;  %v8005_v19 = vunpack.i.l.bf16 %v8004_v7 }
 0x433   :  { %v8014_v30 = vpop.permute.xlu1 %8013 }
 0x434   :  { %v6591_v25 = vpop.f32.mrb[56].mxu1  ;;  %v8009_v8 = vpop.permute.xlu0 %8008  ;;  %v8016_v44 = vunpack.i.h.bf16 %v8014_v30  ;;  %v8015_v61 = vunpack.i.l.bf16 %v8014_v30 }
 0x435   :  { %v4086_v46 = vpop.f32.mrb[57].mxu1  ;;  %v8011_v42 = vunpack.i.h.bf16 %v8009_v8  ;;  %v8010_v40 = vunpack.i.l.bf16 %v8009_v8 }
 0x436   :  { %v6592_v28 = vpop.f32.mrb[58].mxu1  ;;  %v4986_v57 = vsel %vm4980_vm14, %v7971_v6, %v8016_v44  ;;  %v4985_v59 = vsel %vm4980_vm14, %v7970_v54, %v8015_v61  ;;  %v7991_v54 = vunpack.i.h.bf16 %v13254_v55 }
 0x437   :  { %v4088_v13 = vpop.f32.mrb[59].mxu1  ;;  %v8024_v26 = vpop.permute.xlu1 %8023 }
 0x438   :  { %v8019_v49 = vpop.permute.xlu0 %8018  ;;  %v8026_v52 = vunpack.i.h.bf16 %v8024_v26  ;;  %v8025_v0 = vunpack.i.l.bf16 %v8024_v26  ;;  %v4886_v55 = vsel %vm3333_vm8, %v12861_v39, %v7991_v54 }
 0x439   :  { %v8021_v23 = vunpack.i.h.bf16 %v8019_v49  ;;  %v8020_v20 = vunpack.i.l.bf16 %v8019_v49  ;;  %v4902_v17 = vsel %vm3593_vm12, %v4886_v55, %v8001_v53 }
 0x43a   :  { %v4937_v6 = vsel %vm4929_vm1, %v8006_v1, %v8026_v52  ;;  %v4936_v18 = vsel %vm4929_vm1, %v8005_v19, %v8025_v0  ;;  %v4919_v21 = vsel %vm4912_vm0, %v4902_v17, %v8005_v19 }
 0x43b   :  { %v5001_v12 = vsel %vm4996_vm15, %v4985_v59, %v8020_v20  ;;  %v5002_v5 = vsel %vm4996_vm15, %v4986_v57, %v8021_v23  ;;  %v8034_v37 = vpop.permute.xlu1 %8033 }
 0x43c   :  { %v5020_v33 = vpack.c.bf16 %v5002_v5, %v5001_v12  ;;  %v8036_v58 = vunpack.i.h.bf16 %v8034_v37  ;;  %v8035_v56 = vunpack.i.l.bf16 %v8034_v37  ;;  %v13462_v15 = vpop.permute.xlu0 %8028 }
 0x43d   :  { %v8030_v10 = vunpack.i.l.bf16 %v13462_v15  ;;  %v8031_v12 = vunpack.i.h.bf16 %v13462_v15 }
 0x43e   :  { %v4953_v2 = vsel %vm4946_vm2, %v4936_v18, %v8035_v56  ;;  %v4954_v24 = vsel %vm4946_vm2, %v4937_v6, %v8036_v58  ;;  %6615 = vmatprep.mubr.msk.bf16.mxu1 %vm5223_vm5, %v5020_v33 }
 0x43f   :  { %v4970_v14 = vsel %vm4963_vm4, %v4953_v2, %v8010_v40  ;;  %v4971_v48 = vsel %vm4963_vm4, %v4954_v24, %v8011_v42  ;;  %v4887_v50 = vsel %vm3333_vm8, %v12873_v47, %v8030_v10  ;;  %v4888_v15 = vsel %vm3333_vm8, %v13295_v3, %v8031_v12 }
 0x440   :  { %v8039_v43 = vpop.permute.xlu0 %8038  ;;  %v5022_v32 = vpack.c.bf16 %v4971_v48, %v4970_v14 }
 0x441   :  { %v8040_v11 = vunpack.i.l.bf16 %v8039_v43  ;;  %v8041_v58 = vunpack.i.h.bf16 %v8039_v43 }
 0x442   :  { %5307 = vmatprep.mubr.bf16.mxu0 %v5022_v32 }
 0x443   :  { %v8044_v29 = vpop.permute.xlu1 %8043  ;;  %v4903_v60 = vsel %vm3593_vm12, %v4887_v50, %v8040_v11  ;;  %v4904_v2 = vsel %vm3593_vm12, %v4888_v15, %v8041_v58 }
 0x444   :  { %v4920_v38 = vsel %vm4912_vm0, %v4903_v60, %v8006_v1  ;;  %v8046_v13 = vunpack.i.h.bf16 %v8044_v29  ;;  %v8045_v44 = vunpack.i.l.bf16 %v8044_v29 }
 0x445   :  { %v13480_v63 = vpop.permute.xlu0 %8048  ;;  %v5021_v41 = vpack.c.bf16 %v4920_v38, %v4919_v21 }
 0x446   :  { %v8051_v57 = vunpack.i.h.bf16 %v13480_v63  ;;  %v8050_v59 = vunpack.i.l.bf16 %v13480_v63  ;;  %v4921_v10 = vsel %vm4912_vm0, %v4904_v2, %v8045_v44 }
 0x447   :  { %v8054_v16 = vpop.permute.xlu1 %8053  ;;  %5308 = vmatmul.mubr.bf16.gmra.mrb[76].mxu0 %v5021_v41 }
 0x448   :  { %v8056_v45 = vunpack.i.h.bf16 %v8054_v16  ;;  %v8055_v62 = vunpack.i.l.bf16 %v8054_v16 }
 0x449   :  { %v8064_v39 = vpop.permute.xlu0 %8063 }
 0x44a   :  { %v8066_v25 = vunpack.i.h.bf16 %v8064_v39  ;;  %v8065_v47 = vunpack.i.l.bf16 %v8064_v39  ;;  %v4988_v8 = vsel %vm4980_vm14, %v8011_v42, %v8056_v45  ;;  %v4987_v28 = vsel %vm4980_vm14, %v8010_v40, %v8055_v62 }
 0x44b   :  { %v8059_v7 = vpop.permute.xlu1 %8058 }
 0x44c   :  { %v8061_v30 = vunpack.i.h.bf16 %v8059_v7  ;;  %v8060_v46 = vunpack.i.l.bf16 %v8059_v7  ;;  %v4938_v1 = vsel %vm4929_vm1, %v8045_v44, %v8065_v47  ;;  %v4939_v19 = vsel %vm4929_vm1, %v8046_v13, %v8066_v25 }
 0x44d   :  { %v8074_v49 = vpop.permute.xlu0 %8073 }
 0x44e   :  { %v5003_v61 = vsel %vm4996_vm15, %v4987_v28, %v8060_v46  ;;  %v5004_v26 = vsel %vm4996_vm15, %v4988_v8, %v8061_v30  ;;  %v8076_v0 = vunpack.i.h.bf16 %v8074_v49  ;;  %v8075_v23 = vunpack.i.l.bf16 %v8074_v49 }
 0x44f   :  { %v5023_v52 = vpack.c.bf16 %v5004_v26, %v5003_v61  ;;  %v13488_v20 = vpop.permute.xlu1 %8068 }
 0x450   :  { %v4955_v5 = vsel %vm4946_vm2, %v4938_v1, %v8075_v23  ;;  %v4956_v37 = vsel %vm4946_vm2, %v4939_v19, %v8076_v0  ;;  %v8070_v33 = vunpack.i.l.bf16 %v13488_v20  ;;  %v8071_v61 = vunpack.i.h.bf16 %v13488_v20 }
 0x451   :  { %6616 = vmatmul.mubr.msk.bf16.gmra.mrb[68].mxu1 %vm5223_vm5, %v5023_v52  ;;  %v4972_v56 = vsel %vm4963_vm4, %v4955_v5, %v8050_v59  ;;  %v4973_v42 = vsel %vm4963_vm4, %v4956_v37, %v8051_v57  ;;  %v13533_v37 = vld [vmem:[%s13891_s6] ss:$0 sm:$0xff] }
 0x452   :  { %v5025_v6 = vpack.c.bf16 %v4973_v42, %v4972_v56  ;;  %v4889_v54 = vsel %vm3333_vm8, %v13301_v4, %v8070_v33 }
 0x453   :  { %v13501_v40 = vpop.permute.xlu1 %8078 }
 0x454   :  { %v8080_v18 = vunpack.i.l.bf16 %v13501_v40  ;;  %5315 = vmatprep.mubr.bf16.mxu0 %v5025_v6  ;;  %v8081_v19 = vunpack.i.h.bf16 %v13501_v40  ;;  %v4890_v40 = vsel %vm3333_vm8, %v13334_v27, %v8071_v61 }
 0x456   :  { %v4905_v24 = vsel %vm3593_vm12, %v4889_v54, %v8080_v18  ;;  %v4906_v2 = vsel %vm3593_vm12, %v4890_v40, %v8081_v19 }
 0x457   :  { %v4922_v53 = vsel %vm4912_vm0, %v4905_v24, %v8046_v13 }
 0x458   :  { %v5024_v14 = vpack.c.bf16 %v4922_v53, %v4921_v10 }
 0x45a   :  { %5316 = vmatmul.mubr.bf16.gmra.mrb[80].mxu0 %v5024_v14 }
 0x45c   :  { %v6392_v48 = vpop.f32.mrb[64].mxu0 }
 0x45d   :  { %v6393_v43 = vpop.f32.mrb[65].mxu0 }
 0x45e   :  { %v6394_v32 = vadd.f32 %v6393_v43, %v6392_v48  ;;  %v6395_v11 = vpop.f32.mrb[66].mxu0 }
 0x45f   :  { %v6396_v29 = vpop.f32.mrb[67].mxu0 }
 0x460   :  { %v6397_v3 = vadd.f32 %v6396_v29, %v6395_v11  ;;  %v5286_v54 = vadd.f32 %v6394_v32, %v13533_v37 }
 0x462   :  { %v8084_v55 = vpop.permute.xlu0 %8083  ;;  %v5289_v29 = vadd.f32 %v6397_v3, %v13533_v37 }
 0x463   :  { %v6595_v50 = vpop.f32.mrb[60].mxu1  ;;  %v8086_v46 = vunpack.i.h.bf16 %v8084_v55  ;;  %v8085_v8 = vunpack.i.l.bf16 %v8084_v55 }
 0x464   :  { %v4098_v4 = vpop.f32.mrb[61].mxu1 }
 0x465   :  { %v8094_v17 = vpop.permute.xlu1 %8093  ;;  %v6596_v60 = vpop.f32.mrb[62].mxu1  ;;  %v4923_v32 = vsel %vm4912_vm0, %v4906_v2, %v8085_v8 }
 0x466   :  { %v13512_v63 = vpop.permute.xlu0 %8088  ;;  %v4100_v21 = vpop.f32.mrb[63].mxu1  ;;  %v8096_v38 = vunpack.i.h.bf16 %v8094_v17  ;;  %v8095_v41 = vunpack.i.l.bf16 %v8094_v17 }
 0x467   :  { %v8091_v23 = vunpack.i.h.bf16 %v13512_v63 }
 0x468   :  { %v4990_v47 = vsel %vm4980_vm14, %v8051_v57, %v8096_v38  ;;  %v4989_v30 = vsel %vm4980_vm14, %v8050_v59, %v8095_v41  ;;  %v8090_v57 = vunpack.i.l.bf16 %v13512_v63 }
 0x469   :  { %v8104_v16 = vpop.permute.xlu1 %8103 }
 0x46a   :  { %v8099_v45 = vpop.permute.xlu0 %8098  ;;  %v8106_v62 = vunpack.i.h.bf16 %v8104_v16  ;;  %v8105_v39 = vunpack.i.l.bf16 %v8104_v16 }
 0x46b   :  { %v8101_v7 = vunpack.i.h.bf16 %v8099_v45  ;;  %v8100_v25 = vunpack.i.l.bf16 %v8099_v45 }
 0x46c   :  { %v4941_v59 = vsel %vm4929_vm1, %v8086_v46, %v8106_v62  ;;  %v4940_v1 = vsel %vm4929_vm1, %v8085_v8, %v8105_v39 }
 0x46d   :  { %v5005_v28 = vsel %vm4996_vm15, %v4989_v30, %v8100_v25  ;;  %v5006_v13 = vsel %vm4996_vm15, %v4990_v47, %v8101_v7  ;;  %v8114_v44 = vpop.permute.xlu1 %8113 }
 0x46e   :  { %v5026_v26 = vpack.c.bf16 %v5006_v13, %v5005_v28  ;;  %v8116_v49 = vunpack.i.h.bf16 %v8114_v44  ;;  %v8115_v52 = vunpack.i.l.bf16 %v8114_v44  ;;  %v13519_v0 = vpop.permute.xlu0 %8108 }
 0x46f   :  { %v8110_v20 = vunpack.i.l.bf16 %v13519_v0 }
 0x470   :  { %v4957_v12 = vsel %vm4946_vm2, %v4940_v1, %v8115_v52  ;;  %v4958_v5 = vsel %vm4946_vm2, %v4941_v59, %v8116_v49  ;;  %6619 = vmatprep.mubr.msk.bf16.mxu1 %vm5223_vm5, %v5026_v26 }
 0x471   :  { %v4974_v33 = vsel %vm4963_vm4, %v4957_v12, %v8090_v57  ;;  %v4975_v58 = vsel %vm4963_vm4, %v4958_v5, %v8091_v23  ;;  %v4891_v24 = vsel %vm3333_vm8, %v13342_v9, %v8110_v20 }
 0x472   :  { %v13541_v56 = vpop.permute.xlu0 %8118  ;;  %v5028_v42 = vpack.c.bf16 %v4975_v58, %v4974_v33 }
 0x473   :  { %v8120_v6 = vunpack.i.l.bf16 %v13541_v56 }
 0x474   :  { %v6398_v18 = vpop.f32.mrb[68].mxu0  ;;  %v6613_v15 = vpop.f32.mrb[64].mxu1  ;;  %5323 = vmatprep.mubr.bf16.mxu0 %v5028_v42 }
 0x475   :  { %v6399_v10 = vpop.f32.mrb[69].mxu0  ;;  %v5382_v53 = vpop.f32.mrb[65].mxu1  ;;  %v4907_v14 = vsel %vm3593_vm12, %v4891_v24, %v8120_v6 }
 0x476   :  { %v6400_v48 = vadd.f32 %v6399_v10, %v6398_v18  ;;  %v5383_v43 = vadd.f32 %v5382_v53, %v5286_v54  ;;  %v6401_v11 = vpop.f32.mrb[70].mxu0  ;;  %v6614_v27 = vpop.f32.mrb[66].mxu1  ;;  %v4924_v4 = vsel %vm4912_vm0, %v4907_v14, %v8086_v46 }
 0x477   :  { %v6402_v55 = vpop.f32.mrb[71].mxu0  ;;  %v5385_v50 = vpop.f32.mrb[67].mxu1  ;;  %v5027_v21 = vpack.c.bf16 %v4924_v4, %v4923_v32 }
 0x478   :  { %v5294_v17 = vadd.f32 %v6400_v48, %v13533_v37  ;;  %8450 = vtanh.f32 %v5383_v43  ;;  %v6403_v9 = vadd.f32 %v6402_v55, %v6401_v11  ;;  %v5386_v60 = vadd.f32 %v5385_v50, %v5289_v29 }
 0x479   :  { %5324 = vmatmul.mubr.bf16.gmra.mrb[84].mxu0 %v5027_v21 }
 0x47a   :  { %v5391_v38 = vadd.f32 %v6613_v15, %v5294_v17  ;;  %v5297_v41 = vadd.f32 %v6403_v9, %v13533_v37  ;;  %8452 = vtanh.f32 %v5386_v60  ;;  %v8121_v17 = vunpack.i.h.bf16 %v13541_v56 }
 0x47c   :  { %8454 = vtanh.f32 %v5391_v38  ;;  %v5394_v16 = vadd.f32 %v6614_v27, %v5297_v41 }
 0x47e   :  { %8456 = vtanh.f32 %v5394_v16 }
 0x480   :  { %v6404_v3 = vpop.f32.mrb[72].mxu0 }
 0x481   :  { %v13556_v45 = vpop.permute.xlu1 %8123  ;;  %v6405_v62 = vpop.f32.mrb[73].mxu0 }
 0x482   :  { %v8451_v39 = vpop.eup %8450  ;;  %v13558_v7 = vadd.f32 %v6405_v62, %v6404_v3  ;;  %v6407_v25 = vpop.f32.mrb[74].mxu0  ;;  %v8126_v9 = vunpack.i.h.bf16 %v13556_v45  ;;  %v8125_v60 = vunpack.i.l.bf16 %v13556_v45 }
 0x483   :  { %v13560_v47 = vpop.permute.xlu0 %8128  ;;  %v6408_v30 = vpop.f32.mrb[75].mxu0  ;;  %v5477_v28 = vrot.slane %v8451_v39, 1  ;;  %v5541_v13 = vrot.slane %v8451_v39, 2 }
 0x484   :  { %v8453_v46 = vpop.eup %8452  ;;  %v13562_v8 = vadd.f32 %v6408_v30, %v6407_v25  ;;  %v8131_v16 = vunpack.i.h.bf16 %v13560_v47  ;;  %v8130_v3 = vunpack.i.l.bf16 %v13560_v47 }
 0x485   :  { %v5478_v44 = vrot.slane %v8453_v46, 1  ;;  %v5542_v61 = vrot.slane %v8453_v46, 2  ;;  %v8139_v26 = vpop.permute.xlu1 %8138 }
 0x486   :  { %v8455_v49 = vpop.eup %8454  ;;  %v8141_v52 = vunpack.i.h.bf16 %v8139_v26  ;;  %v8140_v59 = vunpack.i.l.bf16 %v8139_v26 }
 0x487   :  { %v5480_v1 = vrot.slane %v8455_v49, 1  ;;  %v13564_v19 = vpop.permute.xlu0 %8133  ;;  %v5479_v12 = vsel %vm671_vm3, %v5477_v28, %v5478_v44  ;;  %v5543_v5 = vsel %vm14363_vm7, %v5541_v13, %v5542_v61  ;;  %v5544_v20 = vrot.slane %v8455_v49, 2 }
 0x488   :  { %v13568_v33 = vpop.eup %8456  ;;  %v5525_v6 = vmax.f32 %v8451_v39, %v5479_v12  ;;  %v4992_v10 = vsel %vm4980_vm14, %v8091_v23, %v8141_v52  ;;  %v4991_v53 = vsel %vm4980_vm14, %v8090_v57, %v8140_v59  ;;  %v8111_v57 = vunpack.i.h.bf16 %v13519_v0 }
 0x489   :  { %v5482_v58 = vrot.slane %v13568_v33, 1  ;;  %v8144_v42 = vpop.permute.xlu1 %8143  ;;  %v5481_v40 = vsel %vm671_vm3, %v5478_v44, %v5480_v1  ;;  %v5545_v18 = vsel %vm14364_vm9, %v5542_v61, %v5544_v20  ;;  %v5546_v24 = vrot.slane %v13568_v33, 2 }
 0x48a   :  { %v8146_v15 = vunpack.i.h.bf16 %v8144_v42  ;;  %v8145_v54 = vunpack.i.l.bf16 %v8144_v42  ;;  %v5526_v2 = vmax.f32 %v8453_v46, %v5481_v40  ;;  %v5589_v43 = vmax.f32 %v5525_v6, %v5543_v5 }
 0x48b   :  { %v8149_v14 = vpop.permute.xlu0 %8148  ;;  %v5483_v48 = vsel %vm671_vm3, %v5480_v1, %v5482_v58  ;;  %v5547_v63 = vsel %vm14365_vm10, %v5544_v20, %v5546_v24  ;;  %v4892_v26 = vsel %vm3333_vm8, %v13378_v31, %v8111_v57 }
 0x48c   :  { %v5007_v11 = vsel %vm4996_vm15, %v4991_v53, %v8145_v54  ;;  %v5008_v27 = vsel %vm4996_vm15, %v4992_v10, %v8146_v15  ;;  %v8151_v29 = vunpack.i.h.bf16 %v8149_v14  ;;  %v8150_v55 = vunpack.i.l.bf16 %v8149_v14 }
 0x48d   :  { %v5029_v50 = vpack.c.bf16 %v5008_v27, %v5007_v11  ;;  %v4580_v32 = vpop.permute.xlu1 %4579  ;;  %v5527_v4 = vmax.f32 %v8455_v49, %v5483_v48  ;;  %v13588_v23 = vmax.f32 %v5526_v2, %v5545_v18  ;;  %v4908_v52 = vsel %vm3593_vm12, %v4892_v26, %v8121_v17  ;;  %v8226_v26 = vld [vmem:[%s13892_s7 + $0x30] ss:$8 sps:$4 sm:$0xff]  }
 0x48e   :  { %v4942_v0 = vsel %vm4929_vm1, %v8125_v60, %v8150_v55  ;;  %v4943_v56 = vsel %vm4929_vm1, %v8126_v9, %v8151_v29  ;;  %v4925_v42 = vsel %vm4912_vm0, %v4908_v52, %v8125_v60  ;;  %v8229_v52 = vld [vmem:[%s13892_s7 + $0x40] ss:$8 sps:$4 sm:$0xff]  }
 0x48f   :  { %v8159_v21 = vpop.permute.xlu0 %8158  ;;  %6620 = vmatmul.mubr.msk.bf16.gmra.mrb[72].mxu1 %vm5223_vm5, %v5029_v50  ;;  %v13595_v38 = vmax.f32 %v5527_v4, %v5547_v63  ;;  %v5605_v41 = vmax.f32 %v5589_v43, %v13588_v23  ;;  %v5035_v43 = vpack.c.bf16 %v13107_v51, %v13107_v51  ;;  %v8135_v4 = vunpack.i.l.bf16 %v13564_v19 }
 0x490   :  { %v8161_v62 = vunpack.i.h.bf16 %v8159_v21  ;;  %v8160_v39 = vunpack.i.l.bf16 %v8159_v21 }
 0x491   :  { %v8154_v25 = vpop.permute.xlu1 %8153  ;;  %v5606_v45 = vmax.f32 %v13588_v23, %v13595_v38  ;;  %v13605_v30 = vmax.f32 %v5605_v41, %v13595_v38 }
 0x492   :  { %v4959_v46 = vsel %vm4946_vm2, %v4942_v0, %v8160_v39  ;;  %v4960_v28 = vsel %vm4946_vm2, %v4943_v56, %v8161_v62  ;;  %v8155_v13 = vunpack.i.l.bf16 %v8154_v25  ;;  %v8156_v2 = vunpack.i.h.bf16 %v8154_v25  ;;  %v8217_v25 = vld [vmem:[%s13892_s7] ss:$8 sps:$4 sm:$0xff]  }
 0x493   :  { %v8169_v44 = vpop.permute.xlu0 %8168  ;;  %v4976_v47 = vsel %vm4963_vm4, %v4959_v46, %v8130_v3  ;;  %v4977_v61 = vsel %vm4963_vm4, %v4960_v28, %v8131_v16  ;;  %v8219_v46 = vld [vmem:[%s13892_s7 + $0x4] ss:$8 sps:$4 sm:$0xff]   ;;  %v8222_v28 = vld [vmem:[%s13892_s7 + $0x14] ss:$8 sps:$4 sm:$0xff]  }
 0x494   :  { %v4893_v49 = vsel %vm3333_vm8, %v13386_v35, %v8155_v13  ;;  %v5031_v1 = vpack.c.bf16 %v4977_v61, %v4976_v47  ;;  %v8171_v6 = vunpack.i.h.bf16 %v8169_v44  ;;  %v8170_v18 = vunpack.i.l.bf16 %v8169_v44  ;;  %5741 = vmatprep.subr.bf16.mxu1 %v8219_v46  ;;  %v8225_v13 = vld [vmem:[%s13892_s7 + $0x24] ss:$8 sps:$4 sm:$0xff]   ;;  %v8223_v47 = vld [vmem:[%s13892_s7 + $0x20] ss:$8 sps:$4 sm:$0xff]   ;;  %v8228_v61 = vld [vmem:[%s13892_s7 + $0x34] ss:$8 sps:$4 sm:$0xff]  }
 0x495   :  { %v8164_v59 = vpop.permute.xlu1 %8163  ;;  %v4909_v12 = vsel %vm3593_vm12, %v4893_v49, %v4580_v32  ;;  %v8136_v32 = vunpack.i.h.bf16 %v13564_v19  ;;  %v4894_v63 = vsel %vm3333_vm8, %v13417_v36, %v8156_v2  ;;  %5742 = vmatpush1.bf16.msra.mxu1 %v8217_v25  ;;  %v8591_v44 = vmov 0   ;;  %v8231_v49 = vld [vmem:[%s13892_s7 + $0x44] ss:$8 sps:$4 sm:$0xff]  }
 0x496   :  { %v8166_v5 = vunpack.i.h.bf16 %v8164_v59  ;;  %v8165_v20 = vunpack.i.l.bf16 %v8164_v59  ;;  %v4926_v40 = vsel %vm4912_vm0, %v4909_v12, %v8126_v9  ;;  %5331 = vmatprep.mubr.bf16.mxu0 %v5031_v1  ;;  %5743 = vmatprep.subr.bf16.mxu1 %v8222_v28 }
 0x497   :  { %v4535_v15 = vpop.permute.xlu0 %4534  ;;  %v5030_v31 = vpack.c.bf16 %v4926_v40, %v4925_v42  ;;  %6013 = vmatprep.subr.bf16.mxu0 %v8591_v44 }
 0x498   :  { %v4994_v54 = vsel %vm4980_vm14, %v8131_v16, %v8166_v5  ;;  %v4993_v35 = vsel %vm4980_vm14, %v8130_v3, %v8165_v20  ;;  %v4895_v57 = vsel %vm3333_vm8, %v13421_v22, %v4535_v15 }
 0x499   :  { %v8174_v10 = vpop.permute.xlu1 %8173  ;;  %5332 = vmatmul.mubr.bf16.gmra.mrb[88].mxu0 %v5030_v31  ;;  %v5009_v53 = vsel %vm4996_vm15, %v4993_v35, %v8170_v18  ;;  %v5010_v14 = vsel %vm4996_vm15, %v4994_v54, %v8171_v6  ;;  %v5302_v18 = vadd.f32 %v13558_v7, %v13533_v37  ;;  %v8233_v7 = vld [vmem:[%s13894_s9 + $0x8] sm:$0xff]  }
 0x49a   :  { %v5032_v48 = vpack.c.bf16 %v5010_v14, %v5009_v53  ;;  %v8176_v11 = vunpack.i.h.bf16 %v8174_v10  ;;  %v8175_v27 = vunpack.i.l.bf16 %v8174_v10  ;;  %v5305_v10 = vadd.f32 %v13562_v8, %v13533_v37  ;;  %v8232_v53 = vld [vmem:[%s13894_s9] sm:$0xff]   ;;  %v8234_v8 = vld [vmem:[%s13894_s9 + $0x10] sm:$0xff]  }
 0x49b   :  { %v8184_v29 = vpop.permute.xlu0 %8183  ;;  %6014 = vmatpush1.bf16.msra.mxu0 %v8232_v53 }
 0x49c   :  { %v8186_v55 = vunpack.i.h.bf16 %v8184_v29  ;;  %v8185_v50 = vunpack.i.l.bf16 %v8184_v29  ;;  %6623 = vmatprep.mubr.msk.bf16.mxu1 %vm5223_vm5, %v5032_v48  ;;  %v4945_v41 = vsel %vm4929_vm1, %v8136_v32, %v8176_v11  ;;  %v4944_v16 = vsel %vm4929_vm1, %v8135_v4, %v8175_v27  ;;  %6015 = vmatprep.subr.bf16.mxu0 %v8591_v44 }
 0x49d   :  { %v8179_v17 = vpop.permute.xlu1 %8178  ;;  %6624 = vmatmul.mubr.msk.bf16.gmra.mrb[76].mxu1 %vm5223_vm5, %v5035_v43 }
 0x49e   :  { %v4911_v51 = vsel %vm3593_vm12, %v4895_v57, %v8186_v55  ;;  %v4910_v9 = vsel %vm3593_vm12, %v4894_v63, %v8185_v50  ;;  %v8181_v60 = vunpack.i.h.bf16 %v8179_v17  ;;  %v8180_v21 = vunpack.i.l.bf16 %v8179_v17  ;;  %5773 = vmatprep.mubr.bf16.mxu1 %v8591_v44 }
 0x49f   :  { %v4927_v3 = vsel %vm4912_vm0, %v4910_v9, %v8135_v4  ;;  %v4928_v22 = vsel %vm4912_vm0, %v4911_v51, %v8136_v32  ;;  %6016 = vmatpush1.bf16.msra.mxu0 %v8233_v7  ;;  %v8235_v32 = vld [vmem:[%s13894_s9 + $0x18] sm:$0xff]   ;;  %vm14366_vm0 = vmmov %vm14347_vm6 }
 0x4a0   :  { %v4961_v19 = vsel %vm4946_vm2, %v4944_v16, %v8180_v21  ;;  %v4962_v36 = vsel %vm4946_vm2, %v4945_v41, %v8181_v60  ;;  %v5033_v56 = vpack.c.bf16 %v4928_v22, %v4927_v3  ;;  %6017 = vmatprep.subr.bf16.mxu0 %v8591_v44  ;;  %vm14368_vm8 = vmmov %vm14366_vm0 }
 0x4a1   :  { %v4978_v62 = vsel %vm4963_vm4, %v4961_v19, %v13102_v34  ;;  %v4979_v39 = vsel %vm4963_vm4, %v4962_v36, %v13102_v34  ;;  %v8220_v34 = vld [vmem:[%s13892_s7 + $0x10] ss:$8 sps:$4 sm:$0xff]   ;;  %v8236_v36 = vld [vmem:[%s13894_s9 + $0x20] sm:$0xff]   ;;  %vm14367_vm4 = vmmov %vm14366_vm0 }
 0x4a2   :  { %v5034_v0 = vpack.c.bf16 %v4979_v39, %v4978_v62  ;;  %5744 = vmatpush1.bf16.msra.mxu1 %v8220_v34  ;;  %vm14369_vm14 = vmmov %vm14366_vm0 }
 0x4a3   :  { %5745 = vmatprep.subr.bf16.mxu1 %v8225_v13  ;;  %6018 = vmatpush1.bf16.msra.mxu0 %v8234_v8  ;;  %vm14370_vm15 = vmmov %vm14366_vm0 }
 0x4a4   :  { %5339 = vmatprep.mubr.bf16.mxu0 %v5034_v0  ;;  %6019 = vmatprep.subr.bf16.mxu0 %v8591_v44  ;;  %vm14371_vm2 = vmmov %vm14366_vm0 }
 0x4a5   :  { %5340 = vmatmul.mubr.bf16.gmra.mrb[92].mxu0 %v5033_v56  ;;  %vm14372_vm5 = vmmov %vm14366_vm0 }
 0x4a6   :  { %5746 = vmatpush1.bf16.msra.mxu1 %v8223_v47  ;;  %vm14373_vm11 = vmmov %vm14366_vm0 }
 0x4a7   :  { %5747 = vmatprep.subr.bf16.mxu1 %v8228_v61  ;;  %6020 = vmatpush1.bf16.msra.mxu0 %v8235_v32  ;;  %vm14374_vm13 = vmmov %vm14366_vm0 }
 0x4a8   :  { %6021 = vmatprep.subr.bf16.mxu0 %v8591_v44  ;;  %vm14375_vm6 = vmmov %vm14366_vm0 }
 0x4a9   :  { %vm14376_vm7 = vmmov %vm14366_vm0 }
 0x4aa   :  { %5748 = vmatpush1.bf16.msra.mxu1 %v8226_v26  ;;  %vm14377_vm9 = vmmov %vm14366_vm0 }
 0x4ab   :  { %5749 = vmatprep.subr.bf16.mxu1 %v8231_v49  ;;  %6022 = vmatpush1.bf16.msra.mxu0 %v8236_v36  ;;  %vm14378_vm10 = vmmov %vm14366_vm0 }
 0x4ac   :  { %6023 = vmatprep.subr.bf16.mxu0 %v8591_v44 }
 0x4ae   :  { %5750 = vmatpush1.bf16.msra.mxu1 %v8229_v52 }
 0x51a   :  { %v6410_v59 = vpop.f32.mrb[76].mxu0 }
 0x51b   :  { %v6411_v1 = vpop.f32.mrb[77].mxu0 }
 0x51c   :  { %v6412_v12 = vadd.f32 %v6411_v1, %v6410_v59  ;;  %v6413_v5 = vpop.f32.mrb[78].mxu0 }
 0x51d   :  { %v6414_v20 = vpop.f32.mrb[79].mxu0 }
 0x51e   :  { %v6415_v42 = vadd.f32 %v6414_v20, %v6413_v5  ;;  %v5310_v40 = vadd.f32 %v6412_v12, %v13533_v37 }
 0x520   :  { %v5313_v54 = vadd.f32 %v6415_v42, %v13533_v37 }
 0x524   :  { %v6617_v6 = vpop.f32.mrb[68].mxu1 }
 0x525   :  { %v5407_v15 = vadd.f32 %v6617_v6, %v5310_v40  ;;  %v5398_v31 = vpop.f32.mrb[69].mxu1 }
 0x526   :  { %v5399_v35 = vadd.f32 %v5398_v31, %v5302_v18  ;;  %v6618_v2 = vpop.f32.mrb[70].mxu1 }
 0x527   :  { %8458 = vtanh.f32 %v5407_v15  ;;  %v5410_v14 = vadd.f32 %v6618_v2, %v5313_v54  ;;  %v5401_v48 = vpop.f32.mrb[71].mxu1 }
 0x528   :  { %8460 = vtanh.f32 %v5399_v35  ;;  %v5402_v43 = vadd.f32 %v5401_v48, %v5305_v10 }
 0x529   :  { %8462 = vtanh.f32 %v5410_v14 }
 0x52a   :  { %8464 = vtanh.f32 %v5402_v43 }
 0x52d   :  { %v6416_v11 = vpop.f32.mrb[80].mxu0 }
 0x52e   :  { %v6417_v27 = vpop.f32.mrb[81].mxu0 }
 0x52f   :  { %v6418_v29 = vadd.f32 %v6417_v27, %v6416_v11  ;;  %v6419_v55 = vpop.f32.mrb[82].mxu0 }
 0x530   :  { %v6420_v50 = vpop.f32.mrb[83].mxu0 }
 0x531   :  { %v8459_v4 = vpop.eup %8458  ;;  %v6421_v63 = vadd.f32 %v6420_v50, %v6419_v55  ;;  %v5318_v2 = vadd.f32 %v6418_v29, %v13533_v37 }
 0x532   :  { %v8461_v57 = vpop.eup %8460  ;;  %v5488_v21 = vrot.slane %v8459_v4, 1  ;;  %v5552_v41 = vrot.slane %v8459_v4, 2 }
 0x533   :  { %v13698_v17 = vpop.eup %8462  ;;  %v5484_v51 = vrot.slane %v8461_v57, 1  ;;  %v5548_v9 = vrot.slane %v8461_v57, 2  ;;  %v5321_v7 = vadd.f32 %v6421_v63, %v13533_v37 }
 0x534   :  { %v8465_v60 = vpop.eup %8464  ;;  %v5490_v16 = vrot.slane %v13698_v17, 1  ;;  %v5554_v19 = vrot.slane %v13698_v17, 2 }
 0x535   :  { %v5485_v3 = vsel %vm671_vm3, %v5482_v58, %v5484_v51  ;;  %v5549_v22 = vsel %vm14366_vm0, %v5546_v24, %v5548_v9  ;;  %v5486_v62 = vrot.slane %v8465_v60, 1  ;;  %v5550_v39 = vrot.slane %v8465_v60, 2 }
 0x536   :  { %v5528_v0 = vmax.f32 %v13568_v33, %v5485_v3  ;;  %v5491_v56 = vsel %vm671_vm3, %v5488_v21, %v5490_v16  ;;  %v5555_v25 = vsel %vm14367_vm4, %v5552_v41, %v5554_v19 }
 0x537   :  { %v5487_v58 = vsel %vm671_vm3, %v5484_v51, %v5486_v62  ;;  %v5489_v46 = vsel %vm671_vm3, %v5486_v62, %v5488_v21  ;;  %v5551_v24 = vsel %vm14368_vm8, %v5548_v9, %v5550_v39  ;;  %v5553_v28 = vsel %vm14369_vm14, %v5550_v39, %v5552_v41 }
 0x538   :  { %v5592_v34 = vmax.f32 %v5528_v0, %v5549_v22  ;;  %v5529_v13 = vmax.f32 %v8461_v57, %v5487_v58  ;;  %v5530_v47 = vmax.f32 %v8465_v60, %v5489_v46  ;;  %v5531_v33 = vmax.f32 %v8459_v4, %v5491_v56 }
 0x539   :  { %vm6145_vm8 = vcmask 1040384   ;;  %vm6147_vm14 = vcmask 197632  }
 0x53a   :  { %v5622_v61 = vmax.f32 %v5606_v45, %v5592_v34  ;;  %v5593_v26 = vmax.f32 %v5529_v13, %v5551_v24  ;;  %v13727_v49 = vmax.f32 %v5530_v47, %v5553_v28  ;;  %v5607_v52 = vmax.f32 %v13595_v38, %v5592_v34 }
 0x53b   :  { %v13730_v59 = vmax.f32 %v5531_v33, %v5555_v25 }
 0x53c   :  { %v5637_v1 = vpack.c.bf16 %v5622_v61, %v13605_v30  ;;  %v5608_v12 = vmax.f32 %v5592_v34, %v5593_v26  ;;  %v5623_v5 = vmax.f32 %v5607_v52, %v5593_v26  ;;  %v5609_v20 = vmax.f32 %v5593_v26, %v13727_v49 }
 0x53d   :  { %v5610_v42 = vmax.f32 %v13727_v49, %v13730_v59 }
 0x53e   :  { %6278 = vmatmul.mubr.msk.bf16.vlgmr.msra.gmra.mrb[80].mxu1 %vm3593_vm12, %v5637_v1  ;;  %v5624_v23 = vmax.f32 %v5608_v12, %v13727_v49  ;;  %v13739_v45 = vmax.f32 %v5609_v20, %v13730_v59 }
 0x53f   :  { %5783 = vmatprep.mubr.bf16.mxu1 %v8591_v44 }
 0x540   :  { %v5638_v38 = vpack.c.bf16 %v5624_v23, %v5623_v5 }
 0x546   :  { %6279 = vmatmul.mubr.msk.bf16.gmra.mrb[84].mxu1 %vm3593_vm12, %v5638_v38 }
 0x547   :  { %5793 = vmatprep.mubr.bf16.mxu1 %v8591_v44 }
 0x54c   :  { %v6422_v30 = vpop.f32.mrb[84].mxu0 }
 0x54d   :  { %v6423_v40 = vpop.f32.mrb[85].mxu0 }
 0x54e   :  { %v6424_v6 = vadd.f32 %v6423_v40, %v6422_v30  ;;  %v6425_v18 = vpop.f32.mrb[86].mxu0 }
 0x54f   :  { %v6426_v15 = vpop.f32.mrb[87].mxu0 }
 0x550   :  { %v6427_v31 = vadd.f32 %v6426_v15, %v6425_v18  ;;  %v5326_v54 = vadd.f32 %v6424_v6, %v13533_v37 }
 0x552   :  { %v5329_v14 = vadd.f32 %v6427_v31, %v13533_v37 }
 0x562   :  { %v6621_v35 = vpop.f32.mrb[72].mxu1 }
 0x563   :  { %v5423_v10 = vadd.f32 %v6621_v35, %v5326_v54  ;;  %v5414_v53 = vpop.f32.mrb[73].mxu1 }
 0x564   :  { %v5415_v48 = vadd.f32 %v5414_v53, %v5318_v2  ;;  %v6622_v43 = vpop.f32.mrb[74].mxu1 }
 0x565   :  { %8466 = vtanh.f32 %v5423_v10  ;;  %v5426_v8 = vadd.f32 %v6622_v43, %v5329_v14  ;;  %v5417_v11 = vpop.f32.mrb[75].mxu1 }
 0x566   :  { %8468 = vtanh.f32 %v5415_v48  ;;  %v5418_v27 = vadd.f32 %v5417_v11, %v5321_v7 }
 0x567   :  { %8470 = vtanh.f32 %v5426_v8 }
 0x568   :  { %8472 = vtanh.f32 %v5418_v27 }
 0x56c   :  { %v6428_v55 = vpop.f32.mrb[88].mxu0 }
 0x56d   :  { %v6429_v50 = vpop.f32.mrb[89].mxu0 }
 0x56e   :  { %v6430_v32 = vadd.f32 %v6429_v50, %v6428_v55  ;;  %v6431_v4 = vpop.f32.mrb[90].mxu0 }
 0x56f   :  { %v8467_v29 = vpop.eup %8466  ;;  %v6432_v57 = vpop.f32.mrb[91].mxu0 }
 0x570   :  { %v8469_v51 = vpop.eup %8468  ;;  %v6433_v9 = vadd.f32 %v6432_v57, %v6431_v4  ;;  %v6625_v60 = vpop.f32.mrb[76].mxu1  ;;  %v5334_v21 = vadd.f32 %v6430_v32, %v13533_v37  ;;  %v5496_v22 = vrot.slane %v8467_v29, 1  ;;  %v5560_v62 = vrot.slane %v8467_v29, 2 }
 0x571   :  { %v13749_v41 = vpop.eup %8470  ;;  %v5430_v63 = vpop.f32.mrb[77].mxu1  ;;  %v5492_v36 = vrot.slane %v8469_v51, 1  ;;  %v5556_v3 = vrot.slane %v8469_v51, 2 }
 0x572   :  { %v8473_v39 = vpop.eup %8472  ;;  %v5431_v0 = vadd.f32 %v5430_v63, %v5334_v21  ;;  %v6626_v56 = vpop.f32.mrb[78].mxu1  ;;  %v5337_v25 = vadd.f32 %v6433_v9, %v13533_v37  ;;  %v5498_v58 = vrot.slane %v13749_v41, 1  ;;  %v5562_v46 = vrot.slane %v13749_v41, 2 }
 0x573   :  { %v5433_v24 = vpop.f32.mrb[79].mxu1  ;;  %v5493_v28 = vsel %vm671_vm3, %v5490_v16, %v5492_v36  ;;  %v5557_v34 = vsel %vm14370_vm15, %v5554_v19, %v5556_v3  ;;  %v5494_v13 = vrot.slane %v8473_v39, 1  ;;  %v5558_v47 = vrot.slane %v8473_v39, 2 }
 0x574   :  { %8474 = vtanh.f32 %v5431_v0  ;;  %v5434_v33 = vadd.f32 %v5433_v24, %v5337_v25  ;;  %v5532_v61 = vmax.f32 %v13698_v17, %v5493_v28  ;;  %v5499_v26 = vsel %vm671_vm3, %v5496_v22, %v5498_v58 }
 0x575   :  { %v5495_v52 = vsel %vm671_vm3, %v5492_v36, %v5494_v13  ;;  %v5497_v1 = vsel %vm671_vm3, %v5494_v13, %v5496_v22  ;;  %v5559_v12 = vsel %vm14371_vm2, %v5556_v3, %v5558_v47  ;;  %v5561_v16 = vsel %vm14372_vm5, %v5558_v47, %v5560_v62 }
 0x576   :  { %8476 = vtanh.f32 %v5434_v33  ;;  %v5596_v5 = vmax.f32 %v5532_v61, %v5557_v34  ;;  %v5533_v20 = vmax.f32 %v8469_v51, %v5495_v52  ;;  %v5534_v19 = vmax.f32 %v8473_v39, %v5497_v1 }
 0x577   :  { %v5535_v23 = vmax.f32 %v8467_v29, %v5499_v26  ;;  %v5563_v38 = vsel %vm14373_vm11, %v5560_v62, %v5562_v46 }
 0x578   :  { %v6434_v30 = vpop.f32.mrb[92].mxu0  ;;  %v5626_v17 = vmax.f32 %v5610_v42, %v5596_v5  ;;  %v5597_v40 = vmax.f32 %v5533_v20, %v5559_v12  ;;  %v5598_v6 = vmax.f32 %v5534_v19, %v5561_v16  ;;  %v5611_v18 = vmax.f32 %v13730_v59, %v5596_v5 }
 0x579   :  { %v6435_v15 = vpop.f32.mrb[93].mxu0  ;;  %v5599_v31 = vmax.f32 %v5535_v23, %v5563_v38 }
 0x57a   :  { %v6436_v54 = vadd.f32 %v6435_v15, %v6434_v30  ;;  %v6437_v35 = vpop.f32.mrb[94].mxu0  ;;  %v5639_v2 = vpack.c.bf16 %v5626_v17, %v13739_v45  ;;  %v5612_v10 = vmax.f32 %v5596_v5, %v5597_v40  ;;  %v5627_v53 = vmax.f32 %v5611_v18, %v5597_v40  ;;  %v8237_v18 = vld [vmem:[%s13894_s9 + $0x28] sm:$0xff]  }
 0x57b   :  { %v6438_v14 = vpop.f32.mrb[95].mxu0  ;;  %v5613_v48 = vmax.f32 %v5597_v40, %v5598_v6  ;;  %v5614_v43 = vmax.f32 %v5598_v6, %v5599_v31  ;;  %6024 = vmatpush1.bf16.msra.mxu0 %v8237_v18 }
 0x57c   :  { %v5342_v7 = vadd.f32 %v6436_v54, %v13533_v37  ;;  %v6439_v8 = vadd.f32 %v6438_v14, %v6437_v35  ;;  %6280 = vmatmul.mubr.msk.bf16.gmra.mrb[88].mxu1 %vm3593_vm12, %v5639_v2  ;;  %v5628_v49 = vmax.f32 %v5612_v10, %v5598_v6  ;;  %v8238_v35 = vld [vmem:[%s13894_s9 + $0x30] sm:$0xff]   ;;  %6025 = vmatprep.subr.bf16.mxu0 %v8591_v44  ;;  %v8240_v14 = vld [vmem:[%s13894_s9 + $0x40] sm:$0xff]  }
 0x57d   :  { %5803 = vmatprep.mubr.bf16.mxu1 %v8591_v44  ;;  %v5629_v59 = vmax.f32 %v5613_v48, %v5599_v31  ;;  %v8241_v48 = vld [vmem:[%s13894_s9 + $0x48] sm:$0xff]  }
 0x57e   :  { %v8475_v42 = vpop.eup %8474  ;;  %v5439_v11 = vadd.f32 %v6625_v60, %v5342_v7  ;;  %v5345_v27 = vadd.f32 %v6439_v8, %v13533_v37  ;;  %v5640_v55 = vpack.c.bf16 %v5628_v49, %v5627_v53  ;;  %v8239_v53 = vld [vmem:[%s13894_s9 + $0x38] sm:$0xff]   ;;  %v5655_v49 = vld [vmem:[%s13893_s8] sm:$0x3] }
 0x57f   :  { %v5500_v45 = vrot.slane %v8475_v42, 1  ;;  %v5564_v50 = vrot.slane %v8475_v42, 2  ;;  %6026 = vmatpush1.bf16.msra.mxu0 %v8238_v35 }
 0x580   :  { %v8477_v32 = vpop.eup %8476  ;;  %8478 = vtanh.f32 %v5439_v11  ;;  %v5442_v4 = vadd.f32 %v6626_v56, %v5345_v27  ;;  %6027 = vmatprep.subr.bf16.mxu0 %v8591_v44 }
 0x581   :  { %v5501_v29 = vsel %vm671_vm3, %v5498_v58, %v5500_v45  ;;  %v5565_v57 = vsel %vm14374_vm13, %v5562_v46, %v5564_v50  ;;  %v5502_v51 = vrot.slane %v8477_v32, 1  ;;  %v5566_v9 = vrot.slane %v8477_v32, 2 }
 0x582   :  { %8480 = vtanh.f32 %v5442_v4  ;;  %v5536_v21 = vmax.f32 %v13749_v41, %v5501_v29 }
 0x583   :  { %v5503_v63 = vsel %vm671_vm3, %v5500_v45, %v5502_v51  ;;  %v5567_v60 = vsel %vm14375_vm6, %v5564_v50, %v5566_v9  ;;  %6028 = vmatpush1.bf16.msra.mxu0 %v8239_v53 }
 0x584   :  { %6281 = vmatmul.mubr.msk.bf16.gmra.mrb[92].mxu1 %vm3593_vm12, %v5640_v55  ;;  %v5600_v37 = vmax.f32 %v5536_v21, %v5565_v57  ;;  %v5537_v36 = vmax.f32 %v8475_v42, %v5503_v63  ;;  %6029 = vmatprep.subr.bf16.mxu0 %v8591_v44 }
 0x585   :  { %5813 = vmatprep.mubr.bf16.mxu1 %v8591_v44 }
 0x586   :  { %v5630_v3 = vmax.f32 %v5614_v43, %v5600_v37  ;;  %v5601_v22 = vmax.f32 %v5537_v36, %v5567_v60  ;;  %v5615_v62 = vmax.f32 %v5599_v31, %v5600_v37  ;;  %v5657_v43 = vlaneseq }
 0x587   :  { %6030 = vmatpush1.bf16.msra.mxu0 %v8240_v14 }
 0x588   :  { %v5641_v39 = vpack.c.bf16 %v5630_v3, %v5629_v59  ;;  %v5616_v0 = vmax.f32 %v5600_v37, %v5601_v22  ;;  %v5631_v56 = vmax.f32 %v5615_v62, %v5601_v22  ;;  %6031 = vmatprep.subr.bf16.mxu0 %v8591_v44  ;;  %v5658_v7 = vshrl.u32 %v5657_v43, 7 }
 0x58a   :  { %v8479_v25 = vpop.eup %8478  ;;  %v5659_v8 = vsub.s32 0, %v5658_v7  ;;  %v5663_v59 = vsub.s32 1, %v5658_v7 }
 0x58b   :  { %v5504_v58 = vrot.slane %v8479_v25, 1  ;;  %v5568_v46 = vrot.slane %v8479_v25, 2  ;;  %6032 = vmatpush1.bf16.msra.mxu0 %v8241_v48 }
 0x58c   :  { %v8481_v41 = vpop.eup %8480  ;;  %6282 = vmatmul.mubr.msk.bf16.gmra.mrb[96].mxu1 %vm3593_vm12, %v5641_v39  ;;  %v13818_v42 = vrot.slane %v5655_v49, %v5659_v8  ;;  %v13820_v11 = vrot.slane %v5655_v49, %v5663_v59 }
 0x58d   :  { %5823 = vmatprep.mubr.bf16.mxu1 %v8591_v44  ;;  %v5505_v24 = vsel %vm671_vm3, %v5502_v51, %v5504_v58  ;;  %v5569_v28 = vsel %vm14376_vm7, %v5566_v9, %v5568_v46  ;;  %v5506_v34 = vrot.slane %v8481_v41, 1  ;;  %v5570_v13 = vrot.slane %v8481_v41, 2 }
 0x58e   :  { %v5538_v47 = vmax.f32 %v8477_v32, %v5505_v24 }
 0x58f   :  { %v5507_v33 = vsel %vm671_vm3, %v5504_v58, %v5506_v34  ;;  %v5524_v61 = vsel %vm671_vm3, %v5506_v34, 0.0  ;;  %v5571_v26 = vsel %vm14377_vm9, %v5568_v46, %v5570_v13  ;;  %v5588_v16 = vsel %vm14378_vm10, %v5570_v13, 0.0 }
 0x590   :  { %v5602_v52 = vmax.f32 %v5538_v47, %v5569_v28  ;;  %v5539_v1 = vmax.f32 %v8479_v25, %v5507_v33  ;;  %v5540_v12 = vmax.f32 %v8481_v41, %v5524_v61  ;;  %vm14379_vm3 = vcmask 1043456  }
 0x592   :  { %v5632_v5 = vmax.f32 %v5616_v0, %v5602_v52  ;;  %v5603_v20 = vmax.f32 %v5539_v1, %v5571_v26  ;;  %v5604_v19 = vmax.f32 %v5540_v12, %v5588_v16  ;;  %v5617_v23 = vmax.f32 %v5601_v22, %v5602_v52 }
 0x594   :  { %v5642_v38 = vpack.c.bf16 %v5632_v5, %v5631_v56  ;;  %v5618_v30 = vmax.f32 %v5602_v52, %v5603_v20  ;;  %v5633_v17 = vmax.f32 %v5617_v23, %v5603_v20  ;;  %v5619_v40 = vmax.f32 %v5603_v20, %v5604_v19 }
 0x595   :  { %v5620_v6 = vmax.f32 %v5604_v19, 0.0 }
 0x596   :  { %6283 = vmatmul.mubr.msk.bf16.gmra.mrb[100].mxu1 %vm3593_vm12, %v5642_v38  ;;  %v5634_v15 = vmax.f32 %v5618_v30, %v5604_v19  ;;  %v5635_v31 = vmax.f32 %v5619_v40, 0.0 }
 0x597   :  { %5833 = vmatprep.mubr.bf16.mxu1 %v8591_v44  ;;  %v5636_v54 = vmax.f32 %v5620_v6, 0.0 }
 0x598   :  { %v5643_v2 = vpack.c.bf16 %v5634_v15, %v5633_v17 }
 0x599   :  { %v5644_v10 = vpack.c.bf16 %v5636_v54, %v5635_v31 }
 0x59e   :  { %6284 = vmatmul.mubr.msk.bf16.gmra.mrb[104].mxu1 %vm3593_vm12, %v5643_v2 }
 0x59f   :  { %5843 = vmatprep.mubr.bf16.mxu1 %v8591_v44 }
 0x5a6   :  { %6285 = vmatmul.mubr.msk.bf16.gmra.mrb[108].mxu1 %vm3593_vm12, %v5644_v10  ;;  %vm6118_vm12 = vcmask 203776  }
 0x611   :  { %v5775_v27 = vpop.f32.mrb[80].mxu1 }
 0x612   :  { %v5776_v55 = vadd.f32 %v5775_v27, %v13818_v42  ;;  %v5777_v45 = vpop.f32.mrb[81].mxu1 }
 0x613   :  { %v5778_v44 = vadd.f32 %v5777_v45, %v13820_v11  ;;  %v5779_v50 = vpop.f32.mrb[82].mxu1 }
 0x614   :  { %8482 = vtanh.f32 %v5776_v55  ;;  %v5780_v32 = vadd.f32 %v5779_v50, %v13818_v42  ;;  %v5781_v4 = vpop.f32.mrb[83].mxu1 }
 0x615   :  { %8484 = vtanh.f32 %v5778_v44  ;;  %v5782_v29 = vadd.f32 %v5781_v4, %v13820_v11 }
 0x616   :  { %8486 = vtanh.f32 %v5780_v32 }
 0x617   :  { %8488 = vtanh.f32 %v5782_v29 }
 0x619   :  { %v5785_v57 = vpop.f32.mrb[84].mxu1 }
 0x61a   :  { %v5786_v51 = vadd.f32 %v5785_v57, %v13818_v42  ;;  %v5787_v9 = vpop.f32.mrb[85].mxu1 }
 0x61b   :  { %v5788_v21 = vadd.f32 %v5787_v9, %v13820_v11  ;;  %v5789_v63 = vpop.f32.mrb[86].mxu1 }
 0x61c   :  { %8490 = vtanh.f32 %v5786_v51  ;;  %v5790_v60 = vadd.f32 %v5789_v63, %v13818_v42  ;;  %v5791_v37 = vpop.f32.mrb[87].mxu1 }
 0x61d   :  { %8492 = vtanh.f32 %v5788_v21  ;;  %v5792_v36 = vadd.f32 %v5791_v37, %v13820_v11 }
 0x61e   :  { %v8483_v3 = vpop.eup %8482  ;;  %8494 = vtanh.f32 %v5790_v60 }
 0x61f   :  { %v8485_v22 = vpop.eup %8484  ;;  %8496 = vtanh.f32 %v5792_v36 }
 0x620   :  { %v8487_v62 = vpop.eup %8486 }
 0x621   :  { %v8489_v39 = vpop.eup %8488  ;;  %v5886_v0 = vpack.c.bf16 %v8487_v62, %v8483_v3 }
 0x622   :  { %v5887_v56 = vpack.c.bf16 %v8489_v39, %v8485_v22 }
 0x624   :  { %6297 = vmatprep.mubr.msk.bf16.mxu0 %vm4929_vm1, %v5887_v56 }
 0x625   :  { %6046 = vmatmul.mubr.bf16.vlgmr.msra.gmra.mrb[96].mxu0 %v5886_v0 }
 0x626   :  { %v8491_v25 = vpop.eup %8490 }
 0x627   :  { %v8493_v58 = vpop.eup %8492 }
 0x628   :  { %v8495_v46 = vpop.eup %8494 }
 0x629   :  { %v8497_v41 = vpop.eup %8496  ;;  %v5888_v24 = vpack.c.bf16 %v8495_v46, %v8491_v25 }
 0x62a   :  { %v5889_v28 = vpack.c.bf16 %v8497_v41, %v8493_v58 }
 0x62c   :  { %6298 = vmatprep.mubr.msk.bf16.mxu0 %vm4929_vm1, %v5889_v28 }
 0x62d   :  { %6054 = vmatmul.mubr.bf16.gmra.mrb[100].mxu0 %v5888_v24 }
 0x64f   :  { %v5795_v34 = vpop.f32.mrb[88].mxu1 }
 0x650   :  { %v5796_v13 = vadd.f32 %v5795_v34, %v13818_v42  ;;  %v5797_v47 = vpop.f32.mrb[89].mxu1 }
 0x651   :  { %v5798_v33 = vadd.f32 %v5797_v47, %v13820_v11  ;;  %v5799_v61 = vpop.f32.mrb[90].mxu1 }
 0x652   :  { %8498 = vtanh.f32 %v5796_v13  ;;  %v5800_v26 = vadd.f32 %v5799_v61, %v13818_v42  ;;  %v5801_v52 = vpop.f32.mrb[91].mxu1 }
 0x653   :  { %8500 = vtanh.f32 %v5798_v33  ;;  %v5802_v1 = vadd.f32 %v5801_v52, %v13820_v11 }
 0x654   :  { %8502 = vtanh.f32 %v5800_v26 }
 0x655   :  { %8504 = vtanh.f32 %v5802_v1 }
 0x657   :  { %v5805_v12 = vpop.f32.mrb[92].mxu1 }
 0x658   :  { %v5806_v16 = vadd.f32 %v5805_v12, %v13818_v42  ;;  %v5807_v5 = vpop.f32.mrb[93].mxu1 }
 0x659   :  { %v5808_v20 = vadd.f32 %v5807_v5, %v13820_v11  ;;  %v5809_v19 = vpop.f32.mrb[94].mxu1 }
 0x65a   :  { %8506 = vtanh.f32 %v5806_v16  ;;  %v5810_v23 = vadd.f32 %v5809_v19, %v13818_v42  ;;  %v5811_v38 = vpop.f32.mrb[95].mxu1 }
 0x65b   :  { %8508 = vtanh.f32 %v5808_v20  ;;  %v5812_v30 = vadd.f32 %v5811_v38, %v13820_v11 }
 0x65c   :  { %v8499_v17 = vpop.eup %8498  ;;  %8510 = vtanh.f32 %v5810_v23 }
 0x65d   :  { %v8501_v40 = vpop.eup %8500  ;;  %8512 = vtanh.f32 %v5812_v30 }
 0x65e   :  { %v8503_v6 = vpop.eup %8502 }
 0x65f   :  { %v8505_v18 = vpop.eup %8504  ;;  %v5815_v15 = vpop.f32.mrb[96].mxu1  ;;  %v5890_v31 = vpack.c.bf16 %v8503_v6, %v8499_v17 }
 0x660   :  { %v5816_v54 = vadd.f32 %v5815_v15, %v13818_v42  ;;  %v5817_v35 = vpop.f32.mrb[97].mxu1  ;;  %v5891_v2 = vpack.c.bf16 %v8505_v18, %v8501_v40 }
 0x661   :  { %v5818_v10 = vadd.f32 %v5817_v35, %v13820_v11  ;;  %v5819_v53 = vpop.f32.mrb[98].mxu1 }
 0x662   :  { %8514 = vtanh.f32 %v5816_v54  ;;  %v5820_v14 = vadd.f32 %v5819_v53, %v13818_v42  ;;  %v5821_v48 = vpop.f32.mrb[99].mxu1  ;;  %6299 = vmatprep.mubr.msk.bf16.mxu0 %vm4929_vm1, %v5891_v2 }
 0x663   :  { %8516 = vtanh.f32 %v5818_v10  ;;  %v5822_v43 = vadd.f32 %v5821_v48, %v13820_v11  ;;  %6062 = vmatmul.mubr.bf16.gmra.mrb[104].mxu0 %v5890_v31 }
 0x664   :  { %v8507_v7 = vpop.eup %8506  ;;  %8518 = vtanh.f32 %v5820_v14 }
 0x665   :  { %v8509_v8 = vpop.eup %8508  ;;  %8520 = vtanh.f32 %v5822_v43 }
 0x666   :  { %v8511_v49 = vpop.eup %8510 }
 0x667   :  { %v8513_v59 = vpop.eup %8512  ;;  %v5892_v27 = vpack.c.bf16 %v8511_v49, %v8507_v7 }
 0x668   :  { %v5893_v55 = vpack.c.bf16 %v8513_v59, %v8509_v8 }
 0x669   :  { %v5825_v45 = vpop.f32.mrb[100].mxu1 }
 0x66a   :  { %v5826_v44 = vadd.f32 %v5825_v45, %v13818_v42  ;;  %v5827_v50 = vpop.f32.mrb[101].mxu1  ;;  %6300 = vmatprep.mubr.msk.bf16.mxu0 %vm4929_vm1, %v5893_v55 }
 0x66b   :  { %v5828_v32 = vadd.f32 %v5827_v50, %v13820_v11  ;;  %v5829_v4 = vpop.f32.mrb[102].mxu1  ;;  %6068 = vmatmul.mubr.bf16.gmra.mrb[108].mxu0 %v5892_v27 }
 0x66c   :  { %v8515_v29 = vpop.eup %8514  ;;  %8522 = vtanh.f32 %v5826_v44  ;;  %v5830_v57 = vadd.f32 %v5829_v4, %v13818_v42  ;;  %v5831_v51 = vpop.f32.mrb[103].mxu1 }
 0x66d   :  { %v8517_v9 = vpop.eup %8516  ;;  %8524 = vtanh.f32 %v5828_v32  ;;  %v5832_v21 = vadd.f32 %v5831_v51, %v13820_v11 }
 0x66e   :  { %v8519_v63 = vpop.eup %8518  ;;  %8526 = vtanh.f32 %v5830_v57 }
 0x66f   :  { %v8521_v60 = vpop.eup %8520  ;;  %8528 = vtanh.f32 %v5832_v21  ;;  %v5894_v37 = vpack.c.bf16 %v8519_v63, %v8515_v29 }
 0x670   :  { %v5895_v36 = vpack.c.bf16 %v8521_v60, %v8517_v9 }
 0x671   :  { %v5835_v3 = vpop.f32.mrb[104].mxu1 }
 0x672   :  { %v5836_v22 = vadd.f32 %v5835_v3, %v13818_v42  ;;  %v5837_v62 = vpop.f32.mrb[105].mxu1  ;;  %6301 = vmatprep.mubr.msk.bf16.mxu0 %vm4929_vm1, %v5895_v36 }
 0x673   :  { %v5838_v39 = vadd.f32 %v5837_v62, %v13820_v11  ;;  %v5839_v0 = vpop.f32.mrb[106].mxu1  ;;  %6074 = vmatmul.mubr.bf16.gmra.mrb[112].mxu0 %v5894_v37 }
 0x674   :  { %8530 = vtanh.f32 %v5836_v22  ;;  %v5840_v56 = vadd.f32 %v5839_v0, %v13818_v42  ;;  %v5841_v25 = vpop.f32.mrb[107].mxu1 }
 0x675   :  { %8532 = vtanh.f32 %v5838_v39  ;;  %v5842_v58 = vadd.f32 %v5841_v25, %v13820_v11 }
 0x676   :  { %v8523_v46 = vpop.eup %8522  ;;  %8534 = vtanh.f32 %v5840_v56 }
 0x677   :  { %v8525_v41 = vpop.eup %8524  ;;  %8536 = vtanh.f32 %v5842_v58 }
 0x678   :  { %v8527_v24 = vpop.eup %8526 }
 0x679   :  { %v8529_v28 = vpop.eup %8528  ;;  %v5845_v34 = vpop.f32.mrb[108].mxu1  ;;  %v5896_v13 = vpack.c.bf16 %v8527_v24, %v8523_v46 }
 0x67a   :  { %v5846_v47 = vadd.f32 %v5845_v34, %v13818_v42  ;;  %v5847_v33 = vpop.f32.mrb[109].mxu1  ;;  %v5897_v61 = vpack.c.bf16 %v8529_v28, %v8525_v41 }
 0x67b   :  { %v5848_v26 = vadd.f32 %v5847_v33, %v13820_v11  ;;  %v5849_v52 = vpop.f32.mrb[110].mxu1 }
 0x67c   :  { %8538 = vtanh.f32 %v5846_v47  ;;  %v5850_v1 = vadd.f32 %v5849_v52, %v13818_v42  ;;  %v5851_v12 = vpop.f32.mrb[111].mxu1  ;;  %6302 = vmatprep.mubr.msk.bf16.mxu0 %vm4929_vm1, %v5897_v61 }
 0x67d   :  { %8540 = vtanh.f32 %v5848_v26  ;;  %v5852_v16 = vadd.f32 %v5851_v12, %v13820_v11  ;;  %6082 = vmatmul.mubr.bf16.gmra.mrb[116].mxu0 %v5896_v13  ;;  %v6286_v11 = vld [vmem:[%s13895_s10] ss:$0 sm:$0xff]  ;;  %s8592_s10 = smov [#allocation2]  }
 0x67e   :  { %v8531_v5 = vpop.eup %8530  ;;  %8542 = vtanh.f32 %v5850_v1  ;;  %s6155_s14 = sshll.u32 %s8592_s10, 4  ;;  %s6156_s14 = int_to_ptr.vmem [resolvable:$true] %s6155_s14 }
 0x67f   :  { %v8533_v20 = vpop.eup %8532  ;;  %8544 = vtanh.f32 %v5852_v16  ;;  %s8551_s15 = scalar_lea.vmem %s6156_s14, 32  ;;  %p8556_p1 = scmp.lt.s32.totalorder %s6156_s14, %s6156_s14 }
 0x680   :  { %v8535_v19 = vpop.eup %8534  ;;  %p8552_p0 = scmp.ne.s32.totalorder %s6156_s14, %s8551_s15  ;;  %p8557_p2 = scmp.lt.s32.totalorder %s8551_s15, %s8551_s15 }
 0x681   :  { %v8537_v23 = vpop.eup %8536  ;;  %v5898_v38 = vpack.c.bf16 %v8535_v19, %v8531_v5 }
 0x682   :  { %v5899_v30 = vpack.c.bf16 %v8537_v23, %v8533_v20  ;;  %p8558_p3 = por %p8557_p2, %p8556_p1 }
 0x684   :  { %6303 = vmatprep.mubr.msk.bf16.mxu0 %vm4929_vm1, %v5899_v30  ;;  %p8559_p4 = pnand %p8558_p3, %p8552_p0 }
 0x685   :  { %6090 = vmatmul.mubr.bf16.gmra.mrb[120].mxu0 %v5898_v38 }
 0x686   :  { %v8539_v17 = vpop.eup %8538 }
 0x687   :  { %v8541_v42 = vpop.eup %8540 }
 0x688   :  { %v8543_v40 = vpop.eup %8542 }
 0x689   :  { %v8545_v6 = vpop.eup %8544  ;;  %v5900_v18 = vpack.c.bf16 %v8543_v40, %v8539_v17 }
 0x68a   :  { %v5901_v15 = vpack.c.bf16 %v8545_v6, %v8541_v42 }
 0x68c   :  { %6304 = vmatprep.mubr.msk.bf16.mxu0 %vm4929_vm1, %v5901_v15  ;;  %vm14380_vm1 = vmmov %vm14379_vm3 }
 0x68d   :  { %6096 = vmatmul.mubr.bf16.gmra.mrb[124].mxu0 %v5900_v18  ;;  %vm14381_vm0 = vmmov %vm14380_vm1 }
 0x68e   :  { %vm14382_vm4 = vmmov %vm14381_vm0 }
 0x6f8   :  { %v6047_v31 = vpop.f32.mrb[96].mxu0 }
 0x6f9   :  { %v6049_v54 = vpop.f32.mrb[97].mxu0  ;;  %v6048_v2 = vadd.f32 %v6286_v11, %v6047_v31 }
 0x6fa   :  { %v6050_v35 = vpop.f32.mrb[98].mxu0 }
 0x6fb   :  { %v6051_v10 = vadd.f32 %v6286_v11, %v6050_v35  ;;  %v6052_v53 = vpop.f32.mrb[99].mxu0  ;;  %v6102_v48 = vmax.f32 %v6048_v2, 0.0 }
 0x6fd   :  { %v6103_v14 = vmax.f32 %v6051_v10, 0.0 }
 0x6ff   :  { %v6111_v43 = vrot.slane %v6103_v14, 4 }
 0x700   :  { %v6055_v7 = vpop.f32.mrb[100].mxu0 }
 0x701   :  { %v6116_v8 = vsel %vm14379_vm3, %v6102_v48, %v6111_v43  ;;  %v6057_v49 = vpop.f32.mrb[101].mxu0  ;;  %v6056_v27 = vadd.f32 %v6286_v11, %v6055_v7 }
 0x702   :  { %v6058_v59 = vpop.f32.mrb[102].mxu0  ;;  %v6119_v29 = vsel %vm6118_vm12, %v6116_v8, 0.0 }
 0x703   :  { %v6059_v55 = vadd.f32 %v6286_v11, %v6058_v59  ;;  %v6060_v45 = vpop.f32.mrb[103].mxu0  ;;  %v6104_v50 = vmax.f32 %v6056_v27, 0.0 }
 0x705   :  { %v6105_v44 = vmax.f32 %v6059_v55, 0.0 }
 0x707   :  { %v6114_v32 = vrot.slane %v6105_v44, 4 }
 0x709   :  { %v6117_v4 = vsel %vm14380_vm1, %v6104_v50, %v6114_v32 }
 0x70a   :  { %v6120_v57 = vsel %vm6118_vm12, %v6117_v4, 0.0 }
 0x70b   :  { %v6121_v51 = vadd.f32 %v6120_v57, %v6119_v29 }
 0x70d   :  { %v6122_v33 = vrot.slane %v6121_v51, 4 }
 0x70f   :  { %v6123_v12 = vadd.f32 %v6122_v33, %v6121_v51 }
 0x711   :  { %v6124_v6 = vrot.slane %v6123_v12, 2 }
 0x736   :  { %v6063_v9 = vpop.f32.mrb[104].mxu0 }
 0x737   :  { %v6064_v21 = vpop.f32.mrb[105].mxu0 }
 0x738   :  { %v6065_v63 = vpop.f32.mrb[106].mxu0 }
 0x739   :  { %v6066_v60 = vpop.f32.mrb[107].mxu0 }
 0x73e   :  { %v6069_v37 = vpop.f32.mrb[108].mxu0 }
 0x73f   :  { %v6070_v36 = vpop.f32.mrb[109].mxu0 }
 0x740   :  { %v6071_v3 = vpop.f32.mrb[110].mxu0 }
 0x741   :  { %v6072_v22 = vpop.f32.mrb[111].mxu0 }
 0x746   :  { %v6075_v62 = vpop.f32.mrb[112].mxu0 }
 0x747   :  { %v6077_v39 = vpop.f32.mrb[113].mxu0  ;;  %v6076_v56 = vadd.f32 %v6286_v11, %v6075_v62 }
 0x748   :  { %v6078_v0 = vpop.f32.mrb[114].mxu0 }
 0x749   :  { %v6079_v25 = vadd.f32 %v6286_v11, %v6078_v0  ;;  %v6080_v58 = vpop.f32.mrb[115].mxu0  ;;  %v6106_v41 = vmax.f32 %v6076_v56, 0.0 }
 0x74b   :  { %v6107_v46 = vmax.f32 %v6079_v25, 0.0 }
 0x74d   :  { %v6129_v24 = vrot.slane %v6107_v46, 4 }
 0x74f   :  { %v6134_v28 = vsel %vm14381_vm0, %v6106_v41, %v6129_v24 }
 0x750   :  { %v6083_v34 = vpop.f32.mrb[116].mxu0  ;;  %v6136_v38 = vsel %vm6118_vm12, %v6134_v28, 0.0 }
 0x751   :  { %v6085_v13 = vpop.f32.mrb[117].mxu0  ;;  %v6084_v61 = vadd.f32 %v6286_v11, %v6083_v34 }
 0x752   :  { %v6086_v47 = vpop.f32.mrb[118].mxu0 }
 0x753   :  { %v6087_v26 = vadd.f32 %v6286_v11, %v6086_v47  ;;  %v6088_v52 = vpop.f32.mrb[119].mxu0  ;;  %v6108_v16 = vmax.f32 %v6084_v61, 0.0  ;;  %v6125_v11 = vadd.f32 %v6124_v6, %v6123_v12 }
 0x755   :  { %v6109_v1 = vmax.f32 %v6087_v26, 0.0  ;;  %v6126_v53 = vrot.slane %v6125_v11, 1 }
 0x757   :  { %v6132_v5 = vrot.slane %v6109_v1, 4  ;;  %v6127_v43 = vadd.f32 %v6126_v53, %v6125_v11 }
 0x758   :  { %v6091_v20 = vpop.f32.mrb[120].mxu0 }
 0x759   :  { %v6135_v19 = vsel %vm14382_vm4, %v6108_v16, %v6132_v5  ;;  %v6092_v23 = vpop.f32.mrb[121].mxu0 }
 0x75a   :  { %v6137_v30 = vsel %vm6118_vm12, %v6135_v19, 0.0  ;;  %v6093_v17 = vpop.f32.mrb[122].mxu0 }
 0x75b   :  { %v6138_v42 = vadd.f32 %v6137_v30, %v6136_v38  ;;  %v6094_v40 = vpop.f32.mrb[123].mxu0 }
 0x75d   :  { %v6139_v18 = vrot.slane %v6138_v42, 4 }
 0x75f   :  { %v6140_v15 = vadd.f32 %v6139_v18, %v6138_v42 }
 0x760   :  { %v6097_v31 = vpop.f32.mrb[124].mxu0 }
 0x761   :  { %v6098_v54 = vpop.f32.mrb[125].mxu0  ;;  %v6141_v35 = vrot.slane %v6140_v15, 2 }
 0x762   :  { %v6099_v2 = vpop.f32.mrb[126].mxu0 }
 0x763   :  { %v6100_v10 = vpop.f32.mrb[127].mxu0  ;;  %v6142_v14 = vadd.f32 %v6141_v35, %v6140_v15 }
 0x765   :  { %v6143_v48 = vrot.slane %v6142_v14, 1 }
 0x767   :  { %v6144_v7 = vadd.f32 %v6143_v48, %v6142_v14 }
 0x769   :  { %v6146_v8 = vsel %vm6145_vm8, %v6127_v43, %v6144_v7 }
 0x76a   :  { %6148 = vst.msk [vmem:[#allocation2] sm:$0x3] %vm6147_vm14, %v6146_v8 }
 0x76b   :  { %8562 = shalt.err (!%p8559_p4)
}
 0x76c   :  { %s8563_s2 = scalar_lea.hbm %s13896_s11, 32 }
 0x76d   :  { %p8564_p5 = scmp.ne.s32.totalorder %s13896_s11, %s8563_s2  ;;  %p8567_p6 = scmp.lt.u32.totalorder %s8563_s2, %s13896_s11 }
 0x76f   :  { %p8569_p7 = pnand %p8567_p6, %p8564_p5 }
 0x771   :  { %8572 = shalt.err (!%p8569_p7)
}
 0x772   :  { %6158 = dma.vmem_to_hbm [thread:$0]  %s6156_s14, 32, %s13896_s11, [#allocation3]  }
 0x773   :  { %8573 = dma.done.wait [#allocation3], 32  }
 0x774   :  { %8574 = vsyncadd [#allocation3], 4294967264 }
 0x775   :  { %6162 = vsyncpa [#allocation3], 1 }

</bundles_post_ra>
